<compile_context>
chip_gen: v7x
topology: tpu7x:2x2x1
jax: 0.10.0
libtpu: 0.0.40
codegen_flags: <defaults>
</compile_context>

<pallas_src>
import jax
import jax.numpy as jnp
from jax.experimental import pallas as pl
from jax.experimental.pallas import tpu as pltpu

IN_DIM = 120
HID_DIM = 2400
OUT_DIM = 1024
NEG_SLOPE = 0.01  # PyTorch nn.LeakyReLU default

IN_PAD = 128      # 120 -> 128      : full 128-lane K for matmul-1
HID_PAD = 2432    # 2400 -> 19*128  : lane-aligned N (matmul-1) / K (matmul-2)
# OUT_DIM = 1024 is already a multiple of 128.


def _round_up(x, m):
    return (x + m - 1) // m * m


def _leaky_relu(x):
    # max(x, a*x) == LeakyReLU_a(x) for 0 < a < 1: one VPU max vs cmp+select.
    return jnp.maximum(x, NEG_SLOPE * x)


def osm_mlp_kernel(x_ref, w1_ref, b1_ref, w2_ref, b2_ref, o_ref):
    # x : (BM, 128)     bf16 | w1: (128, 2432)  bf16 | b1: (1, 2432) f32
    # w2: (2432, 1024)  bf16 | b2: (1, 1024)    f32  | o : (BM, 1024) out dtype
    h = jnp.dot(x_ref[...], w1_ref[...], preferred_element_type=jnp.float32)
    h = _leaky_relu(h + b1_ref[...])          # bias add + activation in f32
    y = jnp.dot(h.astype(w2_ref.dtype), w2_ref[...],
                preferred_element_type=jnp.float32)
    y = _leaky_relu(y + b2_ref[...])
    o_ref[...] = y.astype(o_ref.dtype)


def prepare_params(w1, b1, w2, b2, *, weight_dtype=jnp.bfloat16):
    """One-time parameter prep (do this at load time, NOT per forward call).

    w1: (120, 2400), b1: (2400,), w2: (2400, 1024), b2: (1024,) -- weights are
    stored (in, out), i.e. transposed relative to torch's (out, in) layout.
    Returns lane-aligned zero-padded bf16 weights and f32 biases.
    """
    w1_p = jnp.pad(w1.astype(jnp.float32),
                   ((0, IN_PAD - IN_DIM), (0, HID_PAD - HID_DIM))
                   ).astype(weight_dtype)
    w2_p = jnp.pad(w2.astype(jnp.float32),
                   ((0, HID_PAD - HID_DIM), (0, 0))).astype(weight_dtype)
    b1_p = jnp.pad(b1.astype(jnp.float32),
                   (0, HID_PAD - HID_DIM)).reshape(1, HID_PAD)
    b2_p = b2.astype(jnp.float32).reshape(1, OUT_DIM)
    return w1_p, b1_p, w2_p, b2_p


def osm_mlp(osm_traj, prepared_params, *, block_m=512, out_dtype=jnp.float32):
    """Fused OsmMLP forward.

    osm_traj: (B, ...) with prod(...) == 120 (matches torch .reshape(B, -1)).
    prepared_params: output of prepare_params() (pre-padded / pre-cast).
    """
    w1_p, b1_p, w2_p, b2_p = prepared_params
    B = osm_traj.shape[0]
    x = osm_traj.reshape(B, -1)
    assert x.shape[1] == IN_DIM

    # ---- batch tiling ------------------------------------------------------
    # bf16 activations pack 16 rows per sublane group -> pad B to mult of 16.
    b_pad16 = _round_up(B, 16)
    bm = min(block_m, b_pad16)
    b_pad = _round_up(b_pad16, bm)
    num_tiles = b_pad // bm
    if num_tiles > 1 and num_tiles % 2 == 1:
        # Keep the parallel axis evenly splittable across v7x's 2 TensorCores.
        num_tiles += 1
        b_pad = num_tiles * bm

    x_p = jnp.pad(x.astype(jnp.bfloat16),
                  ((0, b_pad - B), (0, IN_PAD - IN_DIM)))

    resident = pl.Buffered(1)   # grid-invariant operands: no double-buffering

    out = pl.pallas_call(
        osm_mlp_kernel,
        out_shape=jax.ShapeDtypeStruct((b_pad, OUT_DIM), out_dtype),
        grid_spec=pltpu.PrefetchScalarGridSpec(
            num_scalar_prefetch=0,
            grid=(num_tiles,),
            in_specs=[
                # x: batch-tiled, pipelined under the matmuls.
                pl.BlockSpec((bm, IN_PAD), lambda i: (i, 0)),
                # Weights / biases: constant index_map -> VMEM-resident,
                # single-buffered.
                pl.BlockSpec((IN_PAD, HID_PAD), lambda i: (0, 0),
                             pipeline_mode=resident),
                pl.BlockSpec((1, HID_PAD), lambda i: (0, 0),
                             pipeline_mode=resident),
                pl.BlockSpec((HID_PAD, OUT_DIM), lambda i: (0, 0),
                             pipeline_mode=resident),
                pl.BlockSpec((1, OUT_DIM), lambda i: (0, 0),
                             pipeline_mode=resident),
            ],
            out_specs=pl.BlockSpec((bm, OUT_DIM), lambda i: (i, 0)),
        ),
        compiler_params=pltpu.CompilerParams(
            dimension_semantics=(
                ("parallel",) if num_tiles > 1 else ("arbitrary",)),
            vmem_limit_bytes=48 * 1024 * 1024,   # fits v7x's 64 MiB physical
        ),
    )(x_p, w1_p, b1_p, w2_p, b2_p)

    return out[:B]


def init_params(key, dtype=jnp.float32):
    """Deterministic synthetic params with the shapes implied by __init__."""
    k1, k2, k3, k4 = jax.random.split(key, 4)
    # Stored transposed relative to torch's (out, in) so the kernel does x @ W.
    w1 = jax.random.normal(k1, (IN_DIM, HID_DIM), dtype) * 0.02
    b1 = jax.random.normal(k2, (HID_DIM,), dtype) * 0.02
    w2 = jax.random.normal(k3, (HID_DIM, OUT_DIM), dtype) * 0.02
    b2 = jax.random.normal(k4, (OUT_DIM,), dtype) * 0.02
    return w1, b1, w2, b2


def reference(osm_traj, w1, b1, w2, b2, compute_dtype=jnp.float32):
    """Pure-JAX reference. compute_dtype=bf16 mimics the kernel's mixed
    precision (bf16 MXU inputs, f32 accumulation)."""
    q = lambda a: a.astype(compute_dtype).astype(jnp.float32)
    x = osm_traj.reshape(osm_traj.shape[0], -1).astype(jnp.float32)
    h = jax.nn.leaky_relu(q(x) @ q(w1) + b1.astype(jnp.float32), NEG_SLOPE)
    y = jax.nn.leaky_relu(q(h) @ q(w2) + b2.astype(jnp.float32), NEG_SLOPE)
    return y


if __name__ == "__main__":
    key = jax.random.PRNGKey(0)
    kx, kp = jax.random.split(key)

    # Small example input: batch=2, features reshape-able to 120 (e.g. (2, 24, 5)).
    osm_traj = jax.random.normal(kx, (2, 24, 5), jnp.float32)
    w1, b1, w2, b2 = init_params(kp)

    # One-time parameter prep (hoisted out of the per-call path).
    prepared = prepare_params(w1, b1, w2, b2)
    prepared = jax.block_until_ready(prepared)

    out = osm_mlp(osm_traj, prepared)
    out = jax.block_until_ready(out)

    ref_bf16 = reference(osm_traj, w1, b1, w2, b2, compute_dtype=jnp.bfloat16)
    ref_f32 = reference(osm_traj, w1, b1, w2, b2, compute_dtype=jnp.float32)

    assert out.shape == (2, OUT_DIM)
    # Exact-path check: same bf16-quantized weights/activations, f32 accumulation.
    assert jnp.allclose(out, ref_bf16, atol=1e-3, rtol=1e-3)
    # Semantic check vs the full-f32 module forward (bf16 quantization noise).
    assert jnp.allclose(out, ref_f32, atol=5e-2, rtol=5e-2)
    print("KERNEL_OK")
</pallas_src>

<mosaic_0001>
module attributes {stable_mosaic.version = 11 : i64} {
  func.func @osm_mlp_kernel(%arg0: i32, %arg1: memref<16x128xbf16, #tpu.memory_space<vmem>>, %arg2: memref<128x2432xbf16, #tpu.memory_space<vmem>>, %arg3: memref<1x2432xf32, #tpu.memory_space<vmem>>, %arg4: memref<2432x1024xbf16, #tpu.memory_space<vmem>>, %arg5: memref<1x1024xf32, #tpu.memory_space<vmem>>, %arg6: memref<16x1024xf32, #tpu.memory_space<vmem>>) attributes {dimension_semantics = [#tpu.dimension_semantics<arbitrary>], iteration_bounds = array<i64: 1>, scalar_prefetch = 0 : i64, scratch_operands = 0 : i64, tpu.core_type = #tpu.core_type<tc>, window_params = [{transform_indices = @transform_0, window_bounds = array<i64: 16, 128>}, {pipeline_mode = #tpu.pipeline_mode<synchronous>, transform_indices = @transform_1, window_bounds = array<i64: 128, 2432>}, {pipeline_mode = #tpu.pipeline_mode<synchronous>, transform_indices = @transform_2, window_bounds = array<i64: 1, 2432>}, {pipeline_mode = #tpu.pipeline_mode<synchronous>, transform_indices = @transform_3, window_bounds = array<i64: 2432, 1024>}, {pipeline_mode = #tpu.pipeline_mode<synchronous>, transform_indices = @transform_4, window_bounds = array<i64: 1, 1024>}, {transform_indices = @transform_5, window_bounds = array<i64: 16, 1024>}]} {
    %c0 = arith.constant 0 : index
    %c0_0 = arith.constant 0 : index
    %0 = vector.load %arg1[%c0, %c0_0] : memref<16x128xbf16, #tpu.memory_space<vmem>>, vector<16x128xbf16>
    %c0_1 = arith.constant 0 : index
    %c0_2 = arith.constant 0 : index
    %1 = vector.load %arg2[%c0_1, %c0_2] : memref<128x2432xbf16, #tpu.memory_space<vmem>>, vector<128x2432xbf16>
    %cst = arith.constant dense<0.000000e+00> : vector<16x2432xf32>
    %2 = tpu.matmul %0, %1, %cst {dimension_numbers = #tpu.dot_dimension_numbers<[1], [0], [0], [1], [0, 0, 1, 1], [], []>} : vector<16x128xbf16>, vector<128x2432xbf16>, vector<16x2432xf32> -> vector<16x2432xf32>
    %c0_3 = arith.constant 0 : index
    %c0_4 = arith.constant 0 : index
    %3 = vector.load %arg3[%c0_3, %c0_4] : memref<1x2432xf32, #tpu.memory_space<vmem>>, vector<1x2432xf32>
    %4 = vector.broadcast %3 : vector<1x2432xf32> to vector<16x2432xf32>
    %5 = arith.addf %2, %4 : vector<16x2432xf32>
    %cst_5 = arith.constant 0.00999999977 : f32
    %6 = vector.broadcast %cst_5 : f32 to vector<16x2432xf32>
    %7 = arith.mulf %6, %5 : vector<16x2432xf32>
    %8 = arith.maximumf %5, %7 : vector<16x2432xf32>
    %9 = arith.truncf %8 : vector<16x2432xf32> to vector<16x2432xbf16>
    %c0_6 = arith.constant 0 : index
    %c0_7 = arith.constant 0 : index
    %10 = vector.load %arg4[%c0_6, %c0_7] : memref<2432x1024xbf16, #tpu.memory_space<vmem>>, vector<2432x1024xbf16>
    %cst_8 = arith.constant dense<0.000000e+00> : vector<16x1024xf32>
    %11 = tpu.matmul %9, %10, %cst_8 {dimension_numbers = #tpu.dot_dimension_numbers<[1], [0], [0], [1], [0, 0, 1, 1], [], []>} : vector<16x2432xbf16>, vector<2432x1024xbf16>, vector<16x1024xf32> -> vector<16x1024xf32>
    %c0_9 = arith.constant 0 : index
    %c0_10 = arith.constant 0 : index
    %12 = vector.load %arg5[%c0_9, %c0_10] : memref<1x1024xf32, #tpu.memory_space<vmem>>, vector<1x1024xf32>
    %13 = vector.broadcast %12 : vector<1x1024xf32> to vector<16x1024xf32>
    %14 = arith.addf %11, %13 : vector<16x1024xf32>
    %cst_11 = arith.constant 0.00999999977 : f32
    %15 = vector.broadcast %cst_11 : f32 to vector<16x1024xf32>
    %16 = arith.mulf %15, %14 : vector<16x1024xf32>
    %17 = arith.maximumf %14, %16 : vector<16x1024xf32>
    %c0_12 = arith.constant 0 : index
    %c0_13 = arith.constant 0 : index
    %18 = vector.load %arg6[%c0_12, %c0_13] : memref<16x1024xf32, #tpu.memory_space<vmem>>, vector<16x1024xf32>
    tpu.vector_store %arg6[%c0_12, %c0_13], %17 {strides = array<i32>} : memref<16x1024xf32, #tpu.memory_space<vmem>>, vector<16x1024xf32>,
    return
  }
  func.func @transform_0(%arg0: i32) -> (i32, i32) {
    %c0_i32 = arith.constant 0 : i32
    %c0_i32_0 = arith.constant 0 : i32
    return %arg0, %c0_i32 : i32, i32
  }
  func.func @transform_1(%arg0: i32) -> (i32, i32) {
    %c0_i32 = arith.constant 0 : i32
    %c0_i32_0 = arith.constant 0 : i32
    %c0_i32_1 = arith.constant 0 : i32
    return %c0_i32, %c0_i32_0 : i32, i32
  }
  func.func @transform_2(%arg0: i32) -> (i32, i32) {
    %c0_i32 = arith.constant 0 : i32
    %c0_i32_0 = arith.constant 0 : i32
    %c0_i32_1 = arith.constant 0 : i32
    return %c0_i32, %c0_i32_0 : i32, i32
  }
  func.func @transform_3(%arg0: i32) -> (i32, i32) {
    %c0_i32 = arith.constant 0 : i32
    %c0_i32_0 = arith.constant 0 : i32
    %c0_i32_1 = arith.constant 0 : i32
    return %c0_i32, %c0_i32_0 : i32, i32
  }
  func.func @transform_4(%arg0: i32) -> (i32, i32) {
    %c0_i32 = arith.constant 0 : i32
    %c0_i32_0 = arith.constant 0 : i32
    %c0_i32_1 = arith.constant 0 : i32
    return %c0_i32, %c0_i32_0 : i32, i32
  }
  func.func @transform_5(%arg0: i32) -> (i32, i32) {
    %c0_i32 = arith.constant 0 : i32
    %c0_i32_0 = arith.constant 0 : i32
    return %arg0, %c0_i32 : i32, i32
  }
}

</mosaic_0001>

<bundles_post_ra>
// kernel: tpu_custom_call.1
= control target key start
LH: loop header
LB: loop body
LE: loop exit
PB: predicated region body
PF: predicated region fallthrough
CT: control target
= control target key end

     0   :  { %10 = vsyncpa [#allocation3], 0  ;;  %s13077_s0 = inlined_call_operand.hbm [shape: bf16[16,128], index: 0, kind: input, shape index: {}]   ;;  %s13078_s1 = inlined_call_operand.hbm [shape: bf16[128,2432], index: 1, kind: input, shape index: {}]   ;;  %s13079_s2 = inlined_call_operand.hbm [shape: f32[1,2432], index: 2, kind: input, shape index: {}]   ;;  %s13080_s3 = inlined_call_operand.hbm [shape: bf16[2432,1024], index: 3, kind: input, shape index: {}]   ;;  %s13081_s4 = inlined_call_operand.hbm [shape: f32[1,1024], index: 4, kind: input, shape index: {}]   ;;  %s13082_s5 = inlined_call_operand.hbm [shape: f32[16,1024], index: 5, kind: output, shape index: {}]  }
   0x1   :  { %11 = vsyncpa [#allocation6], 0 }
   0x2   :  { %12 = vsyncpa [#allocation9], 0 }
   0x3   :  { %13 = vsyncpa [#allocation4], 0  ;;  %s12711_s18 = smov [#allocation5]   ;;  %s12571_s22 = scalar_lea.hbm %s13078_s1, 19456 }
   0x4   :  { %s31_s19 = sshll.u32 %s12711_s18, 4  ;;  %p12572_p0 = scmp.ne.s32.totalorder %s13078_s1, %s12571_s22  ;;  %s32_s19 = int_to_ptr.vmem [resolvable:$true] %s31_s19 }
   0x5   :  { %p12575_p1 = scmp.lt.u32.totalorder %s12571_s22, %s13078_s1 }
   0x7   :  { %p12577_p2 = pnand %p12575_p1, %p12572_p0 }
   0x9   :  { %12580 = shalt.err (!%p12577_p2)
}
   0xa   :  { %s12581_s27 = scalar_lea.vmem %s32_s19, 19456  ;;  %p12586_p4 = scmp.lt.s32.totalorder %s32_s19, %s32_s19 }
   0xb   :  { %p12582_p3 = scmp.ne.s32.totalorder %s32_s19, %s12581_s27  ;;  %p12587_p5 = scmp.lt.s32.totalorder %s12581_s27, %s12581_s27 }
   0xd   :  { %p12588_p6 = por %p12587_p5, %p12586_p4 }
   0xf   :  { %p12589_p7 = pnand %p12588_p6, %p12582_p3 }
  0x11   :  { %12592 = shalt.err (!%p12589_p7)
}
  0x12   :  { %s12712_s28 = smov 1216   ;;  %s12713_s29 = smov 76  }
  0x13   :  { %37 = dma.hbm_to_vmem [thread:$0]  %s13078_s1, 19456, %s32_s19, [#allocation6], %s12712_s28, %s12712_s28, %s12713_s29  }
  0x14   :  { %s12714_s7 = smov [#allocation8]   ;;  %s12593_s11 = scalar_lea.hbm %s13080_s3, 155648 }
  0x15   :  { %s53_s8 = sshll.u32 %s12714_s7, 4  ;;  %p12594_p8 = scmp.ne.s32.totalorder %s13080_s3, %s12593_s11  ;;  %s54_s8 = int_to_ptr.vmem [resolvable:$true] %s53_s8 }
  0x16   :  { %p12597_p9 = scmp.lt.u32.totalorder %s12593_s11, %s13080_s3 }
  0x18   :  { %p12599_p10 = pnand %p12597_p9, %p12594_p8 }
  0x1a   :  { %12602 = shalt.err (!%p12599_p10)
}
  0x1b   :  { %s12603_s16 = scalar_lea.vmem %s54_s8, 155648  ;;  %p12608_p12 = scmp.lt.s32.totalorder %s54_s8, %s54_s8 }
  0x1c   :  { %p12604_p11 = scmp.ne.s32.totalorder %s54_s8, %s12603_s16  ;;  %p12609_p13 = scmp.lt.s32.totalorder %s12603_s16, %s12603_s16 }
  0x1e   :  { %p12610_p0 = por %p12609_p13, %p12608_p12 }
  0x20   :  { %p12611_p1 = pnand %p12610_p0, %p12604_p11 }
  0x22   :  { %12614 = shalt.err (!%p12611_p1)
}
  0x23   :  { %s12715_s1 = smov 512   ;;  %s12716_s17 = smov 32  }
  0x24   :  { %59 = dma.hbm_to_vmem [thread:$0]  %s13080_s3, 155648, %s54_s8, [#allocation9], %s12715_s1, %s12715_s1, %s12716_s17  }
  0x25   :  { %s12717_s20 = smov [#allocation2]   ;;  %s12615_s24 = scalar_lea.hbm %s13077_s0, 128 }
  0x26   :  { %s19_s21 = sshll.u32 %s12717_s20, 4  ;;  %p12616_p2 = scmp.ne.s32.totalorder %s13077_s0, %s12615_s24  ;;  %s20_s21 = int_to_ptr.vmem [resolvable:$true] %s19_s21 }
  0x27   :  { %p12619_p3 = scmp.lt.u32.totalorder %s12615_s24, %s13077_s0 }
  0x29   :  { %p12621_p4 = pnand %p12619_p3, %p12616_p2 }
  0x2b   :  { %12624 = shalt.err (!%p12621_p4)
}
  0x2c   :  { %s12625_s29 = scalar_lea.vmem %s20_s21, 128  ;;  %p12630_p6 = scmp.lt.s32.totalorder %s20_s21, %s20_s21 }
  0x2d   :  { %p12626_p5 = scmp.ne.s32.totalorder %s20_s21, %s12625_s29  ;;  %p12631_p7 = scmp.lt.s32.totalorder %s12625_s29, %s12625_s29 }
  0x2f   :  { %p12632_p8 = por %p12631_p7, %p12630_p6 }
  0x31   :  { %p12633_p9 = pnand %p12632_p8, %p12626_p5 }
  0x33   :  { %12636 = shalt.err (!%p12633_p9)
}
  0x34   :  { %s12718_s3 = smov 64   ;;  %s12719_s30 = smov 4  }
  0x35   :  { %25 = dma.hbm_to_vmem [thread:$0]  %s13077_s0, 128, %s20_s21, [#allocation3], %s12718_s3, %s12718_s3, %s12719_s30  }
  0x36   :  { %s12720_s8 = smov [#allocation7]   ;;  %s12721_s10 = smov [#allocation10]  }
  0x37   :  { %s44_s9 = sshll.u32 %s12720_s8, 4  ;;  %s66_s11 = sshll.u32 %s12721_s10, 4  ;;  %s45_s9 = int_to_ptr.vmem [resolvable:$true] %s44_s9  ;;  %s67_s11 = int_to_ptr.vmem [resolvable:$true] %s66_s11 }
  0x38   :  { %s12637_s14 = scalar_lea.hbm %s13079_s2, 304 }
  0x39   :  { %p12638_p10 = scmp.ne.s32.totalorder %s13079_s2, %s12637_s14  ;;  %p12641_p11 = scmp.lt.u32.totalorder %s12637_s14, %s13079_s2 }
  0x3b   :  { %p12643_p12 = pnand %p12641_p11, %p12638_p10 }
  0x3d   :  { %12646 = shalt.err (!%p12643_p12)
}
  0x3e   :  { %s12647_s0 = scalar_lea.vmem %s45_s9, 304  ;;  %s12651_s18 = scalar_lea.vmem %s45_s9, 320 }
  0x3f   :  { %p12648_p13 = scmp.ne.s32.totalorder %s45_s9, %s12647_s0  ;;  %p12652_p0 = scmp.lt.s32.totalorder %s45_s9, %s45_s9 }
  0x40   :  { %p12653_p1 = scmp.lt.s32.totalorder %s12651_s18, %s12647_s0 }
  0x42   :  { %p12654_p2 = por %p12653_p1, %p12652_p0 }
  0x44   :  { %p12655_p3 = pnand %p12654_p2, %p12648_p13 }
  0x46   :  { %12658 = shalt.err (!%p12655_p3)
}
  0x47   :  { %47 = dma.hbm_to_vmem [thread:$0]  %s13079_s2, 304, %s45_s9, [#allocation6]  }
  0x48   :  { %s12659_s23 = scalar_lea.hbm %s13081_s4, 128 }
  0x49   :  { %p12660_p4 = scmp.ne.s32.totalorder %s13081_s4, %s12659_s23  ;;  %p12663_p5 = scmp.lt.u32.totalorder %s12659_s23, %s13081_s4 }
  0x4b   :  { %p12665_p6 = pnand %p12663_p5, %p12660_p4 }
  0x4d   :  { %12668 = shalt.err (!%p12665_p6)
}
  0x4e   :  { %s12669_s28 = scalar_lea.vmem %s67_s11, 128  ;;  %p12674_p8 = scmp.lt.s32.totalorder %s67_s11, %s67_s11 }
  0x4f   :  { %p12670_p7 = scmp.ne.s32.totalorder %s67_s11, %s12669_s28  ;;  %p12675_p9 = scmp.lt.s32.totalorder %s12669_s28, %s12669_s28 }
  0x51   :  { %p12676_p10 = por %p12675_p9, %p12674_p8 }
  0x53   :  { %p12677_p11 = pnand %p12676_p10, %p12670_p7 }
  0x55   :  { %12680 = shalt.err (!%p12677_p11)
}
  0x56   :  { %69 = dma.hbm_to_vmem [thread:$0]  %s13081_s4, 128, %s67_s11, [#allocation9]  }
  0x57   :  { %12703 = dma.done.wait [#allocation3], 128  }
  0x58   :  { %12704 = vsyncadd [#allocation3], 4294967168 }
  0x59   :  { %12705 = dma.done.wait [#allocation6], 19760  }
  0x5a   :  { %12706 = vsyncadd [#allocation6], 4294947536 }
  0x5b   :  { %12707 = dma.done.wait [#allocation9], 155776  }
  0x5c   :  { %12708 = vsyncadd [#allocation9], 4294811520  ;;  %v12722_v0 = vmov 0   ;;  %v12345_v1 = vld [vmem:[#allocation5 + $0x4] ss:$76 sps:$4 sm:$0xff]   ;;  %v12821_v28 = vld [vmem:[#allocation2] sm:$0xff]  }
  0x5d   :  { %1155 = vmatprep.mubr.bf16.mxu0 %v12722_v0  ;;  %1198 = vmatprep.mubr.bf16.mxu1 %v12722_v0  ;;  %v12347_v2 = vld [vmem:[#allocation5] ss:$76 sps:$4 sm:$0xff]   ;;  %v12348_v3 = vld [vmem:[#allocation5 + $0x9c] ss:$76 sps:$4 sm:$0xff]   ;;  %v12350_v4 = vld [vmem:[#allocation5 + $0x98] ss:$76 sps:$4 sm:$0xff]  }
  0x5e   :  { %1123 = vmatprep.subr.bf16.mxu0 %v12345_v1  ;;  %v12351_v5 = vld [vmem:[#allocation5 + $0x134] ss:$76 sps:$4 sm:$0xff]   ;;  %v12353_v6 = vld [vmem:[#allocation5 + $0x130] ss:$76 sps:$4 sm:$0xff]   ;;  %v12354_v7 = vld [vmem:[#allocation5 + $0x1cc] ss:$76 sps:$4 sm:$0xff]  }
  0x5f   :  { %1124 = vmatpush1.bf16.msra.mxu0 %v12347_v2  ;;  %v12366_v8 = vld [vmem:[#allocation5 + $0xc] ss:$76 sps:$4 sm:$0xff]   ;;  %v12356_v9 = vld [vmem:[#allocation5 + $0x1c8] ss:$76 sps:$4 sm:$0xff]   ;;  %v12357_v10 = vld [vmem:[#allocation5 + $0x264] ss:$76 sps:$4 sm:$0xff]  }
  0x60   :  { %1125 = vmatprep.subr.bf16.mxu0 %v12348_v3  ;;  %v12370_v11 = vld [vmem:[#allocation5 + $0x8] ss:$76 sps:$4 sm:$0xff]   ;;  %1166 = vmatprep.subr.bf16.mxu1 %v12366_v8  ;;  %v12372_v12 = vld [vmem:[#allocation5 + $0xa4] ss:$76 sps:$4 sm:$0xff]   ;;  %v12375_v13 = vld [vmem:[#allocation5 + $0xa0] ss:$76 sps:$4 sm:$0xff]  }
  0x61   :  { %1167 = vmatpush1.bf16.msra.mxu1 %v12370_v11  ;;  %v12359_v14 = vld [vmem:[#allocation5 + $0x260] ss:$76 sps:$4 sm:$0xff]   ;;  %v12376_v15 = vld [vmem:[#allocation5 + $0x13c] ss:$76 sps:$4 sm:$0xff]   ;;  %v12378_v17 = vld [vmem:[#allocation5 + $0x138] ss:$76 sps:$4 sm:$0xff]  }
  0x62   :  { %1168 = vmatprep.subr.bf16.mxu1 %v12372_v12  ;;  %v12360_v16 = vld [vmem:[#allocation5 + $0x2fc] ss:$76 sps:$4 sm:$0xff]   ;;  %v12379_v18 = vld [vmem:[#allocation5 + $0x1d4] ss:$76 sps:$4 sm:$0xff]   ;;  %v12362_v19 = vld [vmem:[#allocation5 + $0x2f8] ss:$76 sps:$4 sm:$0xff]  }
  0x63   :  { %1126 = vmatpush1.bf16.msra.mxu0 %v12350_v4  ;;  %v12363_v20 = vld [vmem:[#allocation5 + $0x394] ss:$76 sps:$4 sm:$0xff]   ;;  %v12381_v21 = vld [vmem:[#allocation5 + $0x1d0] ss:$76 sps:$4 sm:$0xff]   ;;  %v12382_v22 = vld [vmem:[#allocation5 + $0x26c] ss:$76 sps:$4 sm:$0xff]  }
  0x64   :  { %1127 = vmatprep.subr.bf16.mxu0 %v12351_v5  ;;  %v12365_v23 = vld [vmem:[#allocation5 + $0x390] ss:$76 sps:$4 sm:$0xff]   ;;  %v12368_v24 = vld [vmem:[#allocation5 + $0x42c] ss:$76 sps:$4 sm:$0xff]   ;;  %v12384_v25 = vld [vmem:[#allocation5 + $0x268] ss:$76 sps:$4 sm:$0xff]  }
  0x65   :  { %1169 = vmatpush1.bf16.msra.mxu1 %v12375_v13  ;;  %v12385_v26 = vld [vmem:[#allocation5 + $0x304] ss:$76 sps:$4 sm:$0xff]   ;;  %v12371_v27 = vld [vmem:[#allocation5 + $0x428] ss:$76 sps:$4 sm:$0xff]   ;;  %v12387_v30 = vld [vmem:[#allocation5 + $0x300] ss:$76 sps:$4 sm:$0xff]  }
  0x66   :  { %1170 = vmatprep.subr.bf16.mxu1 %v12376_v15  ;;  %v12396_v29 = vld [vmem:[#allocation5 + $0x14] ss:$76 sps:$4 sm:$0xff]   ;;  %v12388_v31 = vld [vmem:[#allocation5 + $0x39c] ss:$76 sps:$4 sm:$0xff]   ;;  %v12402_v33 = vld [vmem:[#allocation5 + $0xac] ss:$76 sps:$4 sm:$0xff]  }
  0x67   :  { %1128 = vmatpush1.bf16.msra.mxu0 %v12353_v6  ;;  %v12394_v32 = vld [vmem:[#allocation5 + $0x10] ss:$76 sps:$4 sm:$0xff]   ;;  %v12390_v34 = vld [vmem:[#allocation5 + $0x398] ss:$76 sps:$4 sm:$0xff]   ;;  %v12391_v35 = vld [vmem:[#allocation5 + $0x434] ss:$76 sps:$4 sm:$0xff]  }
  0x68   :  { %1129 = vmatprep.subr.bf16.mxu0 %v12354_v7  ;;  %v12400_v36 = vld [vmem:[#allocation5 + $0xa8] ss:$76 sps:$4 sm:$0xff]   ;;  %v12408_v37 = vld [vmem:[#allocation5 + $0x144] ss:$76 sps:$4 sm:$0xff]   ;;  %v12406_v40 = vld [vmem:[#allocation5 + $0x140] ss:$76 sps:$4 sm:$0xff]  }
  0x69   :  { %1171 = vmatpush1.bf16.msra.mxu1 %v12378_v17  ;;  %v12393_v38 = vld [vmem:[#allocation5 + $0x430] ss:$76 sps:$4 sm:$0xff]   ;;  %v12397_v42 = vld [vmem:[#allocation5 + $0x18] ss:$76 sps:$4 sm:$0xff]   ;;  %v12405_v43 = vld [vmem:[#allocation5 + $0xb4] ss:$76 sps:$4 sm:$0xff]  }
  0x6a   :  { %1172 = vmatprep.subr.bf16.mxu1 %v12379_v18  ;;  %v12399_v39 = vld [vmem:[#allocation5 + $0x1c] ss:$76 sps:$4 sm:$0xff]   ;;  %v12412_v44 = vld [vmem:[#allocation5 + $0x1d8] ss:$76 sps:$4 sm:$0xff]   ;;  %v12420_v45 = vld [vmem:[#allocation5 + $0x274] ss:$76 sps:$4 sm:$0xff]  }
  0x6b   :  { %1130 = vmatpush1.bf16.msra.mxu0 %v12356_v9  ;;  %v12414_v41 = vld [vmem:[#allocation5 + $0x1dc] ss:$76 sps:$4 sm:$0xff]   ;;  %v12411_v47 = vld [vmem:[#allocation5 + $0x14c] ss:$76 sps:$4 sm:$0xff]   ;;  %v12417_v51 = vld [vmem:[#allocation5 + $0x1e4] ss:$76 sps:$4 sm:$0xff]  }
  0x6c   :  { %1131 = vmatprep.subr.bf16.mxu0 %v12357_v10  ;;  %v12403_v46 = vld [vmem:[#allocation5 + $0xb0] ss:$76 sps:$4 sm:$0xff]   ;;  %v12426_v49 = vld [vmem:[#allocation5 + $0x30c] ss:$76 sps:$4 sm:$0xff]   ;;  %v12409_v50 = vld [vmem:[#allocation5 + $0x148] ss:$76 sps:$4 sm:$0xff]  }
  0x6d   :  { %1173 = vmatpush1.bf16.msra.mxu1 %v12381_v21  ;;  %v12418_v48 = vld [vmem:[#allocation5 + $0x270] ss:$76 sps:$4 sm:$0xff]   ;;  %v12424_v52 = vld [vmem:[#allocation5 + $0x308] ss:$76 sps:$4 sm:$0xff]   ;;  %v12415_v54 = vld [vmem:[#allocation5 + $0x1e0] ss:$76 sps:$4 sm:$0xff]  }
  0x6e   :  { %1174 = vmatprep.subr.bf16.mxu1 %v12382_v22  ;;  %v12432_v53 = vld [vmem:[#allocation5 + $0x3a4] ss:$76 sps:$4 sm:$0xff]   ;;  %v12423_v55 = vld [vmem:[#allocation5 + $0x27c] ss:$76 sps:$4 sm:$0xff]   ;;  %v12430_v56 = vld [vmem:[#allocation5 + $0x3a0] ss:$76 sps:$4 sm:$0xff]  }
  0x6f   :  { %1132 = vmatpush1.bf16.msra.mxu0 %v12359_v14  ;;  %v12438_v57 = vld [vmem:[#allocation5 + $0x43c] ss:$76 sps:$4 sm:$0xff]   ;;  %v12421_v58 = vld [vmem:[#allocation5 + $0x278] ss:$76 sps:$4 sm:$0xff]   ;;  %v12429_v59 = vld [vmem:[#allocation5 + $0x314] ss:$76 sps:$4 sm:$0xff]  }
  0x70   :  { %1133 = vmatprep.subr.bf16.mxu0 %v12360_v16  ;;  %v12436_v60 = vld [vmem:[#allocation5 + $0x438] ss:$76 sps:$4 sm:$0xff]   ;;  %v12427_v62 = vld [vmem:[#allocation5 + $0x310] ss:$76 sps:$4 sm:$0xff]   ;;  %v12442_v1 = vld [vmem:[#allocation5 + $0x20] ss:$76 sps:$4 sm:$0xff]  }
  0x71   :  { %1175 = vmatpush1.bf16.msra.mxu1 %v12384_v25  ;;  %v12444_v61 = vld [vmem:[#allocation5 + $0x24] ss:$76 sps:$4 sm:$0xff]   ;;  %v12435_v63 = vld [vmem:[#allocation5 + $0x3ac] ss:$76 sps:$4 sm:$0xff]   ;;  %v12450_v2 = vld [vmem:[#allocation5 + $0xbc] ss:$76 sps:$4 sm:$0xff]  }
  0x72   :  { %1176 = vmatprep.subr.bf16.mxu1 %v12385_v26  ;;  %v12433_v3 = vld [vmem:[#allocation5 + $0x3a8] ss:$76 sps:$4 sm:$0xff]   ;;  %v12441_v4 = vld [vmem:[#allocation5 + $0x444] ss:$76 sps:$4 sm:$0xff]   ;;  %v12439_v7 = vld [vmem:[#allocation5 + $0x440] ss:$76 sps:$4 sm:$0xff]  }
  0x73   :  { %1134 = vmatpush1.bf16.msra.mxu0 %v12362_v19  ;;  %v12448_v5 = vld [vmem:[#allocation5 + $0xb8] ss:$76 sps:$4 sm:$0xff]   ;;  %v12456_v6 = vld [vmem:[#allocation5 + $0x154] ss:$76 sps:$4 sm:$0xff]   ;;  %v12454_v9 = vld [vmem:[#allocation5 + $0x150] ss:$76 sps:$4 sm:$0xff]  }
  0x74   :  { %1135 = vmatprep.subr.bf16.mxu0 %v12363_v20  ;;  %v12447_v8 = vld [vmem:[#allocation5 + $0x2c] ss:$76 sps:$4 sm:$0xff]   ;;  %v12445_v11 = vld [vmem:[#allocation5 + $0x28] ss:$76 sps:$4 sm:$0xff]   ;;  %v12453_v12 = vld [vmem:[#allocation5 + $0xc4] ss:$76 sps:$4 sm:$0xff]  }
  0x75   :  { %1177 = vmatpush1.bf16.msra.mxu1 %v12387_v30  ;;  %v12462_v10 = vld [vmem:[#allocation5 + $0x1ec] ss:$76 sps:$4 sm:$0xff]   ;;  %v12460_v13 = vld [vmem:[#allocation5 + $0x1e8] ss:$76 sps:$4 sm:$0xff]   ;;  %v12468_v14 = vld [vmem:[#allocation5 + $0x284] ss:$76 sps:$4 sm:$0xff]  }
  0x76   :  { %1178 = vmatprep.subr.bf16.mxu1 %v12388_v31  ;;  %v12451_v15 = vld [vmem:[#allocation5 + $0xc0] ss:$76 sps:$4 sm:$0xff]   ;;  %v12459_v16 = vld [vmem:[#allocation5 + $0x15c] ss:$76 sps:$4 sm:$0xff]   ;;  %v12457_v19 = vld [vmem:[#allocation5 + $0x158] ss:$76 sps:$4 sm:$0xff]  }
  0x77   :  { %1136 = vmatpush1.bf16.msra.mxu0 %v12365_v23  ;;  %v12466_v17 = vld [vmem:[#allocation5 + $0x280] ss:$76 sps:$4 sm:$0xff]   ;;  %v12474_v18 = vld [vmem:[#allocation5 + $0x31c] ss:$76 sps:$4 sm:$0xff]   ;;  %v12472_v21 = vld [vmem:[#allocation5 + $0x318] ss:$76 sps:$4 sm:$0xff]  }
  0x78   :  { %1137 = vmatprep.subr.bf16.mxu0 %v12368_v24  ;;  %v12465_v20 = vld [vmem:[#allocation5 + $0x1f4] ss:$76 sps:$4 sm:$0xff]   ;;  %v12463_v23 = vld [vmem:[#allocation5 + $0x1f0] ss:$76 sps:$4 sm:$0xff]   ;;  %v12471_v24 = vld [vmem:[#allocation5 + $0x28c] ss:$76 sps:$4 sm:$0xff]  }
  0x79   :  { %1179 = vmatpush1.bf16.msra.mxu1 %v12390_v34  ;;  %v12480_v22 = vld [vmem:[#allocation5 + $0x3b4] ss:$76 sps:$4 sm:$0xff]   ;;  %v12478_v25 = vld [vmem:[#allocation5 + $0x3b0] ss:$76 sps:$4 sm:$0xff]   ;;  %v12486_v26 = vld [vmem:[#allocation5 + $0x44c] ss:$76 sps:$4 sm:$0xff]  }
  0x7a   :  { %1180 = vmatprep.subr.bf16.mxu1 %v12391_v35  ;;  %v12484_v30 = vld [vmem:[#allocation5 + $0x448] ss:$76 sps:$4 sm:$0xff]   ;;  %v12490_v34 = vld [vmem:[#allocation5 + $0x30] ss:$76 sps:$4 sm:$0xff]   ;;  %v12498_v35 = vld [vmem:[#allocation5 + $0xcc] ss:$76 sps:$4 sm:$0xff]  }
  0x7b   :  { %1138 = vmatpush1.bf16.msra.mxu0 %v12371_v27  ;;  %v12469_v27 = vld [vmem:[#allocation5 + $0x288] ss:$76 sps:$4 sm:$0xff]   ;;  %vm12724_vm0 = vmmov 0   ;;  %s12725_s4 = smov [#allocation11]  }
  0x7c   :  { %1209 = vmatprep.subr.bf16.mxu0 %v12396_v29  ;;  %v12477_v29 = vld [vmem:[#allocation5 + $0x324] ss:$76 sps:$4 sm:$0xff]   ;;  %v12492_v31 = vld [vmem:[#allocation5 + $0x34] ss:$76 sps:$4 sm:$0xff]   ;;  %s10757_s30 = sshll.u32 %s12725_s4, 4  ;;  %s10758_s30 = int_to_ptr.vmem [resolvable:$true] %s10757_s30 }
  0x7d   :  { %1181 = vmatpush1.bf16.msra.mxu1 %v12393_v38  ;;  %v12496_v38 = vld [vmem:[#allocation5 + $0xc8] ss:$76 sps:$4 sm:$0xff]   ;;  %s12681_s6 = scalar_lea.vmem %s10758_s30, 2048  ;;  %p12686_p13 = scmp.lt.s32.totalorder %s10758_s30, %s10758_s30 }
  0x7e   :  { %1156 = vmatmul.mubr.bf16.vlgmr.msra.gmra.mrb[0].mxu0 %v12821_v28  ;;  %1252 = vmatprep.subr.bf16.mxu1 %v12399_v39  ;;  %v12504_v39 = vld [vmem:[#allocation5 + $0x164] ss:$76 sps:$4 sm:$0xff]   ;;  %p12682_p12 = scmp.ne.s32.totalorder %s10758_s30, %s12681_s6  ;;  %p12687_p0 = scmp.lt.s32.totalorder %s12681_s6, %s12681_s6 }
  0x7f   :  { %1210 = vmatpush1.bf16.msra.mxu0 %v12394_v32  ;;  %1241 = vmatprep.mubr.bf16.mxu0 %v12722_v0  ;;  %v12475_v32 = vld [vmem:[#allocation5 + $0x320] ss:$76 sps:$4 sm:$0xff]  }
  0x80   :  { %1211 = vmatprep.subr.bf16.mxu0 %v12402_v33  ;;  %1199 = vmatmul.mubr.bf16.vlgmr.msra.gmra.mrb[0].mxu1 %v12821_v28  ;;  %v12483_v33 = vld [vmem:[#allocation5 + $0x3bc] ss:$76 sps:$4 sm:$0xff]   ;;  %p12688_p1 = por %p12687_p0, %p12686_p13 }
  0x81   :  { %1253 = vmatpush1.bf16.msra.mxu1 %v12397_v42  ;;  %1284 = vmatprep.mubr.bf16.mxu1 %v12722_v0  ;;  %v12502_v42 = vld [vmem:[#allocation5 + $0x160] ss:$76 sps:$4 sm:$0xff]  }
  0x82   :  { %1254 = vmatprep.subr.bf16.mxu1 %v12405_v43  ;;  %v12510_v43 = vld [vmem:[#allocation5 + $0x1fc] ss:$76 sps:$4 sm:$0xff]   ;;  %p12689_p2 = pnand %p12688_p1, %p12682_p12 }
  0x83   :  { %1212 = vmatpush1.bf16.msra.mxu0 %v12400_v36  ;;  %v12481_v36 = vld [vmem:[#allocation5 + $0x3b8] ss:$76 sps:$4 sm:$0xff]  }
  0x84   :  { %1213 = vmatprep.subr.bf16.mxu0 %v12408_v37  ;;  %v12489_v37 = vld [vmem:[#allocation5 + $0x454] ss:$76 sps:$4 sm:$0xff]  }
  0x85   :  { %1255 = vmatpush1.bf16.msra.mxu1 %v12403_v46  ;;  %v12508_v46 = vld [vmem:[#allocation5 + $0x1f8] ss:$76 sps:$4 sm:$0xff]  }
  0x86   :  { %1256 = vmatprep.subr.bf16.mxu1 %v12411_v47  ;;  %v12516_v47 = vld [vmem:[#allocation5 + $0x294] ss:$76 sps:$4 sm:$0xff]  }
  0x87   :  { %1214 = vmatpush1.bf16.msra.mxu0 %v12406_v40  ;;  %v12487_v40 = vld [vmem:[#allocation5 + $0x450] ss:$76 sps:$4 sm:$0xff]  }
  0x88   :  { %1215 = vmatprep.subr.bf16.mxu0 %v12414_v41  ;;  %v12495_v41 = vld [vmem:[#allocation5 + $0x3c] ss:$76 sps:$4 sm:$0xff]  }
  0x89   :  { %1257 = vmatpush1.bf16.msra.mxu1 %v12409_v50  ;;  %v12514_v50 = vld [vmem:[#allocation5 + $0x290] ss:$76 sps:$4 sm:$0xff]  }
  0x8a   :  { %1258 = vmatprep.subr.bf16.mxu1 %v12417_v51  ;;  %v12522_v51 = vld [vmem:[#allocation5 + $0x32c] ss:$76 sps:$4 sm:$0xff]  }
  0x8b   :  { %1216 = vmatpush1.bf16.msra.mxu0 %v12412_v44  ;;  %v12493_v44 = vld [vmem:[#allocation5 + $0x38] ss:$76 sps:$4 sm:$0xff]  }
  0x8c   :  { %1217 = vmatprep.subr.bf16.mxu0 %v12420_v45  ;;  %v12501_v45 = vld [vmem:[#allocation5 + $0xd4] ss:$76 sps:$4 sm:$0xff]  }
  0x8d   :  { %1259 = vmatpush1.bf16.msra.mxu1 %v12415_v54  ;;  %v12520_v54 = vld [vmem:[#allocation5 + $0x328] ss:$76 sps:$4 sm:$0xff]  }
  0x8e   :  { %1260 = vmatprep.subr.bf16.mxu1 %v12423_v55  ;;  %v12528_v55 = vld [vmem:[#allocation5 + $0x3c4] ss:$76 sps:$4 sm:$0xff]  }
  0x8f   :  { %1218 = vmatpush1.bf16.msra.mxu0 %v12418_v48  ;;  %v12499_v48 = vld [vmem:[#allocation5 + $0xd0] ss:$76 sps:$4 sm:$0xff]  }
  0x90   :  { %1219 = vmatprep.subr.bf16.mxu0 %v12426_v49  ;;  %v12507_v49 = vld [vmem:[#allocation5 + $0x16c] ss:$76 sps:$4 sm:$0xff]  }
  0x91   :  { %1261 = vmatpush1.bf16.msra.mxu1 %v12421_v58  ;;  %v12526_v58 = vld [vmem:[#allocation5 + $0x3c0] ss:$76 sps:$4 sm:$0xff]  }
  0x92   :  { %1262 = vmatprep.subr.bf16.mxu1 %v12429_v59  ;;  %v12534_v59 = vld [vmem:[#allocation5 + $0x45c] ss:$76 sps:$4 sm:$0xff]  }
  0x93   :  { %1220 = vmatpush1.bf16.msra.mxu0 %v12424_v52  ;;  %v12505_v52 = vld [vmem:[#allocation5 + $0x168] ss:$76 sps:$4 sm:$0xff]  }
  0x94   :  { %1221 = vmatprep.subr.bf16.mxu0 %v12432_v53  ;;  %v12513_v53 = vld [vmem:[#allocation5 + $0x204] ss:$76 sps:$4 sm:$0xff]  }
  0x95   :  { %1263 = vmatpush1.bf16.msra.mxu1 %v12427_v62  ;;  %v12532_v62 = vld [vmem:[#allocation5 + $0x458] ss:$76 sps:$4 sm:$0xff]  }
  0x96   :  { %1264 = vmatprep.subr.bf16.mxu1 %v12435_v63  ;;  %v12540_v63 = vld [vmem:[#allocation5 + $0x44] ss:$76 sps:$4 sm:$0xff]  }
  0x97   :  { %1222 = vmatpush1.bf16.msra.mxu0 %v12430_v56  ;;  %v12511_v56 = vld [vmem:[#allocation5 + $0x200] ss:$76 sps:$4 sm:$0xff]  }
  0x98   :  { %1223 = vmatprep.subr.bf16.mxu0 %v12438_v57  ;;  %v12519_v57 = vld [vmem:[#allocation5 + $0x29c] ss:$76 sps:$4 sm:$0xff]  }
  0x99   :  { %1265 = vmatpush1.bf16.msra.mxu1 %v12433_v3  ;;  %v12538_v3 = vld [vmem:[#allocation5 + $0x40] ss:$76 sps:$4 sm:$0xff]  }
  0x9a   :  { %1266 = vmatprep.subr.bf16.mxu1 %v12441_v4  ;;  %v12544_v4 = vld [vmem:[#allocation5 + $0xdc] ss:$76 sps:$4 sm:$0xff]  }
  0x9b   :  { %1224 = vmatpush1.bf16.msra.mxu0 %v12436_v60  ;;  %v12517_v60 = vld [vmem:[#allocation5 + $0x298] ss:$76 sps:$4 sm:$0xff]  }
  0x9c   :  { %1295 = vmatprep.subr.bf16.mxu0 %v12444_v61  ;;  %v12525_v61 = vld [vmem:[#allocation5 + $0x334] ss:$76 sps:$4 sm:$0xff]  }
  0x9d   :  { %1267 = vmatpush1.bf16.msra.mxu1 %v12439_v7  ;;  %v12542_v7 = vld [vmem:[#allocation5 + $0xd8] ss:$76 sps:$4 sm:$0xff]  }
  0x9e   :  { %1242 = vmatmul.mubr.bf16.vlgmr.msra.gmra.mrb[4].mxu0 %v12821_v28  ;;  %1338 = vmatprep.subr.bf16.mxu1 %v12447_v8  ;;  %v12548_v8 = vld [vmem:[#allocation5 + $0x174] ss:$76 sps:$4 sm:$0xff]  }
  0x9f   :  { %1296 = vmatpush1.bf16.msra.mxu0 %v12442_v1  ;;  %1327 = vmatprep.mubr.bf16.mxu0 %v12722_v0  ;;  %v12523_v1 = vld [vmem:[#allocation5 + $0x330] ss:$76 sps:$4 sm:$0xff]  }
  0xa0   :  { %1297 = vmatprep.subr.bf16.mxu0 %v12450_v2  ;;  %1285 = vmatmul.mubr.bf16.vlgmr.msra.gmra.mrb[4].mxu1 %v12821_v28  ;;  %v12531_v2 = vld [vmem:[#allocation5 + $0x3cc] ss:$76 sps:$4 sm:$0xff]  }
  0xa1   :  { %1339 = vmatpush1.bf16.msra.mxu1 %v12445_v11  ;;  %1370 = vmatprep.mubr.bf16.mxu1 %v12722_v0  ;;  %v12552_v11 = vld [vmem:[#allocation5 + $0x20c] ss:$76 sps:$4 sm:$0xff]  }
  0xa2   :  { %1340 = vmatprep.subr.bf16.mxu1 %v12453_v12  ;;  %v12541_v12 = vld [vmem:[#allocation5 + $0x48] ss:$76 sps:$4 sm:$0xff]  }
  0xa3   :  { %1298 = vmatpush1.bf16.msra.mxu0 %v12448_v5  ;;  %v12529_v5 = vld [vmem:[#allocation5 + $0x3c8] ss:$76 sps:$4 sm:$0xff]  }
  0xa4   :  { %1299 = vmatprep.subr.bf16.mxu0 %v12456_v6  ;;  %v12537_v6 = vld [vmem:[#allocation5 + $0x464] ss:$76 sps:$4 sm:$0xff]  }
  0xa5   :  { %1341 = vmatpush1.bf16.msra.mxu1 %v12451_v15  ;;  %v12556_v15 = vld [vmem:[#allocation5 + $0x2a4] ss:$76 sps:$4 sm:$0xff]  }
  0xa6   :  { %1342 = vmatprep.subr.bf16.mxu1 %v12459_v16  ;;  %v12545_v16 = vld [vmem:[#allocation5 + $0xe0] ss:$76 sps:$4 sm:$0xff]  }
  0xa7   :  { %1300 = vmatpush1.bf16.msra.mxu0 %v12454_v9  ;;  %v12535_v9 = vld [vmem:[#allocation5 + $0x460] ss:$76 sps:$4 sm:$0xff]  }
  0xa8   :  { %1301 = vmatprep.subr.bf16.mxu0 %v12462_v10  ;;  %v12546_v10 = vld [vmem:[#allocation5 + $0x170] ss:$76 sps:$4 sm:$0xff]  }
  0xa9   :  { %1343 = vmatpush1.bf16.msra.mxu1 %v12457_v19  ;;  %v12549_v19 = vld [vmem:[#allocation5 + $0x178] ss:$76 sps:$4 sm:$0xff]  }
  0xaa   :  { %1344 = vmatprep.subr.bf16.mxu1 %v12465_v20  ;;  %v12558_v20 = vld [vmem:[#allocation5 + $0x338] ss:$76 sps:$4 sm:$0xff]  }
  0xab   :  { %1302 = vmatpush1.bf16.msra.mxu0 %v12460_v13  ;;  %v12723_v13 = vmov 0.0  }
  0xac   :  { %1303 = vmatprep.subr.bf16.mxu0 %v12468_v14  ;;  %v12550_v14 = vld [vmem:[#allocation5 + $0x208] ss:$76 sps:$4 sm:$0xff]  }
  0xad   :  { %1345 = vmatpush1.bf16.msra.mxu1 %v12463_v23  ;;  %v12562_v23 = vld [vmem:[#allocation5 + $0x3d0] ss:$76 sps:$4 sm:$0xff]  }
  0xae   :  { %1346 = vmatprep.subr.bf16.mxu1 %v12471_v24  ;;  %v12568_v24 = vld [vmem:[#allocation5 + $0x46c] ss:$76 sps:$4 sm:$0xff]  }
  0xaf   :  { %1304 = vmatpush1.bf16.msra.mxu0 %v12466_v17  ;;  %v12554_v17 = vld [vmem:[#allocation5 + $0x2a0] ss:$76 sps:$4 sm:$0xff]  }
  0xb0   :  { %1305 = vmatprep.subr.bf16.mxu0 %v12474_v18  ;;  %v12560_v18 = vld [vmem:[#allocation5 + $0x33c] ss:$76 sps:$4 sm:$0xff]  }
  0xb1   :  { %1347 = vmatpush1.bf16.msra.mxu1 %v12469_v27  ;;  %v1650_v27 = vld [vmem:[#allocation8 + $0x20] sm:$0xff] }
  0xb2   :  { %1348 = vmatprep.subr.bf16.mxu1 %v12477_v29  ;;  %v12566_v29 = vld [vmem:[#allocation5 + $0x468] ss:$76 sps:$4 sm:$0xff]  }
  0xb3   :  { %1306 = vmatpush1.bf16.msra.mxu0 %v12472_v21  ;;  %v12564_v21 = vld [vmem:[#allocation5 + $0x3d4] ss:$76 sps:$4 sm:$0xff]  }
  0xb4   :  { %1307 = vmatprep.subr.bf16.mxu0 %v12480_v22  ;;  %v12553_v22 = vld [vmem:[#allocation5 + $0x210] ss:$76 sps:$4 sm:$0xff]  }
  0xb5   :  { %1349 = vmatpush1.bf16.msra.mxu1 %v12475_v32  ;;  %v1654_v32 = vld [vmem:[#allocation8 + $0x40] sm:$0xff] }
  0xb6   :  { %1350 = vmatprep.subr.bf16.mxu1 %v12483_v33  ;;  %v1658_v33 = vld [vmem:[#allocation8 + $0x60] sm:$0xff] }
  0xb7   :  { %1308 = vmatpush1.bf16.msra.mxu0 %v12478_v25  ;;  %v12557_v25 = vld [vmem:[#allocation5 + $0x2a8] ss:$76 sps:$4 sm:$0xff]  }
  0xb8   :  { %1309 = vmatprep.subr.bf16.mxu0 %v12486_v26  ;;  %v1646_v26 = vld [vmem:[#allocation8] sm:$0xff] }
  0xb9   :  { %1351 = vmatpush1.bf16.msra.mxu1 %v12481_v36  ;;  %v12565_v36 = vld [vmem:[#allocation5 + $0x3d8] ss:$76 sps:$4 sm:$0xff]  }
  0xba   :  { %1352 = vmatprep.subr.bf16.mxu1 %v12489_v37  ;;  %v1662_v37 = vld [vmem:[#allocation8 + $0x80] sm:$0xff] }
  0xbb   :  { %1310 = vmatpush1.bf16.msra.mxu0 %v12484_v30  ;;  %v10925_v30 = vcombine.high %v1646_v26, %v1650_v27 }
  0xbc   :  { %1381 = vmatprep.subr.bf16.mxu0 %v12492_v31  ;;  %v12561_v31 = vld [vmem:[#allocation5 + $0x340] ss:$76 sps:$4 sm:$0xff]  }
  0xbd   :  { %1353 = vmatpush1.bf16.msra.mxu1 %v12487_v40  ;;  %v1651_v40 = vld [vmem:[#allocation8 + $0x28] sm:$0xff] }
  0xbe   :  { %1328 = vmatmul.mubr.bf16.vlgmr.msra.gmra.mrb[8].mxu0 %v12821_v28  ;;  %1424 = vmatprep.subr.bf16.mxu1 %v12495_v41  ;;  %v10932_v41 = vcombine.low %v1654_v32, %v1658_v33 }
  0xbf   :  { %1382 = vmatpush1.bf16.msra.mxu0 %v12490_v34  ;;  %1413 = vmatprep.mubr.bf16.mxu0 %v12722_v0  ;;  %v10924_v34 = vcombine.low %v1646_v26, %v1650_v27 }
  0xc0   :  { %1383 = vmatprep.subr.bf16.mxu0 %v12498_v35  ;;  %1371 = vmatmul.mubr.bf16.vlgmr.msra.gmra.mrb[8].mxu1 %v12821_v28  ;;  %v10933_v35 = vcombine.high %v1654_v32, %v1658_v33  ;;  %v1703_v32 = vld [vmem:[#allocation8 + $0x1c8] sm:$0xff] }
  0xc1   :  { %1425 = vmatpush1.bf16.msra.mxu1 %v12493_v44  ;;  %1456 = vmatprep.mubr.bf16.mxu1 %v12722_v0  ;;  %v1670_v44 = vld [vmem:[#allocation8 + $0xc0] sm:$0xff]  ;;  %v1707_v33 = vld [vmem:[#allocation8 + $0x1e8] sm:$0xff] }
  0xc2   :  { %1426 = vmatprep.subr.bf16.mxu1 %v12501_v45  ;;  %v1674_v45 = vld [vmem:[#allocation8 + $0xe0] sm:$0xff] }
  0xc3   :  { %1384 = vmatpush1.bf16.msra.mxu0 %v12496_v38  ;;  %v1666_v38 = vld [vmem:[#allocation8 + $0xa0] sm:$0xff] }
  0xc4   :  { %1385 = vmatprep.subr.bf16.mxu0 %v12504_v39  ;;  %v1647_v39 = vld [vmem:[#allocation8 + $0x8] sm:$0xff] }
  0xc5   :  { %1427 = vmatpush1.bf16.msra.mxu1 %v12499_v48  ;;  %v1659_v48 = vld [vmem:[#allocation8 + $0x68] sm:$0xff] }
  0xc6   :  { %1428 = vmatprep.subr.bf16.mxu1 %v12507_v49  ;;  %v10940_v49 = vcombine.low %v1662_v37, %v1666_v38 }
  0xc7   :  { %1386 = vmatpush1.bf16.msra.mxu0 %v12502_v42  ;;  %v10941_v42 = vcombine.high %v1662_v37, %v1666_v38  ;;  %v1726_v37 = vld [vmem:[#allocation8 + $0x280] sm:$0xff] }
  0xc8   :  { %1387 = vmatprep.subr.bf16.mxu0 %v12510_v43  ;;  %v12569_v43 = vld [vmem:[#allocation5 + $0x470] ss:$76 sps:$4 sm:$0xff]   ;;  %v1730_v38 = vld [vmem:[#allocation8 + $0x2a0] sm:$0xff] }
  0xc9   :  { %1429 = vmatpush1.bf16.msra.mxu1 %v12505_v52  ;;  %v1678_v52 = vld [vmem:[#allocation8 + $0x100] sm:$0xff] }
  0xca   :  { %1430 = vmatprep.subr.bf16.mxu1 %v12513_v53  ;;  %v1682_v53 = vld [vmem:[#allocation8 + $0x120] sm:$0xff] }
  0xcb   :  { %1388 = vmatpush1.bf16.msra.mxu0 %v12508_v46  ;;  %v10927_v46 = vcombine.high %v1647_v39, %v1651_v40 }
  0xcc   :  { %1389 = vmatprep.subr.bf16.mxu0 %v12516_v47  ;;  %v1655_v47 = vld [vmem:[#allocation8 + $0x48] sm:$0xff] }
  0xcd   :  { %1431 = vmatpush1.bf16.msra.mxu1 %v12511_v56  ;;  %v1667_v56 = vld [vmem:[#allocation8 + $0xa8] sm:$0xff] }
  0xce   :  { %1432 = vmatprep.subr.bf16.mxu1 %v12519_v57  ;;  %v10948_v57 = vcombine.low %v1670_v44, %v1674_v45 }
  0xcf   :  { %1390 = vmatpush1.bf16.msra.mxu0 %v12514_v50  ;;  %v10949_v50 = vcombine.high %v1670_v44, %v1674_v45  ;;  %v10982_v44 = vcombine.low %v1703_v32, %v1707_v33  ;;  %v1734_v45 = vld [vmem:[#allocation8 + $0x2c0] sm:$0xff] }
  0xd0   :  { %1391 = vmatprep.subr.bf16.mxu0 %v12522_v51  ;;  %v10926_v51 = vcombine.low %v1647_v39, %v1651_v40  ;;  %v10983_v39 = vcombine.high %v1703_v32, %v1707_v33  ;;  %v1711_v40 = vld [vmem:[#allocation8 + $0x208] sm:$0xff] }
  0xd1   :  { %1433 = vmatpush1.bf16.msra.mxu1 %v12517_v60  ;;  %v1686_v60 = vld [vmem:[#allocation8 + $0x140] sm:$0xff]  ;;  %v1771_v32 = vld [vmem:[#allocation8 + $0x3e8] sm:$0xff] }
  0xd2   :  { %1434 = vmatprep.subr.bf16.mxu1 %v12525_v61  ;;  %v1690_v61 = vld [vmem:[#allocation8 + $0x160] sm:$0xff] }
  0xd3   :  { %1392 = vmatpush1.bf16.msra.mxu0 %v12520_v54  ;;  %v10935_v54 = vcombine.high %v1655_v47, %v1659_v48 }
  0xd4   :  { %1393 = vmatprep.subr.bf16.mxu0 %v12528_v55  ;;  %v1663_v55 = vld [vmem:[#allocation8 + $0x88] sm:$0xff] }
  0xd5   :  { %1435 = vmatpush1.bf16.msra.mxu1 %v12523_v1  ;;  %v1675_v1 = vld [vmem:[#allocation8 + $0xe8] sm:$0xff] }
  0xd6   :  { %1436 = vmatprep.subr.bf16.mxu1 %v12531_v2  ;;  %v10956_v2 = vcombine.low %v1678_v52, %v1682_v53 }
  0xd7   :  { %1394 = vmatpush1.bf16.msra.mxu0 %v12526_v58  ;;  %v10957_v58 = vcombine.high %v1678_v52, %v1682_v53  ;;  %v1742_v53 = vld [vmem:[#allocation8 + $0x300] sm:$0xff] }
  0xd8   :  { %1395 = vmatprep.subr.bf16.mxu0 %v12534_v59  ;;  %v10934_v59 = vcombine.low %v1655_v47, %v1659_v48  ;;  %v1719_v48 = vld [vmem:[#allocation8 + $0x248] sm:$0xff] }
  0xd9   :  { %1437 = vmatpush1.bf16.msra.mxu1 %v12529_v5  ;;  %v1694_v5 = vld [vmem:[#allocation8 + $0x180] sm:$0xff] }
  0xda   :  { %1438 = vmatprep.subr.bf16.mxu1 %v12537_v6  ;;  %v1698_v6 = vld [vmem:[#allocation8 + $0x1a0] sm:$0xff] }
  0xdb   :  { %1396 = vmatpush1.bf16.msra.mxu0 %v12532_v62  ;;  %v10943_v62 = vcombine.high %v1663_v55, %v1667_v56 }
  0xdc   :  { %1467 = vmatprep.subr.bf16.mxu0 %v12540_v63  ;;  %v1671_v63 = vld [vmem:[#allocation8 + $0xc8] sm:$0xff] }
  0xdd   :  { %1439 = vmatpush1.bf16.msra.mxu1 %v12535_v9  ;;  %v10964_v9 = vcombine.low %v1686_v60, %v1690_v61 }
  0xde   :  { %1414 = vmatmul.mubr.bf16.vlgmr.msra.gmra.mrb[12].mxu0 %v12821_v28  ;;  %12149 = vmatprep.subr.bf16.mxu1 %v12723_v13 }
  0xdf   :  { %1468 = vmatpush1.bf16.msra.mxu0 %v12538_v3  ;;  %1499 = vmatprep.mubr.bf16.mxu0 %v12722_v0  ;;  %v10965_v3 = vcombine.high %v1686_v60, %v1690_v61  ;;  %v1750_v61 = vld [vmem:[#allocation8 + $0x340] sm:$0xff] }
  0xe0   :  { %1469 = vmatprep.subr.bf16.mxu0 %v12544_v4  ;;  %1457 = vmatmul.mubr.bf16.vlgmr.msra.gmra.mrb[12].mxu1 %v12821_v28  ;;  %v10942_v4 = vcombine.low %v1663_v55, %v1667_v56  ;;  %v1727_v56 = vld [vmem:[#allocation8 + $0x288] sm:$0xff] }
  0xe1   :  { %12150 = vmatpush3.bf16.msra.mxu1 %v12541_v12  ;;  %12165 = vmatprep.mubr.msk.bf16.mxu1 %vm12724_vm0, %v12723_v13  ;;  %v1702_v12 = vld [vmem:[#allocation8 + $0x1c0] sm:$0xff] }
  0xe2   :  { %12151 = vmatprep.subr.bf16.mxu1 %v12723_v13 }
  0xe3   :  { %1470 = vmatpush1.bf16.msra.mxu0 %v12542_v7  ;;  %v1679_v7 = vld [vmem:[#allocation8 + $0x108] sm:$0xff] }
  0xe4   :  { %1471 = vmatprep.subr.bf16.mxu0 %v12548_v8  ;;  %v1683_v8 = vld [vmem:[#allocation8 + $0x128] sm:$0xff] }
  0xe5   :  { %12152 = vmatpush3.bf16.msra.mxu1 %v12545_v16  ;;  %v1691_v16 = vld [vmem:[#allocation8 + $0x168] sm:$0xff] }
  0xe6   :  { %12153 = vmatprep.subr.bf16.mxu1 %v12723_v13 }
  0xe7   :  { %1472 = vmatpush1.bf16.msra.mxu0 %v12546_v10  ;;  %v10973_v10 = vcombine.high %v1694_v5, %v1698_v6 }
  0xe8   :  { %1473 = vmatprep.subr.bf16.mxu0 %v12552_v11  ;;  %v10950_v11 = vcombine.low %v1671_v63, %v1675_v1 }
  0xe9   :  { %12154 = vmatpush3.bf16.msra.mxu1 %v12549_v19  ;;  %v10958_v19 = vcombine.low %v1679_v7, %v1683_v8 }
  0xea   :  { %12155 = vmatprep.subr.bf16.mxu1 %v12723_v13 }
  0xeb   :  { %1474 = vmatpush1.bf16.msra.mxu0 %v12550_v14  ;;  %v10959_v14 = vcombine.high %v1679_v7, %v1683_v8  ;;  %v1743_v8 = vld [vmem:[#allocation8 + $0x308] sm:$0xff] }
  0xec   :  { %1475 = vmatprep.subr.bf16.mxu0 %v12556_v15  ;;  %v1687_v15 = vld [vmem:[#allocation8 + $0x148] sm:$0xff] }
  0xed   :  { %12156 = vmatpush3.bf16.msra.mxu1 %v12553_v22  ;;  %v10967_v22 = vcombine.high %v1687_v15, %v1691_v16  ;;  %v10966_v27 = vcombine.low %v1687_v15, %v1691_v16  ;;  %v1751_v16 = vld [vmem:[#allocation8 + $0x348] sm:$0xff] }
  0xee   :  { %12157 = vmatprep.subr.bf16.mxu1 %v12723_v13 }
  0xef   :  { %1476 = vmatpush1.bf16.msra.mxu0 %v12554_v17  ;;  %v10972_v17 = vcombine.low %v1694_v5, %v1698_v6  ;;  %v1758_v6 = vld [vmem:[#allocation8 + $0x380] sm:$0xff] }
  0xf0   :  { %1477 = vmatprep.subr.bf16.mxu0 %v12560_v18 }
  0xf1   :  { %12158 = vmatpush3.bf16.msra.mxu1 %v12557_v25 }
  0xf2   :  { %12159 = vmatprep.subr.bf16.mxu1 %v12723_v13 }
  0xf3   :  { %1478 = vmatpush1.bf16.msra.mxu0 %v12558_v20  ;;  %v1710_v20 = vld [vmem:[#allocation8 + $0x200] sm:$0xff] }
  0xf4   :  { %1479 = vmatprep.subr.bf16.mxu0 %v12564_v21  ;;  %v1714_v21 = vld [vmem:[#allocation8 + $0x220] sm:$0xff] }
  0xf5   :  { %12160 = vmatpush3.bf16.msra.mxu1 %v12561_v31  ;;  %v10989_v26 = vcombine.high %v1710_v20, %v1714_v21 }
  0xf6   :  { %12161 = vmatprep.subr.bf16.mxu1 %v12723_v13 }
  0xf7   :  { %1480 = vmatpush1.bf16.msra.mxu0 %v12562_v23  ;;  %v1695_v23 = vld [vmem:[#allocation8 + $0x188] sm:$0xff] }
  0xf8   :  { %1481 = vmatprep.subr.bf16.mxu0 %v12568_v24  ;;  %v1699_v24 = vld [vmem:[#allocation8 + $0x1a8] sm:$0xff] }
  0xf9   :  { %12162 = vmatpush3.bf16.msra.mxu1 %v12565_v36  ;;  %v10975_v31 = vcombine.high %v1695_v23, %v1699_v24  ;;  %v10974_v36 = vcombine.low %v1695_v23, %v1699_v24  ;;  %v1759_v24 = vld [vmem:[#allocation8 + $0x388] sm:$0xff] }
  0xfa   :  { %12163 = vmatprep.subr.bf16.mxu1 %v12723_v13  ;;  %v1706_v13 = vld [vmem:[#allocation8 + $0x1e0] sm:$0xff] }
  0xfb   :  { %1482 = vmatpush1.bf16.msra.mxu0 %v12566_v29  ;;  %v10981_v18 = vcombine.high %v1702_v12, %v1706_v13  ;;  %v10980_v25 = vcombine.low %v1702_v12, %v1706_v13  ;;  %v1718_v29 = vld [vmem:[#allocation8 + $0x240] sm:$0xff] }
  0xfc   :  { %8984 = vmatprep.subr.bf16.mxu0 %v10925_v30  ;;  %v1722_v30 = vld [vmem:[#allocation8 + $0x260] sm:$0xff] }
  0xfd   :  { %12164 = vmatpush3.bf16.msra.mxu1 %v12569_v43  ;;  %v11005_v43 = vcombine.high %v1726_v37, %v1730_v38  ;;  %v1766_v13 = vld [vmem:[#allocation8 + $0x3c0] sm:$0xff] }
  0xfe   :  { %1500 = vmatmul.mubr.bf16.vlgmr.msra.gmra.mrb[16].mxu0 %v12821_v28  ;;  %9414 = vmatprep.subr.bf16.mxu1 %v10927_v46  ;;  %v1738_v46 = vld [vmem:[#allocation8 + $0x2e0] sm:$0xff] }
  0xff   :  { %8985 = vmatpush1.bf16.msra.mxu0 %v10924_v34  ;;  %v10988_v34 = vcombine.low %v1710_v20, %v1714_v21  ;;  %v12849_v21 = vld [vmem:[#allocation8 + $0x400] sm:$0xff] }
 0x100   :  { %8986 = vmatprep.subr.bf16.mxu0 %v10933_v35  ;;  %12166 = vmatmul.mubr.bf16.vlgmr.msra.gmra.mrb[16].mxu1 %v12821_v28  ;;  %v10951_v28 = vcombine.high %v1671_v63, %v1675_v1  ;;  %v10997_v35 = vcombine.high %v1718_v29, %v1722_v30  ;;  %v1735_v1 = vld [vmem:[#allocation8 + $0x2c8] sm:$0xff] }
 0x101   :  { %9415 = vmatpush1.bf16.msra.mxu1 %v10926_v51  ;;  %v11013_v51 = vcombine.high %v1734_v45, %v1738_v46 }
 0x102   :  { %9416 = vmatprep.subr.bf16.mxu1 %v10935_v54  ;;  %v1746_v54 = vld [vmem:[#allocation8 + $0x320] sm:$0xff] }
 0x103   :  { %8987 = vmatpush1.bf16.msra.mxu0 %v10932_v41  ;;  %v1715_v41 = vld [vmem:[#allocation8 + $0x228] sm:$0xff] }
 0x104   :  { %8988 = vmatprep.subr.bf16.mxu0 %v10941_v42  ;;  %v10996_v42 = vcombine.low %v1718_v29, %v1722_v30  ;;  %v10991_v47 = vcombine.high %v1711_v40, %v1715_v41  ;;  %v10990_v52 = vcombine.low %v1711_v40, %v1715_v41 }
 0x105   :  { %9417 = vmatpush1.bf16.msra.mxu1 %v10934_v59  ;;  %v11021_v59 = vcombine.high %v1742_v53, %v1746_v54 }
 0x106   :  { %9418 = vmatprep.subr.bf16.mxu1 %v10943_v62  ;;  %v1754_v62 = vld [vmem:[#allocation8 + $0x360] sm:$0xff] }
 0x107   :  { %8989 = vmatpush1.bf16.msra.mxu0 %v10940_v49  ;;  %v1723_v49 = vld [vmem:[#allocation8 + $0x268] sm:$0xff] }
 0x108   :  { %8990 = vmatprep.subr.bf16.mxu0 %v10949_v50  ;;  %v11004_v50 = vcombine.low %v1726_v37, %v1730_v38  ;;  %v10999_v55 = vcombine.high %v1719_v48, %v1723_v49  ;;  %v10998_v60 = vcombine.low %v1719_v48, %v1723_v49  ;;  %v254_v38 = vlaneseq }
 0x109   :  { %9419 = vmatpush1.bf16.msra.mxu1 %v10942_v4  ;;  %v11029_v4 = vcombine.high %v1750_v61, %v1754_v62 }
 0x10a   :  { %9420 = vmatprep.subr.bf16.mxu1 %v10951_v28  ;;  %v1762_v28 = vld [vmem:[#allocation8 + $0x3a0] sm:$0xff]  ;;  %v12855_v40 = vshrl.u32 %v254_v38, 7 }
 0x10b   :  { %8991 = vmatpush1.bf16.msra.mxu0 %v10948_v57  ;;  %v1731_v57 = vld [vmem:[#allocation8 + $0x2a8] sm:$0xff] }
 0x10c   :  { %8992 = vmatprep.subr.bf16.mxu0 %v10957_v58  ;;  %v11012_v58 = vcombine.low %v1734_v45, %v1738_v46  ;;  %v11007_v63 = vcombine.high %v1727_v56, %v1731_v57  ;;  %v11006_v5 = vcombine.low %v1727_v56, %v1731_v57  ;;  %v12858_v41 = vsub.s32 0, %v12855_v40 }
 0x10d   :  { %9421 = vmatpush1.bf16.msra.mxu1 %v10950_v11  ;;  %v11037_v11 = vcombine.high %v1758_v6, %v1762_v28  ;;  %v12873_v57 = vsub.s32 3, %v12855_v40 }
 0x10e   :  { %9422 = vmatprep.subr.bf16.mxu1 %v10959_v14  ;;  %v1770_v14 = vld [vmem:[#allocation8 + $0x3e0] sm:$0xff] }
 0x10f   :  { %8993 = vmatpush1.bf16.msra.mxu0 %v10956_v2  ;;  %v1739_v2 = vld [vmem:[#allocation8 + $0x2e8] sm:$0xff] }
 0x110   :  { %8994 = vmatprep.subr.bf16.mxu0 %v10965_v3  ;;  %v11020_v3 = vcombine.low %v1742_v53, %v1746_v54  ;;  %v11015_v7 = vcombine.high %v1735_v1, %v1739_v2  ;;  %v11014_v12 = vcombine.low %v1735_v1, %v1739_v2  ;;  %v12870_v54 = vsub.s32 2, %v12855_v40 }
 0x111   :  { %9423 = vmatpush1.bf16.msra.mxu1 %v10958_v19  ;;  %v11045_v19 = vcombine.high %v1766_v13, %v1770_v14 }
 0x112   :  { %9424 = vmatprep.subr.bf16.mxu1 %v10967_v22  ;;  %v12851_v22 = vld [vmem:[#allocation8 + $0x420] sm:$0xff] }
 0x113   :  { %8995 = vmatpush1.bf16.msra.mxu0 %v10964_v9  ;;  %v1747_v9 = vld [vmem:[#allocation8 + $0x328] sm:$0xff] }
 0x114   :  { %8996 = vmatprep.subr.bf16.mxu0 %v10973_v10  ;;  %v11028_v10 = vcombine.low %v1750_v61, %v1754_v62  ;;  %v11023_v15 = vcombine.high %v1743_v8, %v1747_v9  ;;  %v11022_v20 = vcombine.low %v1743_v8, %v1747_v9  ;;  %v1782_v62 = vld [vmem:[#allocation8 + $0x440] sm:$0xff]  ;;  %v11052_v8 = vcombine.low %v12849_v21, %v12851_v22 }
 0x115   :  { %9425 = vmatpush1.bf16.msra.mxu1 %v10966_v27  ;;  %v11053_v27 = vcombine.high %v12849_v21, %v12851_v22 }
 0x116   :  { %9426 = vmatprep.subr.bf16.mxu1 %v10975_v31  ;;  %v1767_v31 = vld [vmem:[#allocation8 + $0x3c8] sm:$0xff] }
 0x117   :  { %8997 = vmatpush1.bf16.msra.mxu0 %v10972_v17  ;;  %v1755_v17 = vld [vmem:[#allocation8 + $0x368] sm:$0xff]  ;;  %v11046_v37 = vcombine.low %v1767_v31, %v1771_v32 }
 0x118   :  { %8998 = vmatprep.subr.bf16.mxu0 %v10981_v18  ;;  %v11036_v18 = vcombine.low %v1758_v6, %v1762_v28  ;;  %v11031_v23 = vcombine.high %v1751_v16, %v1755_v17  ;;  %v11030_v29 = vcombine.low %v1751_v16, %v1755_v17  ;;  %v1794_v16 = vld [vmem:[#allocation8 + $0x4a0] sm:$0xff]  ;;  %v1791_v17 = vld [vmem:[#allocation8 + $0x488] sm:$0xff] }
 0x119   :  { %9427 = vmatpush1.bf16.msra.mxu1 %v10974_v36  ;;  %v1779_v36 = vld [vmem:[#allocation8 + $0x428] sm:$0xff] }
 0x11a   :  { %9428 = vmatprep.subr.bf16.mxu1 %v10983_v39 }
 0x11b   :  { %8999 = vmatpush1.bf16.msra.mxu0 %v10980_v25  ;;  %v1763_v25 = vld [vmem:[#allocation8 + $0x3a8] sm:$0xff] }
 0x11c   :  { %9000 = vmatprep.subr.bf16.mxu0 %v10989_v26  ;;  %v11044_v26 = vcombine.low %v1766_v13, %v1770_v14  ;;  %v11039_v30 = vcombine.high %v1759_v24, %v1763_v25  ;;  %v11038_v33 = vcombine.low %v1759_v24, %v1763_v25  ;;  %v1790_v13 = vld [vmem:[#allocation8 + $0x480] sm:$0xff] }
 0x11d   :  { %9429 = vmatpush1.bf16.msra.mxu1 %v10982_v44 }
 0x11e   :  { %9430 = vmatprep.subr.bf16.mxu1 %v10991_v47 }
 0x11f   :  { %9001 = vmatpush1.bf16.msra.mxu0 %v10988_v34  ;;  %v11047_v34 = vcombine.high %v1767_v31, %v1771_v32  ;;  %v1798_v31 = vld [vmem:[#allocation8 + $0x4c0] sm:$0xff] }
 0x120   :  { %9002 = vmatprep.subr.bf16.mxu0 %v10997_v35  ;;  %v1775_v35 = vld [vmem:[#allocation8 + $0x408] sm:$0xff] }
 0x121   :  { %9431 = vmatpush1.bf16.msra.mxu1 %v10990_v52  ;;  %v11055_v39 = vcombine.high %v1775_v35, %v1779_v36  ;;  %v11054_v9 = vcombine.low %v1775_v35, %v1779_v36  ;;  %v1799_v35 = vld [vmem:[#allocation8 + $0x4c8] sm:$0xff] }
 0x122   :  { %9432 = vmatprep.subr.bf16.mxu1 %v10999_v55  ;;  %v1803_v36 = vld [vmem:[#allocation8 + $0x4e8] sm:$0xff] }
 0x123   :  { %9003 = vmatpush1.bf16.msra.mxu0 %v10996_v42  ;;  %v12860_v42 = vld [vmem:[#allocation7] sm:$0xff] }
 0x124   :  { %9004 = vmatprep.subr.bf16.mxu0 %v11005_v43  ;;  %v12863_v43 = vsub.s32 1, %v12855_v40  ;;  %v257_v44 = vrot.slane %v12860_v42, %v12858_v41  ;;  %v269_v6 = vrot.slane %v12860_v42, %v12873_v57 }
 0x125   :  { %9433 = vmatpush1.bf16.msra.mxu1 %v10998_v60 }
 0x126   :  { %9434 = vmatprep.subr.bf16.mxu1 %v11007_v63  ;;  %v261_v45 = vrot.slane %v12860_v42, %v12863_v43  ;;  %v265_v63 = vrot.slane %v12860_v42, %v12870_v54 }
 0x127   :  { %9005 = vmatpush1.bf16.msra.mxu0 %v11004_v50 }
 0x128   :  { %9006 = vmatprep.subr.bf16.mxu0 %v11013_v51 }
 0x129   :  { %9435 = vmatpush1.bf16.msra.mxu1 %v11006_v5  ;;  %v1787_v5 = vld [vmem:[#allocation8 + $0x468] sm:$0xff] }
 0x12a   :  { %9436 = vmatprep.subr.bf16.mxu1 %v11015_v7 }
 0x12b   :  { %9007 = vmatpush1.bf16.msra.mxu0 %v11012_v58 }
 0x12c   :  { %9008 = vmatprep.subr.bf16.mxu0 %v11021_v59 }
 0x12d   :  { %9437 = vmatpush1.bf16.msra.mxu1 %v11014_v12 }
 0x12e   :  { %9438 = vmatprep.subr.bf16.mxu1 %v11023_v15 }
 0x12f   :  { %9009 = vmatpush1.bf16.msra.mxu0 %v11020_v3  ;;  %v1786_v3 = vld [vmem:[#allocation8 + $0x460] sm:$0xff] }
 0x130   :  { %9010 = vmatprep.subr.bf16.mxu0 %v11029_v4  ;;  %v1783_v4 = vld [vmem:[#allocation8 + $0x448] sm:$0xff]  ;;  %v11060_v24 = vcombine.low %v1782_v62, %v1786_v3 }
 0x131   :  { %9439 = vmatpush1.bf16.msra.mxu1 %v11022_v20  ;;  %v11063_v12 = vcombine.high %v1783_v4, %v1787_v5  ;;  %v11062_v25 = vcombine.low %v1783_v4, %v1787_v5  ;;  %v12899_v5 = vsub.s32 5, %v12855_v40 }
 0x132   :  { %9440 = vmatprep.subr.bf16.mxu1 %v11031_v23 }
 0x133   :  { %9011 = vmatpush1.bf16.msra.mxu0 %v11028_v10 }
 0x134   :  { %9012 = vmatprep.subr.bf16.mxu0 %v11037_v11  ;;  %v11061_v11 = vcombine.high %v1782_v62, %v1786_v3  ;;  %v1818_v62 = vld [vmem:[#allocation8 + $0x560] sm:$0xff] }
 0x135   :  { %9441 = vmatpush1.bf16.msra.mxu1 %v11030_v29  ;;  %v11069_v29 = vcombine.high %v1790_v13, %v1794_v16 }
 0x136   :  { %9442 = vmatprep.subr.bf16.mxu1 %v11039_v30 }
 0x137   :  { %9013 = vmatpush1.bf16.msra.mxu0 %v11036_v18  ;;  %v1795_v18 = vld [vmem:[#allocation8 + $0x4a8] sm:$0xff] }
 0x138   :  { %9014 = vmatprep.subr.bf16.mxu0 %v11045_v19  ;;  %v11071_v30 = vcombine.high %v1791_v17, %v1795_v18 }
 0x139   :  { %9443 = vmatpush1.bf16.msra.mxu1 %v11038_v33 }
 0x13a   :  { %9444 = vmatprep.subr.bf16.mxu1 %v11047_v34  ;;  %v1802_v34 = vld [vmem:[#allocation8 + $0x4e0] sm:$0xff] }
 0x13b   :  { %9015 = vmatpush1.bf16.msra.mxu0 %v11044_v26 }
 0x13c   :  { %9027 = vmatprep.subr.bf16.mxu0 %v11053_v27 }
 0x13d   :  { %9445 = vmatpush1.bf16.msra.mxu1 %v11046_v37 }
 0x13e   :  { %9457 = vmatprep.subr.bf16.mxu1 %v11055_v39 }
 0x151   :  { %v1157_v46 = vpop.f32.mrb[0].mxu0 }
 0x152   :  { %v1158_v47 = vadd.f32 %v1157_v46, %v257_v44  ;;  %v1159_v48 = vpop.f32.mrb[1].mxu0 }
 0x153   :  { %v1160_v49 = vadd.f32 %v1159_v48, %v261_v45  ;;  %v1161_v50 = vpop.f32.mrb[2].mxu0  ;;  %v1200_v10 = vpop.f32.mrb[0].mxu1  ;;  %v11079_v48 = vcombine.high %v1799_v35, %v1803_v36 }
 0x154   :  { %v1551_v51 = vmul.f32 0.01, %v1158_v47  ;;  %v1162_v52 = vadd.f32 %v1161_v50, %v257_v44  ;;  %v1163_v53 = vpop.f32.mrb[3].mxu0  ;;  %v1201_v14 = vadd.f32 %v1200_v10, %v265_v63  ;;  %v1202_v15 = vpop.f32.mrb[1].mxu1  ;;  %v11068_v44 = vcombine.low %v1790_v13, %v1794_v16  ;;  %v1826_v10 = vld [vmem:[#allocation8 + $0x5a0] sm:$0xff] }
 0x155   :  { %v1552_v55 = vmul.f32 0.01, %v1160_v49  ;;  %v1164_v56 = vadd.f32 %v1163_v53, %v261_v45  ;;  %v1203_v19 = vadd.f32 %v1202_v15, %v269_v6  ;;  %v1204_v20 = vpop.f32.mrb[2].mxu1  ;;  %v11070_v45 = vcombine.low %v1791_v17, %v1795_v18  ;;  %v1811_v53 = vld [vmem:[#allocation8 + $0x528] sm:$0xff] }
 0x156   :  { %v1570_v58 = vmul.f32 0.01, %v1162_v52  ;;  %v1589_v60 = vmax.f32 %v1158_v47, %v1551_v51  ;;  %v1553_v21 = vmul.f32 0.01, %v1201_v14  ;;  %v1205_v22 = vadd.f32 %v1204_v20, %v265_v63  ;;  %v1206_v23 = vpop.f32.mrb[3].mxu1  ;;  %v1810_v51 = vld [vmem:[#allocation8 + $0x520] sm:$0xff] }
 0x157   :  { %v1571_v59 = vmul.f32 0.01, %v1164_v56  ;;  %v1590_v1 = vmax.f32 %v1160_v49, %v1552_v55  ;;  %v1554_v26 = vmul.f32 0.01, %v1203_v19  ;;  %v1207_v27 = vadd.f32 %v1206_v23, %v269_v6  ;;  %v1806_v49 = vld [vmem:[#allocation8 + $0x500] sm:$0xff]  ;;  %v1815_v63 = vld [vmem:[#allocation8 + $0x548] sm:$0xff] }
 0x158   :  { %v1608_v61 = vmax.f32 %v1162_v52, %v1570_v58  ;;  %v1591_v32 = vmax.f32 %v1201_v14, %v1553_v21  ;;  %v1572_v33 = vmul.f32 0.01, %v1205_v22  ;;  %v11077_v47 = vcombine.high %v1798_v31, %v1802_v34  ;;  %v1807_v52 = vld [vmem:[#allocation8 + $0x508] sm:$0xff]  ;;  %v1834_v20 = vld [vmem:[#allocation8 + $0x5e0] sm:$0xff] }
 0x159   :  { %v1609_v2 = vmax.f32 %v1164_v56, %v1571_v59  ;;  %v1592_v37 = vmax.f32 %v1203_v19, %v1554_v26  ;;  %v1573_v38 = vmul.f32 0.01, %v1207_v27  ;;  %v11076_v56 = vcombine.low %v1798_v31, %v1802_v34  ;;  %v1830_v19 = vld [vmem:[#allocation8 + $0x5c0] sm:$0xff]  ;;  %v1831_v21 = vld [vmem:[#allocation8 + $0x5c8] sm:$0xff] }
 0x15a   :  { %v12879_v28 = vpack.c.bf16 %v1608_v61, %v1589_v60  ;;  %v1610_v39 = vmax.f32 %v1205_v22, %v1572_v33  ;;  %v11078_v58 = vcombine.low %v1799_v35, %v1803_v36  ;;  %v11085_v59 = vcombine.high %v1806_v49, %v1810_v51  ;;  %v1814_v61 = vld [vmem:[#allocation8 + $0x540] sm:$0xff]  ;;  %v1835_v22 = vld [vmem:[#allocation8 + $0x5e8] sm:$0xff] }
 0x15b   :  { %v12881_v7 = vpack.c.bf16 %v1609_v2, %v1590_v1  ;;  %v1611_v46 = vmax.f32 %v1207_v27, %v1573_v38  ;;  %v11087_v60 = vcombine.high %v1807_v52, %v1811_v53  ;;  %v1819_v1 = vld [vmem:[#allocation8 + $0x568] sm:$0xff]  ;;  %v12896_v2 = vsub.s32 4, %v12855_v40  ;;  %v1838_v33 = vld [vmem:[#allocation8 + $0x600] sm:$0xff] }
 0x15c   :  { %v12889_v50 = vpack.c.bf16 %v1610_v39, %v1591_v32  ;;  %v11084_v3 = vcombine.low %v1806_v49, %v1810_v51  ;;  %v11086_v4 = vcombine.low %v1807_v52, %v1811_v53  ;;  %v11093_v6 = vcombine.high %v1814_v61, %v1818_v62  ;;  %v1842_v34 = vld [vmem:[#allocation8 + $0x620] sm:$0xff]  ;;  %v1839_v39 = vld [vmem:[#allocation8 + $0x608] sm:$0xff] }
 0x15d   :  { %9016 = vmatprep.mubr.bf16.mxu0 %v12881_v7  ;;  %9446 = vmatprep.mubr.bf16.mxu1 %v12881_v7  ;;  %v12891_v55 = vpack.c.bf16 %v1611_v46, %v1592_v37  ;;  %v273_v13 = vrot.slane %v12860_v42, %v12896_v2  ;;  %v11092_v14 = vcombine.low %v1814_v61, %v1818_v62  ;;  %v12906_v36 = vsub.s32 6, %v12855_v40 }
 0x15e   :  { %9017 = vmatmul.mubr.bf16.vlgmr.msra.gmra.mrb[20].mxu0 %v12879_v28  ;;  %9447 = vmatmul.mubr.bf16.vlgmr.msra.gmra.mrb[20].mxu1 %v12879_v28  ;;  %v11094_v15 = vcombine.low %v1815_v63, %v1819_v1  ;;  %v277_v16 = vrot.slane %v12860_v42, %v12899_v5  ;;  %v11111_v32 = vcombine.high %v1831_v21, %v1835_v22  ;;  %v12909_v46 = vsub.s32 7, %v12855_v40  ;;  %v1850_v40 = vld [vmem:[#allocation8 + $0x660] sm:$0xff] }
 0x15f   :  { %9028 = vmatpush1.bf16.msra.mxu0 %v11052_v8  ;;  %9458 = vmatpush1.bf16.msra.mxu1 %v11054_v9  ;;  %v11095_v8 = vcombine.high %v1815_v63, %v1819_v1  ;;  %v1822_v9 = vld [vmem:[#allocation8 + $0x580] sm:$0xff]  ;;  %v11110_v52 = vcombine.low %v1831_v21, %v1835_v22  ;;  %v11117_v53 = vcombine.high %v1838_v33, %v1842_v34  ;;  %v1847_v63 = vld [vmem:[#allocation8 + $0x648] sm:$0xff] }
 0x160   :  { %9029 = vmatprep.subr.bf16.mxu0 %v11061_v11  ;;  %9459 = vmatprep.subr.bf16.mxu1 %v11063_v12  ;;  %v1823_v11 = vld [vmem:[#allocation8 + $0x588] sm:$0xff]  ;;  %v11101_v17 = vcombine.high %v1822_v9, %v1826_v10  ;;  %v281_v61 = vrot.slane %v12860_v42, %v12906_v36 }
 0x161   :  { %9059 = vmatprep.mubr.bf16.mxu0 %v12891_v55  ;;  %9489 = vmatprep.mubr.bf16.mxu1 %v12891_v55  ;;  %v1827_v12 = vld [vmem:[#allocation8 + $0x5a8] sm:$0xff] }
 0x162   :  { %v11103_v18 = vcombine.high %v1823_v11, %v1827_v12  ;;  %v11102_v27 = vcombine.low %v1823_v11, %v1827_v12  ;;  %v1851_v1 = vld [vmem:[#allocation8 + $0x668] sm:$0xff] }
 0x163   :  { %9030 = vmatpush1.bf16.msra.mxu0 %v11060_v24  ;;  %9460 = vmatpush1.bf16.msra.mxu1 %v11062_v25  ;;  %v11100_v24 = vcombine.low %v1822_v9, %v1826_v10 }
 0x164   :  { %9031 = vmatprep.subr.bf16.mxu0 %v11069_v29  ;;  %9461 = vmatprep.subr.bf16.mxu1 %v11071_v30  ;;  %v11109_v29 = vcombine.high %v1830_v19, %v1834_v20 }
 0x167   :  { %9032 = vmatpush1.bf16.msra.mxu0 %v11068_v44  ;;  %9462 = vmatpush1.bf16.msra.mxu1 %v11070_v45  ;;  %v1843_v44 = vld [vmem:[#allocation8 + $0x628] sm:$0xff] }
 0x168   :  { %9033 = vmatprep.subr.bf16.mxu0 %v11077_v47  ;;  %9463 = vmatprep.subr.bf16.mxu1 %v11079_v48  ;;  %v11108_v48 = vcombine.low %v1830_v19, %v1834_v20  ;;  %v11118_v9 = vcombine.low %v1839_v39, %v1843_v44 }
 0x16b   :  { %9034 = vmatpush1.bf16.msra.mxu0 %v11076_v56  ;;  %9464 = vmatpush1.bf16.msra.mxu1 %v11078_v58 }
 0x16c   :  { %9035 = vmatprep.subr.bf16.mxu0 %v11085_v59  ;;  %9465 = vmatprep.subr.bf16.mxu1 %v11087_v60  ;;  %v11119_v59 = vcombine.high %v1839_v39, %v1843_v44  ;;  %v1846_v60 = vld [vmem:[#allocation8 + $0x640] sm:$0xff] }
 0x16d   :  { %v11125_v12 = vcombine.high %v1846_v60, %v1850_v40 }
 0x16f   :  { %9036 = vmatpush1.bf16.msra.mxu0 %v11084_v3  ;;  %9466 = vmatpush1.bf16.msra.mxu1 %v11086_v4  ;;  %v285_v3 = vrot.slane %v12860_v42, %v12909_v46  ;;  %v1859_v42 = vld [vmem:[#allocation8 + $0x6a8] sm:$0xff] }
 0x170   :  { %9037 = vmatprep.subr.bf16.mxu0 %v11093_v6  ;;  %9467 = vmatprep.subr.bf16.mxu1 %v11095_v8  ;;  %v11116_v8 = vcombine.low %v1838_v33, %v1842_v34  ;;  %v1866_v34 = vld [vmem:[#allocation8 + $0x6e0] sm:$0xff] }
 0x171   :  { %v1243_v23 = vpop.f32.mrb[4].mxu0 }
 0x172   :  { %v1244_v25 = vadd.f32 %v1243_v23, %v273_v13  ;;  %v1245_v26 = vpop.f32.mrb[5].mxu0 }
 0x173   :  { %9038 = vmatpush1.bf16.msra.mxu0 %v11092_v14  ;;  %9468 = vmatpush1.bf16.msra.mxu1 %v11094_v15  ;;  %v1246_v30 = vadd.f32 %v1245_v26, %v277_v16  ;;  %v1247_v31 = vpop.f32.mrb[6].mxu0  ;;  %v1286_v10 = vpop.f32.mrb[4].mxu1  ;;  %v1854_v14 = vld [vmem:[#allocation8 + $0x680] sm:$0xff] }
 0x174   :  { %9039 = vmatprep.subr.bf16.mxu0 %v11101_v17  ;;  %9469 = vmatprep.subr.bf16.mxu1 %v11103_v18  ;;  %v1555_v35 = vmul.f32 0.01, %v1244_v25  ;;  %v1248_v37 = vadd.f32 %v1247_v31, %v273_v13  ;;  %v1249_v38 = vpop.f32.mrb[7].mxu0  ;;  %v11127_v13 = vcombine.high %v1847_v63, %v1851_v1  ;;  %v1287_v15 = vadd.f32 %v1286_v10, %v281_v61  ;;  %v1858_v17 = vld [vmem:[#allocation8 + $0x6a0] sm:$0xff]  ;;  %v1855_v18 = vld [vmem:[#allocation8 + $0x688] sm:$0xff] }
 0x175   :  { %v1556_v45 = vmul.f32 0.01, %v1246_v30  ;;  %v1250_v47 = vadd.f32 %v1249_v38, %v277_v16  ;;  %v1288_v16 = vpop.f32.mrb[5].mxu1  ;;  %v1862_v31 = vld [vmem:[#allocation8 + $0x6c0] sm:$0xff] }
 0x176   :  { %v1593_v49 = vmax.f32 %v1244_v25, %v1555_v35  ;;  %v1574_v51 = vmul.f32 0.01, %v1248_v37  ;;  %v1289_v19 = vadd.f32 %v1288_v16, %v285_v3  ;;  %v1290_v20 = vpop.f32.mrb[6].mxu1  ;;  %v1557_v21 = vmul.f32 0.01, %v1287_v15  ;;  %v1863_v35 = vld [vmem:[#allocation8 + $0x6c8] sm:$0xff] }
 0x177   :  { %9040 = vmatpush1.bf16.msra.mxu0 %v11100_v24  ;;  %9470 = vmatpush1.bf16.msra.mxu1 %v11102_v27  ;;  %v1594_v56 = vmax.f32 %v1246_v30, %v1556_v45  ;;  %v1575_v58 = vmul.f32 0.01, %v1250_v47  ;;  %v1291_v22 = vadd.f32 %v1290_v20, %v281_v61  ;;  %v1292_v23 = vpop.f32.mrb[7].mxu1  ;;  %v11124_v24 = vcombine.low %v1846_v60, %v1850_v40  ;;  %v1890_v16 = vld [vmem:[#allocation8 + $0x7a0] sm:$0xff] }
 0x178   :  { %9041 = vmatprep.subr.bf16.mxu0 %v11109_v29  ;;  %9471 = vmatprep.subr.bf16.mxu1 %v11111_v32  ;;  %v1612_v62 = vmax.f32 %v1248_v37, %v1574_v51  ;;  %v11126_v25 = vcombine.low %v1847_v63, %v1851_v1  ;;  %v1558_v26 = vmul.f32 0.01, %v1289_v19  ;;  %v1293_v27 = vadd.f32 %v1292_v23, %v285_v3  ;;  %v1867_v37 = vld [vmem:[#allocation8 + $0x6e8] sm:$0xff]  ;;  %v1878_v1 = vld [vmem:[#allocation8 + $0x740] sm:$0xff] }
 0x179   :  { %v1613_v4 = vmax.f32 %v1250_v47, %v1575_v58  ;;  %v11133_v29 = vcombine.high %v1854_v14, %v1858_v17  ;;  %v11135_v30 = vcombine.high %v1855_v18, %v1859_v42  ;;  %v1595_v32 = vmax.f32 %v1287_v15, %v1557_v21  ;;  %v1871_v58 = vld [vmem:[#allocation8 + $0x708] sm:$0xff]  ;;  %v1882_v3 = vld [vmem:[#allocation8 + $0x760] sm:$0xff] }
 0x17a   :  { %v12915_v6 = vpack.c.bf16 %v1612_v62, %v1593_v49  ;;  %v1576_v33 = vmul.f32 0.01, %v1291_v22  ;;  %v1596_v38 = vmax.f32 %v1289_v19, %v1558_v26  ;;  %v1577_v39 = vmul.f32 0.01, %v1293_v27  ;;  %v1886_v15 = vld [vmem:[#allocation8 + $0x780] sm:$0xff]  ;;  %v1895_v26 = vld [vmem:[#allocation8 + $0x7c8] sm:$0xff] }
 0x17b   :  { %9042 = vmatpush1.bf16.msra.mxu0 %v11108_v48  ;;  %9472 = vmatpush1.bf16.msra.mxu1 %v11110_v52  ;;  %v12917_v11 = vpack.c.bf16 %v1613_v4, %v1594_v56  ;;  %v11132_v45 = vcombine.low %v1854_v14, %v1858_v17  ;;  %v11134_v47 = vcombine.low %v1855_v18, %v1859_v42  ;;  %v1870_v52 = vld [vmem:[#allocation8 + $0x700] sm:$0xff]  ;;  %v1879_v4 = vld [vmem:[#allocation8 + $0x748] sm:$0xff] }
 0x17c   :  { %9043 = vmatprep.subr.bf16.mxu0 %v11117_v53  ;;  %9473 = vmatprep.subr.bf16.mxu1 %v11119_v59  ;;  %v1614_v44 = vmax.f32 %v1291_v22, %v1576_v33  ;;  %v1615_v48 = vmax.f32 %v1293_v27, %v1577_v39  ;;  %v11141_v49 = vcombine.high %v1862_v31, %v1866_v34  ;;  %v1874_v56 = vld [vmem:[#allocation8 + $0x720] sm:$0xff]  ;;  %v1875_v59 = vld [vmem:[#allocation8 + $0x728] sm:$0xff] }
 0x17d   :  { %v11143_v51 = vcombine.high %v1863_v35, %v1867_v37  ;;  %v11140_v61 = vcombine.low %v1862_v31, %v1866_v34  ;;  %v11142_v62 = vcombine.low %v1863_v35, %v1867_v37  ;;  %v11149_v40 = vcombine.high %v1870_v52, %v1874_v56  ;;  %v1887_v17 = vld [vmem:[#allocation8 + $0x788] sm:$0xff]  ;;  %v1902_v39 = vld [vmem:[#allocation8 + $0x800] sm:$0xff] }
 0x17e   :  { %v12919_v53 = vpack.c.bf16 %v1614_v44, %v1595_v32  ;;  %v12921_v60 = vpack.c.bf16 %v1615_v48, %v1596_v38  ;;  %v11151_v63 = vcombine.high %v1871_v58, %v1875_v59  ;;  %v11150_v10 = vcombine.low %v1871_v58, %v1875_v59  ;;  %v1891_v18 = vld [vmem:[#allocation8 + $0x7a8] sm:$0xff]  ;;  %v1906_v44 = vld [vmem:[#allocation8 + $0x820] sm:$0xff] }
 0x17f   :  { %9044 = vmatpush1.bf16.msra.mxu0 %v11116_v8  ;;  %9474 = vmatpush1.bf16.msra.mxu1 %v11118_v9  ;;  %v1883_v8 = vld [vmem:[#allocation8 + $0x768] sm:$0xff]  ;;  %v11148_v9 = vcombine.low %v1870_v52, %v1874_v56  ;;  %v11156_v19 = vcombine.low %v1878_v1, %v1882_v3  ;;  %v11165_v22 = vcombine.high %v1886_v15, %v1890_v16 }
 0x180   :  { %9045 = vmatprep.subr.bf16.mxu0 %v11125_v12  ;;  %9475 = vmatprep.subr.bf16.mxu1 %v11127_v13  ;;  %v12923_v12 = vld [vmem:[#allocation7 + $0x8] sm:$0xff]  ;;  %v11157_v13 = vcombine.high %v1878_v1, %v1882_v3  ;;  %v11159_v14 = vcombine.high %v1879_v4, %v1883_v8  ;;  %v11158_v20 = vcombine.low %v1879_v4, %v1883_v8  ;;  %v1899_v27 = vld [vmem:[#allocation8 + $0x7e8] sm:$0xff] }
 0x181   :  { %v289_v42 = vrot.slane %v12923_v12, %v12858_v41  ;;  %v293_v21 = vrot.slane %v12923_v12, %v12863_v43  ;;  %v11167_v23 = vcombine.high %v1887_v17, %v1891_v18  ;;  %v11164_v32 = vcombine.low %v1886_v15, %v1890_v16  ;;  %v1911_v15 = vld [vmem:[#allocation8 + $0x848] sm:$0xff] }
 0x182   :  { %v11166_v33 = vcombine.low %v1887_v17, %v1891_v18  ;;  %v11175_v38 = vcombine.high %v1895_v26, %v1899_v27  ;;  %v297_v4 = vrot.slane %v12923_v12, %v12870_v54  ;;  %v1915_v16 = vld [vmem:[#allocation8 + $0x868] sm:$0xff]  ;;  %v11180_v18 = vcombine.low %v1902_v39, %v1906_v44 }
 0x183   :  { %9046 = vmatpush1.bf16.msra.mxu0 %v11124_v24  ;;  %9476 = vmatpush1.bf16.msra.mxu1 %v11126_v25  ;;  %v1894_v24 = vld [vmem:[#allocation8 + $0x7c0] sm:$0xff] }
 0x184   :  { %9047 = vmatprep.subr.bf16.mxu0 %v11133_v29  ;;  %9477 = vmatprep.subr.bf16.mxu1 %v11135_v30  ;;  %v1898_v25 = vld [vmem:[#allocation8 + $0x7e0] sm:$0xff] }
 0x185   :  { %v11173_v37 = vcombine.high %v1894_v24, %v1898_v25  ;;  %v11172_v58 = vcombine.low %v1894_v24, %v1898_v25  ;;  %v11191_v24 = vcombine.high %v1911_v15, %v1915_v16  ;;  %v1918_v25 = vld [vmem:[#allocation8 + $0x880] sm:$0xff] }
 0x187   :  { %9048 = vmatpush1.bf16.msra.mxu0 %v11132_v45  ;;  %9478 = vmatpush1.bf16.msra.mxu1 %v11134_v47 }
 0x188   :  { %9049 = vmatprep.subr.bf16.mxu0 %v11141_v49  ;;  %9479 = vmatprep.subr.bf16.mxu1 %v11143_v51  ;;  %v1903_v49 = vld [vmem:[#allocation8 + $0x808] sm:$0xff] }
 0x189   :  { %v1907_v51 = vld [vmem:[#allocation8 + $0x828] sm:$0xff] }
 0x18a   :  { %v11183_v3 = vcombine.high %v1903_v49, %v1907_v51 }
 0x18b   :  { %9050 = vmatpush1.bf16.msra.mxu0 %v11140_v61  ;;  %9480 = vmatpush1.bf16.msra.mxu1 %v11142_v62  ;;  %v11174_v62 = vcombine.low %v1895_v26, %v1899_v27  ;;  %v1922_v26 = vld [vmem:[#allocation8 + $0x8a0] sm:$0xff] }
 0x18c   :  { %9051 = vmatprep.subr.bf16.mxu0 %v11149_v40  ;;  %9481 = vmatprep.subr.bf16.mxu1 %v11151_v63  ;;  %v11181_v40 = vcombine.high %v1902_v39, %v1906_v44  ;;  %v11190_v39 = vcombine.low %v1911_v15, %v1915_v16  ;;  %v11197_v44 = vcombine.high %v1918_v25, %v1922_v26 }
 0x18f   :  { %9052 = vmatpush1.bf16.msra.mxu0 %v11148_v9  ;;  %9482 = vmatpush1.bf16.msra.mxu1 %v11150_v10  ;;  %v1910_v9 = vld [vmem:[#allocation8 + $0x840] sm:$0xff]  ;;  %v301_v10 = vrot.slane %v12923_v12, %v12873_v57 }
 0x190   :  { %9053 = vmatprep.subr.bf16.mxu0 %v11157_v13  ;;  %9483 = vmatprep.subr.bf16.mxu1 %v11159_v14  ;;  %v1914_v14 = vld [vmem:[#allocation8 + $0x860] sm:$0xff] }
 0x191   :  { %v1329_v29 = vpop.f32.mrb[8].mxu0 }
 0x192   :  { %v1330_v30 = vadd.f32 %v1329_v29, %v289_v42  ;;  %v1331_v31 = vpop.f32.mrb[9].mxu0 }
 0x193   :  { %9054 = vmatpush1.bf16.msra.mxu0 %v11156_v19  ;;  %9484 = vmatpush1.bf16.msra.mxu1 %v11158_v20  ;;  %v1332_v34 = vadd.f32 %v1331_v31, %v293_v21  ;;  %v1333_v35 = vpop.f32.mrb[10].mxu0  ;;  %v11182_v20 = vcombine.low %v1903_v49, %v1907_v51  ;;  %v1923_v31 = vld [vmem:[#allocation8 + $0x8a8] sm:$0xff]  ;;  %v1926_v49 = vld [vmem:[#allocation8 + $0x8c0] sm:$0xff] }
 0x194   :  { %9055 = vmatprep.subr.bf16.mxu0 %v11165_v22  ;;  %9485 = vmatprep.subr.bf16.mxu1 %v11167_v23  ;;  %v1559_v45 = vmul.f32 0.01, %v1330_v30  ;;  %v1334_v47 = vadd.f32 %v1333_v35, %v289_v42  ;;  %v1335_v48 = vpop.f32.mrb[11].mxu0  ;;  %v1372_v42 = vpop.f32.mrb[8].mxu1  ;;  %v11189_v23 = vcombine.high %v1910_v9, %v1914_v14  ;;  %v11188_v35 = vcombine.low %v1910_v9, %v1914_v14  ;;  %v1930_v51 = vld [vmem:[#allocation8 + $0x8e0] sm:$0xff]  ;;  %v1939_v14 = vld [vmem:[#allocation8 + $0x928] sm:$0xff] }
 0x195   :  { %v1560_v52 = vmul.f32 0.01, %v1332_v34  ;;  %v1336_v56 = vadd.f32 %v1335_v48, %v293_v21  ;;  %v1373_v21 = vadd.f32 %v1372_v42, %v297_v4  ;;  %v1374_v22 = vpop.f32.mrb[9].mxu1  ;;  %v1938_v9 = vld [vmem:[#allocation8 + $0x920] sm:$0xff]  ;;  %v11204_v15 = vcombine.low %v1926_v49, %v1930_v51 }
 0x196   :  { %v1597_v59 = vmax.f32 %v1330_v30, %v1559_v45  ;;  %v1578_v61 = vmul.f32 0.01, %v1334_v47  ;;  %v1375_v27 = vadd.f32 %v1374_v22, %v301_v10  ;;  %v1376_v29 = vpop.f32.mrb[10].mxu1  ;;  %v1919_v30 = vld [vmem:[#allocation8 + $0x888] sm:$0xff] }
 0x197   :  { %9056 = vmatpush1.bf16.msra.mxu0 %v11164_v32  ;;  %9486 = vmatpush1.bf16.msra.mxu1 %v11166_v33  ;;  %v1598_v63 = vmax.f32 %v1332_v34, %v1560_v52  ;;  %v1579_v1 = vmul.f32 0.01, %v1336_v56  ;;  %v1561_v32 = vmul.f32 0.01, %v1373_v21  ;;  %v1377_v33 = vadd.f32 %v1376_v29, %v297_v4  ;;  %v1378_v34 = vpop.f32.mrb[11].mxu1  ;;  %v1943_v22 = vld [vmem:[#allocation8 + $0x948] sm:$0xff] }
 0x198   :  { %9057 = vmatprep.subr.bf16.mxu0 %v11173_v37  ;;  %9487 = vmatprep.subr.bf16.mxu1 %v11175_v38  ;;  %v1616_v8 = vmax.f32 %v1334_v47, %v1578_v61  ;;  %v1562_v37 = vmul.f32 0.01, %v1375_v27  ;;  %v1379_v38 = vadd.f32 %v1378_v34, %v301_v10  ;;  %v11199_v48 = vcombine.high %v1919_v30, %v1923_v31  ;;  %v1950_v29 = vld [vmem:[#allocation8 + $0x980] sm:$0xff] }
 0x199   :  { %v1617_v13 = vmax.f32 %v1336_v56, %v1579_v1  ;;  %v1599_v45 = vmax.f32 %v1373_v21, %v1561_v32  ;;  %v1580_v47 = vmul.f32 0.01, %v1377_v33  ;;  %v11205_v1 = vcombine.high %v1926_v49, %v1930_v51  ;;  %v1946_v21 = vld [vmem:[#allocation8 + $0x960] sm:$0xff]  ;;  %v1955_v32 = vld [vmem:[#allocation8 + $0x9a8] sm:$0xff] }
 0x19a   :  { %v12933_v17 = vpack.c.bf16 %v1616_v8, %v1597_v59  ;;  %v1600_v52 = vmax.f32 %v1375_v27, %v1562_v37  ;;  %v1581_v56 = vmul.f32 0.01, %v1379_v38  ;;  %v1931_v59 = vld [vmem:[#allocation8 + $0x8e8] sm:$0xff]  ;;  %v1934_v8 = vld [vmem:[#allocation8 + $0x900] sm:$0xff] }
 0x19b   :  { %9058 = vmatpush1.bf16.msra.mxu0 %v11172_v58  ;;  %9488 = vmatpush1.bf16.msra.mxu1 %v11174_v62  ;;  %v12935_v19 = vpack.c.bf16 %v1617_v13, %v1598_v63  ;;  %v1927_v58 = vld [vmem:[#allocation8 + $0x8c8] sm:$0xff]  ;;  %v1618_v61 = vmax.f32 %v1377_v33, %v1580_v47  ;;  %v11196_v62 = vcombine.low %v1918_v25, %v1922_v26 }
 0x19c   :  { %9070 = vmatprep.subr.bf16.mxu0 %v11181_v40  ;;  %9500 = vmatprep.subr.bf16.mxu1 %v11183_v3  ;;  %v1619_v40 = vmax.f32 %v1379_v38, %v1581_v56  ;;  %v11198_v63 = vcombine.low %v1919_v30, %v1923_v31  ;;  %v11207_v4 = vcombine.high %v1927_v58, %v1931_v59  ;;  %v1935_v13 = vld [vmem:[#allocation8 + $0x908] sm:$0xff]  ;;  %v1954_v30 = vld [vmem:[#allocation8 + $0x9a0] sm:$0xff] }
 0x19d   :  { %v12941_v3 = vpack.c.bf16 %v1618_v61, %v1599_v45  ;;  %v11206_v16 = vcombine.low %v1927_v58, %v1931_v59  ;;  %v11215_v42 = vcombine.high %v1935_v13, %v1939_v14  ;;  %v11214_v25 = vcombine.low %v1935_v13, %v1939_v14  ;;  %v1951_v31 = vld [vmem:[#allocation8 + $0x988] sm:$0xff]  ;;  %v1962_v45 = vld [vmem:[#allocation8 + $0x9e0] sm:$0xff] }
 0x19e   :  { %9060 = vmatmul.mubr.bf16.vlgmr.msra.gmra.mrb[20].mxu0 %v12889_v50  ;;  %9490 = vmatmul.mubr.bf16.vlgmr.msra.gmra.mrb[20].mxu1 %v12889_v50  ;;  %v12943_v10 = vpack.c.bf16 %v1619_v40, %v1600_v52  ;;  %v305_v33 = vrot.slane %v12923_v12, %v12896_v2  ;;  %v11229_v38 = vcombine.high %v1950_v29, %v1954_v30  ;;  %v1963_v49 = vld [vmem:[#allocation8 + $0x9e8] sm:$0xff] }
 0x19f   :  { %9071 = vmatpush1.bf16.msra.mxu0 %v11180_v18  ;;  %9102 = vmatprep.mubr.bf16.mxu0 %v12917_v11  ;;  %v11213_v18 = vcombine.high %v1934_v8, %v1938_v9  ;;  %v11228_v56 = vcombine.low %v1950_v29, %v1954_v30  ;;  %v11230_v61 = vcombine.low %v1951_v31, %v1955_v32  ;;  %v1974_v29 = vld [vmem:[#allocation8 + $0xa40] sm:$0xff] }
 0x1a0   :  { %9501 = vmatpush1.bf16.msra.mxu1 %v11182_v20  ;;  %9532 = vmatprep.mubr.bf16.mxu1 %v12917_v11  ;;  %v1942_v20 = vld [vmem:[#allocation8 + $0x940] sm:$0xff] }
 0x1a1   :  { %9072 = vmatprep.subr.bf16.mxu0 %v11189_v23  ;;  %9502 = vmatprep.subr.bf16.mxu1 %v11191_v24  ;;  %v1947_v23 = vld [vmem:[#allocation8 + $0x968] sm:$0xff]  ;;  %v11212_v24 = vcombine.low %v1934_v8, %v1938_v9  ;;  %v11221_v26 = vcombine.high %v1942_v20, %v1946_v21  ;;  %v11220_v34 = vcombine.low %v1942_v20, %v1946_v21  ;;  %v1966_v8 = vld [vmem:[#allocation8 + $0xa00] sm:$0xff] }
 0x1a2   :  { %v11223_v27 = vcombine.high %v1943_v22, %v1947_v23  ;;  %v11222_v37 = vcombine.low %v1943_v22, %v1947_v23  ;;  %v1970_v9 = vld [vmem:[#allocation8 + $0xa20] sm:$0xff] }
 0x1a3   :  { %9073 = vmatpush1.bf16.msra.mxu0 %v11188_v35  ;;  %v309_v35 = vrot.slane %v12923_v12, %v12899_v5  ;;  %v1978_v30 = vld [vmem:[#allocation8 + $0xa60] sm:$0xff] }
 0x1a4   :  { %9503 = vmatpush1.bf16.msra.mxu1 %v11190_v39  ;;  %9074 = vmatprep.subr.bf16.mxu0 %v11197_v44  ;;  %v11231_v39 = vcombine.high %v1951_v31, %v1955_v32  ;;  %v1958_v44 = vld [vmem:[#allocation8 + $0x9c0] sm:$0xff]  ;;  %v317_v31 = vrot.slane %v12923_v12, %v12909_v46 }
 0x1a5   :  { %9504 = vmatprep.subr.bf16.mxu1 %v11199_v48  ;;  %v1959_v48 = vld [vmem:[#allocation8 + $0x9c8] sm:$0xff]  ;;  %v11236_v20 = vcombine.low %v1958_v44, %v1962_v45 }
 0x1a6   :  { %v11238_v21 = vcombine.low %v1959_v48, %v1963_v49 }
 0x1a7   :  { %9075 = vmatpush1.bf16.msra.mxu0 %v11196_v62  ;;  %v11237_v62 = vcombine.high %v1958_v44, %v1962_v45  ;;  %v11253_v45 = vcombine.high %v1974_v29, %v1978_v30 }
 0x1a8   :  { %9505 = vmatpush1.bf16.msra.mxu1 %v11198_v63  ;;  %9076 = vmatprep.subr.bf16.mxu0 %v11205_v1 }
 0x1a9   :  { %9506 = vmatprep.subr.bf16.mxu1 %v11207_v4  ;;  %v11239_v4 = vcombine.high %v1959_v48, %v1963_v49 }
 0x1ab   :  { %9077 = vmatpush1.bf16.msra.mxu0 %v11204_v15  ;;  %v1967_v15 = vld [vmem:[#allocation8 + $0xa08] sm:$0xff] }
 0x1ac   :  { %9507 = vmatpush1.bf16.msra.mxu1 %v11206_v16  ;;  %9078 = vmatprep.subr.bf16.mxu0 %v11213_v18  ;;  %v1971_v16 = vld [vmem:[#allocation8 + $0xa28] sm:$0xff] }
 0x1ad   :  { %9508 = vmatprep.subr.bf16.mxu1 %v11215_v42  ;;  %v11246_v44 = vcombine.low %v1967_v15, %v1971_v16 }
 0x1af   :  { %9079 = vmatpush1.bf16.msra.mxu0 %v11212_v24  ;;  %v11245_v24 = vcombine.high %v1966_v8, %v1970_v9 }
 0x1b0   :  { %9509 = vmatpush1.bf16.msra.mxu1 %v11214_v25  ;;  %9080 = vmatprep.subr.bf16.mxu0 %v11221_v26  ;;  %v313_v25 = vrot.slane %v12923_v12, %v12906_v36  ;;  %v1986_v12 = vld [vmem:[#allocation8 + $0xaa0] sm:$0xff] }
 0x1b1   :  { %9510 = vmatprep.subr.bf16.mxu1 %v11223_v27  ;;  %v1415_v47 = vpop.f32.mrb[12].mxu0  ;;  %v11247_v27 = vcombine.high %v1967_v15, %v1971_v16  ;;  %v1990_v16 = vld [vmem:[#allocation8 + $0xac0] sm:$0xff] }
 0x1b2   :  { %v1416_v51 = vadd.f32 %v1415_v47, %v305_v33  ;;  %v1417_v52 = vpop.f32.mrb[13].mxu0 }
 0x1b3   :  { %9081 = vmatpush1.bf16.msra.mxu0 %v11220_v34  ;;  %v1418_v58 = vadd.f32 %v1417_v52, %v309_v35  ;;  %v1419_v59 = vpop.f32.mrb[14].mxu0  ;;  %v1979_v34 = vld [vmem:[#allocation8 + $0xa68] sm:$0xff] }
 0x1b4   :  { %9511 = vmatpush1.bf16.msra.mxu1 %v11222_v37  ;;  %9082 = vmatprep.subr.bf16.mxu0 %v11229_v38  ;;  %v1563_v40 = vmul.f32 0.01, %v1416_v51  ;;  %v1420_v63 = vadd.f32 %v1419_v59, %v305_v33  ;;  %v1421_v1 = vpop.f32.mrb[15].mxu0  ;;  %v1975_v33 = vld [vmem:[#allocation8 + $0xa48] sm:$0xff]  ;;  %v11244_v37 = vcombine.low %v1966_v8, %v1970_v9  ;;  %v1458_v38 = vpop.f32.mrb[12].mxu1 }
 0x1b5   :  { %9512 = vmatprep.subr.bf16.mxu1 %v11231_v39  ;;  %v1564_v13 = vmul.f32 0.01, %v1418_v58  ;;  %v1422_v14 = vadd.f32 %v1421_v1, %v309_v35  ;;  %v1459_v47 = vadd.f32 %v1458_v38, %v313_v25  ;;  %v1460_v48 = vpop.f32.mrb[13].mxu1  ;;  %v11255_v49 = vcombine.high %v1975_v33, %v1979_v34  ;;  %v1987_v59 = vld [vmem:[#allocation8 + $0xaa8] sm:$0xff] }
 0x1b6   :  { %v1601_v18 = vmax.f32 %v1416_v51, %v1563_v40  ;;  %v1582_v42 = vmul.f32 0.01, %v1420_v63  ;;  %v1982_v51 = vld [vmem:[#allocation8 + $0xa80] sm:$0xff]  ;;  %v1461_v52 = vadd.f32 %v1460_v48, %v317_v31  ;;  %v11254_v8 = vcombine.low %v1975_v33, %v1979_v34  ;;  %v1999_v34 = vld [vmem:[#allocation8 + $0xb08] sm:$0xff] }
 0x1b7   :  { %9083 = vmatpush1.bf16.msra.mxu0 %v11228_v56  ;;  %v1602_v22 = vmax.f32 %v1418_v58, %v1564_v13  ;;  %v1583_v23 = vmul.f32 0.01, %v1422_v14  ;;  %v1462_v56 = vpop.f32.mrb[14].mxu1  ;;  %v1983_v58 = vld [vmem:[#allocation8 + $0xa88] sm:$0xff]  ;;  %v11261_v9 = vcombine.high %v1982_v51, %v1986_v12  ;;  %v2006_v48 = vld [vmem:[#allocation8 + $0xb40] sm:$0xff] }
 0x1b8   :  { %9513 = vmatpush1.bf16.msra.mxu1 %v11230_v61  ;;  %9084 = vmatprep.subr.bf16.mxu0 %v11237_v62  ;;  %v1620_v26 = vmax.f32 %v1420_v63, %v1582_v42  ;;  %v1565_v61 = vmul.f32 0.01, %v1459_v47  ;;  %v1463_v62 = vadd.f32 %v1462_v56, %v313_v25  ;;  %v1464_v40 = vpop.f32.mrb[15].mxu1  ;;  %v11252_v63 = vcombine.low %v1974_v29, %v1978_v30  ;;  %v250_v56 = vld [vmem:[#allocation7 + $0x10] sm:$0x7] }
 0x1b9   :  { %9514 = vmatprep.subr.bf16.mxu1 %v11239_v4  ;;  %v1621_v32 = vmax.f32 %v1422_v14, %v1583_v23  ;;  %v1566_v1 = vmul.f32 0.01, %v1461_v52  ;;  %v1465_v4 = vadd.f32 %v1464_v40, %v317_v31  ;;  %v11263_v15 = vcombine.high %v1983_v58, %v1987_v59  ;;  %v1998_v31 = vld [vmem:[#allocation8 + $0xb00] sm:$0xff] }
 0x1ba   :  { %v12953_v35 = vpack.c.bf16 %v1620_v26, %v1601_v18  ;;  %v1603_v13 = vmax.f32 %v1459_v47, %v1565_v61  ;;  %v1584_v14 = vmul.f32 0.01, %v1463_v62  ;;  %v1994_v18 = vld [vmem:[#allocation8 + $0xae0] sm:$0xff]  ;;  %v11262_v26 = vcombine.low %v1983_v58, %v1987_v59 }
 0x1bb   :  { %9085 = vmatpush1.bf16.msra.mxu0 %v11236_v20  ;;  %v12955_v39 = vpack.c.bf16 %v1621_v32, %v1602_v22  ;;  %v1604_v42 = vmax.f32 %v1461_v52, %v1566_v1  ;;  %v1585_v20 = vmul.f32 0.01, %v1465_v4  ;;  %v1995_v22 = vld [vmem:[#allocation8 + $0xae8] sm:$0xff]  ;;  %v2002_v32 = vld [vmem:[#allocation8 + $0xb20] sm:$0xff]  ;;  %v11268_v38 = vcombine.low %v1990_v16, %v1994_v18 }
 0x1bc   :  { %9515 = vmatpush1.bf16.msra.mxu1 %v11238_v21  ;;  %9086 = vmatprep.subr.bf16.mxu0 %v11245_v24  ;;  %v1991_v21 = vld [vmem:[#allocation8 + $0xac8] sm:$0xff]  ;;  %v1622_v23 = vmax.f32 %v1463_v62, %v1584_v14  ;;  %v11260_v24 = vcombine.low %v1982_v51, %v1986_v12  ;;  %v11276_v52 = vcombine.low %v1998_v31, %v2002_v32  ;;  %v2014_v62 = vld [vmem:[#allocation8 + $0xb80] sm:$0xff] }
 0x1bd   :  { %9516 = vmatprep.subr.bf16.mxu1 %v11247_v27  ;;  %v1623_v25 = vmax.f32 %v1465_v4, %v1585_v20  ;;  %v11269_v27 = vcombine.high %v1990_v16, %v1994_v18  ;;  %v11271_v30 = vcombine.high %v1991_v21, %v1995_v22  ;;  %v2007_v51 = vld [vmem:[#allocation8 + $0xb48] sm:$0xff]  ;;  %v2018_v40 = vld [vmem:[#allocation8 + $0xba0] sm:$0xff]  ;;  %v321_v4 = vrot.slane %v250_v56, %v12858_v41 }
 0x1be   :  { %v12957_v29 = vpack.c.bf16 %v1622_v23, %v1603_v13  ;;  %v2011_v12 = vld [vmem:[#allocation8 + $0xb68] sm:$0xff]  ;;  %v11293_v14 = vcombine.high %v2014_v62, %v2018_v40  ;;  %v2022_v16 = vld [vmem:[#allocation8 + $0xbc0] sm:$0xff] }
 0x1bf   :  { %9087 = vmatpush1.bf16.msra.mxu0 %v11244_v37  ;;  %v12959_v33 = vpack.c.bf16 %v1623_v25, %v1604_v42  ;;  %v2003_v37 = vld [vmem:[#allocation8 + $0xb28] sm:$0xff]  ;;  %v11287_v61 = vcombine.high %v2007_v51, %v2011_v12  ;;  %v11286_v13 = vcombine.low %v2007_v51, %v2011_v12  ;;  %v2026_v18 = vld [vmem:[#allocation8 + $0xbe0] sm:$0xff] }
 0x1c0   :  { %9517 = vmatpush1.bf16.msra.mxu1 %v11246_v44  ;;  %9088 = vmatprep.subr.bf16.mxu0 %v11253_v45  ;;  %v11270_v44 = vcombine.low %v1991_v21, %v1995_v22  ;;  %v11277_v45 = vcombine.high %v1998_v31, %v2002_v32  ;;  %v11279_v47 = vcombine.high %v1999_v34, %v2003_v37  ;;  %v2019_v1 = vld [vmem:[#allocation8 + $0xba8] sm:$0xff] }
 0x1c1   :  { %9518 = vmatprep.subr.bf16.mxu1 %v11255_v49  ;;  %v2010_v49 = vld [vmem:[#allocation8 + $0xb60] sm:$0xff]  ;;  %v11278_v58 = vcombine.low %v1999_v34, %v2003_v37  ;;  %v2023_v20 = vld [vmem:[#allocation8 + $0xbc8] sm:$0xff] }
 0x1c2   :  { %v11285_v59 = vcombine.high %v2006_v48, %v2010_v49  ;;  %v2027_v21 = vld [vmem:[#allocation8 + $0xbe8] sm:$0xff] }
 0x1c3   :  { %9089 = vmatpush1.bf16.msra.mxu0 %v11252_v63  ;;  %v2015_v63 = vld [vmem:[#allocation8 + $0xb88] sm:$0xff]  ;;  %v11303_v37 = vcombine.high %v2023_v20, %v2027_v21 }
 0x1c4   :  { %9519 = vmatpush1.bf16.msra.mxu1 %v11254_v8  ;;  %9090 = vmatprep.subr.bf16.mxu0 %v11261_v9  ;;  %v11284_v8 = vcombine.low %v2006_v48, %v2010_v49  ;;  %v325_v9 = vrot.slane %v250_v56, %v12863_v43  ;;  %v2031_v48 = vld [vmem:[#allocation8 + $0xc08] sm:$0xff] }
 0x1c5   :  { %9520 = vmatprep.subr.bf16.mxu1 %v11263_v15  ;;  %v11295_v15 = vcombine.high %v2015_v63, %v2019_v1  ;;  %v2035_v49 = vld [vmem:[#allocation8 + $0xc28] sm:$0xff] }
 0x1c7   :  { %9091 = vmatpush1.bf16.msra.mxu0 %v11260_v24  ;;  %v11292_v24 = vcombine.low %v2014_v62, %v2018_v40  ;;  %v329_v40 = vrot.slane %v250_v56, %v12870_v54 }
 0x1c8   :  { %9521 = vmatpush1.bf16.msra.mxu1 %v11262_v26  ;;  %9092 = vmatprep.subr.bf16.mxu0 %v11269_v27  ;;  %v11294_v27 = vcombine.low %v2015_v63, %v2019_v1  ;;  %v11311_v1 = vcombine.high %v2031_v48, %v2035_v49 }
 0x1c9   :  { %9522 = vmatprep.subr.bf16.mxu1 %v11271_v30  ;;  %v11301_v30 = vcombine.high %v2022_v16, %v2026_v18 }
 0x1cb   :  { %9093 = vmatpush1.bf16.msra.mxu0 %v11268_v38  ;;  %v2030_v38 = vld [vmem:[#allocation8 + $0xc00] sm:$0xff] }
 0x1cc   :  { %9523 = vmatpush1.bf16.msra.mxu1 %v11270_v44  ;;  %9094 = vmatprep.subr.bf16.mxu0 %v11277_v45  ;;  %v2034_v44 = vld [vmem:[#allocation8 + $0xc20] sm:$0xff] }
 0x1cd   :  { %9524 = vmatprep.subr.bf16.mxu1 %v11279_v47  ;;  %v11309_v62 = vcombine.high %v2030_v38, %v2034_v44 }
 0x1cf   :  { %9095 = vmatpush1.bf16.msra.mxu0 %v11276_v52  ;;  %v11300_v52 = vcombine.low %v2022_v16, %v2026_v18  ;;  %v2043_v16 = vld [vmem:[#allocation8 + $0xc68] sm:$0xff] }
 0x1d0   :  { %9525 = vmatpush1.bf16.msra.mxu1 %v11278_v58  ;;  %9096 = vmatprep.subr.bf16.mxu0 %v11285_v59  ;;  %v11302_v58 = vcombine.low %v2023_v20, %v2027_v21  ;;  %v11310_v20 = vcombine.low %v2031_v48, %v2035_v49  ;;  %v2054_v49 = vld [vmem:[#allocation8 + $0xcc0] sm:$0xff] }
 0x1d1   :  { %9526 = vmatprep.subr.bf16.mxu1 %v11287_v61  ;;  %v1501_v42 = vpop.f32.mrb[16].mxu0 }
 0x1d2   :  { %v1502_v22 = vadd.f32 %v1501_v42, %v321_v4  ;;  %v1503_v23 = vpop.f32.mrb[17].mxu0 }
 0x1d3   :  { %9097 = vmatpush1.bf16.msra.mxu0 %v11284_v8  ;;  %v1504_v25 = vadd.f32 %v1503_v23, %v325_v9  ;;  %v1505_v26 = vpop.f32.mrb[18].mxu0  ;;  %v2038_v8 = vld [vmem:[#allocation8 + $0xc40] sm:$0xff]  ;;  %v1544_v18 = vpop.f32.mrb[16].mxu1 }
 0x1d4   :  { %9527 = vmatpush1.bf16.msra.mxu1 %v11286_v13  ;;  %9098 = vmatprep.subr.bf16.mxu0 %v11293_v14  ;;  %v1567_v31 = vmul.f32 0.01, %v1502_v22  ;;  %v1506_v32 = vadd.f32 %v1505_v26, %v321_v4  ;;  %v1507_v34 = vpop.f32.mrb[19].mxu0  ;;  %v11308_v14 = vcombine.low %v2030_v38, %v2034_v44  ;;  %v1545_v21 = vadd.f32 %v1544_v18, %v329_v40  ;;  %v12167_v56 = vpop.f32.mrb[17].mxu1  ;;  %v2046_v23 = vld [vmem:[#allocation8 + $0xc80] sm:$0xff] }
 0x1d5   :  { %9528 = vmatprep.subr.bf16.mxu1 %v11295_v15  ;;  %v1568_v45 = vmul.f32 0.01, %v1504_v25  ;;  %v1508_v47 = vadd.f32 %v1507_v34, %v325_v9  ;;  %v2042_v9 = vld [vmem:[#allocation8 + $0xc60] sm:$0xff]  ;;  %v2039_v15 = vld [vmem:[#allocation8 + $0xc48] sm:$0xff] }
 0x1d6   :  { %v1605_v51 = vmax.f32 %v1502_v22, %v1567_v31  ;;  %v1586_v12 = vmul.f32 0.01, %v1506_v32  ;;  %v11317_v22 = vcombine.high %v2038_v8, %v2042_v9  ;;  %v11319_v26 = vcombine.high %v2039_v15, %v2043_v16  ;;  %v2071_v56 = vld [vmem:[#allocation8 + $0xd48] sm:$0xff] }
 0x1d7   :  { %9099 = vmatpush1.bf16.msra.mxu0 %v11292_v24  ;;  %v1606_v59 = vmax.f32 %v1504_v25, %v1568_v45  ;;  %v1587_v61 = vmul.f32 0.01, %v1508_v47  ;;  %v2050_v24 = vld [vmem:[#allocation8 + $0xca0] sm:$0xff]  ;;  %v1547_v25 = vpop.f32.mrb[18].mxu1  ;;  %v1569_v31 = vmul.f32 0.01, %v1545_v21  ;;  %v11318_v38 = vcombine.low %v2039_v15, %v2043_v16 }
 0x1d8   :  { %9529 = vmatpush1.bf16.msra.mxu1 %v11294_v27  ;;  %9100 = vmatprep.subr.bf16.mxu0 %v11301_v30  ;;  %v1624_v63 = vmax.f32 %v1506_v32, %v1586_v12  ;;  %v2047_v27 = vld [vmem:[#allocation8 + $0xc88] sm:$0xff]  ;;  %v1548_v32 = vadd.f32 %v1547_v25, %v329_v40  ;;  %v12168_v34 = vpop.f32.mrb[19].mxu1  ;;  %v11325_v44 = vcombine.high %v2046_v23, %v2050_v24 }
 0x1d9   :  { %9530 = vmatprep.subr.bf16.mxu1 %v11303_v37  ;;  %v1625_v4 = vmax.f32 %v1508_v47, %v1587_v61  ;;  %v2051_v30 = vld [vmem:[#allocation8 + $0xca8] sm:$0xff]  ;;  %v11316_v37 = vcombine.low %v2038_v8, %v2042_v9  ;;  %v1607_v45 = vmax.f32 %v1545_v21, %v1569_v31  ;;  %v2074_v21 = vld [vmem:[#allocation8 + $0xd60] sm:$0xff] }
 0x1da   :  { %v12964_v13 = vpack.c.bf16 %v1624_v63, %v1605_v51  ;;  %v1588_v47 = vmul.f32 0.01, %v1548_v32  ;;  %v11327_v48 = vcombine.high %v2047_v27, %v2051_v30  ;;  %v2058_v51 = vld [vmem:[#allocation8 + $0xce0] sm:$0xff]  ;;  %v2055_v12 = vld [vmem:[#allocation8 + $0xcc8] sm:$0xff]  ;;  %v11326_v61 = vcombine.low %v2047_v27, %v2051_v30 }
 0x1db   :  { %9101 = vmatpush1.bf16.msra.mxu0 %v11300_v52  ;;  %v12966_v42 = vpack.c.bf16 %v1625_v4, %v1606_v59  ;;  %v2059_v52 = vld [vmem:[#allocation8 + $0xce8] sm:$0xff]  ;;  %v11324_v59 = vcombine.low %v2046_v23, %v2050_v24  ;;  %v2066_v4 = vld [vmem:[#allocation8 + $0xd20] sm:$0xff] }
 0x1dc   :  { %9531 = vmatpush1.bf16.msra.mxu1 %v11302_v58  ;;  %9113 = vmatprep.subr.bf16.mxu0 %v11309_v62  ;;  %v1626_v58 = vmax.f32 %v1548_v32, %v1588_v47  ;;  %v11333_v62 = vcombine.high %v2054_v49, %v2058_v51  ;;  %v11335_v63 = vcombine.high %v2055_v12, %v2059_v52  ;;  %v2063_v8 = vld [vmem:[#allocation8 + $0xd08] sm:$0xff]  ;;  %v2078_v27 = vld [vmem:[#allocation8 + $0xd80] sm:$0xff] }
 0x1dd   :  { %9543 = vmatprep.subr.bf16.mxu1 %v11311_v1  ;;  %v2062_v1 = vld [vmem:[#allocation8 + $0xd00] sm:$0xff]  ;;  %v2067_v9 = vld [vmem:[#allocation8 + $0xd28] sm:$0xff]  ;;  %v11334_v15 = vcombine.low %v2055_v12, %v2059_v52 }
 0x1de   :  { %9103 = vmatmul.mubr.bf16.vlgmr.msra.gmra.mrb[20].mxu0 %v12915_v6  ;;  %v12972_v40 = vpack.c.bf16 %v1626_v58, %v1607_v45  ;;  %v11341_v16 = vcombine.high %v2062_v1, %v2066_v4  ;;  %v11343_v18 = vcombine.high %v2063_v8, %v2067_v9  ;;  %v11340_v23 = vcombine.low %v2062_v1, %v2066_v4  ;;  %v2082_v30 = vld [vmem:[#allocation8 + $0xda0] sm:$0xff]  ;;  %v2079_v31 = vld [vmem:[#allocation8 + $0xd88] sm:$0xff] }
 0x1df   :  { %9533 = vmatmul.mubr.bf16.vlgmr.msra.gmra.mrb[20].mxu1 %v12915_v6  ;;  %9114 = vmatpush1.bf16.msra.mxu0 %v11308_v14  ;;  %v11332_v14 = vcombine.low %v2054_v49, %v2058_v51  ;;  %v11342_v24 = vcombine.low %v2063_v8, %v2067_v9  ;;  %v2083_v32 = vld [vmem:[#allocation8 + $0xda8] sm:$0xff]  ;;  %v2086_v45 = vld [vmem:[#allocation8 + $0xdc0] sm:$0xff]  ;;  %v11356_v51 = vcombine.low %v2078_v27, %v2082_v30 }
 0x1e0   :  { %9145 = vmatprep.mubr.bf16.mxu0 %v12921_v60  ;;  %9544 = vmatpush1.bf16.msra.mxu1 %v11310_v20  ;;  %v2070_v20 = vld [vmem:[#allocation8 + $0xd40] sm:$0xff]  ;;  %v2091_v49 = vld [vmem:[#allocation8 + $0xde8] sm:$0xff]  ;;  %v11358_v12 = vcombine.low %v2079_v31, %v2083_v32 }
 0x1e1   :  { %9575 = vmatprep.mubr.bf16.mxu1 %v12921_v60  ;;  %9115 = vmatprep.subr.bf16.mxu0 %v11317_v22  ;;  %v2075_v22 = vld [vmem:[#allocation8 + $0xd68] sm:$0xff]  ;;  %v11349_v25 = vcombine.high %v2070_v20, %v2074_v21  ;;  %v11348_v34 = vcombine.low %v2070_v20, %v2074_v21  ;;  %v2090_v47 = vld [vmem:[#allocation8 + $0xde0] sm:$0xff] }
 0x1e2   :  { %9545 = vmatprep.subr.bf16.mxu1 %v11319_v26  ;;  %v11351_v26 = vcombine.high %v2071_v56, %v2075_v22  ;;  %v11365_v52 = vcombine.high %v2086_v45, %v2090_v47  ;;  %v11364_v1 = vcombine.low %v2086_v45, %v2090_v47 }
 0x1e3   :  { %9116 = vmatpush1.bf16.msra.mxu0 %v11316_v37  ;;  %v11350_v37 = vcombine.low %v2071_v56, %v2075_v22 }
 0x1e4   :  { %9546 = vmatpush1.bf16.msra.mxu1 %v11318_v38  ;;  %9117 = vmatprep.subr.bf16.mxu0 %v11325_v44  ;;  %v11357_v38 = vcombine.high %v2078_v27, %v2082_v30  ;;  %v11359_v44 = vcombine.high %v2079_v31, %v2083_v32 }
 0x1e5   :  { %9547 = vmatprep.subr.bf16.mxu1 %v11327_v48  ;;  %v2087_v48 = vld [vmem:[#allocation8 + $0xdc8] sm:$0xff] }
 0x1e6   :  { %v11367_v58 = vcombine.high %v2087_v48, %v2091_v49  ;;  %v11366_v4 = vcombine.low %v2087_v48, %v2091_v49 }
 0x1e7   :  { %9118 = vmatpush1.bf16.msra.mxu0 %v11324_v59  ;;  %v2094_v59 = vld [vmem:[#allocation8 + $0xe00] sm:$0xff] }
 0x1e8   :  { %9548 = vmatpush1.bf16.msra.mxu1 %v11326_v61  ;;  %9119 = vmatprep.subr.bf16.mxu0 %v11333_v62  ;;  %v2098_v61 = vld [vmem:[#allocation8 + $0xe20] sm:$0xff]  ;;  %v2095_v62 = vld [vmem:[#allocation8 + $0xe08] sm:$0xff] }
 0x1e9   :  { %9549 = vmatprep.subr.bf16.mxu1 %v11335_v63  ;;  %v2099_v63 = vld [vmem:[#allocation8 + $0xe28] sm:$0xff]  ;;  %v11373_v8 = vcombine.high %v2094_v59, %v2098_v61  ;;  %v11372_v20 = vcombine.low %v2094_v59, %v2098_v61 }
 0x1ea   :  { %v11375_v9 = vcombine.high %v2095_v62, %v2099_v63  ;;  %v11374_v21 = vcombine.low %v2095_v62, %v2099_v63 }
 0x1eb   :  { %9120 = vmatpush1.bf16.msra.mxu0 %v11332_v14  ;;  %v2102_v14 = vld [vmem:[#allocation8 + $0xe40] sm:$0xff] }
 0x1ec   :  { %9550 = vmatpush1.bf16.msra.mxu1 %v11334_v15  ;;  %9121 = vmatprep.subr.bf16.mxu0 %v11341_v16  ;;  %v2106_v15 = vld [vmem:[#allocation8 + $0xe60] sm:$0xff]  ;;  %v2103_v16 = vld [vmem:[#allocation8 + $0xe48] sm:$0xff] }
 0x1ed   :  { %9551 = vmatprep.subr.bf16.mxu1 %v11343_v18  ;;  %v2107_v18 = vld [vmem:[#allocation8 + $0xe68] sm:$0xff]  ;;  %v11381_v56 = vcombine.high %v2102_v14, %v2106_v15  ;;  %v11380_v27 = vcombine.low %v2102_v14, %v2106_v15 }
 0x1ee   :  { %v11383_v22 = vcombine.high %v2103_v16, %v2107_v18  ;;  %v11382_v30 = vcombine.low %v2103_v16, %v2107_v18 }
 0x1ef   :  { %9122 = vmatpush1.bf16.msra.mxu0 %v11340_v23  ;;  %v2110_v23 = vld [vmem:[#allocation8 + $0xe80] sm:$0xff] }
 0x1f0   :  { %9552 = vmatpush1.bf16.msra.mxu1 %v11342_v24  ;;  %9123 = vmatprep.subr.bf16.mxu0 %v11349_v25  ;;  %v2114_v24 = vld [vmem:[#allocation8 + $0xea0] sm:$0xff]  ;;  %v2111_v25 = vld [vmem:[#allocation8 + $0xe88] sm:$0xff] }
 0x1f1   :  { %9553 = vmatprep.subr.bf16.mxu1 %v11351_v26  ;;  %v2115_v26 = vld [vmem:[#allocation8 + $0xea8] sm:$0xff]  ;;  %v11389_v31 = vcombine.high %v2110_v23, %v2114_v24  ;;  %v11388_v45 = vcombine.low %v2110_v23, %v2114_v24 }
 0x1f2   :  { %v11391_v32 = vcombine.high %v2111_v25, %v2115_v26  ;;  %v11390_v47 = vcombine.low %v2111_v25, %v2115_v26 }
 0x1f3   :  { %9124 = vmatpush1.bf16.msra.mxu0 %v11348_v34  ;;  %v2118_v34 = vld [vmem:[#allocation8 + $0xec0] sm:$0xff] }
 0x1f4   :  { %9554 = vmatpush1.bf16.msra.mxu1 %v11350_v37  ;;  %9125 = vmatprep.subr.bf16.mxu0 %v11357_v38  ;;  %v2122_v37 = vld [vmem:[#allocation8 + $0xee0] sm:$0xff]  ;;  %v2119_v38 = vld [vmem:[#allocation8 + $0xec8] sm:$0xff] }
 0x1f5   :  { %9555 = vmatprep.subr.bf16.mxu1 %v11359_v44  ;;  %v2123_v44 = vld [vmem:[#allocation8 + $0xee8] sm:$0xff]  ;;  %v11397_v48 = vcombine.high %v2118_v34, %v2122_v37  ;;  %v11396_v59 = vcombine.low %v2118_v34, %v2122_v37 }
 0x1f6   :  { %v11399_v49 = vcombine.high %v2119_v38, %v2123_v44  ;;  %v11398_v61 = vcombine.low %v2119_v38, %v2123_v44 }
 0x1f7   :  { %9126 = vmatpush1.bf16.msra.mxu0 %v11356_v51  ;;  %v2126_v51 = vld [vmem:[#allocation8 + $0xf00] sm:$0xff] }
 0x1f8   :  { %9556 = vmatpush1.bf16.msra.mxu1 %v11358_v12  ;;  %9127 = vmatprep.subr.bf16.mxu0 %v11365_v52  ;;  %v2130_v12 = vld [vmem:[#allocation8 + $0xf20] sm:$0xff]  ;;  %v2127_v52 = vld [vmem:[#allocation8 + $0xf08] sm:$0xff] }
 0x1f9   :  { %9557 = vmatprep.subr.bf16.mxu1 %v11367_v58  ;;  %v2131_v58 = vld [vmem:[#allocation8 + $0xf28] sm:$0xff]  ;;  %v11405_v62 = vcombine.high %v2126_v51, %v2130_v12  ;;  %v11404_v14 = vcombine.low %v2126_v51, %v2130_v12 }
 0x1fa   :  { %v11407_v63 = vcombine.high %v2127_v52, %v2131_v58  ;;  %v11406_v15 = vcombine.low %v2127_v52, %v2131_v58 }
 0x1fb   :  { %9128 = vmatpush1.bf16.msra.mxu0 %v11364_v1  ;;  %v2134_v1 = vld [vmem:[#allocation8 + $0xf40] sm:$0xff] }
 0x1fc   :  { %9558 = vmatpush1.bf16.msra.mxu1 %v11366_v4  ;;  %9129 = vmatprep.subr.bf16.mxu0 %v11373_v8  ;;  %v2138_v4 = vld [vmem:[#allocation8 + $0xf60] sm:$0xff]  ;;  %v2135_v8 = vld [vmem:[#allocation8 + $0xf48] sm:$0xff] }
 0x1fd   :  { %9559 = vmatprep.subr.bf16.mxu1 %v11375_v9  ;;  %v2139_v9 = vld [vmem:[#allocation8 + $0xf68] sm:$0xff]  ;;  %v11413_v16 = vcombine.high %v2134_v1, %v2138_v4  ;;  %v11412_v23 = vcombine.low %v2134_v1, %v2138_v4 }
 0x1fe   :  { %v11415_v18 = vcombine.high %v2135_v8, %v2139_v9  ;;  %v11414_v24 = vcombine.low %v2135_v8, %v2139_v9  ;;  %v2171_v1 = vld [vmem:[#allocation8 + $0x1068] sm:$0xff]  ;;  %v2174_v9 = vld [vmem:[#allocation8 + $0x1080] sm:$0xff] }
 0x1ff   :  { %9130 = vmatpush1.bf16.msra.mxu0 %v11372_v20  ;;  %v2142_v20 = vld [vmem:[#allocation8 + $0xf80] sm:$0xff] }
 0x200   :  { %9560 = vmatpush1.bf16.msra.mxu1 %v11374_v21  ;;  %9131 = vmatprep.subr.bf16.mxu0 %v11381_v56  ;;  %v2146_v21 = vld [vmem:[#allocation8 + $0xfa0] sm:$0xff]  ;;  %v2143_v56 = vld [vmem:[#allocation8 + $0xf88] sm:$0xff] }
 0x201   :  { %9561 = vmatprep.subr.bf16.mxu1 %v11383_v22  ;;  %v2147_v22 = vld [vmem:[#allocation8 + $0xfa8] sm:$0xff]  ;;  %v11421_v25 = vcombine.high %v2142_v20, %v2146_v21  ;;  %v11420_v34 = vcombine.low %v2142_v20, %v2146_v21 }
 0x202   :  { %v11423_v26 = vcombine.high %v2143_v56, %v2147_v22  ;;  %v11422_v37 = vcombine.low %v2143_v56, %v2147_v22 }
 0x203   :  { %9132 = vmatpush1.bf16.msra.mxu0 %v11380_v27  ;;  %v2150_v27 = vld [vmem:[#allocation8 + $0xfc0] sm:$0xff] }
 0x204   :  { %9562 = vmatpush1.bf16.msra.mxu1 %v11382_v30  ;;  %9133 = vmatprep.subr.bf16.mxu0 %v11389_v31  ;;  %v2154_v30 = vld [vmem:[#allocation8 + $0xfe0] sm:$0xff]  ;;  %v2151_v31 = vld [vmem:[#allocation8 + $0xfc8] sm:$0xff] }
 0x205   :  { %9563 = vmatprep.subr.bf16.mxu1 %v11391_v32  ;;  %v2155_v32 = vld [vmem:[#allocation8 + $0xfe8] sm:$0xff]  ;;  %v11429_v38 = vcombine.high %v2150_v27, %v2154_v30  ;;  %v11428_v51 = vcombine.low %v2150_v27, %v2154_v30 }
 0x206   :  { %v11431_v44 = vcombine.high %v2151_v31, %v2155_v32  ;;  %v11430_v12 = vcombine.low %v2151_v31, %v2155_v32 }
 0x207   :  { %9134 = vmatpush1.bf16.msra.mxu0 %v11388_v45  ;;  %v2158_v45 = vld [vmem:[#allocation8 + $0x1000] sm:$0xff] }
 0x208   :  { %9564 = vmatpush1.bf16.msra.mxu1 %v11390_v47  ;;  %9135 = vmatprep.subr.bf16.mxu0 %v11397_v48  ;;  %v2162_v47 = vld [vmem:[#allocation8 + $0x1020] sm:$0xff]  ;;  %v2159_v48 = vld [vmem:[#allocation8 + $0x1008] sm:$0xff] }
 0x209   :  { %9565 = vmatprep.subr.bf16.mxu1 %v11399_v49  ;;  %v2163_v49 = vld [vmem:[#allocation8 + $0x1028] sm:$0xff]  ;;  %v11437_v52 = vcombine.high %v2158_v45, %v2162_v47 }
 0x20a   :  { %v11439_v58 = vcombine.high %v2159_v48, %v2163_v49  ;;  %v11438_v4 = vcombine.low %v2159_v48, %v2163_v49 }
 0x20b   :  { %9136 = vmatpush1.bf16.msra.mxu0 %v11396_v59  ;;  %v2166_v59 = vld [vmem:[#allocation8 + $0x1040] sm:$0xff] }
 0x20c   :  { %9566 = vmatpush1.bf16.msra.mxu1 %v11398_v61  ;;  %9137 = vmatprep.subr.bf16.mxu0 %v11405_v62  ;;  %v2170_v61 = vld [vmem:[#allocation8 + $0x1060] sm:$0xff]  ;;  %v11436_v62 = vcombine.low %v2158_v45, %v2162_v47 }
 0x20d   :  { %9567 = vmatprep.subr.bf16.mxu1 %v11407_v63  ;;  %v2167_v63 = vld [vmem:[#allocation8 + $0x1048] sm:$0xff]  ;;  %v11445_v8 = vcombine.high %v2166_v59, %v2170_v61  ;;  %v11444_v20 = vcombine.low %v2166_v59, %v2170_v61 }
 0x20e   :  { %v11446_v21 = vcombine.low %v2167_v63, %v2171_v1 }
 0x20f   :  { %9138 = vmatpush1.bf16.msra.mxu0 %v11404_v14  ;;  %v2178_v14 = vld [vmem:[#allocation8 + $0x10a0] sm:$0xff] }
 0x210   :  { %9568 = vmatpush1.bf16.msra.mxu1 %v11406_v15  ;;  %9139 = vmatprep.subr.bf16.mxu0 %v11413_v16  ;;  %v11447_v15 = vcombine.high %v2167_v63, %v2171_v1  ;;  %v2175_v16 = vld [vmem:[#allocation8 + $0x1088] sm:$0xff]  ;;  %v11453_v56 = vcombine.high %v2174_v9, %v2178_v14  ;;  %v11452_v27 = vcombine.low %v2174_v9, %v2178_v14  ;;  %v2206_v1 = vld [vmem:[#allocation8 + $0x1180] sm:$0xff] }
 0x211   :  { %9569 = vmatprep.subr.bf16.mxu1 %v11415_v18  ;;  %v2179_v18 = vld [vmem:[#allocation8 + $0x10a8] sm:$0xff] }
 0x212   :  { %v11455_v22 = vcombine.high %v2175_v16, %v2179_v18  ;;  %v11454_v30 = vcombine.low %v2175_v16, %v2179_v18  ;;  %v2211_v9 = vld [vmem:[#allocation8 + $0x11a8] sm:$0xff] }
 0x213   :  { %9140 = vmatpush1.bf16.msra.mxu0 %v11412_v23  ;;  %v2182_v23 = vld [vmem:[#allocation8 + $0x10c0] sm:$0xff] }
 0x214   :  { %9570 = vmatpush1.bf16.msra.mxu1 %v11414_v24  ;;  %9141 = vmatprep.subr.bf16.mxu0 %v11421_v25  ;;  %v2186_v24 = vld [vmem:[#allocation8 + $0x10e0] sm:$0xff]  ;;  %v2183_v25 = vld [vmem:[#allocation8 + $0x10c8] sm:$0xff] }
 0x215   :  { %9571 = vmatprep.subr.bf16.mxu1 %v11423_v26  ;;  %v2187_v26 = vld [vmem:[#allocation8 + $0x10e8] sm:$0xff]  ;;  %v11461_v31 = vcombine.high %v2182_v23, %v2186_v24  ;;  %v11460_v45 = vcombine.low %v2182_v23, %v2186_v24 }
 0x216   :  { %v11463_v32 = vcombine.high %v2183_v25, %v2187_v26  ;;  %v11462_v47 = vcombine.low %v2183_v25, %v2187_v26 }
 0x217   :  { %9142 = vmatpush1.bf16.msra.mxu0 %v11420_v34  ;;  %v2190_v34 = vld [vmem:[#allocation8 + $0x1100] sm:$0xff] }
 0x218   :  { %9572 = vmatpush1.bf16.msra.mxu1 %v11422_v37  ;;  %9143 = vmatprep.subr.bf16.mxu0 %v11429_v38  ;;  %v2194_v37 = vld [vmem:[#allocation8 + $0x1120] sm:$0xff]  ;;  %v2191_v38 = vld [vmem:[#allocation8 + $0x1108] sm:$0xff] }
 0x219   :  { %9573 = vmatprep.subr.bf16.mxu1 %v11431_v44  ;;  %v2195_v44 = vld [vmem:[#allocation8 + $0x1128] sm:$0xff]  ;;  %v11469_v48 = vcombine.high %v2190_v34, %v2194_v37  ;;  %v11468_v59 = vcombine.low %v2190_v34, %v2194_v37 }
 0x21a   :  { %v11471_v49 = vcombine.high %v2191_v38, %v2195_v44  ;;  %v11470_v61 = vcombine.low %v2191_v38, %v2195_v44 }
 0x21b   :  { %9144 = vmatpush1.bf16.msra.mxu0 %v11428_v51  ;;  %v2198_v51 = vld [vmem:[#allocation8 + $0x1140] sm:$0xff] }
 0x21c   :  { %9574 = vmatpush1.bf16.msra.mxu1 %v11430_v12  ;;  %9156 = vmatprep.subr.bf16.mxu0 %v11437_v52  ;;  %v2202_v12 = vld [vmem:[#allocation8 + $0x1160] sm:$0xff]  ;;  %v2199_v52 = vld [vmem:[#allocation8 + $0x1148] sm:$0xff] }
 0x21d   :  { %9586 = vmatprep.subr.bf16.mxu1 %v11439_v58  ;;  %v2203_v58 = vld [vmem:[#allocation8 + $0x1168] sm:$0xff]  ;;  %v11476_v14 = vcombine.low %v2198_v51, %v2202_v12 }
 0x21e   :  { %9146 = vmatmul.mubr.bf16.vlgmr.msra.gmra.mrb[20].mxu0 %v12919_v53  ;;  %v11479_v63 = vcombine.high %v2199_v52, %v2203_v58 }
 0x21f   :  { %9576 = vmatmul.mubr.bf16.vlgmr.msra.gmra.mrb[20].mxu1 %v12919_v53  ;;  %9157 = vmatpush1.bf16.msra.mxu0 %v11436_v62  ;;  %v11477_v62 = vcombine.high %v2198_v51, %v2202_v12 }
 0x220   :  { %9188 = vmatprep.mubr.bf16.mxu0 %v12935_v19  ;;  %9587 = vmatpush1.bf16.msra.mxu1 %v11438_v4  ;;  %v2210_v4 = vld [vmem:[#allocation8 + $0x11a0] sm:$0xff] }
 0x221   :  { %9618 = vmatprep.mubr.bf16.mxu1 %v12935_v19  ;;  %9158 = vmatprep.subr.bf16.mxu0 %v11445_v8  ;;  %v2207_v8 = vld [vmem:[#allocation8 + $0x1188] sm:$0xff]  ;;  %v11485_v16 = vcombine.high %v2206_v1, %v2210_v4  ;;  %v11484_v23 = vcombine.low %v2206_v1, %v2210_v4 }
 0x222   :  { %9588 = vmatprep.subr.bf16.mxu1 %v11447_v15  ;;  %v11478_v15 = vcombine.low %v2199_v52, %v2203_v58  ;;  %v11487_v18 = vcombine.high %v2207_v8, %v2211_v9  ;;  %v11486_v24 = vcombine.low %v2207_v8, %v2211_v9 }
 0x223   :  { %9159 = vmatpush1.bf16.msra.mxu0 %v11444_v20  ;;  %v2214_v20 = vld [vmem:[#allocation8 + $0x11c0] sm:$0xff] }
 0x224   :  { %9589 = vmatpush1.bf16.msra.mxu1 %v11446_v21  ;;  %9160 = vmatprep.subr.bf16.mxu0 %v11453_v56  ;;  %v2218_v21 = vld [vmem:[#allocation8 + $0x11e0] sm:$0xff]  ;;  %v2215_v56 = vld [vmem:[#allocation8 + $0x11c8] sm:$0xff] }
 0x225   :  { %9590 = vmatprep.subr.bf16.mxu1 %v11455_v22  ;;  %v2219_v22 = vld [vmem:[#allocation8 + $0x11e8] sm:$0xff]  ;;  %v11493_v25 = vcombine.high %v2214_v20, %v2218_v21  ;;  %v11492_v34 = vcombine.low %v2214_v20, %v2218_v21 }
 0x226   :  { %v11495_v26 = vcombine.high %v2215_v56, %v2219_v22  ;;  %v11494_v37 = vcombine.low %v2215_v56, %v2219_v22 }
 0x227   :  { %9161 = vmatpush1.bf16.msra.mxu0 %v11452_v27  ;;  %v2222_v27 = vld [vmem:[#allocation8 + $0x1200] sm:$0xff] }
 0x228   :  { %9591 = vmatpush1.bf16.msra.mxu1 %v11454_v30  ;;  %9162 = vmatprep.subr.bf16.mxu0 %v11461_v31  ;;  %v2226_v30 = vld [vmem:[#allocation8 + $0x1220] sm:$0xff]  ;;  %v2223_v31 = vld [vmem:[#allocation8 + $0x1208] sm:$0xff] }
 0x229   :  { %9592 = vmatprep.subr.bf16.mxu1 %v11463_v32  ;;  %v2227_v32 = vld [vmem:[#allocation8 + $0x1228] sm:$0xff]  ;;  %v11501_v38 = vcombine.high %v2222_v27, %v2226_v30  ;;  %v11500_v51 = vcombine.low %v2222_v27, %v2226_v30 }
 0x22a   :  { %v11503_v44 = vcombine.high %v2223_v31, %v2227_v32  ;;  %v11502_v12 = vcombine.low %v2223_v31, %v2227_v32 }
 0x22b   :  { %9163 = vmatpush1.bf16.msra.mxu0 %v11460_v45  ;;  %v2230_v45 = vld [vmem:[#allocation8 + $0x1240] sm:$0xff] }
 0x22c   :  { %9593 = vmatpush1.bf16.msra.mxu1 %v11462_v47  ;;  %9164 = vmatprep.subr.bf16.mxu0 %v11469_v48  ;;  %v2234_v47 = vld [vmem:[#allocation8 + $0x1260] sm:$0xff]  ;;  %v2231_v48 = vld [vmem:[#allocation8 + $0x1248] sm:$0xff] }
 0x22d   :  { %9594 = vmatprep.subr.bf16.mxu1 %v11471_v49  ;;  %v2235_v49 = vld [vmem:[#allocation8 + $0x1268] sm:$0xff]  ;;  %v11509_v52 = vcombine.high %v2230_v45, %v2234_v47  ;;  %v11508_v1 = vcombine.low %v2230_v45, %v2234_v47 }
 0x22e   :  { %v11511_v58 = vcombine.high %v2231_v48, %v2235_v49  ;;  %v11510_v4 = vcombine.low %v2231_v48, %v2235_v49 }
 0x22f   :  { %9165 = vmatpush1.bf16.msra.mxu0 %v11468_v59  ;;  %v2238_v59 = vld [vmem:[#allocation8 + $0x1280] sm:$0xff] }
 0x230   :  { %9595 = vmatpush1.bf16.msra.mxu1 %v11470_v61  ;;  %9166 = vmatprep.subr.bf16.mxu0 %v11477_v62  ;;  %v2242_v61 = vld [vmem:[#allocation8 + $0x12a0] sm:$0xff]  ;;  %v2239_v62 = vld [vmem:[#allocation8 + $0x1288] sm:$0xff] }
 0x231   :  { %9596 = vmatprep.subr.bf16.mxu1 %v11479_v63  ;;  %v2243_v63 = vld [vmem:[#allocation8 + $0x12a8] sm:$0xff]  ;;  %v11517_v8 = vcombine.high %v2238_v59, %v2242_v61  ;;  %v11516_v20 = vcombine.low %v2238_v59, %v2242_v61 }
 0x232   :  { %v11519_v9 = vcombine.high %v2239_v62, %v2243_v63  ;;  %v11518_v21 = vcombine.low %v2239_v62, %v2243_v63 }
 0x233   :  { %9167 = vmatpush1.bf16.msra.mxu0 %v11476_v14  ;;  %v2246_v14 = vld [vmem:[#allocation8 + $0x12c0] sm:$0xff] }
 0x234   :  { %9597 = vmatpush1.bf16.msra.mxu1 %v11478_v15  ;;  %9168 = vmatprep.subr.bf16.mxu0 %v11485_v16  ;;  %v2250_v15 = vld [vmem:[#allocation8 + $0x12e0] sm:$0xff]  ;;  %v2247_v16 = vld [vmem:[#allocation8 + $0x12c8] sm:$0xff] }
 0x235   :  { %9598 = vmatprep.subr.bf16.mxu1 %v11487_v18  ;;  %v2251_v18 = vld [vmem:[#allocation8 + $0x12e8] sm:$0xff]  ;;  %v11525_v56 = vcombine.high %v2246_v14, %v2250_v15  ;;  %v11524_v27 = vcombine.low %v2246_v14, %v2250_v15 }
 0x236   :  { %v11527_v22 = vcombine.high %v2247_v16, %v2251_v18  ;;  %v11526_v30 = vcombine.low %v2247_v16, %v2251_v18 }
 0x237   :  { %9169 = vmatpush1.bf16.msra.mxu0 %v11484_v23  ;;  %v2254_v23 = vld [vmem:[#allocation8 + $0x1300] sm:$0xff] }
 0x238   :  { %9599 = vmatpush1.bf16.msra.mxu1 %v11486_v24  ;;  %9170 = vmatprep.subr.bf16.mxu0 %v11493_v25  ;;  %v2258_v24 = vld [vmem:[#allocation8 + $0x1320] sm:$0xff]  ;;  %v2255_v25 = vld [vmem:[#allocation8 + $0x1308] sm:$0xff] }
 0x239   :  { %9600 = vmatprep.subr.bf16.mxu1 %v11495_v26  ;;  %v2259_v26 = vld [vmem:[#allocation8 + $0x1328] sm:$0xff]  ;;  %v11533_v31 = vcombine.high %v2254_v23, %v2258_v24  ;;  %v11532_v45 = vcombine.low %v2254_v23, %v2258_v24 }
 0x23a   :  { %v11535_v32 = vcombine.high %v2255_v25, %v2259_v26  ;;  %v11534_v47 = vcombine.low %v2255_v25, %v2259_v26 }
 0x23b   :  { %9171 = vmatpush1.bf16.msra.mxu0 %v11492_v34  ;;  %v2262_v34 = vld [vmem:[#allocation8 + $0x1340] sm:$0xff] }
 0x23c   :  { %9601 = vmatpush1.bf16.msra.mxu1 %v11494_v37  ;;  %9172 = vmatprep.subr.bf16.mxu0 %v11501_v38  ;;  %v2266_v37 = vld [vmem:[#allocation8 + $0x1360] sm:$0xff]  ;;  %v2263_v38 = vld [vmem:[#allocation8 + $0x1348] sm:$0xff] }
 0x23d   :  { %9602 = vmatprep.subr.bf16.mxu1 %v11503_v44  ;;  %v2267_v44 = vld [vmem:[#allocation8 + $0x1368] sm:$0xff]  ;;  %v11541_v48 = vcombine.high %v2262_v34, %v2266_v37  ;;  %v11540_v59 = vcombine.low %v2262_v34, %v2266_v37 }
 0x23e   :  { %v11543_v49 = vcombine.high %v2263_v38, %v2267_v44  ;;  %v11542_v61 = vcombine.low %v2263_v38, %v2267_v44  ;;  %v2299_v34 = vld [vmem:[#allocation8 + $0x1468] sm:$0xff]  ;;  %v2302_v44 = vld [vmem:[#allocation8 + $0x1480] sm:$0xff] }
 0x23f   :  { %9173 = vmatpush1.bf16.msra.mxu0 %v11500_v51  ;;  %v2270_v51 = vld [vmem:[#allocation8 + $0x1380] sm:$0xff] }
 0x240   :  { %9603 = vmatpush1.bf16.msra.mxu1 %v11502_v12  ;;  %9174 = vmatprep.subr.bf16.mxu0 %v11509_v52  ;;  %v2274_v12 = vld [vmem:[#allocation8 + $0x13a0] sm:$0xff]  ;;  %v2271_v52 = vld [vmem:[#allocation8 + $0x1388] sm:$0xff] }
 0x241   :  { %9604 = vmatprep.subr.bf16.mxu1 %v11511_v58  ;;  %v2275_v58 = vld [vmem:[#allocation8 + $0x13a8] sm:$0xff]  ;;  %v11549_v62 = vcombine.high %v2270_v51, %v2274_v12  ;;  %v11548_v14 = vcombine.low %v2270_v51, %v2274_v12 }
 0x242   :  { %v11551_v63 = vcombine.high %v2271_v52, %v2275_v58  ;;  %v11550_v15 = vcombine.low %v2271_v52, %v2275_v58 }
 0x243   :  { %9175 = vmatpush1.bf16.msra.mxu0 %v11508_v1  ;;  %v2278_v1 = vld [vmem:[#allocation8 + $0x13c0] sm:$0xff] }
 0x244   :  { %9605 = vmatpush1.bf16.msra.mxu1 %v11510_v4  ;;  %9176 = vmatprep.subr.bf16.mxu0 %v11517_v8  ;;  %v2282_v4 = vld [vmem:[#allocation8 + $0x13e0] sm:$0xff]  ;;  %v2279_v8 = vld [vmem:[#allocation8 + $0x13c8] sm:$0xff] }
 0x245   :  { %9606 = vmatprep.subr.bf16.mxu1 %v11519_v9  ;;  %v2283_v9 = vld [vmem:[#allocation8 + $0x13e8] sm:$0xff]  ;;  %v11557_v16 = vcombine.high %v2278_v1, %v2282_v4  ;;  %v11556_v23 = vcombine.low %v2278_v1, %v2282_v4 }
 0x246   :  { %v11559_v18 = vcombine.high %v2279_v8, %v2283_v9  ;;  %v11558_v24 = vcombine.low %v2279_v8, %v2283_v9 }
 0x247   :  { %9177 = vmatpush1.bf16.msra.mxu0 %v11516_v20  ;;  %v2286_v20 = vld [vmem:[#allocation8 + $0x1400] sm:$0xff] }
 0x248   :  { %9607 = vmatpush1.bf16.msra.mxu1 %v11518_v21  ;;  %9178 = vmatprep.subr.bf16.mxu0 %v11525_v56  ;;  %v2290_v21 = vld [vmem:[#allocation8 + $0x1420] sm:$0xff]  ;;  %v2287_v56 = vld [vmem:[#allocation8 + $0x1408] sm:$0xff] }
 0x249   :  { %9608 = vmatprep.subr.bf16.mxu1 %v11527_v22  ;;  %v2291_v22 = vld [vmem:[#allocation8 + $0x1428] sm:$0xff]  ;;  %v11565_v25 = vcombine.high %v2286_v20, %v2290_v21 }
 0x24a   :  { %v11567_v26 = vcombine.high %v2287_v56, %v2291_v22  ;;  %v11566_v37 = vcombine.low %v2287_v56, %v2291_v22 }
 0x24b   :  { %9179 = vmatpush1.bf16.msra.mxu0 %v11524_v27  ;;  %v2294_v27 = vld [vmem:[#allocation8 + $0x1440] sm:$0xff] }
 0x24c   :  { %9609 = vmatpush1.bf16.msra.mxu1 %v11526_v30  ;;  %9180 = vmatprep.subr.bf16.mxu0 %v11533_v31  ;;  %v2298_v30 = vld [vmem:[#allocation8 + $0x1460] sm:$0xff]  ;;  %v11564_v31 = vcombine.low %v2286_v20, %v2290_v21 }
 0x24d   :  { %9610 = vmatprep.subr.bf16.mxu1 %v11535_v32  ;;  %v2295_v32 = vld [vmem:[#allocation8 + $0x1448] sm:$0xff]  ;;  %v11573_v38 = vcombine.high %v2294_v27, %v2298_v30  ;;  %v11572_v51 = vcombine.low %v2294_v27, %v2298_v30 }
 0x24e   :  { %v11574_v12 = vcombine.low %v2295_v32, %v2299_v34 }
 0x24f   :  { %9181 = vmatpush1.bf16.msra.mxu0 %v11532_v45  ;;  %v2306_v45 = vld [vmem:[#allocation8 + $0x14a0] sm:$0xff] }
 0x250   :  { %9611 = vmatpush1.bf16.msra.mxu1 %v11534_v47  ;;  %9182 = vmatprep.subr.bf16.mxu0 %v11541_v48  ;;  %v11575_v47 = vcombine.high %v2295_v32, %v2299_v34  ;;  %v2303_v48 = vld [vmem:[#allocation8 + $0x1488] sm:$0xff]  ;;  %v11581_v52 = vcombine.high %v2302_v44, %v2306_v45  ;;  %v11580_v1 = vcombine.low %v2302_v44, %v2306_v45  ;;  %v2334_v34 = vld [vmem:[#allocation8 + $0x1580] sm:$0xff] }
 0x251   :  { %9612 = vmatprep.subr.bf16.mxu1 %v11543_v49  ;;  %v2307_v49 = vld [vmem:[#allocation8 + $0x14a8] sm:$0xff] }
 0x252   :  { %v11583_v58 = vcombine.high %v2303_v48, %v2307_v49  ;;  %v11582_v4 = vcombine.low %v2303_v48, %v2307_v49  ;;  %v2339_v44 = vld [vmem:[#allocation8 + $0x15a8] sm:$0xff] }
 0x253   :  { %9183 = vmatpush1.bf16.msra.mxu0 %v11540_v59  ;;  %v2310_v59 = vld [vmem:[#allocation8 + $0x14c0] sm:$0xff] }
 0x254   :  { %9613 = vmatpush1.bf16.msra.mxu1 %v11542_v61  ;;  %9184 = vmatprep.subr.bf16.mxu0 %v11549_v62  ;;  %v2314_v61 = vld [vmem:[#allocation8 + $0x14e0] sm:$0xff]  ;;  %v2311_v62 = vld [vmem:[#allocation8 + $0x14c8] sm:$0xff] }
 0x255   :  { %9614 = vmatprep.subr.bf16.mxu1 %v11551_v63  ;;  %v2315_v63 = vld [vmem:[#allocation8 + $0x14e8] sm:$0xff]  ;;  %v11589_v8 = vcombine.high %v2310_v59, %v2314_v61  ;;  %v11588_v20 = vcombine.low %v2310_v59, %v2314_v61 }
 0x256   :  { %v11591_v9 = vcombine.high %v2311_v62, %v2315_v63  ;;  %v11590_v21 = vcombine.low %v2311_v62, %v2315_v63 }
 0x257   :  { %9185 = vmatpush1.bf16.msra.mxu0 %v11548_v14  ;;  %v2318_v14 = vld [vmem:[#allocation8 + $0x1500] sm:$0xff] }
 0x258   :  { %9615 = vmatpush1.bf16.msra.mxu1 %v11550_v15  ;;  %9186 = vmatprep.subr.bf16.mxu0 %v11557_v16  ;;  %v2322_v15 = vld [vmem:[#allocation8 + $0x1520] sm:$0xff]  ;;  %v2319_v16 = vld [vmem:[#allocation8 + $0x1508] sm:$0xff] }
 0x259   :  { %9616 = vmatprep.subr.bf16.mxu1 %v11559_v18  ;;  %v2323_v18 = vld [vmem:[#allocation8 + $0x1528] sm:$0xff]  ;;  %v11597_v56 = vcombine.high %v2318_v14, %v2322_v15  ;;  %v11596_v27 = vcombine.low %v2318_v14, %v2322_v15 }
 0x25a   :  { %v11599_v22 = vcombine.high %v2319_v16, %v2323_v18  ;;  %v11598_v30 = vcombine.low %v2319_v16, %v2323_v18 }
 0x25b   :  { %9187 = vmatpush1.bf16.msra.mxu0 %v11556_v23  ;;  %v2326_v23 = vld [vmem:[#allocation8 + $0x1540] sm:$0xff] }
 0x25c   :  { %9617 = vmatpush1.bf16.msra.mxu1 %v11558_v24  ;;  %9199 = vmatprep.subr.bf16.mxu0 %v11565_v25  ;;  %v2330_v24 = vld [vmem:[#allocation8 + $0x1560] sm:$0xff]  ;;  %v2327_v25 = vld [vmem:[#allocation8 + $0x1548] sm:$0xff] }
 0x25d   :  { %9629 = vmatprep.subr.bf16.mxu1 %v11567_v26  ;;  %v2331_v26 = vld [vmem:[#allocation8 + $0x1568] sm:$0xff]  ;;  %v11604_v45 = vcombine.low %v2326_v23, %v2330_v24 }
 0x25e   :  { %9189 = vmatmul.mubr.bf16.vlgmr.msra.gmra.mrb[20].mxu0 %v12933_v17  ;;  %v11607_v32 = vcombine.high %v2327_v25, %v2331_v26 }
 0x25f   :  { %9619 = vmatmul.mubr.bf16.vlgmr.msra.gmra.mrb[20].mxu1 %v12933_v17  ;;  %9200 = vmatpush1.bf16.msra.mxu0 %v11564_v31  ;;  %v11605_v31 = vcombine.high %v2326_v23, %v2330_v24 }
 0x260   :  { %9231 = vmatprep.mubr.bf16.mxu0 %v12943_v10  ;;  %9630 = vmatpush1.bf16.msra.mxu1 %v11566_v37  ;;  %v2338_v37 = vld [vmem:[#allocation8 + $0x15a0] sm:$0xff] }
 0x261   :  { %9661 = vmatprep.mubr.bf16.mxu1 %v12943_v10  ;;  %9201 = vmatprep.subr.bf16.mxu0 %v11573_v38  ;;  %v2335_v38 = vld [vmem:[#allocation8 + $0x1588] sm:$0xff]  ;;  %v11613_v48 = vcombine.high %v2334_v34, %v2338_v37  ;;  %v11612_v59 = vcombine.low %v2334_v34, %v2338_v37 }
 0x262   :  { %9631 = vmatprep.subr.bf16.mxu1 %v11575_v47  ;;  %v11606_v47 = vcombine.low %v2327_v25, %v2331_v26  ;;  %v11615_v49 = vcombine.high %v2335_v38, %v2339_v44  ;;  %v11614_v61 = vcombine.low %v2335_v38, %v2339_v44 }
 0x263   :  { %9202 = vmatpush1.bf16.msra.mxu0 %v11572_v51  ;;  %v2342_v51 = vld [vmem:[#allocation8 + $0x15c0] sm:$0xff] }
 0x264   :  { %9632 = vmatpush1.bf16.msra.mxu1 %v11574_v12  ;;  %9203 = vmatprep.subr.bf16.mxu0 %v11581_v52  ;;  %v2346_v12 = vld [vmem:[#allocation8 + $0x15e0] sm:$0xff]  ;;  %v2343_v52 = vld [vmem:[#allocation8 + $0x15c8] sm:$0xff] }
 0x265   :  { %9633 = vmatprep.subr.bf16.mxu1 %v11583_v58  ;;  %v2347_v58 = vld [vmem:[#allocation8 + $0x15e8] sm:$0xff]  ;;  %v11621_v62 = vcombine.high %v2342_v51, %v2346_v12  ;;  %v11620_v14 = vcombine.low %v2342_v51, %v2346_v12 }
 0x266   :  { %v11623_v63 = vcombine.high %v2343_v52, %v2347_v58  ;;  %v11622_v15 = vcombine.low %v2343_v52, %v2347_v58 }
 0x267   :  { %9204 = vmatpush1.bf16.msra.mxu0 %v11580_v1  ;;  %v2350_v1 = vld [vmem:[#allocation8 + $0x1600] sm:$0xff] }
 0x268   :  { %9634 = vmatpush1.bf16.msra.mxu1 %v11582_v4  ;;  %9205 = vmatprep.subr.bf16.mxu0 %v11589_v8  ;;  %v2354_v4 = vld [vmem:[#allocation8 + $0x1620] sm:$0xff]  ;;  %v2351_v8 = vld [vmem:[#allocation8 + $0x1608] sm:$0xff] }
 0x269   :  { %9635 = vmatprep.subr.bf16.mxu1 %v11591_v9  ;;  %v2355_v9 = vld [vmem:[#allocation8 + $0x1628] sm:$0xff]  ;;  %v11629_v16 = vcombine.high %v2350_v1, %v2354_v4  ;;  %v11628_v23 = vcombine.low %v2350_v1, %v2354_v4 }
 0x26a   :  { %v11631_v18 = vcombine.high %v2351_v8, %v2355_v9  ;;  %v11630_v24 = vcombine.low %v2351_v8, %v2355_v9 }
 0x26b   :  { %9206 = vmatpush1.bf16.msra.mxu0 %v11588_v20  ;;  %v2358_v20 = vld [vmem:[#allocation8 + $0x1640] sm:$0xff] }
 0x26c   :  { %9636 = vmatpush1.bf16.msra.mxu1 %v11590_v21  ;;  %9207 = vmatprep.subr.bf16.mxu0 %v11597_v56  ;;  %v2362_v21 = vld [vmem:[#allocation8 + $0x1660] sm:$0xff]  ;;  %v2359_v56 = vld [vmem:[#allocation8 + $0x1648] sm:$0xff] }
 0x26d   :  { %9637 = vmatprep.subr.bf16.mxu1 %v11599_v22  ;;  %v2363_v22 = vld [vmem:[#allocation8 + $0x1668] sm:$0xff]  ;;  %v11637_v25 = vcombine.high %v2358_v20, %v2362_v21  ;;  %v11636_v34 = vcombine.low %v2358_v20, %v2362_v21 }
 0x26e   :  { %v11639_v26 = vcombine.high %v2359_v56, %v2363_v22  ;;  %v11638_v37 = vcombine.low %v2359_v56, %v2363_v22 }
 0x26f   :  { %9208 = vmatpush1.bf16.msra.mxu0 %v11596_v27  ;;  %v2366_v27 = vld [vmem:[#allocation8 + $0x1680] sm:$0xff] }
 0x270   :  { %9638 = vmatpush1.bf16.msra.mxu1 %v11598_v30  ;;  %9209 = vmatprep.subr.bf16.mxu0 %v11605_v31  ;;  %v2370_v30 = vld [vmem:[#allocation8 + $0x16a0] sm:$0xff]  ;;  %v2367_v31 = vld [vmem:[#allocation8 + $0x1688] sm:$0xff] }
 0x271   :  { %9639 = vmatprep.subr.bf16.mxu1 %v11607_v32  ;;  %v2371_v32 = vld [vmem:[#allocation8 + $0x16a8] sm:$0xff]  ;;  %v11645_v38 = vcombine.high %v2366_v27, %v2370_v30  ;;  %v11644_v51 = vcombine.low %v2366_v27, %v2370_v30 }
 0x272   :  { %v11647_v44 = vcombine.high %v2367_v31, %v2371_v32  ;;  %v11646_v12 = vcombine.low %v2367_v31, %v2371_v32 }
 0x273   :  { %9210 = vmatpush1.bf16.msra.mxu0 %v11604_v45  ;;  %v2374_v45 = vld [vmem:[#allocation8 + $0x16c0] sm:$0xff] }
 0x274   :  { %9640 = vmatpush1.bf16.msra.mxu1 %v11606_v47  ;;  %9211 = vmatprep.subr.bf16.mxu0 %v11613_v48  ;;  %v2378_v47 = vld [vmem:[#allocation8 + $0x16e0] sm:$0xff]  ;;  %v2375_v48 = vld [vmem:[#allocation8 + $0x16c8] sm:$0xff] }
 0x275   :  { %9641 = vmatprep.subr.bf16.mxu1 %v11615_v49  ;;  %v2379_v49 = vld [vmem:[#allocation8 + $0x16e8] sm:$0xff]  ;;  %v11653_v52 = vcombine.high %v2374_v45, %v2378_v47  ;;  %v11652_v1 = vcombine.low %v2374_v45, %v2378_v47 }
 0x276   :  { %v11655_v58 = vcombine.high %v2375_v48, %v2379_v49  ;;  %v11654_v4 = vcombine.low %v2375_v48, %v2379_v49 }
 0x277   :  { %9212 = vmatpush1.bf16.msra.mxu0 %v11612_v59  ;;  %v2382_v59 = vld [vmem:[#allocation8 + $0x1700] sm:$0xff] }
 0x278   :  { %9642 = vmatpush1.bf16.msra.mxu1 %v11614_v61  ;;  %9213 = vmatprep.subr.bf16.mxu0 %v11621_v62  ;;  %v2386_v61 = vld [vmem:[#allocation8 + $0x1720] sm:$0xff]  ;;  %v2383_v62 = vld [vmem:[#allocation8 + $0x1708] sm:$0xff] }
 0x279   :  { %9643 = vmatprep.subr.bf16.mxu1 %v11623_v63  ;;  %v2387_v63 = vld [vmem:[#allocation8 + $0x1728] sm:$0xff]  ;;  %v11661_v8 = vcombine.high %v2382_v59, %v2386_v61  ;;  %v11660_v20 = vcombine.low %v2382_v59, %v2386_v61 }
 0x27a   :  { %v11663_v9 = vcombine.high %v2383_v62, %v2387_v63  ;;  %v11662_v21 = vcombine.low %v2383_v62, %v2387_v63 }
 0x27b   :  { %9214 = vmatpush1.bf16.msra.mxu0 %v11620_v14  ;;  %v2390_v14 = vld [vmem:[#allocation8 + $0x1740] sm:$0xff] }
 0x27c   :  { %9644 = vmatpush1.bf16.msra.mxu1 %v11622_v15  ;;  %9215 = vmatprep.subr.bf16.mxu0 %v11629_v16  ;;  %v2394_v15 = vld [vmem:[#allocation8 + $0x1760] sm:$0xff]  ;;  %v2391_v16 = vld [vmem:[#allocation8 + $0x1748] sm:$0xff] }
 0x27d   :  { %9645 = vmatprep.subr.bf16.mxu1 %v11631_v18  ;;  %v2395_v18 = vld [vmem:[#allocation8 + $0x1768] sm:$0xff]  ;;  %v11669_v56 = vcombine.high %v2390_v14, %v2394_v15  ;;  %v11668_v27 = vcombine.low %v2390_v14, %v2394_v15 }
 0x27e   :  { %v11671_v22 = vcombine.high %v2391_v16, %v2395_v18  ;;  %v11670_v30 = vcombine.low %v2391_v16, %v2395_v18  ;;  %v2427_v14 = vld [vmem:[#allocation8 + $0x1868] sm:$0xff]  ;;  %v2430_v18 = vld [vmem:[#allocation8 + $0x1880] sm:$0xff] }
 0x27f   :  { %9216 = vmatpush1.bf16.msra.mxu0 %v11628_v23  ;;  %v2398_v23 = vld [vmem:[#allocation8 + $0x1780] sm:$0xff] }
 0x280   :  { %9646 = vmatpush1.bf16.msra.mxu1 %v11630_v24  ;;  %9217 = vmatprep.subr.bf16.mxu0 %v11637_v25  ;;  %v2402_v24 = vld [vmem:[#allocation8 + $0x17a0] sm:$0xff]  ;;  %v2399_v25 = vld [vmem:[#allocation8 + $0x1788] sm:$0xff] }
 0x281   :  { %9647 = vmatprep.subr.bf16.mxu1 %v11639_v26  ;;  %v2403_v26 = vld [vmem:[#allocation8 + $0x17a8] sm:$0xff]  ;;  %v11677_v31 = vcombine.high %v2398_v23, %v2402_v24  ;;  %v11676_v45 = vcombine.low %v2398_v23, %v2402_v24 }
 0x282   :  { %v11679_v32 = vcombine.high %v2399_v25, %v2403_v26  ;;  %v11678_v47 = vcombine.low %v2399_v25, %v2403_v26 }
 0x283   :  { %9218 = vmatpush1.bf16.msra.mxu0 %v11636_v34  ;;  %v2406_v34 = vld [vmem:[#allocation8 + $0x17c0] sm:$0xff] }
 0x284   :  { %9648 = vmatpush1.bf16.msra.mxu1 %v11638_v37  ;;  %9219 = vmatprep.subr.bf16.mxu0 %v11645_v38  ;;  %v2410_v37 = vld [vmem:[#allocation8 + $0x17e0] sm:$0xff]  ;;  %v2407_v38 = vld [vmem:[#allocation8 + $0x17c8] sm:$0xff] }
 0x285   :  { %9649 = vmatprep.subr.bf16.mxu1 %v11647_v44  ;;  %v2411_v44 = vld [vmem:[#allocation8 + $0x17e8] sm:$0xff]  ;;  %v11685_v48 = vcombine.high %v2406_v34, %v2410_v37  ;;  %v11684_v59 = vcombine.low %v2406_v34, %v2410_v37 }
 0x286   :  { %v11687_v49 = vcombine.high %v2407_v38, %v2411_v44  ;;  %v11686_v61 = vcombine.low %v2407_v38, %v2411_v44 }
 0x287   :  { %9220 = vmatpush1.bf16.msra.mxu0 %v11644_v51  ;;  %v2414_v51 = vld [vmem:[#allocation8 + $0x1800] sm:$0xff] }
 0x288   :  { %9650 = vmatpush1.bf16.msra.mxu1 %v11646_v12  ;;  %9221 = vmatprep.subr.bf16.mxu0 %v11653_v52  ;;  %v2418_v12 = vld [vmem:[#allocation8 + $0x1820] sm:$0xff]  ;;  %v2415_v52 = vld [vmem:[#allocation8 + $0x1808] sm:$0xff] }
 0x289   :  { %9651 = vmatprep.subr.bf16.mxu1 %v11655_v58  ;;  %v2419_v58 = vld [vmem:[#allocation8 + $0x1828] sm:$0xff]  ;;  %v11693_v62 = vcombine.high %v2414_v51, %v2418_v12 }
 0x28a   :  { %v11695_v63 = vcombine.high %v2415_v52, %v2419_v58  ;;  %v11694_v15 = vcombine.low %v2415_v52, %v2419_v58 }
 0x28b   :  { %9222 = vmatpush1.bf16.msra.mxu0 %v11652_v1  ;;  %v2422_v1 = vld [vmem:[#allocation8 + $0x1840] sm:$0xff] }
 0x28c   :  { %9652 = vmatpush1.bf16.msra.mxu1 %v11654_v4  ;;  %9223 = vmatprep.subr.bf16.mxu0 %v11661_v8  ;;  %v2426_v4 = vld [vmem:[#allocation8 + $0x1860] sm:$0xff]  ;;  %v11692_v8 = vcombine.low %v2414_v51, %v2418_v12 }
 0x28d   :  { %9653 = vmatprep.subr.bf16.mxu1 %v11663_v9  ;;  %v2423_v9 = vld [vmem:[#allocation8 + $0x1848] sm:$0xff]  ;;  %v11701_v16 = vcombine.high %v2422_v1, %v2426_v4  ;;  %v11700_v23 = vcombine.low %v2422_v1, %v2426_v4 }
 0x28e   :  { %v11702_v24 = vcombine.low %v2423_v9, %v2427_v14 }
 0x28f   :  { %9224 = vmatpush1.bf16.msra.mxu0 %v11660_v20  ;;  %v2434_v20 = vld [vmem:[#allocation8 + $0x18a0] sm:$0xff] }
 0x290   :  { %9654 = vmatpush1.bf16.msra.mxu1 %v11662_v21  ;;  %9225 = vmatprep.subr.bf16.mxu0 %v11669_v56  ;;  %v11703_v21 = vcombine.high %v2423_v9, %v2427_v14  ;;  %v2431_v56 = vld [vmem:[#allocation8 + $0x1888] sm:$0xff]  ;;  %v11709_v25 = vcombine.high %v2430_v18, %v2434_v20  ;;  %v11708_v34 = vcombine.low %v2430_v18, %v2434_v20  ;;  %v2462_v14 = vld [vmem:[#allocation8 + $0x1980] sm:$0xff] }
 0x291   :  { %9655 = vmatprep.subr.bf16.mxu1 %v11671_v22  ;;  %v2435_v22 = vld [vmem:[#allocation8 + $0x18a8] sm:$0xff] }
 0x292   :  { %v11711_v26 = vcombine.high %v2431_v56, %v2435_v22  ;;  %v11710_v37 = vcombine.low %v2431_v56, %v2435_v22  ;;  %v2467_v18 = vld [vmem:[#allocation8 + $0x19a8] sm:$0xff] }
 0x293   :  { %9226 = vmatpush1.bf16.msra.mxu0 %v11668_v27  ;;  %v2438_v27 = vld [vmem:[#allocation8 + $0x18c0] sm:$0xff] }
 0x294   :  { %9656 = vmatpush1.bf16.msra.mxu1 %v11670_v30  ;;  %9227 = vmatprep.subr.bf16.mxu0 %v11677_v31  ;;  %v2442_v30 = vld [vmem:[#allocation8 + $0x18e0] sm:$0xff]  ;;  %v2439_v31 = vld [vmem:[#allocation8 + $0x18c8] sm:$0xff] }
 0x295   :  { %9657 = vmatprep.subr.bf16.mxu1 %v11679_v32  ;;  %v2443_v32 = vld [vmem:[#allocation8 + $0x18e8] sm:$0xff]  ;;  %v11717_v38 = vcombine.high %v2438_v27, %v2442_v30  ;;  %v11716_v51 = vcombine.low %v2438_v27, %v2442_v30 }
 0x296   :  { %v11719_v44 = vcombine.high %v2439_v31, %v2443_v32  ;;  %v11718_v12 = vcombine.low %v2439_v31, %v2443_v32 }
 0x297   :  { %9228 = vmatpush1.bf16.msra.mxu0 %v11676_v45  ;;  %v2446_v45 = vld [vmem:[#allocation8 + $0x1900] sm:$0xff] }
 0x298   :  { %9658 = vmatpush1.bf16.msra.mxu1 %v11678_v47  ;;  %9229 = vmatprep.subr.bf16.mxu0 %v11685_v48  ;;  %v2450_v47 = vld [vmem:[#allocation8 + $0x1920] sm:$0xff]  ;;  %v2447_v48 = vld [vmem:[#allocation8 + $0x1908] sm:$0xff] }
 0x299   :  { %9659 = vmatprep.subr.bf16.mxu1 %v11687_v49  ;;  %v2451_v49 = vld [vmem:[#allocation8 + $0x1928] sm:$0xff]  ;;  %v11725_v52 = vcombine.high %v2446_v45, %v2450_v47  ;;  %v11724_v1 = vcombine.low %v2446_v45, %v2450_v47 }
 0x29a   :  { %v11727_v58 = vcombine.high %v2447_v48, %v2451_v49  ;;  %v11726_v4 = vcombine.low %v2447_v48, %v2451_v49 }
 0x29b   :  { %9230 = vmatpush1.bf16.msra.mxu0 %v11684_v59  ;;  %v2454_v59 = vld [vmem:[#allocation8 + $0x1940] sm:$0xff] }
 0x29c   :  { %9660 = vmatpush1.bf16.msra.mxu1 %v11686_v61  ;;  %9242 = vmatprep.subr.bf16.mxu0 %v11693_v62  ;;  %v2458_v61 = vld [vmem:[#allocation8 + $0x1960] sm:$0xff]  ;;  %v2455_v62 = vld [vmem:[#allocation8 + $0x1948] sm:$0xff] }
 0x29d   :  { %9672 = vmatprep.subr.bf16.mxu1 %v11695_v63  ;;  %v2459_v63 = vld [vmem:[#allocation8 + $0x1968] sm:$0xff]  ;;  %v11732_v20 = vcombine.low %v2454_v59, %v2458_v61 }
 0x29e   :  { %9232 = vmatmul.mubr.bf16.vlgmr.msra.gmra.mrb[20].mxu0 %v12941_v3  ;;  %v11735_v9 = vcombine.high %v2455_v62, %v2459_v63 }
 0x29f   :  { %9662 = vmatmul.mubr.bf16.vlgmr.msra.gmra.mrb[20].mxu1 %v12941_v3  ;;  %9243 = vmatpush1.bf16.msra.mxu0 %v11692_v8  ;;  %v11733_v8 = vcombine.high %v2454_v59, %v2458_v61 }
 0x2a0   :  { %9274 = vmatprep.mubr.bf16.mxu0 %v12955_v39  ;;  %9673 = vmatpush1.bf16.msra.mxu1 %v11694_v15  ;;  %v2466_v15 = vld [vmem:[#allocation8 + $0x19a0] sm:$0xff] }
 0x2a1   :  { %9704 = vmatprep.mubr.bf16.mxu1 %v12955_v39  ;;  %9244 = vmatprep.subr.bf16.mxu0 %v11701_v16  ;;  %v2463_v16 = vld [vmem:[#allocation8 + $0x1988] sm:$0xff]  ;;  %v11741_v56 = vcombine.high %v2462_v14, %v2466_v15  ;;  %v11740_v27 = vcombine.low %v2462_v14, %v2466_v15 }
 0x2a2   :  { %9674 = vmatprep.subr.bf16.mxu1 %v11703_v21  ;;  %v11734_v21 = vcombine.low %v2455_v62, %v2459_v63  ;;  %v11743_v22 = vcombine.high %v2463_v16, %v2467_v18  ;;  %v11742_v30 = vcombine.low %v2463_v16, %v2467_v18 }
 0x2a3   :  { %9245 = vmatpush1.bf16.msra.mxu0 %v11700_v23  ;;  %v2470_v23 = vld [vmem:[#allocation8 + $0x19c0] sm:$0xff] }
 0x2a4   :  { %9675 = vmatpush1.bf16.msra.mxu1 %v11702_v24  ;;  %9246 = vmatprep.subr.bf16.mxu0 %v11709_v25  ;;  %v2474_v24 = vld [vmem:[#allocation8 + $0x19e0] sm:$0xff]  ;;  %v2471_v25 = vld [vmem:[#allocation8 + $0x19c8] sm:$0xff] }
 0x2a5   :  { %9676 = vmatprep.subr.bf16.mxu1 %v11711_v26  ;;  %v2475_v26 = vld [vmem:[#allocation8 + $0x19e8] sm:$0xff]  ;;  %v11749_v31 = vcombine.high %v2470_v23, %v2474_v24  ;;  %v11748_v45 = vcombine.low %v2470_v23, %v2474_v24 }
 0x2a6   :  { %v11751_v32 = vcombine.high %v2471_v25, %v2475_v26  ;;  %v11750_v47 = vcombine.low %v2471_v25, %v2475_v26 }
 0x2a7   :  { %9247 = vmatpush1.bf16.msra.mxu0 %v11708_v34  ;;  %v2478_v34 = vld [vmem:[#allocation8 + $0x1a00] sm:$0xff] }
 0x2a8   :  { %9677 = vmatpush1.bf16.msra.mxu1 %v11710_v37  ;;  %9248 = vmatprep.subr.bf16.mxu0 %v11717_v38  ;;  %v2482_v37 = vld [vmem:[#allocation8 + $0x1a20] sm:$0xff]  ;;  %v2479_v38 = vld [vmem:[#allocation8 + $0x1a08] sm:$0xff] }
 0x2a9   :  { %9678 = vmatprep.subr.bf16.mxu1 %v11719_v44  ;;  %v2483_v44 = vld [vmem:[#allocation8 + $0x1a28] sm:$0xff]  ;;  %v11757_v48 = vcombine.high %v2478_v34, %v2482_v37  ;;  %v11756_v59 = vcombine.low %v2478_v34, %v2482_v37 }
 0x2aa   :  { %v11759_v49 = vcombine.high %v2479_v38, %v2483_v44  ;;  %v11758_v61 = vcombine.low %v2479_v38, %v2483_v44 }
 0x2ab   :  { %9249 = vmatpush1.bf16.msra.mxu0 %v11716_v51  ;;  %v2486_v51 = vld [vmem:[#allocation8 + $0x1a40] sm:$0xff] }
 0x2ac   :  { %9679 = vmatpush1.bf16.msra.mxu1 %v11718_v12  ;;  %9250 = vmatprep.subr.bf16.mxu0 %v11725_v52  ;;  %v2490_v12 = vld [vmem:[#allocation8 + $0x1a60] sm:$0xff]  ;;  %v2487_v52 = vld [vmem:[#allocation8 + $0x1a48] sm:$0xff] }
 0x2ad   :  { %9680 = vmatprep.subr.bf16.mxu1 %v11727_v58  ;;  %v2491_v58 = vld [vmem:[#allocation8 + $0x1a68] sm:$0xff]  ;;  %v11765_v62 = vcombine.high %v2486_v51, %v2490_v12  ;;  %v11764_v14 = vcombine.low %v2486_v51, %v2490_v12 }
 0x2ae   :  { %v11767_v63 = vcombine.high %v2487_v52, %v2491_v58  ;;  %v11766_v15 = vcombine.low %v2487_v52, %v2491_v58 }
 0x2af   :  { %9251 = vmatpush1.bf16.msra.mxu0 %v11724_v1  ;;  %v2494_v1 = vld [vmem:[#allocation8 + $0x1a80] sm:$0xff] }
 0x2b0   :  { %9681 = vmatpush1.bf16.msra.mxu1 %v11726_v4  ;;  %9252 = vmatprep.subr.bf16.mxu0 %v11733_v8  ;;  %v2498_v4 = vld [vmem:[#allocation8 + $0x1aa0] sm:$0xff]  ;;  %v2495_v8 = vld [vmem:[#allocation8 + $0x1a88] sm:$0xff] }
 0x2b1   :  { %9682 = vmatprep.subr.bf16.mxu1 %v11735_v9  ;;  %v2499_v9 = vld [vmem:[#allocation8 + $0x1aa8] sm:$0xff]  ;;  %v11773_v16 = vcombine.high %v2494_v1, %v2498_v4  ;;  %v11772_v23 = vcombine.low %v2494_v1, %v2498_v4 }
 0x2b2   :  { %v11775_v18 = vcombine.high %v2495_v8, %v2499_v9  ;;  %v11774_v24 = vcombine.low %v2495_v8, %v2499_v9 }
 0x2b3   :  { %9253 = vmatpush1.bf16.msra.mxu0 %v11732_v20  ;;  %v2502_v20 = vld [vmem:[#allocation8 + $0x1ac0] sm:$0xff] }
 0x2b4   :  { %9683 = vmatpush1.bf16.msra.mxu1 %v11734_v21  ;;  %9254 = vmatprep.subr.bf16.mxu0 %v11741_v56  ;;  %v2506_v21 = vld [vmem:[#allocation8 + $0x1ae0] sm:$0xff]  ;;  %v2503_v56 = vld [vmem:[#allocation8 + $0x1ac8] sm:$0xff] }
 0x2b5   :  { %9684 = vmatprep.subr.bf16.mxu1 %v11743_v22  ;;  %v2507_v22 = vld [vmem:[#allocation8 + $0x1ae8] sm:$0xff]  ;;  %v11781_v25 = vcombine.high %v2502_v20, %v2506_v21  ;;  %v11780_v34 = vcombine.low %v2502_v20, %v2506_v21 }
 0x2b6   :  { %v11783_v26 = vcombine.high %v2503_v56, %v2507_v22  ;;  %v11782_v37 = vcombine.low %v2503_v56, %v2507_v22 }
 0x2b7   :  { %9255 = vmatpush1.bf16.msra.mxu0 %v11740_v27  ;;  %v2510_v27 = vld [vmem:[#allocation8 + $0x1b00] sm:$0xff] }
 0x2b8   :  { %9685 = vmatpush1.bf16.msra.mxu1 %v11742_v30  ;;  %9256 = vmatprep.subr.bf16.mxu0 %v11749_v31  ;;  %v2514_v30 = vld [vmem:[#allocation8 + $0x1b20] sm:$0xff]  ;;  %v2511_v31 = vld [vmem:[#allocation8 + $0x1b08] sm:$0xff] }
 0x2b9   :  { %9686 = vmatprep.subr.bf16.mxu1 %v11751_v32  ;;  %v2515_v32 = vld [vmem:[#allocation8 + $0x1b28] sm:$0xff]  ;;  %v11789_v38 = vcombine.high %v2510_v27, %v2514_v30  ;;  %v11788_v51 = vcombine.low %v2510_v27, %v2514_v30 }
 0x2ba   :  { %v11791_v44 = vcombine.high %v2511_v31, %v2515_v32  ;;  %v11790_v12 = vcombine.low %v2511_v31, %v2515_v32 }
 0x2bb   :  { %9257 = vmatpush1.bf16.msra.mxu0 %v11748_v45  ;;  %v2518_v45 = vld [vmem:[#allocation8 + $0x1b40] sm:$0xff] }
 0x2bc   :  { %9687 = vmatpush1.bf16.msra.mxu1 %v11750_v47  ;;  %9258 = vmatprep.subr.bf16.mxu0 %v11757_v48  ;;  %v2522_v47 = vld [vmem:[#allocation8 + $0x1b60] sm:$0xff]  ;;  %v2519_v48 = vld [vmem:[#allocation8 + $0x1b48] sm:$0xff] }
 0x2bd   :  { %9688 = vmatprep.subr.bf16.mxu1 %v11759_v49  ;;  %v2523_v49 = vld [vmem:[#allocation8 + $0x1b68] sm:$0xff]  ;;  %v11797_v52 = vcombine.high %v2518_v45, %v2522_v47  ;;  %v11796_v1 = vcombine.low %v2518_v45, %v2522_v47 }
 0x2be   :  { %v11799_v58 = vcombine.high %v2519_v48, %v2523_v49  ;;  %v11798_v4 = vcombine.low %v2519_v48, %v2523_v49  ;;  %v2555_v45 = vld [vmem:[#allocation8 + $0x1c68] sm:$0xff]  ;;  %v2558_v49 = vld [vmem:[#allocation8 + $0x1c80] sm:$0xff] }
 0x2bf   :  { %9259 = vmatpush1.bf16.msra.mxu0 %v11756_v59  ;;  %v2526_v59 = vld [vmem:[#allocation8 + $0x1b80] sm:$0xff] }
 0x2c0   :  { %9689 = vmatpush1.bf16.msra.mxu1 %v11758_v61  ;;  %9260 = vmatprep.subr.bf16.mxu0 %v11765_v62  ;;  %v2530_v61 = vld [vmem:[#allocation8 + $0x1ba0] sm:$0xff]  ;;  %v2527_v62 = vld [vmem:[#allocation8 + $0x1b88] sm:$0xff] }
 0x2c1   :  { %9690 = vmatprep.subr.bf16.mxu1 %v11767_v63  ;;  %v2531_v63 = vld [vmem:[#allocation8 + $0x1ba8] sm:$0xff]  ;;  %v11805_v8 = vcombine.high %v2526_v59, %v2530_v61  ;;  %v11804_v20 = vcombine.low %v2526_v59, %v2530_v61 }
 0x2c2   :  { %v11807_v9 = vcombine.high %v2527_v62, %v2531_v63  ;;  %v11806_v21 = vcombine.low %v2527_v62, %v2531_v63 }
 0x2c3   :  { %9261 = vmatpush1.bf16.msra.mxu0 %v11764_v14  ;;  %v2534_v14 = vld [vmem:[#allocation8 + $0x1bc0] sm:$0xff] }
 0x2c4   :  { %9691 = vmatpush1.bf16.msra.mxu1 %v11766_v15  ;;  %9262 = vmatprep.subr.bf16.mxu0 %v11773_v16  ;;  %v2538_v15 = vld [vmem:[#allocation8 + $0x1be0] sm:$0xff]  ;;  %v2535_v16 = vld [vmem:[#allocation8 + $0x1bc8] sm:$0xff] }
 0x2c5   :  { %9692 = vmatprep.subr.bf16.mxu1 %v11775_v18  ;;  %v2539_v18 = vld [vmem:[#allocation8 + $0x1be8] sm:$0xff]  ;;  %v11813_v56 = vcombine.high %v2534_v14, %v2538_v15  ;;  %v11812_v27 = vcombine.low %v2534_v14, %v2538_v15 }
 0x2c6   :  { %v11815_v22 = vcombine.high %v2535_v16, %v2539_v18  ;;  %v11814_v30 = vcombine.low %v2535_v16, %v2539_v18 }
 0x2c7   :  { %9263 = vmatpush1.bf16.msra.mxu0 %v11772_v23  ;;  %v2542_v23 = vld [vmem:[#allocation8 + $0x1c00] sm:$0xff] }
 0x2c8   :  { %9693 = vmatpush1.bf16.msra.mxu1 %v11774_v24  ;;  %9264 = vmatprep.subr.bf16.mxu0 %v11781_v25  ;;  %v2546_v24 = vld [vmem:[#allocation8 + $0x1c20] sm:$0xff]  ;;  %v2543_v25 = vld [vmem:[#allocation8 + $0x1c08] sm:$0xff] }
 0x2c9   :  { %9694 = vmatprep.subr.bf16.mxu1 %v11783_v26  ;;  %v2547_v26 = vld [vmem:[#allocation8 + $0x1c28] sm:$0xff]  ;;  %v11821_v31 = vcombine.high %v2542_v23, %v2546_v24 }
 0x2ca   :  { %v11823_v32 = vcombine.high %v2543_v25, %v2547_v26  ;;  %v11822_v47 = vcombine.low %v2543_v25, %v2547_v26 }
 0x2cb   :  { %9265 = vmatpush1.bf16.msra.mxu0 %v11780_v34  ;;  %v2550_v34 = vld [vmem:[#allocation8 + $0x1c40] sm:$0xff] }
 0x2cc   :  { %9695 = vmatpush1.bf16.msra.mxu1 %v11782_v37  ;;  %9266 = vmatprep.subr.bf16.mxu0 %v11789_v38  ;;  %v2554_v37 = vld [vmem:[#allocation8 + $0x1c60] sm:$0xff]  ;;  %v11820_v38 = vcombine.low %v2542_v23, %v2546_v24 }
 0x2cd   :  { %9696 = vmatprep.subr.bf16.mxu1 %v11791_v44  ;;  %v2551_v44 = vld [vmem:[#allocation8 + $0x1c48] sm:$0xff]  ;;  %v11829_v48 = vcombine.high %v2550_v34, %v2554_v37  ;;  %v11828_v59 = vcombine.low %v2550_v34, %v2554_v37 }
 0x2ce   :  { %v11830_v61 = vcombine.low %v2551_v44, %v2555_v45 }
 0x2cf   :  { %9267 = vmatpush1.bf16.msra.mxu0 %v11788_v51  ;;  %v2562_v51 = vld [vmem:[#allocation8 + $0x1ca0] sm:$0xff] }
 0x2d0   :  { %9697 = vmatpush1.bf16.msra.mxu1 %v11790_v12  ;;  %9268 = vmatprep.subr.bf16.mxu0 %v11797_v52  ;;  %v11831_v12 = vcombine.high %v2551_v44, %v2555_v45  ;;  %v2559_v52 = vld [vmem:[#allocation8 + $0x1c88] sm:$0xff]  ;;  %v11837_v62 = vcombine.high %v2558_v49, %v2562_v51  ;;  %v11836_v14 = vcombine.low %v2558_v49, %v2562_v51  ;;  %v2590_v45 = vld [vmem:[#allocation8 + $0x1d80] sm:$0xff] }
 0x2d1   :  { %9698 = vmatprep.subr.bf16.mxu1 %v11799_v58  ;;  %v2563_v58 = vld [vmem:[#allocation8 + $0x1ca8] sm:$0xff] }
 0x2d2   :  { %v11839_v63 = vcombine.high %v2559_v52, %v2563_v58  ;;  %v11838_v15 = vcombine.low %v2559_v52, %v2563_v58  ;;  %v2595_v49 = vld [vmem:[#allocation8 + $0x1da8] sm:$0xff] }
 0x2d3   :  { %9269 = vmatpush1.bf16.msra.mxu0 %v11796_v1  ;;  %v2566_v1 = vld [vmem:[#allocation8 + $0x1cc0] sm:$0xff] }
 0x2d4   :  { %9699 = vmatpush1.bf16.msra.mxu1 %v11798_v4  ;;  %9270 = vmatprep.subr.bf16.mxu0 %v11805_v8  ;;  %v2570_v4 = vld [vmem:[#allocation8 + $0x1ce0] sm:$0xff]  ;;  %v2567_v8 = vld [vmem:[#allocation8 + $0x1cc8] sm:$0xff] }
 0x2d5   :  { %9700 = vmatprep.subr.bf16.mxu1 %v11807_v9  ;;  %v2571_v9 = vld [vmem:[#allocation8 + $0x1ce8] sm:$0xff]  ;;  %v11845_v16 = vcombine.high %v2566_v1, %v2570_v4  ;;  %v11844_v23 = vcombine.low %v2566_v1, %v2570_v4 }
 0x2d6   :  { %v11847_v18 = vcombine.high %v2567_v8, %v2571_v9  ;;  %v11846_v24 = vcombine.low %v2567_v8, %v2571_v9 }
 0x2d7   :  { %9271 = vmatpush1.bf16.msra.mxu0 %v11804_v20  ;;  %v2574_v20 = vld [vmem:[#allocation8 + $0x1d00] sm:$0xff] }
 0x2d8   :  { %9701 = vmatpush1.bf16.msra.mxu1 %v11806_v21  ;;  %9272 = vmatprep.subr.bf16.mxu0 %v11813_v56  ;;  %v2578_v21 = vld [vmem:[#allocation8 + $0x1d20] sm:$0xff]  ;;  %v2575_v56 = vld [vmem:[#allocation8 + $0x1d08] sm:$0xff] }
 0x2d9   :  { %9702 = vmatprep.subr.bf16.mxu1 %v11815_v22  ;;  %v2579_v22 = vld [vmem:[#allocation8 + $0x1d28] sm:$0xff]  ;;  %v11853_v25 = vcombine.high %v2574_v20, %v2578_v21  ;;  %v11852_v34 = vcombine.low %v2574_v20, %v2578_v21 }
 0x2da   :  { %v11855_v26 = vcombine.high %v2575_v56, %v2579_v22  ;;  %v11854_v37 = vcombine.low %v2575_v56, %v2579_v22 }
 0x2db   :  { %9273 = vmatpush1.bf16.msra.mxu0 %v11812_v27  ;;  %v2582_v27 = vld [vmem:[#allocation8 + $0x1d40] sm:$0xff] }
 0x2dc   :  { %9703 = vmatpush1.bf16.msra.mxu1 %v11814_v30  ;;  %9285 = vmatprep.subr.bf16.mxu0 %v11821_v31  ;;  %v2586_v30 = vld [vmem:[#allocation8 + $0x1d60] sm:$0xff]  ;;  %v2583_v31 = vld [vmem:[#allocation8 + $0x1d48] sm:$0xff] }
 0x2dd   :  { %9715 = vmatprep.subr.bf16.mxu1 %v11823_v32  ;;  %v2587_v32 = vld [vmem:[#allocation8 + $0x1d68] sm:$0xff]  ;;  %v11860_v51 = vcombine.low %v2582_v27, %v2586_v30 }
 0x2de   :  { %9275 = vmatmul.mubr.bf16.vlgmr.msra.gmra.mrb[20].mxu0 %v12953_v35  ;;  %v11863_v44 = vcombine.high %v2583_v31, %v2587_v32 }
 0x2df   :  { %9705 = vmatmul.mubr.bf16.vlgmr.msra.gmra.mrb[20].mxu1 %v12953_v35  ;;  %9286 = vmatpush1.bf16.msra.mxu0 %v11820_v38  ;;  %v11861_v38 = vcombine.high %v2582_v27, %v2586_v30 }
 0x2e0   :  { %9317 = vmatprep.mubr.bf16.mxu0 %v12959_v33  ;;  %9716 = vmatpush1.bf16.msra.mxu1 %v11822_v47  ;;  %v2594_v47 = vld [vmem:[#allocation8 + $0x1da0] sm:$0xff] }
 0x2e1   :  { %9747 = vmatprep.mubr.bf16.mxu1 %v12959_v33  ;;  %9287 = vmatprep.subr.bf16.mxu0 %v11829_v48  ;;  %v2591_v48 = vld [vmem:[#allocation8 + $0x1d88] sm:$0xff]  ;;  %v11869_v52 = vcombine.high %v2590_v45, %v2594_v47  ;;  %v11868_v1 = vcombine.low %v2590_v45, %v2594_v47 }
 0x2e2   :  { %9717 = vmatprep.subr.bf16.mxu1 %v11831_v12  ;;  %v11862_v12 = vcombine.low %v2583_v31, %v2587_v32  ;;  %v11871_v58 = vcombine.high %v2591_v48, %v2595_v49  ;;  %v11870_v4 = vcombine.low %v2591_v48, %v2595_v49 }
 0x2e3   :  { %9288 = vmatpush1.bf16.msra.mxu0 %v11828_v59  ;;  %v2598_v59 = vld [vmem:[#allocation8 + $0x1dc0] sm:$0xff] }
 0x2e4   :  { %9718 = vmatpush1.bf16.msra.mxu1 %v11830_v61  ;;  %9289 = vmatprep.subr.bf16.mxu0 %v11837_v62  ;;  %v2602_v61 = vld [vmem:[#allocation8 + $0x1de0] sm:$0xff]  ;;  %v2599_v62 = vld [vmem:[#allocation8 + $0x1dc8] sm:$0xff] }
 0x2e5   :  { %9719 = vmatprep.subr.bf16.mxu1 %v11839_v63  ;;  %v2603_v63 = vld [vmem:[#allocation8 + $0x1de8] sm:$0xff]  ;;  %v11877_v8 = vcombine.high %v2598_v59, %v2602_v61  ;;  %v11876_v20 = vcombine.low %v2598_v59, %v2602_v61 }
 0x2e6   :  { %v11879_v9 = vcombine.high %v2599_v62, %v2603_v63  ;;  %v11878_v21 = vcombine.low %v2599_v62, %v2603_v63 }
 0x2e7   :  { %9290 = vmatpush1.bf16.msra.mxu0 %v11836_v14  ;;  %v2606_v14 = vld [vmem:[#allocation8 + $0x1e00] sm:$0xff] }
 0x2e8   :  { %9720 = vmatpush1.bf16.msra.mxu1 %v11838_v15  ;;  %9291 = vmatprep.subr.bf16.mxu0 %v11845_v16  ;;  %v2610_v15 = vld [vmem:[#allocation8 + $0x1e20] sm:$0xff]  ;;  %v2607_v16 = vld [vmem:[#allocation8 + $0x1e08] sm:$0xff] }
 0x2e9   :  { %9721 = vmatprep.subr.bf16.mxu1 %v11847_v18  ;;  %v2611_v18 = vld [vmem:[#allocation8 + $0x1e28] sm:$0xff]  ;;  %v11885_v56 = vcombine.high %v2606_v14, %v2610_v15  ;;  %v11884_v27 = vcombine.low %v2606_v14, %v2610_v15 }
 0x2ea   :  { %v11887_v22 = vcombine.high %v2607_v16, %v2611_v18  ;;  %v11886_v30 = vcombine.low %v2607_v16, %v2611_v18 }
 0x2eb   :  { %9292 = vmatpush1.bf16.msra.mxu0 %v11844_v23  ;;  %v2614_v23 = vld [vmem:[#allocation8 + $0x1e40] sm:$0xff] }
 0x2ec   :  { %9722 = vmatpush1.bf16.msra.mxu1 %v11846_v24  ;;  %9293 = vmatprep.subr.bf16.mxu0 %v11853_v25  ;;  %v2618_v24 = vld [vmem:[#allocation8 + $0x1e60] sm:$0xff]  ;;  %v2615_v25 = vld [vmem:[#allocation8 + $0x1e48] sm:$0xff] }
 0x2ed   :  { %9723 = vmatprep.subr.bf16.mxu1 %v11855_v26  ;;  %v2619_v26 = vld [vmem:[#allocation8 + $0x1e68] sm:$0xff]  ;;  %v11893_v31 = vcombine.high %v2614_v23, %v2618_v24  ;;  %v11892_v45 = vcombine.low %v2614_v23, %v2618_v24 }
 0x2ee   :  { %v11895_v32 = vcombine.high %v2615_v25, %v2619_v26  ;;  %v11894_v47 = vcombine.low %v2615_v25, %v2619_v26 }
 0x2ef   :  { %9294 = vmatpush1.bf16.msra.mxu0 %v11852_v34  ;;  %v2622_v34 = vld [vmem:[#allocation8 + $0x1e80] sm:$0xff] }
 0x2f0   :  { %9724 = vmatpush1.bf16.msra.mxu1 %v11854_v37  ;;  %9295 = vmatprep.subr.bf16.mxu0 %v11861_v38  ;;  %v2626_v37 = vld [vmem:[#allocation8 + $0x1ea0] sm:$0xff]  ;;  %v2623_v38 = vld [vmem:[#allocation8 + $0x1e88] sm:$0xff] }
 0x2f1   :  { %9725 = vmatprep.subr.bf16.mxu1 %v11863_v44  ;;  %v2627_v44 = vld [vmem:[#allocation8 + $0x1ea8] sm:$0xff]  ;;  %v11901_v48 = vcombine.high %v2622_v34, %v2626_v37  ;;  %v11900_v59 = vcombine.low %v2622_v34, %v2626_v37 }
 0x2f2   :  { %v11903_v49 = vcombine.high %v2623_v38, %v2627_v44  ;;  %v11902_v61 = vcombine.low %v2623_v38, %v2627_v44 }
 0x2f3   :  { %9296 = vmatpush1.bf16.msra.mxu0 %v11860_v51  ;;  %v2630_v51 = vld [vmem:[#allocation8 + $0x1ec0] sm:$0xff] }
 0x2f4   :  { %9726 = vmatpush1.bf16.msra.mxu1 %v11862_v12  ;;  %9297 = vmatprep.subr.bf16.mxu0 %v11869_v52  ;;  %v2634_v12 = vld [vmem:[#allocation8 + $0x1ee0] sm:$0xff]  ;;  %v2631_v52 = vld [vmem:[#allocation8 + $0x1ec8] sm:$0xff] }
 0x2f5   :  { %9727 = vmatprep.subr.bf16.mxu1 %v11871_v58  ;;  %v2635_v58 = vld [vmem:[#allocation8 + $0x1ee8] sm:$0xff]  ;;  %v11909_v62 = vcombine.high %v2630_v51, %v2634_v12  ;;  %v11908_v14 = vcombine.low %v2630_v51, %v2634_v12 }
 0x2f6   :  { %v11911_v63 = vcombine.high %v2631_v52, %v2635_v58  ;;  %v11910_v15 = vcombine.low %v2631_v52, %v2635_v58 }
 0x2f7   :  { %9298 = vmatpush1.bf16.msra.mxu0 %v11868_v1  ;;  %v2638_v1 = vld [vmem:[#allocation8 + $0x1f00] sm:$0xff] }
 0x2f8   :  { %9728 = vmatpush1.bf16.msra.mxu1 %v11870_v4  ;;  %9299 = vmatprep.subr.bf16.mxu0 %v11877_v8  ;;  %v2642_v4 = vld [vmem:[#allocation8 + $0x1f20] sm:$0xff]  ;;  %v2639_v8 = vld [vmem:[#allocation8 + $0x1f08] sm:$0xff] }
 0x2f9   :  { %9729 = vmatprep.subr.bf16.mxu1 %v11879_v9  ;;  %v2643_v9 = vld [vmem:[#allocation8 + $0x1f28] sm:$0xff]  ;;  %v11917_v16 = vcombine.high %v2638_v1, %v2642_v4  ;;  %v11916_v23 = vcombine.low %v2638_v1, %v2642_v4 }
 0x2fa   :  { %v11919_v18 = vcombine.high %v2639_v8, %v2643_v9  ;;  %v11918_v24 = vcombine.low %v2639_v8, %v2643_v9 }
 0x2fb   :  { %9300 = vmatpush1.bf16.msra.mxu0 %v11876_v20  ;;  %v2646_v20 = vld [vmem:[#allocation8 + $0x1f40] sm:$0xff] }
 0x2fc   :  { %9730 = vmatpush1.bf16.msra.mxu1 %v11878_v21  ;;  %9301 = vmatprep.subr.bf16.mxu0 %v11885_v56  ;;  %v2650_v21 = vld [vmem:[#allocation8 + $0x1f60] sm:$0xff]  ;;  %v2647_v56 = vld [vmem:[#allocation8 + $0x1f48] sm:$0xff] }
 0x2fd   :  { %9731 = vmatprep.subr.bf16.mxu1 %v11887_v22  ;;  %v2651_v22 = vld [vmem:[#allocation8 + $0x1f68] sm:$0xff]  ;;  %v11925_v25 = vcombine.high %v2646_v20, %v2650_v21  ;;  %v11924_v34 = vcombine.low %v2646_v20, %v2650_v21 }
 0x2fe   :  { %v11927_v26 = vcombine.high %v2647_v56, %v2651_v22  ;;  %v11926_v37 = vcombine.low %v2647_v56, %v2651_v22  ;;  %v2683_v20 = vld [vmem:[#allocation8 + $0x2068] sm:$0xff]  ;;  %v2686_v22 = vld [vmem:[#allocation8 + $0x2080] sm:$0xff] }
 0x2ff   :  { %9302 = vmatpush1.bf16.msra.mxu0 %v11884_v27  ;;  %v2654_v27 = vld [vmem:[#allocation8 + $0x1f80] sm:$0xff] }
 0x300   :  { %9732 = vmatpush1.bf16.msra.mxu1 %v11886_v30  ;;  %9303 = vmatprep.subr.bf16.mxu0 %v11893_v31  ;;  %v2658_v30 = vld [vmem:[#allocation8 + $0x1fa0] sm:$0xff]  ;;  %v2655_v31 = vld [vmem:[#allocation8 + $0x1f88] sm:$0xff] }
 0x301   :  { %9733 = vmatprep.subr.bf16.mxu1 %v11895_v32  ;;  %v2659_v32 = vld [vmem:[#allocation8 + $0x1fa8] sm:$0xff]  ;;  %v11933_v38 = vcombine.high %v2654_v27, %v2658_v30  ;;  %v11932_v51 = vcombine.low %v2654_v27, %v2658_v30 }
 0x302   :  { %v11935_v44 = vcombine.high %v2655_v31, %v2659_v32  ;;  %v11934_v12 = vcombine.low %v2655_v31, %v2659_v32 }
 0x303   :  { %9304 = vmatpush1.bf16.msra.mxu0 %v11892_v45  ;;  %v2662_v45 = vld [vmem:[#allocation8 + $0x1fc0] sm:$0xff] }
 0x304   :  { %9734 = vmatpush1.bf16.msra.mxu1 %v11894_v47  ;;  %9305 = vmatprep.subr.bf16.mxu0 %v11901_v48  ;;  %v2666_v47 = vld [vmem:[#allocation8 + $0x1fe0] sm:$0xff]  ;;  %v2663_v48 = vld [vmem:[#allocation8 + $0x1fc8] sm:$0xff] }
 0x305   :  { %9735 = vmatprep.subr.bf16.mxu1 %v11903_v49  ;;  %v2667_v49 = vld [vmem:[#allocation8 + $0x1fe8] sm:$0xff]  ;;  %v11941_v52 = vcombine.high %v2662_v45, %v2666_v47  ;;  %v11940_v1 = vcombine.low %v2662_v45, %v2666_v47 }
 0x306   :  { %v11943_v58 = vcombine.high %v2663_v48, %v2667_v49  ;;  %v11942_v4 = vcombine.low %v2663_v48, %v2667_v49 }
 0x307   :  { %9306 = vmatpush1.bf16.msra.mxu0 %v11900_v59  ;;  %v2670_v59 = vld [vmem:[#allocation8 + $0x2000] sm:$0xff] }
 0x308   :  { %9736 = vmatpush1.bf16.msra.mxu1 %v11902_v61  ;;  %9307 = vmatprep.subr.bf16.mxu0 %v11909_v62  ;;  %v2674_v61 = vld [vmem:[#allocation8 + $0x2020] sm:$0xff]  ;;  %v2671_v62 = vld [vmem:[#allocation8 + $0x2008] sm:$0xff] }
 0x309   :  { %9737 = vmatprep.subr.bf16.mxu1 %v11911_v63  ;;  %v2675_v63 = vld [vmem:[#allocation8 + $0x2028] sm:$0xff]  ;;  %v11949_v8 = vcombine.high %v2670_v59, %v2674_v61 }
 0x30a   :  { %v11951_v9 = vcombine.high %v2671_v62, %v2675_v63  ;;  %v11950_v21 = vcombine.low %v2671_v62, %v2675_v63 }
 0x30b   :  { %9308 = vmatpush1.bf16.msra.mxu0 %v11908_v14  ;;  %v2678_v14 = vld [vmem:[#allocation8 + $0x2040] sm:$0xff] }
 0x30c   :  { %9738 = vmatpush1.bf16.msra.mxu1 %v11910_v15  ;;  %9309 = vmatprep.subr.bf16.mxu0 %v11917_v16  ;;  %v2682_v15 = vld [vmem:[#allocation8 + $0x2060] sm:$0xff]  ;;  %v11948_v16 = vcombine.low %v2670_v59, %v2674_v61 }
 0x30d   :  { %9739 = vmatprep.subr.bf16.mxu1 %v11919_v18  ;;  %v2679_v18 = vld [vmem:[#allocation8 + $0x2048] sm:$0xff]  ;;  %v11957_v56 = vcombine.high %v2678_v14, %v2682_v15  ;;  %v11956_v27 = vcombine.low %v2678_v14, %v2682_v15 }
 0x30e   :  { %v11958_v30 = vcombine.low %v2679_v18, %v2683_v20 }
 0x30f   :  { %9310 = vmatpush1.bf16.msra.mxu0 %v11916_v23  ;;  %v2690_v23 = vld [vmem:[#allocation8 + $0x20a0] sm:$0xff] }
 0x310   :  { %9740 = vmatpush1.bf16.msra.mxu1 %v11918_v24  ;;  %9311 = vmatprep.subr.bf16.mxu0 %v11925_v25  ;;  %v11959_v24 = vcombine.high %v2679_v18, %v2683_v20  ;;  %v2687_v25 = vld [vmem:[#allocation8 + $0x2088] sm:$0xff]  ;;  %v11965_v31 = vcombine.high %v2686_v22, %v2690_v23  ;;  %v11964_v45 = vcombine.low %v2686_v22, %v2690_v23  ;;  %v2718_v20 = vld [vmem:[#allocation8 + $0x2180] sm:$0xff] }
 0x311   :  { %9741 = vmatprep.subr.bf16.mxu1 %v11927_v26  ;;  %v2691_v26 = vld [vmem:[#allocation8 + $0x20a8] sm:$0xff] }
 0x312   :  { %v11967_v32 = vcombine.high %v2687_v25, %v2691_v26  ;;  %v11966_v47 = vcombine.low %v2687_v25, %v2691_v26  ;;  %v2723_v22 = vld [vmem:[#allocation8 + $0x21a8] sm:$0xff] }
 0x313   :  { %9312 = vmatpush1.bf16.msra.mxu0 %v11924_v34  ;;  %v2694_v34 = vld [vmem:[#allocation8 + $0x20c0] sm:$0xff] }
 0x314   :  { %9742 = vmatpush1.bf16.msra.mxu1 %v11926_v37  ;;  %9313 = vmatprep.subr.bf16.mxu0 %v11933_v38  ;;  %v2698_v37 = vld [vmem:[#allocation8 + $0x20e0] sm:$0xff]  ;;  %v2695_v38 = vld [vmem:[#allocation8 + $0x20c8] sm:$0xff] }
 0x315   :  { %9743 = vmatprep.subr.bf16.mxu1 %v11935_v44  ;;  %v2699_v44 = vld [vmem:[#allocation8 + $0x20e8] sm:$0xff]  ;;  %v11973_v48 = vcombine.high %v2694_v34, %v2698_v37  ;;  %v11972_v59 = vcombine.low %v2694_v34, %v2698_v37 }
 0x316   :  { %v11975_v49 = vcombine.high %v2695_v38, %v2699_v44  ;;  %v11974_v61 = vcombine.low %v2695_v38, %v2699_v44 }
 0x317   :  { %9314 = vmatpush1.bf16.msra.mxu0 %v11932_v51  ;;  %v2702_v51 = vld [vmem:[#allocation8 + $0x2100] sm:$0xff] }
 0x318   :  { %9744 = vmatpush1.bf16.msra.mxu1 %v11934_v12  ;;  %9315 = vmatprep.subr.bf16.mxu0 %v11941_v52  ;;  %v2706_v12 = vld [vmem:[#allocation8 + $0x2120] sm:$0xff]  ;;  %v2703_v52 = vld [vmem:[#allocation8 + $0x2108] sm:$0xff] }
 0x319   :  { %9745 = vmatprep.subr.bf16.mxu1 %v11943_v58  ;;  %v2707_v58 = vld [vmem:[#allocation8 + $0x2128] sm:$0xff]  ;;  %v11981_v62 = vcombine.high %v2702_v51, %v2706_v12  ;;  %v11980_v14 = vcombine.low %v2702_v51, %v2706_v12 }
 0x31a   :  { %v11983_v63 = vcombine.high %v2703_v52, %v2707_v58  ;;  %v11982_v15 = vcombine.low %v2703_v52, %v2707_v58 }
 0x31b   :  { %9316 = vmatpush1.bf16.msra.mxu0 %v11940_v1  ;;  %v2710_v1 = vld [vmem:[#allocation8 + $0x2140] sm:$0xff] }
 0x31c   :  { %9746 = vmatpush1.bf16.msra.mxu1 %v11942_v4  ;;  %9328 = vmatprep.subr.bf16.mxu0 %v11949_v8  ;;  %v2714_v4 = vld [vmem:[#allocation8 + $0x2160] sm:$0xff]  ;;  %v2711_v8 = vld [vmem:[#allocation8 + $0x2148] sm:$0xff] }
 0x31d   :  { %9758 = vmatprep.subr.bf16.mxu1 %v11951_v9  ;;  %v2715_v9 = vld [vmem:[#allocation8 + $0x2168] sm:$0xff]  ;;  %v11988_v23 = vcombine.low %v2710_v1, %v2714_v4 }
 0x31e   :  { %9318 = vmatmul.mubr.bf16.vlgmr.msra.gmra.mrb[20].mxu0 %v12957_v29  ;;  %v11991_v18 = vcombine.high %v2711_v8, %v2715_v9 }
 0x31f   :  { %9748 = vmatmul.mubr.bf16.vlgmr.msra.gmra.mrb[20].mxu1 %v12957_v29  ;;  %9329 = vmatpush1.bf16.msra.mxu0 %v11948_v16  ;;  %v11989_v16 = vcombine.high %v2710_v1, %v2714_v4 }
 0x320   :  { %9360 = vmatprep.mubr.bf16.mxu0 %v12966_v42  ;;  %9759 = vmatpush1.bf16.msra.mxu1 %v11950_v21  ;;  %v2722_v21 = vld [vmem:[#allocation8 + $0x21a0] sm:$0xff] }
 0x321   :  { %9790 = vmatprep.mubr.bf16.mxu1 %v12966_v42  ;;  %9330 = vmatprep.subr.bf16.mxu0 %v11957_v56  ;;  %v2719_v56 = vld [vmem:[#allocation8 + $0x2188] sm:$0xff]  ;;  %v11997_v25 = vcombine.high %v2718_v20, %v2722_v21  ;;  %v11996_v34 = vcombine.low %v2718_v20, %v2722_v21 }
 0x322   :  { %9760 = vmatprep.subr.bf16.mxu1 %v11959_v24  ;;  %v11990_v24 = vcombine.low %v2711_v8, %v2715_v9  ;;  %v11999_v26 = vcombine.high %v2719_v56, %v2723_v22  ;;  %v11998_v37 = vcombine.low %v2719_v56, %v2723_v22 }
 0x323   :  { %9331 = vmatpush1.bf16.msra.mxu0 %v11956_v27  ;;  %v2726_v27 = vld [vmem:[#allocation8 + $0x21c0] sm:$0xff] }
 0x324   :  { %9761 = vmatpush1.bf16.msra.mxu1 %v11958_v30  ;;  %9332 = vmatprep.subr.bf16.mxu0 %v11965_v31  ;;  %v2730_v30 = vld [vmem:[#allocation8 + $0x21e0] sm:$0xff]  ;;  %v2727_v31 = vld [vmem:[#allocation8 + $0x21c8] sm:$0xff] }
 0x325   :  { %9762 = vmatprep.subr.bf16.mxu1 %v11967_v32  ;;  %v2731_v32 = vld [vmem:[#allocation8 + $0x21e8] sm:$0xff]  ;;  %v12005_v38 = vcombine.high %v2726_v27, %v2730_v30  ;;  %v12004_v51 = vcombine.low %v2726_v27, %v2730_v30 }
 0x326   :  { %v12007_v44 = vcombine.high %v2727_v31, %v2731_v32  ;;  %v12006_v12 = vcombine.low %v2727_v31, %v2731_v32 }
 0x327   :  { %9333 = vmatpush1.bf16.msra.mxu0 %v11964_v45  ;;  %v2734_v45 = vld [vmem:[#allocation8 + $0x2200] sm:$0xff] }
 0x328   :  { %9763 = vmatpush1.bf16.msra.mxu1 %v11966_v47  ;;  %9334 = vmatprep.subr.bf16.mxu0 %v11973_v48  ;;  %v2738_v47 = vld [vmem:[#allocation8 + $0x2220] sm:$0xff]  ;;  %v2735_v48 = vld [vmem:[#allocation8 + $0x2208] sm:$0xff] }
 0x329   :  { %9764 = vmatprep.subr.bf16.mxu1 %v11975_v49  ;;  %v2739_v49 = vld [vmem:[#allocation8 + $0x2228] sm:$0xff]  ;;  %v12013_v52 = vcombine.high %v2734_v45, %v2738_v47  ;;  %v12012_v1 = vcombine.low %v2734_v45, %v2738_v47 }
 0x32a   :  { %v12015_v58 = vcombine.high %v2735_v48, %v2739_v49  ;;  %v12014_v4 = vcombine.low %v2735_v48, %v2739_v49 }
 0x32b   :  { %9335 = vmatpush1.bf16.msra.mxu0 %v11972_v59  ;;  %v2742_v59 = vld [vmem:[#allocation8 + $0x2240] sm:$0xff] }
 0x32c   :  { %9765 = vmatpush1.bf16.msra.mxu1 %v11974_v61  ;;  %9336 = vmatprep.subr.bf16.mxu0 %v11981_v62  ;;  %v2746_v61 = vld [vmem:[#allocation8 + $0x2260] sm:$0xff]  ;;  %v2743_v62 = vld [vmem:[#allocation8 + $0x2248] sm:$0xff] }
 0x32d   :  { %9766 = vmatprep.subr.bf16.mxu1 %v11983_v63  ;;  %v2747_v63 = vld [vmem:[#allocation8 + $0x2268] sm:$0xff]  ;;  %v12021_v8 = vcombine.high %v2742_v59, %v2746_v61  ;;  %v12020_v20 = vcombine.low %v2742_v59, %v2746_v61 }
 0x32e   :  { %v12023_v9 = vcombine.high %v2743_v62, %v2747_v63  ;;  %v12022_v21 = vcombine.low %v2743_v62, %v2747_v63 }
 0x32f   :  { %9337 = vmatpush1.bf16.msra.mxu0 %v11980_v14  ;;  %v2750_v14 = vld [vmem:[#allocation8 + $0x2280] sm:$0xff] }
 0x330   :  { %9767 = vmatpush1.bf16.msra.mxu1 %v11982_v15  ;;  %9338 = vmatprep.subr.bf16.mxu0 %v11989_v16  ;;  %v2754_v15 = vld [vmem:[#allocation8 + $0x22a0] sm:$0xff]  ;;  %v2751_v16 = vld [vmem:[#allocation8 + $0x2288] sm:$0xff] }
 0x331   :  { %9768 = vmatprep.subr.bf16.mxu1 %v11991_v18  ;;  %v2755_v18 = vld [vmem:[#allocation8 + $0x22a8] sm:$0xff]  ;;  %v12029_v56 = vcombine.high %v2750_v14, %v2754_v15  ;;  %v12028_v27 = vcombine.low %v2750_v14, %v2754_v15 }
 0x332   :  { %v12031_v22 = vcombine.high %v2751_v16, %v2755_v18  ;;  %v12030_v30 = vcombine.low %v2751_v16, %v2755_v18 }
 0x333   :  { %9339 = vmatpush1.bf16.msra.mxu0 %v11988_v23  ;;  %v2758_v23 = vld [vmem:[#allocation8 + $0x22c0] sm:$0xff] }
 0x334   :  { %9769 = vmatpush1.bf16.msra.mxu1 %v11990_v24  ;;  %9340 = vmatprep.subr.bf16.mxu0 %v11997_v25  ;;  %v2762_v24 = vld [vmem:[#allocation8 + $0x22e0] sm:$0xff]  ;;  %v2759_v25 = vld [vmem:[#allocation8 + $0x22c8] sm:$0xff] }
 0x335   :  { %9770 = vmatprep.subr.bf16.mxu1 %v11999_v26  ;;  %v2763_v26 = vld [vmem:[#allocation8 + $0x22e8] sm:$0xff]  ;;  %v12037_v31 = vcombine.high %v2758_v23, %v2762_v24  ;;  %v12036_v45 = vcombine.low %v2758_v23, %v2762_v24 }
 0x336   :  { %v12039_v32 = vcombine.high %v2759_v25, %v2763_v26  ;;  %v12038_v47 = vcombine.low %v2759_v25, %v2763_v26 }
 0x337   :  { %9341 = vmatpush1.bf16.msra.mxu0 %v11996_v34  ;;  %v2766_v34 = vld [vmem:[#allocation8 + $0x2300] sm:$0xff] }
 0x338   :  { %9771 = vmatpush1.bf16.msra.mxu1 %v11998_v37  ;;  %9342 = vmatprep.subr.bf16.mxu0 %v12005_v38  ;;  %v2770_v37 = vld [vmem:[#allocation8 + $0x2320] sm:$0xff]  ;;  %v2767_v38 = vld [vmem:[#allocation8 + $0x2308] sm:$0xff] }
 0x339   :  { %9772 = vmatprep.subr.bf16.mxu1 %v12007_v44  ;;  %v2771_v44 = vld [vmem:[#allocation8 + $0x2328] sm:$0xff]  ;;  %v12045_v48 = vcombine.high %v2766_v34, %v2770_v37  ;;  %v12044_v59 = vcombine.low %v2766_v34, %v2770_v37 }
 0x33a   :  { %v12047_v49 = vcombine.high %v2767_v38, %v2771_v44  ;;  %v12046_v61 = vcombine.low %v2767_v38, %v2771_v44 }
 0x33b   :  { %9343 = vmatpush1.bf16.msra.mxu0 %v12004_v51  ;;  %v2774_v51 = vld [vmem:[#allocation8 + $0x2340] sm:$0xff] }
 0x33c   :  { %9773 = vmatpush1.bf16.msra.mxu1 %v12006_v12  ;;  %9344 = vmatprep.subr.bf16.mxu0 %v12013_v52  ;;  %v2778_v12 = vld [vmem:[#allocation8 + $0x2360] sm:$0xff]  ;;  %v2775_v52 = vld [vmem:[#allocation8 + $0x2348] sm:$0xff] }
 0x33d   :  { %9774 = vmatprep.subr.bf16.mxu1 %v12015_v58  ;;  %v2779_v58 = vld [vmem:[#allocation8 + $0x2368] sm:$0xff]  ;;  %v12053_v62 = vcombine.high %v2774_v51, %v2778_v12  ;;  %v12052_v14 = vcombine.low %v2774_v51, %v2778_v12 }
 0x33e   :  { %v12055_v63 = vcombine.high %v2775_v52, %v2779_v58  ;;  %v12054_v15 = vcombine.low %v2775_v52, %v2779_v58 }
 0x33f   :  { %9345 = vmatpush1.bf16.msra.mxu0 %v12012_v1  ;;  %v2782_v1 = vld [vmem:[#allocation8 + $0x2380] sm:$0xff] }
 0x340   :  { %9775 = vmatpush1.bf16.msra.mxu1 %v12014_v4  ;;  %9346 = vmatprep.subr.bf16.mxu0 %v12021_v8  ;;  %v2786_v4 = vld [vmem:[#allocation8 + $0x23a0] sm:$0xff]  ;;  %v2783_v8 = vld [vmem:[#allocation8 + $0x2388] sm:$0xff] }
 0x341   :  { %9776 = vmatprep.subr.bf16.mxu1 %v12023_v9  ;;  %v2787_v9 = vld [vmem:[#allocation8 + $0x23a8] sm:$0xff]  ;;  %v12061_v16 = vcombine.high %v2782_v1, %v2786_v4  ;;  %v12060_v23 = vcombine.low %v2782_v1, %v2786_v4 }
 0x342   :  { %v12063_v18 = vcombine.high %v2783_v8, %v2787_v9  ;;  %v12062_v24 = vcombine.low %v2783_v8, %v2787_v9 }
 0x343   :  { %9347 = vmatpush1.bf16.msra.mxu0 %v12020_v20  ;;  %v2790_v20 = vld [vmem:[#allocation8 + $0x23c0] sm:$0xff] }
 0x344   :  { %9777 = vmatpush1.bf16.msra.mxu1 %v12022_v21  ;;  %9348 = vmatprep.subr.bf16.mxu0 %v12029_v56  ;;  %v2794_v21 = vld [vmem:[#allocation8 + $0x23e0] sm:$0xff]  ;;  %v2791_v56 = vld [vmem:[#allocation8 + $0x23c8] sm:$0xff] }
 0x345   :  { %9778 = vmatprep.subr.bf16.mxu1 %v12031_v22  ;;  %v2795_v22 = vld [vmem:[#allocation8 + $0x23e8] sm:$0xff]  ;;  %v12069_v25 = vcombine.high %v2790_v20, %v2794_v21  ;;  %v12068_v34 = vcombine.low %v2790_v20, %v2794_v21 }
 0x346   :  { %v12071_v26 = vcombine.high %v2791_v56, %v2795_v22  ;;  %v12070_v37 = vcombine.low %v2791_v56, %v2795_v22 }
 0x347   :  { %9349 = vmatpush1.bf16.msra.mxu0 %v12028_v27  ;;  %v2798_v27 = vld [vmem:[#allocation8 + $0x2400] sm:$0xff] }
 0x348   :  { %9779 = vmatpush1.bf16.msra.mxu1 %v12030_v30  ;;  %9350 = vmatprep.subr.bf16.mxu0 %v12037_v31  ;;  %v2802_v30 = vld [vmem:[#allocation8 + $0x2420] sm:$0xff]  ;;  %v2799_v31 = vld [vmem:[#allocation8 + $0x2408] sm:$0xff] }
 0x349   :  { %9780 = vmatprep.subr.bf16.mxu1 %v12039_v32  ;;  %v2803_v32 = vld [vmem:[#allocation8 + $0x2428] sm:$0xff]  ;;  %v12077_v38 = vcombine.high %v2798_v27, %v2802_v30  ;;  %v12076_v51 = vcombine.low %v2798_v27, %v2802_v30 }
 0x34a   :  { %v12079_v44 = vcombine.high %v2799_v31, %v2803_v32  ;;  %v12078_v12 = vcombine.low %v2799_v31, %v2803_v32 }
 0x34b   :  { %9351 = vmatpush1.bf16.msra.mxu0 %v12036_v45  ;;  %v2806_v45 = vld [vmem:[#allocation8 + $0x2440] sm:$0xff] }
 0x34c   :  { %9781 = vmatpush1.bf16.msra.mxu1 %v12038_v47  ;;  %9352 = vmatprep.subr.bf16.mxu0 %v12045_v48  ;;  %v2810_v47 = vld [vmem:[#allocation8 + $0x2460] sm:$0xff]  ;;  %v2807_v48 = vld [vmem:[#allocation8 + $0x2448] sm:$0xff] }
 0x34d   :  { %9782 = vmatprep.subr.bf16.mxu1 %v12047_v49  ;;  %v2811_v49 = vld [vmem:[#allocation8 + $0x2468] sm:$0xff]  ;;  %v12085_v52 = vcombine.high %v2806_v45, %v2810_v47  ;;  %v12084_v1 = vcombine.low %v2806_v45, %v2810_v47 }
 0x34e   :  { %v12087_v58 = vcombine.high %v2807_v48, %v2811_v49  ;;  %v12086_v4 = vcombine.low %v2807_v48, %v2811_v49 }
 0x34f   :  { %9353 = vmatpush1.bf16.msra.mxu0 %v12044_v59  ;;  %v2814_v59 = vld [vmem:[#allocation8 + $0x2480] sm:$0xff] }
 0x350   :  { %9783 = vmatpush1.bf16.msra.mxu1 %v12046_v61  ;;  %9354 = vmatprep.subr.bf16.mxu0 %v12053_v62  ;;  %v2818_v61 = vld [vmem:[#allocation8 + $0x24a0] sm:$0xff]  ;;  %v2815_v62 = vld [vmem:[#allocation8 + $0x2488] sm:$0xff] }
 0x351   :  { %9784 = vmatprep.subr.bf16.mxu1 %v12055_v63  ;;  %v2819_v63 = vld [vmem:[#allocation8 + $0x24a8] sm:$0xff]  ;;  %v12093_v8 = vcombine.high %v2814_v59, %v2818_v61  ;;  %v12092_v20 = vcombine.low %v2814_v59, %v2818_v61 }
 0x352   :  { %v12095_v9 = vcombine.high %v2815_v62, %v2819_v63  ;;  %v12094_v21 = vcombine.low %v2815_v62, %v2819_v63 }
 0x353   :  { %9355 = vmatpush1.bf16.msra.mxu0 %v12052_v14  ;;  %v2822_v14 = vld [vmem:[#allocation8 + $0x24c0] sm:$0xff] }
 0x354   :  { %9785 = vmatpush1.bf16.msra.mxu1 %v12054_v15  ;;  %9356 = vmatprep.subr.bf16.mxu0 %v12061_v16  ;;  %v2826_v15 = vld [vmem:[#allocation8 + $0x24e0] sm:$0xff]  ;;  %v2823_v16 = vld [vmem:[#allocation8 + $0x24c8] sm:$0xff] }
 0x355   :  { %9786 = vmatprep.subr.bf16.mxu1 %v12063_v18  ;;  %v2827_v18 = vld [vmem:[#allocation8 + $0x24e8] sm:$0xff]  ;;  %v12101_v56 = vcombine.high %v2822_v14, %v2826_v15  ;;  %v12100_v27 = vcombine.low %v2822_v14, %v2826_v15 }
 0x356   :  { %v12103_v22 = vcombine.high %v2823_v16, %v2827_v18  ;;  %v12102_v30 = vcombine.low %v2823_v16, %v2827_v18 }
 0x357   :  { %9357 = vmatpush1.bf16.msra.mxu0 %v12060_v23  ;;  %v2830_v23 = vld [vmem:[#allocation8 + $0x2500] sm:$0xff] }
 0x358   :  { %9787 = vmatpush1.bf16.msra.mxu1 %v12062_v24  ;;  %9358 = vmatprep.subr.bf16.mxu0 %v12069_v25  ;;  %v2834_v24 = vld [vmem:[#allocation8 + $0x2520] sm:$0xff]  ;;  %v2831_v25 = vld [vmem:[#allocation8 + $0x2508] sm:$0xff] }
 0x359   :  { %9788 = vmatprep.subr.bf16.mxu1 %v12071_v26  ;;  %v2835_v26 = vld [vmem:[#allocation8 + $0x2528] sm:$0xff]  ;;  %v12109_v31 = vcombine.high %v2830_v23, %v2834_v24  ;;  %v12108_v45 = vcombine.low %v2830_v23, %v2834_v24 }
 0x35a   :  { %v12111_v32 = vcombine.high %v2831_v25, %v2835_v26  ;;  %v12110_v47 = vcombine.low %v2831_v25, %v2835_v26 }
 0x35b   :  { %9359 = vmatpush1.bf16.msra.mxu0 %v12068_v34  ;;  %v2838_v34 = vld [vmem:[#allocation8 + $0x2540] sm:$0xff] }
 0x35c   :  { %9789 = vmatpush1.bf16.msra.mxu1 %v12070_v37  ;;  %9371 = vmatprep.subr.bf16.mxu0 %v12077_v38  ;;  %v2842_v37 = vld [vmem:[#allocation8 + $0x2560] sm:$0xff]  ;;  %v2839_v38 = vld [vmem:[#allocation8 + $0x2548] sm:$0xff] }
 0x35d   :  { %9801 = vmatprep.subr.bf16.mxu1 %v12079_v44  ;;  %v2843_v44 = vld [vmem:[#allocation8 + $0x2568] sm:$0xff]  ;;  %v12117_v48 = vcombine.high %v2838_v34, %v2842_v37  ;;  %v12116_v59 = vcombine.low %v2838_v34, %v2842_v37  ;;  %v1661_v34 = vld [vmem:[#allocation8 + $0x78] sm:$0xff] }
 0x35e   :  { %9361 = vmatmul.mubr.bf16.vlgmr.msra.gmra.mrb[20].mxu0 %v12964_v13  ;;  %v12119_v49 = vcombine.high %v2839_v38, %v2843_v44  ;;  %v12118_v61 = vcombine.low %v2839_v38, %v2843_v44  ;;  %v1664_v44 = vld [vmem:[#allocation8 + $0x90] sm:$0xff] }
 0x35f   :  { %9791 = vmatmul.mubr.bf16.vlgmr.msra.gmra.mrb[20].mxu1 %v12964_v13  ;;  %9372 = vmatpush1.bf16.msra.mxu0 %v12076_v51  ;;  %v2846_v51 = vld [vmem:[#allocation8 + $0x2580] sm:$0xff] }
 0x360   :  { %9802 = vmatpush1.bf16.msra.mxu1 %v12078_v12  ;;  %9373 = vmatprep.subr.bf16.mxu0 %v12085_v52  ;;  %v2850_v12 = vld [vmem:[#allocation8 + $0x25a0] sm:$0xff]  ;;  %v2847_v52 = vld [vmem:[#allocation8 + $0x2588] sm:$0xff] }
 0x361   :  { %9803 = vmatprep.subr.bf16.mxu1 %v12087_v58  ;;  %9403 = vmatprep.mubr.bf16.mxu0 %v12722_v0  ;;  %v2851_v58 = vld [vmem:[#allocation8 + $0x25a8] sm:$0xff]  ;;  %v12125_v62 = vcombine.high %v2846_v51, %v2850_v12  ;;  %v12124_v14 = vcombine.low %v2846_v51, %v2850_v12 }
 0x362   :  { %9833 = vmatprep.mubr.bf16.mxu1 %v12722_v0  ;;  %v12127_v63 = vcombine.high %v2847_v52, %v2851_v58  ;;  %v12126_v15 = vcombine.low %v2847_v52, %v2851_v58 }
 0x363   :  { %9374 = vmatpush1.bf16.msra.mxu0 %v12084_v1  ;;  %v2854_v1 = vld [vmem:[#allocation8 + $0x25c0] sm:$0xff] }
 0x364   :  { %9804 = vmatpush1.bf16.msra.mxu1 %v12086_v4  ;;  %9375 = vmatprep.subr.bf16.mxu0 %v12093_v8  ;;  %v2858_v4 = vld [vmem:[#allocation8 + $0x25e0] sm:$0xff]  ;;  %v2855_v8 = vld [vmem:[#allocation8 + $0x25c8] sm:$0xff] }
 0x365   :  { %9805 = vmatprep.subr.bf16.mxu1 %v12095_v9  ;;  %v2859_v9 = vld [vmem:[#allocation8 + $0x25e8] sm:$0xff]  ;;  %v12133_v16 = vcombine.high %v2854_v1, %v2858_v4  ;;  %v12132_v23 = vcombine.low %v2854_v1, %v2858_v4 }
 0x366   :  { %v12135_v18 = vcombine.high %v2855_v8, %v2859_v9  ;;  %v12134_v24 = vcombine.low %v2855_v8, %v2859_v9 }
 0x367   :  { %9376 = vmatpush1.bf16.msra.mxu0 %v12092_v20  ;;  %v1648_v20 = vld [vmem:[#allocation8 + $0x10] sm:$0xff] }
 0x368   :  { %9806 = vmatpush1.bf16.msra.mxu1 %v12094_v21  ;;  %9377 = vmatprep.subr.bf16.mxu0 %v12101_v56  ;;  %v1652_v21 = vld [vmem:[#allocation8 + $0x30] sm:$0xff]  ;;  %v1649_v56 = vld [vmem:[#allocation8 + $0x18] sm:$0xff] }
 0x369   :  { %9807 = vmatprep.subr.bf16.mxu1 %v12103_v22  ;;  %v1653_v22 = vld [vmem:[#allocation8 + $0x38] sm:$0xff]  ;;  %v10929_v25 = vcombine.high %v1648_v20, %v1652_v21 }
 0x36a   :  { %v10931_v26 = vcombine.high %v1649_v56, %v1653_v22  ;;  %v10930_v37 = vcombine.low %v1649_v56, %v1653_v22  ;;  %v1688_v22 = vld [vmem:[#allocation8 + $0x150] sm:$0xff] }
 0x36b   :  { %9378 = vmatpush1.bf16.msra.mxu0 %v12100_v27  ;;  %v1656_v27 = vld [vmem:[#allocation8 + $0x50] sm:$0xff] }
 0x36c   :  { %9808 = vmatpush1.bf16.msra.mxu1 %v12102_v30  ;;  %9379 = vmatprep.subr.bf16.mxu0 %v12109_v31  ;;  %v1660_v30 = vld [vmem:[#allocation8 + $0x70] sm:$0xff]  ;;  %v10928_v31 = vcombine.low %v1648_v20, %v1652_v21 }
 0x36d   :  { %9809 = vmatprep.subr.bf16.mxu1 %v12111_v32  ;;  %v1657_v32 = vld [vmem:[#allocation8 + $0x58] sm:$0xff]  ;;  %v10937_v38 = vcombine.high %v1656_v27, %v1660_v30  ;;  %v10936_v51 = vcombine.low %v1656_v27, %v1660_v30 }
 0x36e   :  { %v10938_v12 = vcombine.low %v1657_v32, %v1661_v34 }
 0x36f   :  { %9380 = vmatpush1.bf16.msra.mxu0 %v12108_v45  ;;  %v1668_v45 = vld [vmem:[#allocation8 + $0xb0] sm:$0xff] }
 0x370   :  { %9810 = vmatpush1.bf16.msra.mxu1 %v12110_v47  ;;  %9381 = vmatprep.subr.bf16.mxu0 %v12117_v48  ;;  %v10939_v47 = vcombine.high %v1657_v32, %v1661_v34  ;;  %v1665_v48 = vld [vmem:[#allocation8 + $0x98] sm:$0xff]  ;;  %v10945_v52 = vcombine.high %v1664_v44, %v1668_v45  ;;  %v10944_v1 = vcombine.low %v1664_v44, %v1668_v45  ;;  %v1696_v32 = vld [vmem:[#allocation8 + $0x190] sm:$0xff] }
 0x371   :  { %9811 = vmatprep.subr.bf16.mxu1 %v12119_v49  ;;  %v1669_v49 = vld [vmem:[#allocation8 + $0xb8] sm:$0xff]  ;;  %v1700_v34 = vld [vmem:[#allocation8 + $0x1b0] sm:$0xff] }
 0x372   :  { %v10947_v58 = vcombine.high %v1665_v48, %v1669_v49  ;;  %v10946_v4 = vcombine.low %v1665_v48, %v1669_v49  ;;  %v1704_v49 = vld [vmem:[#allocation8 + $0x1d0] sm:$0xff] }
 0x373   :  { %9382 = vmatpush1.bf16.msra.mxu0 %v12116_v59  ;;  %v1672_v59 = vld [vmem:[#allocation8 + $0xd0] sm:$0xff] }
 0x374   :  { %9812 = vmatpush1.bf16.msra.mxu1 %v12118_v61  ;;  %9383 = vmatprep.subr.bf16.mxu0 %v12125_v62  ;;  %v1676_v61 = vld [vmem:[#allocation8 + $0xf0] sm:$0xff]  ;;  %v1673_v62 = vld [vmem:[#allocation8 + $0xd8] sm:$0xff] }
 0x375   :  { %9813 = vmatprep.subr.bf16.mxu1 %v12127_v63  ;;  %v1677_v63 = vld [vmem:[#allocation8 + $0xf8] sm:$0xff]  ;;  %v10953_v8 = vcombine.high %v1672_v59, %v1676_v61 }
 0x376   :  { %v10955_v9 = vcombine.high %v1673_v62, %v1677_v63  ;;  %v10954_v20 = vcombine.low %v1673_v62, %v1677_v63  ;;  %v1712_v63 = vld [vmem:[#allocation8 + $0x210] sm:$0xff] }
 0x377   :  { %9384 = vmatpush1.bf16.msra.mxu0 %v12124_v14  ;;  %v1680_v14 = vld [vmem:[#allocation8 + $0x110] sm:$0xff] }
 0x378   :  { %9814 = vmatpush1.bf16.msra.mxu1 %v12126_v15  ;;  %9385 = vmatprep.subr.bf16.mxu0 %v12133_v16  ;;  %v1684_v15 = vld [vmem:[#allocation8 + $0x130] sm:$0xff]  ;;  %v1681_v16 = vld [vmem:[#allocation8 + $0x118] sm:$0xff] }
 0x379   :  { %9815 = vmatprep.subr.bf16.mxu1 %v12135_v18  ;;  %v1685_v18 = vld [vmem:[#allocation8 + $0x138] sm:$0xff]  ;;  %v10961_v21 = vcombine.high %v1680_v14, %v1684_v15 }
 0x37a   :  { %v10963_v56 = vcombine.high %v1681_v16, %v1685_v18  ;;  %v10962_v27 = vcombine.low %v1681_v16, %v1685_v18  ;;  %v1720_v18 = vld [vmem:[#allocation8 + $0x250] sm:$0xff] }
 0x37b   :  { %9386 = vmatpush1.bf16.msra.mxu0 %v12132_v23  ;;  %v1692_v23 = vld [vmem:[#allocation8 + $0x170] sm:$0xff] }
 0x37c   :  { %9816 = vmatpush1.bf16.msra.mxu1 %v12134_v24  ;;  %9844 = vmatprep.subr.bf16.mxu0 %v10929_v25  ;;  %v1689_v24 = vld [vmem:[#allocation8 + $0x158] sm:$0xff]  ;;  %v10969_v30 = vcombine.high %v1688_v22, %v1692_v23  ;;  %v10968_v44 = vcombine.low %v1688_v22, %v1692_v23 }
 0x37d   :  { %10274 = vmatprep.subr.bf16.mxu1 %v10931_v26  ;;  %v1693_v25 = vld [vmem:[#allocation8 + $0x178] sm:$0xff]  ;;  %v10960_v26 = vcombine.low %v1680_v14, %v1684_v15 }
 0x37e   :  { %9404 = vmatmul.mubr.bf16.vlgmr.msra.gmra.mrb[20].mxu0 %v12972_v40  ;;  %v10970_v45 = vcombine.low %v1689_v24, %v1693_v25 }
 0x37f   :  { %9834 = vmatmul.mubr.bf16.vlgmr.msra.gmra.mrb[20].mxu1 %v12972_v40  ;;  %9845 = vmatpush1.bf16.msra.mxu0 %v10928_v31  ;;  %v10971_v31 = vcombine.high %v1689_v24, %v1693_v25  ;;  %v1728_v25 = vld [vmem:[#allocation8 + $0x290] sm:$0xff] }
 0x380   :  { %9876 = vmatprep.mubr.bf16.mxu0 %v12881_v7  ;;  %10275 = vmatpush1.bf16.msra.mxu1 %v10930_v37  ;;  %v1697_v37 = vld [vmem:[#allocation8 + $0x198] sm:$0xff] }
 0x381   :  { %10306 = vmatprep.mubr.bf16.mxu1 %v12881_v7  ;;  %9846 = vmatprep.subr.bf16.mxu0 %v10937_v38  ;;  %v10952_v7 = vcombine.low %v1672_v59, %v1676_v61  ;;  %v1701_v38 = vld [vmem:[#allocation8 + $0x1b8] sm:$0xff] }
 0x382   :  { %10276 = vmatprep.subr.bf16.mxu1 %v10939_v47  ;;  %v10977_v47 = vcombine.high %v1696_v32, %v1700_v34  ;;  %v10979_v48 = vcombine.high %v1697_v37, %v1701_v38  ;;  %v10978_v59 = vcombine.low %v1697_v37, %v1701_v38  ;;  %v1736_v38 = vld [vmem:[#allocation8 + $0x2d0] sm:$0xff] }
 0x383   :  { %9847 = vmatpush1.bf16.msra.mxu0 %v10936_v51  ;;  %v1708_v51 = vld [vmem:[#allocation8 + $0x1f0] sm:$0xff] }
 0x384   :  { %10277 = vmatpush1.bf16.msra.mxu1 %v10938_v12  ;;  %9848 = vmatprep.subr.bf16.mxu0 %v10945_v52  ;;  %v1705_v12 = vld [vmem:[#allocation8 + $0x1d8] sm:$0xff]  ;;  %v10985_v61 = vcombine.high %v1704_v49, %v1708_v51 }
 0x385   :  { %10278 = vmatprep.subr.bf16.mxu1 %v10947_v58  ;;  %v1709_v52 = vld [vmem:[#allocation8 + $0x1f8] sm:$0xff]  ;;  %v10976_v58 = vcombine.low %v1696_v32, %v1700_v34 }
 0x386   :  { %v10987_v62 = vcombine.high %v1705_v12, %v1709_v52  ;;  %v10986_v14 = vcombine.low %v1705_v12, %v1709_v52  ;;  %v1744_v52 = vld [vmem:[#allocation8 + $0x310] sm:$0xff] }
 0x387   :  { %9849 = vmatpush1.bf16.msra.mxu0 %v10944_v1  ;;  %v1716_v1 = vld [vmem:[#allocation8 + $0x230] sm:$0xff] }
 0x388   :  { %10279 = vmatpush1.bf16.msra.mxu1 %v10946_v4  ;;  %9850 = vmatprep.subr.bf16.mxu0 %v10953_v8  ;;  %v1713_v4 = vld [vmem:[#allocation8 + $0x218] sm:$0xff]  ;;  %v10993_v15 = vcombine.high %v1712_v63, %v1716_v1 }
 0x389   :  { %10280 = vmatprep.subr.bf16.mxu1 %v10955_v9  ;;  %v1717_v8 = vld [vmem:[#allocation8 + $0x238] sm:$0xff]  ;;  %v10984_v9 = vcombine.low %v1704_v49, %v1708_v51 }
 0x38a   :  { %v10995_v16 = vcombine.high %v1713_v4, %v1717_v8  ;;  %v10994_v22 = vcombine.low %v1713_v4, %v1717_v8  ;;  %v1752_v8 = vld [vmem:[#allocation8 + $0x350] sm:$0xff] }
 0x38b   :  { %9851 = vmatpush1.bf16.msra.mxu0 %v10952_v7  ;;  %v1724_v7 = vld [vmem:[#allocation8 + $0x270] sm:$0xff] }
 0x38c   :  { %10281 = vmatpush1.bf16.msra.mxu1 %v10954_v20  ;;  %9852 = vmatprep.subr.bf16.mxu0 %v10961_v21  ;;  %v1721_v20 = vld [vmem:[#allocation8 + $0x258] sm:$0xff]  ;;  %v11001_v23 = vcombine.high %v1720_v18, %v1724_v7 }
 0x38d   :  { %10282 = vmatprep.subr.bf16.mxu1 %v10963_v56  ;;  %v1725_v21 = vld [vmem:[#allocation8 + $0x278] sm:$0xff]  ;;  %v10992_v56 = vcombine.low %v1712_v63, %v1716_v1 }
 0x38e   :  { %v11003_v24 = vcombine.high %v1721_v20, %v1725_v21  ;;  %v11002_v32 = vcombine.low %v1721_v20, %v1725_v21  ;;  %v1760_v21 = vld [vmem:[#allocation8 + $0x390] sm:$0xff] }
 0x38f   :  { %9853 = vmatpush1.bf16.msra.mxu0 %v10960_v26  ;;  %v1732_v26 = vld [vmem:[#allocation8 + $0x2b0] sm:$0xff] }
 0x390   :  { %10283 = vmatpush1.bf16.msra.mxu1 %v10962_v27  ;;  %9854 = vmatprep.subr.bf16.mxu0 %v10969_v30  ;;  %v1729_v27 = vld [vmem:[#allocation8 + $0x298] sm:$0xff]  ;;  %v11009_v34 = vcombine.high %v1728_v25, %v1732_v26 }
 0x391   :  { %10284 = vmatprep.subr.bf16.mxu1 %v10971_v31  ;;  %v1733_v30 = vld [vmem:[#allocation8 + $0x2b8] sm:$0xff]  ;;  %v11000_v31 = vcombine.low %v1720_v18, %v1724_v7 }
 0x392   :  { %v11011_v37 = vcombine.high %v1729_v27, %v1733_v30  ;;  %v11010_v49 = vcombine.low %v1729_v27, %v1733_v30  ;;  %v1768_v30 = vld [vmem:[#allocation8 + $0x3d0] sm:$0xff] }
 0x393   :  { %9855 = vmatpush1.bf16.msra.mxu0 %v10968_v44  ;;  %v1740_v44 = vld [vmem:[#allocation8 + $0x2f0] sm:$0xff] }
 0x394   :  { %10285 = vmatpush1.bf16.msra.mxu1 %v10970_v45  ;;  %9856 = vmatprep.subr.bf16.mxu0 %v10977_v47  ;;  %v1737_v45 = vld [vmem:[#allocation8 + $0x2d8] sm:$0xff]  ;;  %v11017_v51 = vcombine.high %v1736_v38, %v1740_v44 }
 0x395   :  { %10286 = vmatprep.subr.bf16.mxu1 %v10979_v48  ;;  %v1741_v47 = vld [vmem:[#allocation8 + $0x2f8] sm:$0xff]  ;;  %v11008_v48 = vcombine.low %v1728_v25, %v1732_v26 }
 0x396   :  { %v11019_v12 = vcombine.high %v1737_v45, %v1741_v47  ;;  %v11018_v63 = vcombine.low %v1737_v45, %v1741_v47  ;;  %v1776_v47 = vld [vmem:[#allocation8 + $0x410] sm:$0xff] }
 0x397   :  { %9857 = vmatpush1.bf16.msra.mxu0 %v10976_v58  ;;  %v1748_v58 = vld [vmem:[#allocation8 + $0x330] sm:$0xff] }
 0x398   :  { %10287 = vmatpush1.bf16.msra.mxu1 %v10978_v59  ;;  %9858 = vmatprep.subr.bf16.mxu0 %v10985_v61  ;;  %v1745_v59 = vld [vmem:[#allocation8 + $0x318] sm:$0xff]  ;;  %v11025_v1 = vcombine.high %v1744_v52, %v1748_v58 }
 0x399   :  { %10288 = vmatprep.subr.bf16.mxu1 %v10987_v62  ;;  %v1749_v61 = vld [vmem:[#allocation8 + $0x338] sm:$0xff]  ;;  %v11016_v62 = vcombine.low %v1736_v38, %v1740_v44 }
 0x39a   :  { %v11027_v4 = vcombine.high %v1745_v59, %v1749_v61  ;;  %v11026_v18 = vcombine.low %v1745_v59, %v1749_v61  ;;  %v1784_v61 = vld [vmem:[#allocation8 + $0x450] sm:$0xff] }
 0x39b   :  { %9859 = vmatpush1.bf16.msra.mxu0 %v10984_v9  ;;  %v1756_v9 = vld [vmem:[#allocation8 + $0x370] sm:$0xff] }
 0x39c   :  { %10289 = vmatpush1.bf16.msra.mxu1 %v10986_v14  ;;  %9860 = vmatprep.subr.bf16.mxu0 %v10993_v15  ;;  %v1753_v14 = vld [vmem:[#allocation8 + $0x358] sm:$0xff]  ;;  %v11033_v7 = vcombine.high %v1752_v8, %v1756_v9 }
 0x39d   :  { %10290 = vmatprep.subr.bf16.mxu1 %v10995_v16  ;;  %v1757_v15 = vld [vmem:[#allocation8 + $0x378] sm:$0xff]  ;;  %v11024_v16 = vcombine.low %v1744_v52, %v1748_v58 }
 0x39e   :  { %v11035_v20 = vcombine.high %v1753_v14, %v1757_v15  ;;  %v11034_v25 = vcombine.low %v1753_v14, %v1757_v15  ;;  %v1792_v14 = vld [vmem:[#allocation8 + $0x490] sm:$0xff] }
 0x39f   :  { %9861 = vmatpush1.bf16.msra.mxu0 %v10992_v56  ;;  %v1764_v56 = vld [vmem:[#allocation8 + $0x3b0] sm:$0xff] }
 0x3a0   :  { %10291 = vmatpush1.bf16.msra.mxu1 %v10994_v22  ;;  %9862 = vmatprep.subr.bf16.mxu0 %v11001_v23  ;;  %v1761_v22 = vld [vmem:[#allocation8 + $0x398] sm:$0xff]  ;;  %v11041_v26 = vcombine.high %v1760_v21, %v1764_v56  ;;  %v1796_v15 = vld [vmem:[#allocation8 + $0x4b0] sm:$0xff] }
 0x3a1   :  { %10292 = vmatprep.subr.bf16.mxu1 %v11003_v24  ;;  %v1765_v23 = vld [vmem:[#allocation8 + $0x3b8] sm:$0xff]  ;;  %v11032_v24 = vcombine.low %v1752_v8, %v1756_v9 }
 0x3a2   :  { %v11043_v27 = vcombine.high %v1761_v22, %v1765_v23  ;;  %v11042_v38 = vcombine.low %v1761_v22, %v1765_v23  ;;  %v1800_v23 = vld [vmem:[#allocation8 + $0x4d0] sm:$0xff] }
 0x3a3   :  { %9863 = vmatpush1.bf16.msra.mxu0 %v11000_v31  ;;  %v1772_v31 = vld [vmem:[#allocation8 + $0x3f0] sm:$0xff] }
 0x3a4   :  { %10293 = vmatpush1.bf16.msra.mxu1 %v11002_v32  ;;  %9864 = vmatprep.subr.bf16.mxu0 %v11009_v34  ;;  %v1769_v32 = vld [vmem:[#allocation8 + $0x3d8] sm:$0xff]  ;;  %v11049_v44 = vcombine.high %v1768_v30, %v1772_v31 }
 0x3a5   :  { %10294 = vmatprep.subr.bf16.mxu1 %v11011_v37  ;;  %v1773_v34 = vld [vmem:[#allocation8 + $0x3f8] sm:$0xff]  ;;  %v11040_v37 = vcombine.low %v1760_v21, %v1764_v56  ;;  %v11073_v56 = vcombine.high %v1792_v14, %v1796_v15 }
 0x3a6   :  { %v11051_v45 = vcombine.high %v1769_v32, %v1773_v34  ;;  %v11050_v52 = vcombine.low %v1769_v32, %v1773_v34  ;;  %v1808_v32 = vld [vmem:[#allocation8 + $0x510] sm:$0xff] }
 0x3a7   :  { %9865 = vmatpush1.bf16.msra.mxu0 %v11008_v48  ;;  %v1780_v48 = vld [vmem:[#allocation8 + $0x430] sm:$0xff] }
 0x3a8   :  { %10295 = vmatpush1.bf16.msra.mxu1 %v11010_v49  ;;  %9866 = vmatprep.subr.bf16.mxu0 %v11017_v51  ;;  %v1777_v49 = vld [vmem:[#allocation8 + $0x418] sm:$0xff]  ;;  %v11057_v58 = vcombine.high %v1776_v47, %v1780_v48  ;;  %v1812_v34 = vld [vmem:[#allocation8 + $0x530] sm:$0xff] }
 0x3a9   :  { %10296 = vmatprep.subr.bf16.mxu1 %v11019_v12  ;;  %v1781_v51 = vld [vmem:[#allocation8 + $0x438] sm:$0xff]  ;;  %v11048_v12 = vcombine.low %v1768_v30, %v1772_v31 }
 0x3aa   :  { %v11059_v59 = vcombine.high %v1777_v49, %v1781_v51  ;;  %v11058_v8 = vcombine.low %v1777_v49, %v1781_v51  ;;  %v1820_v49 = vld [vmem:[#allocation8 + $0x570] sm:$0xff]  ;;  %v1817_v51 = vld [vmem:[#allocation8 + $0x558] sm:$0xff] }
 0x3ab   :  { %9867 = vmatpush1.bf16.msra.mxu0 %v11016_v62  ;;  %v1788_v62 = vld [vmem:[#allocation8 + $0x470] sm:$0xff] }
 0x3ac   :  { %10297 = vmatpush1.bf16.msra.mxu1 %v11018_v63  ;;  %9868 = vmatprep.subr.bf16.mxu0 %v11025_v1  ;;  %v11056_v63 = vcombine.low %v1776_v47, %v1780_v48  ;;  %v1785_v1 = vld [vmem:[#allocation8 + $0x458] sm:$0xff]  ;;  %v11065_v9 = vcombine.high %v1784_v61, %v1788_v62  ;;  %v1816_v48 = vld [vmem:[#allocation8 + $0x550] sm:$0xff] }
 0x3ad   :  { %10298 = vmatprep.subr.bf16.mxu1 %v11027_v4  ;;  %v1789_v4 = vld [vmem:[#allocation8 + $0x478] sm:$0xff] }
 0x3ae   :  { %v11066_v21 = vcombine.low %v1785_v1, %v1789_v4 }
 0x3af   :  { %9869 = vmatpush1.bf16.msra.mxu0 %v11024_v16  ;;  %v11067_v16 = vcombine.high %v1785_v1, %v1789_v4  ;;  %v1825_v1 = vld [vmem:[#allocation8 + $0x598] sm:$0xff] }
 0x3b0   :  { %10299 = vmatpush1.bf16.msra.mxu1 %v11026_v18  ;;  %9870 = vmatprep.subr.bf16.mxu0 %v11033_v7  ;;  %v1793_v18 = vld [vmem:[#allocation8 + $0x498] sm:$0xff] }
 0x3b1   :  { %10300 = vmatprep.subr.bf16.mxu1 %v11035_v20  ;;  %v1797_v7 = vld [vmem:[#allocation8 + $0x4b8] sm:$0xff]  ;;  %v11064_v20 = vcombine.low %v1784_v61, %v1788_v62  ;;  %v1824_v62 = vld [vmem:[#allocation8 + $0x590] sm:$0xff] }
 0x3b2   :  { %v11075_v22 = vcombine.high %v1793_v18, %v1797_v7  ;;  %v1829_v4 = vld [vmem:[#allocation8 + $0x5b8] sm:$0xff] }
 0x3b3   :  { %9871 = vmatpush1.bf16.msra.mxu0 %v11032_v24  ;;  %v1804_v24 = vld [vmem:[#allocation8 + $0x4f0] sm:$0xff] }
 0x3b4   :  { %10301 = vmatpush1.bf16.msra.mxu1 %v11034_v25  ;;  %9872 = vmatprep.subr.bf16.mxu0 %v11041_v26  ;;  %v1801_v25 = vld [vmem:[#allocation8 + $0x4d8] sm:$0xff]  ;;  %v11081_v30 = vcombine.high %v1800_v23, %v1804_v24 }
 0x3b5   :  { %10302 = vmatprep.subr.bf16.mxu1 %v11043_v27  ;;  %v1805_v26 = vld [vmem:[#allocation8 + $0x4f8] sm:$0xff]  ;;  %v11072_v27 = vcombine.low %v1792_v14, %v1796_v15  ;;  %v11107_v15 = vcombine.high %v1825_v1, %v1829_v4 }
 0x3b6   :  { %v11083_v31 = vcombine.high %v1801_v25, %v1805_v26 }
 0x3b7   :  { %9873 = vmatpush1.bf16.msra.mxu0 %v11040_v37  ;;  %v1809_v37 = vld [vmem:[#allocation8 + $0x518] sm:$0xff] }
 0x3b8   :  { %10303 = vmatpush1.bf16.msra.mxu1 %v11042_v38  ;;  %9874 = vmatprep.subr.bf16.mxu0 %v11049_v44  ;;  %v1813_v38 = vld [vmem:[#allocation8 + $0x538] sm:$0xff]  ;;  %v11082_v44 = vcombine.low %v1801_v25, %v1805_v26  ;;  %v1844_v25 = vld [vmem:[#allocation8 + $0x630] sm:$0xff] }
 0x3b9   :  { %10304 = vmatprep.subr.bf16.mxu1 %v11051_v45  ;;  %v11089_v45 = vcombine.high %v1808_v32, %v1812_v34  ;;  %v11091_v47 = vcombine.high %v1809_v37, %v1813_v38  ;;  %v1841_v26 = vld [vmem:[#allocation8 + $0x618] sm:$0xff] }
 0x3bb   :  { %9875 = vmatpush1.bf16.msra.mxu0 %v11048_v12  ;;  %v1821_v12 = vld [vmem:[#allocation8 + $0x578] sm:$0xff] }
 0x3bc   :  { %10305 = vmatpush1.bf16.msra.mxu1 %v11050_v52  ;;  %9887 = vmatprep.subr.bf16.mxu0 %v11057_v58  ;;  %v11088_v52 = vcombine.low %v1808_v32, %v1812_v34  ;;  %v11090_v58 = vcombine.low %v1809_v37, %v1813_v38  ;;  %v11099_v61 = vcombine.high %v1817_v51, %v1821_v12  ;;  %v1848_v34 = vld [vmem:[#allocation8 + $0x650] sm:$0xff]  ;;  %v1849_v38 = vld [vmem:[#allocation8 + $0x658] sm:$0xff] }
 0x3bd   :  { %10317 = vmatprep.subr.bf16.mxu1 %v11059_v59  ;;  %v11097_v59 = vcombine.high %v1816_v48, %v1820_v49  ;;  %v1852_v37 = vld [vmem:[#allocation8 + $0x670] sm:$0xff] }
 0x3be   :  { %9877 = vmatmul.mubr.bf16.vlgmr.msra.gmra.mrb[24].mxu0 %v12879_v28 }
 0x3bf   :  { %10307 = vmatmul.mubr.bf16.vlgmr.msra.gmra.mrb[24].mxu1 %v12879_v28  ;;  %9888 = vmatpush1.bf16.msra.mxu0 %v11056_v63  ;;  %v11074_v28 = vcombine.low %v1793_v18, %v1797_v7  ;;  %v1828_v63 = vld [vmem:[#allocation8 + $0x5b0] sm:$0xff]  ;;  %v1833_v7 = vld [vmem:[#allocation8 + $0x5d8] sm:$0xff] }
 0x3c0   :  { %9919 = vmatprep.mubr.bf16.mxu0 %v12891_v55  ;;  %10318 = vmatpush1.bf16.msra.mxu1 %v11058_v8  ;;  %v11096_v8 = vcombine.low %v1816_v48, %v1820_v49  ;;  %v11105_v14 = vcombine.high %v1824_v62, %v1828_v63  ;;  %v1836_v18 = vld [vmem:[#allocation8 + $0x5f0] sm:$0xff] }
 0x3c1   :  { %10349 = vmatprep.mubr.bf16.mxu1 %v12891_v55  ;;  %9889 = vmatprep.subr.bf16.mxu0 %v11065_v9  ;;  %v11080_v55 = vcombine.low %v1800_v23, %v1804_v24  ;;  %v11098_v9 = vcombine.low %v1817_v51, %v1821_v12  ;;  %v1840_v24 = vld [vmem:[#allocation8 + $0x610] sm:$0xff]  ;;  %v1857_v12 = vld [vmem:[#allocation8 + $0x698] sm:$0xff] }
 0x3c2   :  { %10319 = vmatprep.subr.bf16.mxu1 %v11067_v16  ;;  %v1832_v16 = vld [vmem:[#allocation8 + $0x5d0] sm:$0xff] }
 0x3c3   :  { %9890 = vmatpush1.bf16.msra.mxu0 %v11064_v20  ;;  %v1837_v20 = vld [vmem:[#allocation8 + $0x5f8] sm:$0xff]  ;;  %v1856_v49 = vld [vmem:[#allocation8 + $0x690] sm:$0xff] }
 0x3c4   :  { %10320 = vmatpush1.bf16.msra.mxu1 %v11066_v21  ;;  %9891 = vmatprep.subr.bf16.mxu0 %v11073_v56  ;;  %v11104_v21 = vcombine.low %v1824_v62, %v1828_v63  ;;  %v11106_v56 = vcombine.low %v1825_v1, %v1829_v4  ;;  %v11115_v23 = vcombine.high %v1833_v7, %v1837_v20  ;;  %v1860_v51 = vld [vmem:[#allocation8 + $0x6b0] sm:$0xff]  ;;  %v1865_v4 = vld [vmem:[#allocation8 + $0x6d8] sm:$0xff] }
 0x3c5   :  { %10321 = vmatprep.subr.bf16.mxu1 %v11075_v22  ;;  %v11113_v22 = vcombine.high %v1832_v16, %v1836_v18  ;;  %v1864_v63 = vld [vmem:[#allocation8 + $0x6d0] sm:$0xff] }
 0x3c6   :  { %v1868_v1 = vld [vmem:[#allocation8 + $0x6f0] sm:$0xff] }
 0x3c7   :  { %9892 = vmatpush1.bf16.msra.mxu0 %v11072_v27  ;;  %v1845_v27 = vld [vmem:[#allocation8 + $0x638] sm:$0xff] }
 0x3c8   :  { %10322 = vmatpush1.bf16.msra.mxu1 %v11074_v28  ;;  %9893 = vmatprep.subr.bf16.mxu0 %v11081_v30  ;;  %v11112_v28 = vcombine.low %v1832_v16, %v1836_v18  ;;  %v11114_v30 = vcombine.low %v1833_v7, %v1837_v20  ;;  %v11123_v32 = vcombine.high %v1841_v26, %v1845_v27  ;;  %v1872_v18 = vld [vmem:[#allocation8 + $0x710] sm:$0xff]  ;;  %v1873_v20 = vld [vmem:[#allocation8 + $0x718] sm:$0xff] }
 0x3c9   :  { %10323 = vmatprep.subr.bf16.mxu1 %v11083_v31  ;;  %v11121_v31 = vcombine.high %v1840_v24, %v1844_v25  ;;  %v1876_v7 = vld [vmem:[#allocation8 + $0x730] sm:$0xff] }
 0x3cb   :  { %9894 = vmatpush1.bf16.msra.mxu0 %v11080_v55  ;;  %v1853_v55 = vld [vmem:[#allocation8 + $0x678] sm:$0xff] }
 0x3cc   :  { %10324 = vmatpush1.bf16.msra.mxu1 %v11082_v44  ;;  %9895 = vmatprep.subr.bf16.mxu0 %v11089_v45  ;;  %v11120_v44 = vcombine.low %v1840_v24, %v1844_v25  ;;  %v11122_v45 = vcombine.low %v1841_v26, %v1845_v27  ;;  %v11131_v48 = vcombine.high %v1849_v38, %v1853_v55  ;;  %v1880_v25 = vld [vmem:[#allocation8 + $0x750] sm:$0xff]  ;;  %v1881_v27 = vld [vmem:[#allocation8 + $0x758] sm:$0xff] }
 0x3cd   :  { %10325 = vmatprep.subr.bf16.mxu1 %v11091_v47  ;;  %v11129_v47 = vcombine.high %v1848_v34, %v1852_v37  ;;  %v1884_v26 = vld [vmem:[#allocation8 + $0x770] sm:$0xff] }
 0x3cf   :  { %9896 = vmatpush1.bf16.msra.mxu0 %v11088_v52  ;;  %v1861_v52 = vld [vmem:[#allocation8 + $0x6b8] sm:$0xff] }
 0x3d0   :  { %10326 = vmatpush1.bf16.msra.mxu1 %v11090_v58  ;;  %9897 = vmatprep.subr.bf16.mxu0 %v11097_v59  ;;  %v11128_v58 = vcombine.low %v1848_v34, %v1852_v37  ;;  %v11130_v59 = vcombine.low %v1849_v38, %v1853_v55  ;;  %v11139_v62 = vcombine.high %v1857_v12, %v1861_v52  ;;  %v1888_v37 = vld [vmem:[#allocation8 + $0x790] sm:$0xff]  ;;  %v1889_v55 = vld [vmem:[#allocation8 + $0x798] sm:$0xff] }
 0x3d1   :  { %10327 = vmatprep.subr.bf16.mxu1 %v11099_v61  ;;  %v11137_v61 = vcombine.high %v1856_v49, %v1860_v51  ;;  %v1892_v38 = vld [vmem:[#allocation8 + $0x7b0] sm:$0xff] }
 0x3d3   :  { %9898 = vmatpush1.bf16.msra.mxu0 %v11096_v8  ;;  %v1869_v8 = vld [vmem:[#allocation8 + $0x6f8] sm:$0xff] }
 0x3d4   :  { %10328 = vmatpush1.bf16.msra.mxu1 %v11098_v9  ;;  %9899 = vmatprep.subr.bf16.mxu0 %v11105_v14  ;;  %v11136_v9 = vcombine.low %v1856_v49, %v1860_v51  ;;  %v11138_v14 = vcombine.low %v1857_v12, %v1861_v52  ;;  %v11147_v16 = vcombine.high %v1865_v4, %v1869_v8  ;;  %v1896_v51 = vld [vmem:[#allocation8 + $0x7d0] sm:$0xff]  ;;  %v1897_v52 = vld [vmem:[#allocation8 + $0x7d8] sm:$0xff] }
 0x3d5   :  { %10329 = vmatprep.subr.bf16.mxu1 %v11107_v15  ;;  %v11145_v15 = vcombine.high %v1864_v63, %v1868_v1  ;;  %v1900_v12 = vld [vmem:[#allocation8 + $0x7f0] sm:$0xff] }
 0x3d7   :  { %9900 = vmatpush1.bf16.msra.mxu0 %v11104_v21  ;;  %v1877_v21 = vld [vmem:[#allocation8 + $0x738] sm:$0xff] }
 0x3d8   :  { %10330 = vmatpush1.bf16.msra.mxu1 %v11106_v56  ;;  %9901 = vmatprep.subr.bf16.mxu0 %v11113_v22  ;;  %v11144_v56 = vcombine.low %v1864_v63, %v1868_v1  ;;  %v11146_v22 = vcombine.low %v1865_v4, %v1869_v8  ;;  %v11155_v24 = vcombine.high %v1873_v20, %v1877_v21  ;;  %v1904_v1 = vld [vmem:[#allocation8 + $0x810] sm:$0xff]  ;;  %v1905_v8 = vld [vmem:[#allocation8 + $0x818] sm:$0xff] }
 0x3d9   :  { %10331 = vmatprep.subr.bf16.mxu1 %v11115_v23  ;;  %v11153_v23 = vcombine.high %v1872_v18, %v1876_v7  ;;  %v1908_v4 = vld [vmem:[#allocation8 + $0x830] sm:$0xff] }
 0x3db   :  { %9902 = vmatpush1.bf16.msra.mxu0 %v11112_v28  ;;  %v1885_v28 = vld [vmem:[#allocation8 + $0x778] sm:$0xff] }
 0x3dc   :  { %10332 = vmatpush1.bf16.msra.mxu1 %v11114_v30  ;;  %9903 = vmatprep.subr.bf16.mxu0 %v11121_v31  ;;  %v11152_v30 = vcombine.low %v1872_v18, %v1876_v7  ;;  %v11154_v31 = vcombine.low %v1873_v20, %v1877_v21  ;;  %v11163_v34 = vcombine.high %v1881_v27, %v1885_v28  ;;  %v1912_v7 = vld [vmem:[#allocation8 + $0x850] sm:$0xff] }
 0x3dd   :  { %10333 = vmatprep.subr.bf16.mxu1 %v11123_v32  ;;  %v11161_v32 = vcombine.high %v1880_v25, %v1884_v26  ;;  %v1916_v20 = vld [vmem:[#allocation8 + $0x870] sm:$0xff]  ;;  %v11184_v21 = vcombine.low %v1904_v1, %v1908_v4 }
 0x3df   :  { %9904 = vmatpush1.bf16.msra.mxu0 %v11120_v44  ;;  %v1893_v44 = vld [vmem:[#allocation8 + $0x7b8] sm:$0xff] }
 0x3e0   :  { %10334 = vmatpush1.bf16.msra.mxu1 %v11122_v45  ;;  %9905 = vmatprep.subr.bf16.mxu0 %v11129_v47  ;;  %v11160_v45 = vcombine.low %v1880_v25, %v1884_v26  ;;  %v11162_v47 = vcombine.low %v1881_v27, %v1885_v28  ;;  %v11171_v49 = vcombine.high %v1889_v55, %v1893_v44  ;;  %v1920_v25 = vld [vmem:[#allocation8 + $0x890] sm:$0xff]  ;;  %v1921_v28 = vld [vmem:[#allocation8 + $0x898] sm:$0xff] }
 0x3e1   :  { %10335 = vmatprep.subr.bf16.mxu1 %v11131_v48  ;;  %v11169_v48 = vcombine.high %v1888_v37, %v1892_v38  ;;  %v1924_v26 = vld [vmem:[#allocation8 + $0x8b0] sm:$0xff] }
 0x3e3   :  { %9906 = vmatpush1.bf16.msra.mxu0 %v11128_v58  ;;  %v1901_v58 = vld [vmem:[#allocation8 + $0x7f8] sm:$0xff] }
 0x3e4   :  { %10336 = vmatpush1.bf16.msra.mxu1 %v11130_v59  ;;  %9907 = vmatprep.subr.bf16.mxu0 %v11137_v61  ;;  %v11168_v59 = vcombine.low %v1888_v37, %v1892_v38  ;;  %v11170_v61 = vcombine.low %v1889_v55, %v1893_v44  ;;  %v11179_v63 = vcombine.high %v1897_v52, %v1901_v58  ;;  %v1928_v38 = vld [vmem:[#allocation8 + $0x8d0] sm:$0xff]  ;;  %v1929_v44 = vld [vmem:[#allocation8 + $0x8d8] sm:$0xff] }
 0x3e5   :  { %10337 = vmatprep.subr.bf16.mxu1 %v11139_v62  ;;  %v11177_v62 = vcombine.high %v1896_v51, %v1900_v12  ;;  %v1932_v55 = vld [vmem:[#allocation8 + $0x8f0] sm:$0xff] }
 0x3e7   :  { %9908 = vmatpush1.bf16.msra.mxu0 %v11136_v9  ;;  %v1909_v9 = vld [vmem:[#allocation8 + $0x838] sm:$0xff] }
 0x3e8   :  { %10338 = vmatpush1.bf16.msra.mxu1 %v11138_v14  ;;  %9909 = vmatprep.subr.bf16.mxu0 %v11145_v15  ;;  %v11176_v14 = vcombine.low %v1896_v51, %v1900_v12  ;;  %v11178_v15 = vcombine.low %v1897_v52, %v1901_v58  ;;  %v11187_v18 = vcombine.high %v1905_v8, %v1909_v9  ;;  %v1936_v51 = vld [vmem:[#allocation8 + $0x910] sm:$0xff]  ;;  %v1937_v52 = vld [vmem:[#allocation8 + $0x918] sm:$0xff] }
 0x3e9   :  { %10339 = vmatprep.subr.bf16.mxu1 %v11147_v16  ;;  %v11185_v16 = vcombine.high %v1904_v1, %v1908_v4  ;;  %v1940_v12 = vld [vmem:[#allocation8 + $0x930] sm:$0xff]  ;;  %v1941_v58 = vld [vmem:[#allocation8 + $0x938] sm:$0xff] }
 0x3ea   :  { %v1948_v1 = vld [vmem:[#allocation8 + $0x970] sm:$0xff]  ;;  %v1945_v4 = vld [vmem:[#allocation8 + $0x958] sm:$0xff] }
 0x3eb   :  { %9910 = vmatpush1.bf16.msra.mxu0 %v11144_v56  ;;  %v1913_v56 = vld [vmem:[#allocation8 + $0x858] sm:$0xff] }
 0x3ec   :  { %10340 = vmatpush1.bf16.msra.mxu1 %v11146_v22  ;;  %9911 = vmatprep.subr.bf16.mxu0 %v11153_v23  ;;  %v1917_v22 = vld [vmem:[#allocation8 + $0x878] sm:$0xff]  ;;  %v11186_v23 = vcombine.low %v1905_v8, %v1909_v9  ;;  %v11216_v9 = vcombine.low %v1936_v51, %v1940_v12 }
 0x3ed   :  { %10341 = vmatprep.subr.bf16.mxu1 %v11155_v24  ;;  %v11193_v24 = vcombine.high %v1912_v7, %v1916_v20  ;;  %v11195_v27 = vcombine.high %v1913_v56, %v1917_v22  ;;  %v1949_v8 = vld [vmem:[#allocation8 + $0x978] sm:$0xff] }
 0x3ef   :  { %9912 = vmatpush1.bf16.msra.mxu0 %v11152_v30  ;;  %v1925_v30 = vld [vmem:[#allocation8 + $0x8b8] sm:$0xff] }
 0x3f0   :  { %10342 = vmatpush1.bf16.msra.mxu1 %v11154_v31  ;;  %9913 = vmatprep.subr.bf16.mxu0 %v11161_v32  ;;  %v11192_v31 = vcombine.low %v1912_v7, %v1916_v20  ;;  %v11194_v32 = vcombine.low %v1913_v56, %v1917_v22  ;;  %v11203_v37 = vcombine.high %v1921_v28, %v1925_v30  ;;  %v1956_v7 = vld [vmem:[#allocation8 + $0x9b0] sm:$0xff]  ;;  %v1953_v20 = vld [vmem:[#allocation8 + $0x998] sm:$0xff] }
 0x3f1   :  { %10343 = vmatprep.subr.bf16.mxu1 %v11163_v34  ;;  %v11201_v34 = vcombine.high %v1920_v25, %v1924_v26  ;;  %v11226_v22 = vcombine.low %v1945_v4, %v1949_v8 }
 0x3f3   :  { %9914 = vmatpush1.bf16.msra.mxu0 %v11160_v45  ;;  %v1933_v45 = vld [vmem:[#allocation8 + $0x8f8] sm:$0xff] }
 0x3f4   :  { %10344 = vmatpush1.bf16.msra.mxu1 %v11162_v47  ;;  %9915 = vmatprep.subr.bf16.mxu0 %v11169_v48  ;;  %v11200_v47 = vcombine.low %v1920_v25, %v1924_v26  ;;  %v11209_v48 = vcombine.high %v1928_v38, %v1932_v55  ;;  %v1960_v25 = vld [vmem:[#allocation8 + $0x9d0] sm:$0xff] }
 0x3f5   :  { %10345 = vmatprep.subr.bf16.mxu1 %v11171_v49  ;;  %v11211_v49 = vcombine.high %v1929_v44, %v1933_v45  ;;  %v1964_v26 = vld [vmem:[#allocation8 + $0x9f0] sm:$0xff] }
 0x3f7   :  { %9916 = vmatpush1.bf16.msra.mxu0 %v11168_v59  ;;  %v11210_v59 = vcombine.low %v1929_v44, %v1933_v45  ;;  %v1973_v44 = vld [vmem:[#allocation8 + $0xa38] sm:$0xff]  ;;  %v11240_v45 = vcombine.low %v1960_v25, %v1964_v26 }
 0x3f8   :  { %10346 = vmatpush1.bf16.msra.mxu1 %v11170_v61  ;;  %9917 = vmatprep.subr.bf16.mxu0 %v11177_v62  ;;  %v11217_v61 = vcombine.high %v1936_v51, %v1940_v12  ;;  %v11219_v62 = vcombine.high %v1937_v52, %v1941_v58  ;;  %v1980_v51 = vld [vmem:[#allocation8 + $0xa70] sm:$0xff]  ;;  %v1977_v12 = vld [vmem:[#allocation8 + $0xa58] sm:$0xff] }
 0x3f9   :  { %10347 = vmatprep.subr.bf16.mxu1 %v11179_v63  ;;  %v1944_v63 = vld [vmem:[#allocation8 + $0x950] sm:$0xff] }
 0x3fa   :  { %v11224_v56 = vcombine.low %v1944_v63, %v1948_v1 }
 0x3fb   :  { %9918 = vmatpush1.bf16.msra.mxu0 %v11176_v14  ;;  %v11218_v14 = vcombine.low %v1937_v52, %v1941_v58  ;;  %v1981_v52 = vld [vmem:[#allocation8 + $0xa78] sm:$0xff] }
 0x3fc   :  { %10348 = vmatpush1.bf16.msra.mxu1 %v11178_v15  ;;  %9930 = vmatprep.subr.bf16.mxu0 %v11185_v16  ;;  %v11225_v15 = vcombine.high %v1944_v63, %v1948_v1  ;;  %v11227_v16 = vcombine.high %v1945_v4, %v1949_v8  ;;  %v1988_v63 = vld [vmem:[#allocation8 + $0xab0] sm:$0xff]  ;;  %v1985_v1 = vld [vmem:[#allocation8 + $0xa98] sm:$0xff] }
 0x3fd   :  { %10360 = vmatprep.subr.bf16.mxu1 %v11187_v18  ;;  %v1952_v18 = vld [vmem:[#allocation8 + $0x990] sm:$0xff]  ;;  %v1989_v4 = vld [vmem:[#allocation8 + $0xab8] sm:$0xff] }
 0x3fe   :  { %9920 = vmatmul.mubr.bf16.vlgmr.msra.gmra.mrb[24].mxu0 %v12889_v50 }
 0x3ff   :  { %10350 = vmatmul.mubr.bf16.vlgmr.msra.gmra.mrb[24].mxu1 %v12889_v50  ;;  %9931 = vmatpush1.bf16.msra.mxu0 %v11184_v21  ;;  %v11202_v50 = vcombine.low %v1921_v28, %v1925_v30  ;;  %v1957_v21 = vld [vmem:[#allocation8 + $0x9b8] sm:$0xff]  ;;  %v11232_v30 = vcombine.low %v1952_v18, %v1956_v7 }
 0x400   :  { %9962 = vmatprep.mubr.bf16.mxu0 %v12917_v11  ;;  %10361 = vmatpush1.bf16.msra.mxu1 %v11186_v23  ;;  %v11233_v23 = vcombine.high %v1952_v18, %v1956_v7  ;;  %v1965_v28 = vld [vmem:[#allocation8 + $0x9f8] sm:$0xff]  ;;  %v1996_v18 = vld [vmem:[#allocation8 + $0xaf0] sm:$0xff] }
 0x401   :  { %10392 = vmatprep.mubr.bf16.mxu1 %v12917_v11  ;;  %9932 = vmatprep.subr.bf16.mxu0 %v11193_v24  ;;  %v11208_v11 = vcombine.low %v1928_v38, %v1932_v55  ;;  %v11235_v24 = vcombine.high %v1953_v20, %v1957_v21  ;;  %v1972_v38 = vld [vmem:[#allocation8 + $0xa30] sm:$0xff]  ;;  %v1969_v55 = vld [vmem:[#allocation8 + $0xa18] sm:$0xff] }
 0x402   :  { %10362 = vmatprep.subr.bf16.mxu1 %v11195_v27  ;;  %v1961_v27 = vld [vmem:[#allocation8 + $0x9d8] sm:$0xff] }
 0x403   :  { %9933 = vmatpush1.bf16.msra.mxu0 %v11192_v31  ;;  %v11234_v31 = vcombine.low %v1953_v20, %v1957_v21  ;;  %v1993_v7 = vld [vmem:[#allocation8 + $0xad8] sm:$0xff] }
 0x404   :  { %10363 = vmatpush1.bf16.msra.mxu1 %v11194_v32  ;;  %9934 = vmatprep.subr.bf16.mxu0 %v11201_v34  ;;  %v11241_v32 = vcombine.high %v1960_v25, %v1964_v26  ;;  %v11243_v34 = vcombine.high %v1961_v27, %v1965_v28  ;;  %v1997_v20 = vld [vmem:[#allocation8 + $0xaf8] sm:$0xff]  ;;  %v2004_v25 = vld [vmem:[#allocation8 + $0xb30] sm:$0xff] }
 0x405   :  { %10364 = vmatprep.subr.bf16.mxu1 %v11203_v37  ;;  %v1968_v37 = vld [vmem:[#allocation8 + $0xa10] sm:$0xff]  ;;  %v2001_v26 = vld [vmem:[#allocation8 + $0xb18] sm:$0xff] }
 0x406   :  { %v11248_v58 = vcombine.low %v1968_v37, %v1972_v38 }
 0x407   :  { %9935 = vmatpush1.bf16.msra.mxu0 %v11200_v47  ;;  %v11242_v47 = vcombine.low %v1961_v27, %v1965_v28  ;;  %v2005_v27 = vld [vmem:[#allocation8 + $0xb38] sm:$0xff] }
 0x408   :  { %10365 = vmatpush1.bf16.msra.mxu1 %v11202_v50  ;;  %9936 = vmatprep.subr.bf16.mxu0 %v11209_v48  ;;  %v11249_v50 = vcombine.high %v1968_v37, %v1972_v38  ;;  %v11251_v48 = vcombine.high %v1969_v55, %v1973_v44  ;;  %v2012_v37 = vld [vmem:[#allocation8 + $0xb70] sm:$0xff]  ;;  %v2009_v38 = vld [vmem:[#allocation8 + $0xb58] sm:$0xff] }
 0x409   :  { %10366 = vmatprep.subr.bf16.mxu1 %v11211_v49  ;;  %v1976_v49 = vld [vmem:[#allocation8 + $0xa50] sm:$0xff] }
 0x40a   :  { %v11256_v8 = vcombine.low %v1976_v49, %v1980_v51 }
 0x40b   :  { %9937 = vmatpush1.bf16.msra.mxu0 %v11208_v11  ;;  %v11250_v11 = vcombine.low %v1969_v55, %v1973_v44  ;;  %v2013_v55 = vld [vmem:[#allocation8 + $0xb78] sm:$0xff] }
 0x40c   :  { %10367 = vmatpush1.bf16.msra.mxu1 %v11210_v59  ;;  %9938 = vmatprep.subr.bf16.mxu0 %v11217_v61  ;;  %v11257_v59 = vcombine.high %v1976_v49, %v1980_v51  ;;  %v11259_v61 = vcombine.high %v1977_v12, %v1981_v52  ;;  %v2020_v49 = vld [vmem:[#allocation8 + $0xbb0] sm:$0xff]  ;;  %v2017_v51 = vld [vmem:[#allocation8 + $0xb98] sm:$0xff] }
 0x40d   :  { %10368 = vmatprep.subr.bf16.mxu1 %v11219_v62  ;;  %v1984_v62 = vld [vmem:[#allocation8 + $0xa90] sm:$0xff] }
 0x40e   :  { %v11264_v21 = vcombine.low %v1984_v62, %v1988_v63 }
 0x40f   :  { %9939 = vmatpush1.bf16.msra.mxu0 %v11216_v9  ;;  %v11258_v9 = vcombine.low %v1977_v12, %v1981_v52  ;;  %v2021_v12 = vld [vmem:[#allocation8 + $0xbb8] sm:$0xff] }
 0x410   :  { %10369 = vmatpush1.bf16.msra.mxu1 %v11218_v14  ;;  %9940 = vmatprep.subr.bf16.mxu0 %v11225_v15  ;;  %v11265_v14 = vcombine.high %v1984_v62, %v1988_v63  ;;  %v11267_v15 = vcombine.high %v1985_v1, %v1989_v4  ;;  %v2028_v62 = vld [vmem:[#allocation8 + $0xbf0] sm:$0xff]  ;;  %v2025_v63 = vld [vmem:[#allocation8 + $0xbd8] sm:$0xff] }
 0x411   :  { %10370 = vmatprep.subr.bf16.mxu1 %v11227_v16  ;;  %v1992_v16 = vld [vmem:[#allocation8 + $0xad0] sm:$0xff] }
 0x412   :  { %v11272_v28 = vcombine.low %v1992_v16, %v1996_v18 }
 0x413   :  { %9941 = vmatpush1.bf16.msra.mxu0 %v11224_v56  ;;  %v11266_v56 = vcombine.low %v1985_v1, %v1989_v4  ;;  %v2029_v1 = vld [vmem:[#allocation8 + $0xbf8] sm:$0xff] }
 0x414   :  { %10371 = vmatpush1.bf16.msra.mxu1 %v11226_v22  ;;  %9942 = vmatprep.subr.bf16.mxu0 %v11233_v23  ;;  %v11273_v22 = vcombine.high %v1992_v16, %v1996_v18  ;;  %v11275_v23 = vcombine.high %v1993_v7, %v1997_v20  ;;  %v2036_v16 = vld [vmem:[#allocation8 + $0xc30] sm:$0xff]  ;;  %v2033_v18 = vld [vmem:[#allocation8 + $0xc18] sm:$0xff] }
 0x415   :  { %10372 = vmatprep.subr.bf16.mxu1 %v11235_v24  ;;  %v2000_v24 = vld [vmem:[#allocation8 + $0xb10] sm:$0xff] }
 0x416   :  { %v11280_v44 = vcombine.low %v2000_v24, %v2004_v25 }
 0x417   :  { %9943 = vmatpush1.bf16.msra.mxu0 %v11232_v30  ;;  %v11274_v30 = vcombine.low %v1993_v7, %v1997_v20  ;;  %v2037_v7 = vld [vmem:[#allocation8 + $0xc38] sm:$0xff] }
 0x418   :  { %10373 = vmatpush1.bf16.msra.mxu1 %v11234_v31  ;;  %9944 = vmatprep.subr.bf16.mxu0 %v11241_v32  ;;  %v11281_v31 = vcombine.high %v2000_v24, %v2004_v25  ;;  %v11283_v32 = vcombine.high %v2001_v26, %v2005_v27  ;;  %v2044_v24 = vld [vmem:[#allocation8 + $0xc70] sm:$0xff] }
 0x419   :  { %10374 = vmatprep.subr.bf16.mxu1 %v11243_v34  ;;  %v2008_v34 = vld [vmem:[#allocation8 + $0xb50] sm:$0xff] }
 0x41a   :  { %v11288_v52 = vcombine.low %v2008_v34, %v2012_v37 }
 0x41b   :  { %9945 = vmatpush1.bf16.msra.mxu0 %v11240_v45  ;;  %v11282_v45 = vcombine.low %v2001_v26, %v2005_v27  ;;  %v2041_v26 = vld [vmem:[#allocation8 + $0xc58] sm:$0xff] }
 0x41c   :  { %10375 = vmatpush1.bf16.msra.mxu1 %v11242_v47  ;;  %9946 = vmatprep.subr.bf16.mxu0 %v11249_v50  ;;  %v11289_v47 = vcombine.high %v2008_v34, %v2012_v37  ;;  %v11291_v50 = vcombine.high %v2009_v38, %v2013_v55  ;;  %v2045_v27 = vld [vmem:[#allocation8 + $0xc78] sm:$0xff] }
 0x41d   :  { %10376 = vmatprep.subr.bf16.mxu1 %v11251_v48  ;;  %v2016_v48 = vld [vmem:[#allocation8 + $0xb90] sm:$0xff]  ;;  %v11323_v34 = vcombine.high %v2041_v26, %v2045_v27  ;;  %v2049_v37 = vld [vmem:[#allocation8 + $0xc98] sm:$0xff] }
 0x41e   :  { %v11296_v4 = vcombine.low %v2016_v48, %v2020_v49 }
 0x41f   :  { %9947 = vmatpush1.bf16.msra.mxu0 %v11248_v58  ;;  %v11290_v58 = vcombine.low %v2009_v38, %v2013_v55  ;;  %v2053_v38 = vld [vmem:[#allocation8 + $0xcb8] sm:$0xff] }
 0x420   :  { %10377 = vmatpush1.bf16.msra.mxu1 %v11250_v11  ;;  %9948 = vmatprep.subr.bf16.mxu0 %v11257_v59  ;;  %v11297_v11 = vcombine.high %v2016_v48, %v2020_v49  ;;  %v11299_v59 = vcombine.high %v2017_v51, %v2021_v12  ;;  %v2060_v48 = vld [vmem:[#allocation8 + $0xcf0] sm:$0xff]  ;;  %v2057_v49 = vld [vmem:[#allocation8 + $0xcd8] sm:$0xff] }
 0x421   :  { %10378 = vmatprep.subr.bf16.mxu1 %v11259_v61  ;;  %v2024_v61 = vld [vmem:[#allocation8 + $0xbd0] sm:$0xff] }
 0x422   :  { %v11304_v20 = vcombine.low %v2024_v61, %v2028_v62 }
 0x423   :  { %9949 = vmatpush1.bf16.msra.mxu0 %v11256_v8  ;;  %v11298_v8 = vcombine.low %v2017_v51, %v2021_v12  ;;  %v2061_v51 = vld [vmem:[#allocation8 + $0xcf8] sm:$0xff] }
 0x424   :  { %10379 = vmatpush1.bf16.msra.mxu1 %v11258_v9  ;;  %9950 = vmatprep.subr.bf16.mxu0 %v11265_v14  ;;  %v11305_v9 = vcombine.high %v2024_v61, %v2028_v62  ;;  %v11307_v14 = vcombine.high %v2025_v63, %v2029_v1  ;;  %v2065_v61 = vld [vmem:[#allocation8 + $0xd18] sm:$0xff] }
 0x425   :  { %10380 = vmatprep.subr.bf16.mxu1 %v11267_v15  ;;  %v2032_v15 = vld [vmem:[#allocation8 + $0xc10] sm:$0xff]  ;;  %v2069_v62 = vld [vmem:[#allocation8 + $0xd38] sm:$0xff] }
 0x426   :  { %v11312_v25 = vcombine.low %v2032_v15, %v2036_v16 }
 0x427   :  { %9951 = vmatpush1.bf16.msra.mxu0 %v11264_v21  ;;  %v11306_v21 = vcombine.low %v2025_v63, %v2029_v1  ;;  %v11338_v63 = vcombine.low %v2057_v49, %v2061_v51 }
 0x428   :  { %10381 = vmatpush1.bf16.msra.mxu1 %v11266_v56  ;;  %9952 = vmatprep.subr.bf16.mxu0 %v11273_v22  ;;  %v11313_v56 = vcombine.high %v2032_v15, %v2036_v16  ;;  %v11315_v22 = vcombine.high %v2033_v18, %v2037_v7  ;;  %v2077_v15 = vld [vmem:[#allocation8 + $0xd78] sm:$0xff] }
 0x429   :  { %10382 = vmatprep.subr.bf16.mxu1 %v11275_v23  ;;  %v2040_v23 = vld [vmem:[#allocation8 + $0xc50] sm:$0xff] }
 0x42a   :  { %v11320_v55 = vcombine.low %v2040_v23, %v2044_v24 }
 0x42b   :  { %9953 = vmatpush1.bf16.msra.mxu0 %v11272_v28  ;;  %v11314_v28 = vcombine.low %v2033_v18, %v2037_v7  ;;  %v2862_v18 = vld [vmem:[#allocation10] sm:$0xff]  ;;  %v11346_v7 = vcombine.low %v2065_v61, %v2069_v62 }
 0x42c   :  { %10383 = vmatpush1.bf16.msra.mxu1 %v11274_v30  ;;  %9954 = vmatprep.subr.bf16.mxu0 %v11281_v31  ;;  %v11321_v30 = vcombine.high %v2040_v23, %v2044_v24  ;;  %v2048_v31 = vld [vmem:[#allocation8 + $0xc90] sm:$0xff]  ;;  %v2867_v23 = vrot.slane %v2862_v18, %v12858_v41  ;;  %v2081_v24 = vld [vmem:[#allocation8 + $0xd98] sm:$0xff] }
 0x42d   :  { %10384 = vmatprep.subr.bf16.mxu1 %v11283_v32  ;;  %v2052_v32 = vld [vmem:[#allocation8 + $0xcb0] sm:$0xff]  ;;  %v13024_v41 = vld [vmem:[#allocation8 + $0xdf8] sm:$0xff] }
 0x42e   :  { %v11328_v12 = vcombine.low %v2048_v31, %v2052_v32 }
 0x42f   :  { %9955 = vmatpush1.bf16.msra.mxu0 %v11280_v44  ;;  %v11322_v44 = vcombine.low %v2041_v26, %v2045_v27  ;;  %v2875_v26 = vrot.slane %v2862_v18, %v12870_v54  ;;  %v2871_v27 = vrot.slane %v2862_v18, %v12863_v43 }
 0x430   :  { %10385 = vmatpush1.bf16.msra.mxu1 %v11282_v45  ;;  %9956 = vmatprep.subr.bf16.mxu0 %v11289_v47  ;;  %v11329_v45 = vcombine.high %v2048_v31, %v2052_v32  ;;  %v11331_v47 = vcombine.high %v2049_v37, %v2053_v38  ;;  %v13019_v31 = vld [vmem:[#allocation8 + $0xdf0] sm:$0xff]  ;;  %v2879_v32 = vrot.slane %v2862_v18, %v12873_v57 }
 0x431   :  { %10386 = vmatprep.subr.bf16.mxu1 %v11291_v50  ;;  %v2056_v50 = vld [vmem:[#allocation8 + $0xcd0] sm:$0xff] }
 0x433   :  { %9957 = vmatpush1.bf16.msra.mxu0 %v11288_v52  ;;  %v11337_v52 = vcombine.high %v2056_v50, %v2060_v48 }
 0x434   :  { %10387 = vmatpush1.bf16.msra.mxu1 %v11290_v58  ;;  %9958 = vmatprep.subr.bf16.mxu0 %v11297_v11  ;;  %v11339_v58 = vcombine.high %v2057_v49, %v2061_v51  ;;  %v2064_v11 = vld [vmem:[#allocation8 + $0xd10] sm:$0xff] }
 0x435   :  { %10388 = vmatprep.subr.bf16.mxu1 %v11299_v59  ;;  %v2068_v59 = vld [vmem:[#allocation8 + $0xd30] sm:$0xff] }
 0x436   :  { %v11345_v1 = vcombine.high %v2064_v11, %v2068_v59  ;;  %v11344_v16 = vcombine.low %v2064_v11, %v2068_v59 }
 0x437   :  { %9959 = vmatpush1.bf16.msra.mxu0 %v11296_v4  ;;  %v11347_v4 = vcombine.high %v2065_v61, %v2069_v62 }
 0x438   :  { %10389 = vmatpush1.bf16.msra.mxu1 %v11298_v8  ;;  %9960 = vmatprep.subr.bf16.mxu0 %v11305_v9  ;;  %v2072_v8 = vld [vmem:[#allocation8 + $0xd50] sm:$0xff] }
 0x439   :  { %10390 = vmatprep.subr.bf16.mxu1 %v11307_v14  ;;  %v2076_v9 = vld [vmem:[#allocation8 + $0xd70] sm:$0xff]  ;;  %v2073_v14 = vld [vmem:[#allocation8 + $0xd58] sm:$0xff] }
 0x43b   :  { %9961 = vmatpush1.bf16.msra.mxu0 %v11304_v20  ;;  %v11353_v20 = vcombine.high %v2072_v8, %v2076_v9 }
 0x43c   :  { %10391 = vmatpush1.bf16.msra.mxu1 %v11306_v21  ;;  %9973 = vmatprep.subr.bf16.mxu0 %v11313_v56  ;;  %v11355_v21 = vcombine.high %v2073_v14, %v2077_v15  ;;  %v2080_v56 = vld [vmem:[#allocation8 + $0xd90] sm:$0xff] }
 0x43d   :  { %10403 = vmatprep.subr.bf16.mxu1 %v11315_v22  ;;  %v2084_v22 = vld [vmem:[#allocation8 + $0xdb0] sm:$0xff] }
 0x43e   :  { %9963 = vmatmul.mubr.bf16.vlgmr.msra.gmra.mrb[24].mxu0 %v12915_v6 }
 0x43f   :  { %10393 = vmatmul.mubr.bf16.vlgmr.msra.gmra.mrb[24].mxu1 %v12915_v6  ;;  %9974 = vmatpush1.bf16.msra.mxu0 %v11312_v25  ;;  %v11330_v6 = vcombine.low %v2049_v37, %v2053_v38  ;;  %v2085_v25 = vld [vmem:[#allocation8 + $0xdb8] sm:$0xff]  ;;  %v11361_v37 = vcombine.high %v2080_v56, %v2084_v22 }
 0x440   :  { %10005 = vmatprep.mubr.bf16.mxu0 %v12921_v60  ;;  %10404 = vmatpush1.bf16.msra.mxu1 %v11314_v28  ;;  %v11352_v28 = vcombine.low %v2072_v8, %v2076_v9  ;;  %v13022_v38 = vld [vmem:[#allocation8 + $0xdd8] sm:$0xff]  ;;  %v11363_v54 = vcombine.high %v2081_v24, %v2085_v25 }
 0x441   :  { %10435 = vmatprep.mubr.bf16.mxu1 %v12921_v60  ;;  %9975 = vmatprep.subr.bf16.mxu0 %v11321_v30  ;;  %v11336_v60 = vcombine.low %v2056_v50, %v2060_v48  ;;  %v13017_v30 = vld [vmem:[#allocation8 + $0xdd0] sm:$0xff]  ;;  %v11362_v50 = vcombine.low %v2081_v24, %v2085_v25 }
 0x442   :  { %10405 = vmatprep.subr.bf16.mxu1 %v11323_v34  ;;  %v11354_v34 = vcombine.low %v2073_v14, %v2077_v15  ;;  %v11369_v48 = vcombine.high %v13017_v30, %v13019_v31  ;;  %v2100_v15 = vld [vmem:[#allocation8 + $0xe30] sm:$0xff] }
 0x443   :  { %9976 = vmatpush1.bf16.msra.mxu0 %v11320_v55 }
 0x444   :  { %10406 = vmatpush1.bf16.msra.mxu1 %v11322_v44  ;;  %9977 = vmatprep.subr.bf16.mxu0 %v11329_v45 }
 0x445   :  { %10407 = vmatprep.subr.bf16.mxu1 %v11331_v47  ;;  %v11360_v47 = vcombine.low %v2080_v56, %v2084_v22  ;;  %v2101_v56 = vld [vmem:[#allocation8 + $0xe38] sm:$0xff] }
 0x447   :  { %9978 = vmatpush1.bf16.msra.mxu0 %v11328_v12 }
 0x448   :  { %10408 = vmatpush1.bf16.msra.mxu1 %v11330_v6  ;;  %9979 = vmatprep.subr.bf16.mxu0 %v11337_v52  ;;  %v11368_v6 = vcombine.low %v13017_v30, %v13019_v31  ;;  %v11370_v52 = vcombine.low %v13022_v38, %v13024_v41 }
 0x449   :  { %10409 = vmatprep.subr.bf16.mxu1 %v11339_v58 }
 0x44b   :  { %9980 = vmatpush1.bf16.msra.mxu0 %v11336_v60  ;;  %v11371_v60 = vcombine.high %v13022_v38, %v13024_v41  ;;  %v2108_v38 = vld [vmem:[#allocation8 + $0xe70] sm:$0xff] }
 0x44c   :  { %10410 = vmatpush1.bf16.msra.mxu1 %v11338_v63  ;;  %9981 = vmatprep.subr.bf16.mxu0 %v11345_v1  ;;  %v2096_v63 = vld [vmem:[#allocation8 + $0xe10] sm:$0xff] }
 0x44d   :  { %10411 = vmatprep.subr.bf16.mxu1 %v11347_v4 }
 0x44f   :  { %9982 = vmatpush1.bf16.msra.mxu0 %v11344_v16 }
 0x450   :  { %10412 = vmatpush1.bf16.msra.mxu1 %v11346_v7  ;;  %9983 = vmatprep.subr.bf16.mxu0 %v11353_v20 }
 0x451   :  { %v9405_v55 = vpop.f32.mrb[20].mxu0  ;;  %10413 = vmatprep.subr.bf16.mxu1 %v11355_v21  ;;  %v2097_v21 = vld [vmem:[#allocation8 + $0xe18] sm:$0xff] }
 0x452   :  { %v12169_v44 = vadd.f32 %v9405_v55, %v2867_v23  ;;  %v9835_v43 = vpop.f32.mrb[20].mxu1  ;;  %v9407_v45 = vpop.f32.mrb[21].mxu0  ;;  %v2105_v55 = vld [vmem:[#allocation8 + $0xe58] sm:$0xff] }
 0x453   :  { %v12173_v49 = vadd.f32 %v9835_v43, %v2875_v26  ;;  %v12170_v57 = vadd.f32 %v9407_v45, %v2871_v27  ;;  %v9837_v51 = vpop.f32.mrb[21].mxu1  ;;  %v9409_v12 = vpop.f32.mrb[22].mxu0  ;;  %9984 = vmatpush1.bf16.msra.mxu0 %v11352_v28  ;;  %v11378_v43 = vcombine.low %v2097_v21, %v2101_v56 }
 0x454   :  { %v10704_v58 = vmul.f32 0.01, %v12169_v44  ;;  %v12174_v11 = vadd.f32 %v9837_v51, %v2879_v32  ;;  %v12171_v59 = vadd.f32 %v9409_v12, %v2867_v23  ;;  %v9839_v61 = vpop.f32.mrb[22].mxu1  ;;  %10414 = vmatpush1.bf16.msra.mxu1 %v11354_v34  ;;  %v9411_v62 = vpop.f32.mrb[23].mxu0  ;;  %9985 = vmatprep.subr.bf16.mxu0 %v11361_v37  ;;  %v2104_v37 = vld [vmem:[#allocation8 + $0xe50] sm:$0xff] }
 0x455   :  { %v10706_v1 = vmul.f32 0.01, %v12173_v49  ;;  %v10705_v4 = vmul.f32 0.01, %v12170_v57  ;;  %v12175_v8 = vadd.f32 %v9839_v61, %v2875_v26  ;;  %v12172_v9 = vadd.f32 %v9411_v62, %v2871_v27  ;;  %v9841_v14 = vpop.f32.mrb[23].mxu1  ;;  %10415 = vmatprep.subr.bf16.mxu1 %v11363_v54  ;;  %v2109_v54 = vld [vmem:[#allocation8 + $0xe78] sm:$0xff] }
 0x456   :  { %v10720_v16 = vmax.f32 %v12169_v44, %v10704_v58  ;;  %v10707_v18 = vmul.f32 0.01, %v12174_v11  ;;  %v10712_v7 = vmul.f32 0.01, %v12171_v59  ;;  %v12176_v20 = vadd.f32 %v9841_v14, %v2879_v32  ;;  %v2125_v61 = vld [vmem:[#allocation8 + $0xef8] sm:$0xff] }
 0x457   :  { %v10722_v22 = vmax.f32 %v12173_v49, %v10706_v1  ;;  %v10721_v23 = vmax.f32 %v12170_v57, %v10705_v4  ;;  %v10714_v24 = vmul.f32 0.01, %v12175_v8  ;;  %v10713_v25 = vmul.f32 0.01, %v12172_v9  ;;  %9986 = vmatpush1.bf16.msra.mxu0 %v11360_v47  ;;  %v2113_v49 = vld [vmem:[#allocation8 + $0xe98] sm:$0xff]  ;;  %v2128_v4 = vld [vmem:[#allocation8 + $0xf10] sm:$0xff] }
 0x458   :  { %10736 = vst [vmem:[#allocation11] sm:$0xff] %v10720_v16  ;;  %v10723_v28 = vmax.f32 %v12174_v11, %v10707_v18  ;;  %v10728_v30 = vmax.f32 %v12171_v59, %v10712_v7  ;;  %v10715_v31 = vmul.f32 0.01, %v12176_v20  ;;  %10416 = vmatpush1.bf16.msra.mxu1 %v11362_v50  ;;  %9987 = vmatprep.subr.bf16.mxu0 %v11369_v48  ;;  %v2112_v50 = vld [vmem:[#allocation8 + $0xe90] sm:$0xff]  ;;  %v2117_v57 = vld [vmem:[#allocation8 + $0xeb8] sm:$0xff] }
 0x459   :  { %v11377_v26 = vcombine.high %v2096_v63, %v2100_v15  ;;  %10738 = vst [vmem:[#allocation11 + $0x10] sm:$0xff] %v10722_v22  ;;  %10737 = vst [vmem:[#allocation11 + $0x8] sm:$0xff] %v10721_v23  ;;  %v10730_v27 = vmax.f32 %v12175_v8, %v10714_v24  ;;  %v10729_v34 = vmax.f32 %v12172_v9, %v10713_v25  ;;  %10417 = vmatprep.subr.bf16.mxu1 %v11371_v60  ;;  %v2116_v48 = vld [vmem:[#allocation8 + $0xeb0] sm:$0xff]  ;;  %v2129_v9 = vld [vmem:[#allocation8 + $0xf18] sm:$0xff] }
 0x45a   :  { %v11379_v32 = vcombine.high %v2097_v21, %v2101_v56  ;;  %10739 = vst [vmem:[#allocation11 + $0x18] sm:$0xff] %v10723_v28  ;;  %10744 = vst [vmem:[#allocation11 + $0x40] sm:$0xff] %v10728_v30  ;;  %v10731_v41 = vmax.f32 %v12176_v20, %v10715_v31  ;;  %v11376_v44 = vcombine.low %v2096_v63, %v2100_v15  ;;  %v2120_v11 = vld [vmem:[#allocation8 + $0xed0] sm:$0xff]  ;;  %v2133_v14 = vld [vmem:[#allocation8 + $0xf38] sm:$0xff] }
 0x45b   :  { %10746 = vst [vmem:[#allocation11 + $0x50] sm:$0xff] %v10730_v27  ;;  %10745 = vst [vmem:[#allocation11 + $0x48] sm:$0xff] %v10729_v34  ;;  %9988 = vmatpush1.bf16.msra.mxu0 %v11368_v6  ;;  %v11385_v45 = vcombine.high %v2104_v37, %v2108_v38  ;;  %v11387_v47 = vcombine.high %v2105_v55, %v2109_v54  ;;  %v11384_v51 = vcombine.low %v2104_v37, %v2108_v38  ;;  %v2124_v59 = vld [vmem:[#allocation8 + $0xef0] sm:$0xff]  ;;  %v2137_v56 = vld [vmem:[#allocation8 + $0xf58] sm:$0xff] }
 0x45c   :  { %10747 = vst [vmem:[#allocation11 + $0x58] sm:$0xff] %v10731_v41  ;;  %10418 = vmatpush1.bf16.msra.mxu1 %v11370_v52  ;;  %9989 = vmatprep.subr.bf16.mxu0 %v11377_v26  ;;  %v11386_v12 = vcombine.low %v2105_v55, %v2109_v54  ;;  %v11393_v58 = vcombine.high %v2112_v50, %v2116_v48  ;;  %v2121_v52 = vld [vmem:[#allocation8 + $0xed8] sm:$0xff]  ;;  %v2132_v8 = vld [vmem:[#allocation8 + $0xf30] sm:$0xff] }
 0x45d   :  { %10419 = vmatprep.subr.bf16.mxu1 %v11379_v32  ;;  %v11395_v6 = vcombine.high %v2113_v49, %v2117_v57  ;;  %v11392_v62 = vcombine.low %v2112_v50, %v2116_v48  ;;  %v11394_v60 = vcombine.low %v2113_v49, %v2117_v57  ;;  %v11401_v63 = vcombine.high %v2120_v11, %v2124_v59  ;;  %v2136_v20 = vld [vmem:[#allocation8 + $0xf50] sm:$0xff]  ;;  %v2141_v22 = vld [vmem:[#allocation8 + $0xf78] sm:$0xff] }
 0x45e   :  { %v11403_v1 = vcombine.high %v2121_v52, %v2125_v61  ;;  %v11400_v15 = vcombine.low %v2120_v11, %v2124_v59  ;;  %v11402_v16 = vcombine.low %v2121_v52, %v2125_v61  ;;  %v11409_v18 = vcombine.high %v2128_v4, %v2132_v8  ;;  %v2140_v21 = vld [vmem:[#allocation8 + $0xf70] sm:$0xff]  ;;  %v2145_v26 = vld [vmem:[#allocation8 + $0xf98] sm:$0xff] }
 0x45f   :  { %9990 = vmatpush1.bf16.msra.mxu0 %v11376_v44  ;;  %v11411_v7 = vcombine.high %v2129_v9, %v2133_v14  ;;  %v11408_v23 = vcombine.low %v2128_v4, %v2132_v8  ;;  %v11410_v24 = vcombine.low %v2129_v9, %v2133_v14  ;;  %v11417_v25 = vcombine.high %v2136_v20, %v2140_v21  ;;  %v2144_v30 = vld [vmem:[#allocation8 + $0xf90] sm:$0xff]  ;;  %v2149_v27 = vld [vmem:[#allocation8 + $0xfb8] sm:$0xff] }
 0x460   :  { %10420 = vmatpush1.bf16.msra.mxu1 %v11378_v43  ;;  %9991 = vmatprep.subr.bf16.mxu0 %v11385_v45  ;;  %v11419_v28 = vcombine.high %v2137_v56, %v2141_v22  ;;  %v2148_v31 = vld [vmem:[#allocation8 + $0xfb0] sm:$0xff]  ;;  %v11416_v34 = vcombine.low %v2136_v20, %v2140_v21  ;;  %v11418_v32 = vcombine.low %v2137_v56, %v2141_v22  ;;  %v2153_v54 = vld [vmem:[#allocation8 + $0xfd8] sm:$0xff] }
 0x461   :  { %10421 = vmatprep.subr.bf16.mxu1 %v11387_v47  ;;  %v11425_v37 = vcombine.high %v2144_v30, %v2148_v31  ;;  %v11427_v38 = vcombine.high %v2145_v26, %v2149_v27  ;;  %v2152_v41 = vld [vmem:[#allocation8 + $0xfd0] sm:$0xff]  ;;  %v2157_v44 = vld [vmem:[#allocation8 + $0xff8] sm:$0xff]  ;;  %v11424_v43 = vcombine.low %v2144_v30, %v2148_v31  ;;  %v11426_v45 = vcombine.low %v2145_v26, %v2149_v27 }
 0x462   :  { %v2156_v55 = vld [vmem:[#allocation8 + $0xff0] sm:$0xff]  ;;  %v11435_v50 = vcombine.high %v2153_v54, %v2157_v44  ;;  %v2161_v57 = vld [vmem:[#allocation8 + $0x1018] sm:$0xff] }
 0x463   :  { %9992 = vmatpush1.bf16.msra.mxu0 %v11384_v51  ;;  %v11433_v47 = vcombine.high %v2152_v41, %v2156_v55  ;;  %v2160_v48 = vld [vmem:[#allocation8 + $0x1010] sm:$0xff]  ;;  %v2165_v51 = vld [vmem:[#allocation8 + $0x1038] sm:$0xff] }
 0x464   :  { %10422 = vmatpush1.bf16.msra.mxu1 %v11386_v12  ;;  %9993 = vmatprep.subr.bf16.mxu0 %v11393_v58  ;;  %v2164_v49 = vld [vmem:[#allocation8 + $0x1030] sm:$0xff]  ;;  %v11432_v12 = vcombine.low %v2152_v41, %v2156_v55  ;;  %v11434_v58 = vcombine.low %v2153_v54, %v2157_v44  ;;  %v11443_v11 = vcombine.high %v2161_v57, %v2165_v51  ;;  %v2177_v14 = vld [vmem:[#allocation8 + $0x1098] sm:$0xff] }
 0x465   :  { %10423 = vmatprep.subr.bf16.mxu1 %v11395_v6  ;;  %v11441_v6 = vcombine.high %v2160_v48, %v2164_v49  ;;  %v2168_v59 = vld [vmem:[#allocation8 + $0x1050] sm:$0xff]  ;;  %v11440_v61 = vcombine.low %v2160_v48, %v2164_v49  ;;  %v2185_v22 = vld [vmem:[#allocation8 + $0x10d8] sm:$0xff] }
 0x466   :  { %v2172_v52 = vld [vmem:[#allocation8 + $0x1070] sm:$0xff]  ;;  %v2193_v26 = vld [vmem:[#allocation8 + $0x1118] sm:$0xff] }
 0x467   :  { %9994 = vmatpush1.bf16.msra.mxu0 %v11392_v62  ;;  %v2169_v62 = vld [vmem:[#allocation8 + $0x1058] sm:$0xff]  ;;  %v2176_v4 = vld [vmem:[#allocation8 + $0x1090] sm:$0xff] }
 0x468   :  { %10424 = vmatpush1.bf16.msra.mxu1 %v11394_v60  ;;  %9995 = vmatprep.subr.bf16.mxu0 %v11401_v63  ;;  %v2173_v60 = vld [vmem:[#allocation8 + $0x1078] sm:$0xff]  ;;  %v11442_v63 = vcombine.low %v2161_v57, %v2165_v51  ;;  %v2180_v8 = vld [vmem:[#allocation8 + $0x10b0] sm:$0xff] }
 0x469   :  { %10425 = vmatprep.subr.bf16.mxu1 %v11403_v1  ;;  %v11449_v1 = vcombine.high %v2168_v59, %v2172_v52  ;;  %v11451_v9 = vcombine.high %v2169_v62, %v2173_v60  ;;  %v2184_v21 = vld [vmem:[#allocation8 + $0x10d0] sm:$0xff]  ;;  %v2197_v27 = vld [vmem:[#allocation8 + $0x1138] sm:$0xff] }
 0x46a   :  { %v2188_v56 = vld [vmem:[#allocation8 + $0x10f0] sm:$0xff]  ;;  %v2201_v55 = vld [vmem:[#allocation8 + $0x1158] sm:$0xff] }
 0x46b   :  { %9996 = vmatpush1.bf16.msra.mxu0 %v11400_v15  ;;  %v2181_v15 = vld [vmem:[#allocation8 + $0x10b8] sm:$0xff]  ;;  %v2192_v30 = vld [vmem:[#allocation8 + $0x1110] sm:$0xff] }
 0x46c   :  { %10426 = vmatpush1.bf16.msra.mxu1 %v11402_v16  ;;  %9997 = vmatprep.subr.bf16.mxu0 %v11409_v18  ;;  %v11448_v16 = vcombine.low %v2168_v59, %v2172_v52  ;;  %v11450_v18 = vcombine.low %v2169_v62, %v2173_v60  ;;  %v11459_v20 = vcombine.high %v2177_v14, %v2181_v15  ;;  %v2196_v31 = vld [vmem:[#allocation8 + $0x1130] sm:$0xff]  ;;  %v2205_v54 = vld [vmem:[#allocation8 + $0x1178] sm:$0xff] }
 0x46d   :  { %10427 = vmatprep.subr.bf16.mxu1 %v11411_v7  ;;  %v11457_v7 = vcombine.high %v2176_v4, %v2180_v8  ;;  %v2204_v41 = vld [vmem:[#allocation8 + $0x1170] sm:$0xff]  ;;  %v11472_v44 = vcombine.low %v2192_v30, %v2196_v31  ;;  %v2209_v49 = vld [vmem:[#allocation8 + $0x1198] sm:$0xff] }
 0x46e   :  { %v2212_v48 = vld [vmem:[#allocation8 + $0x11b0] sm:$0xff]  ;;  %v2213_v57 = vld [vmem:[#allocation8 + $0x11b8] sm:$0xff] }
 0x46f   :  { %9998 = vmatpush1.bf16.msra.mxu0 %v11408_v23  ;;  %v2189_v23 = vld [vmem:[#allocation8 + $0x10f8] sm:$0xff]  ;;  %v2220_v59 = vld [vmem:[#allocation8 + $0x11f0] sm:$0xff]  ;;  %v11490_v60 = vcombine.low %v2209_v49, %v2213_v57 }
 0x470   :  { %10428 = vmatpush1.bf16.msra.mxu1 %v11410_v24  ;;  %9999 = vmatprep.subr.bf16.mxu0 %v11417_v25  ;;  %v11456_v24 = vcombine.low %v2176_v4, %v2180_v8  ;;  %v11465_v25 = vcombine.high %v2184_v21, %v2188_v56  ;;  %v2217_v52 = vld [vmem:[#allocation8 + $0x11d8] sm:$0xff]  ;;  %v2224_v4 = vld [vmem:[#allocation8 + $0x1210] sm:$0xff] }
 0x471   :  { %10429 = vmatprep.subr.bf16.mxu1 %v11419_v28  ;;  %v11467_v28 = vcombine.high %v2185_v22, %v2189_v23  ;;  %v2228_v8 = vld [vmem:[#allocation8 + $0x1230] sm:$0xff] }
 0x473   :  { %10000 = vmatpush1.bf16.msra.mxu0 %v11416_v34  ;;  %v11466_v34 = vcombine.low %v2185_v22, %v2189_v23  ;;  %v2237_v22 = vld [vmem:[#allocation8 + $0x1278] sm:$0xff]  ;;  %v11504_v23 = vcombine.low %v2224_v4, %v2228_v8 }
 0x474   :  { %10430 = vmatpush1.bf16.msra.mxu1 %v11418_v32  ;;  %10001 = vmatprep.subr.bf16.mxu0 %v11425_v37  ;;  %v11473_v32 = vcombine.high %v2192_v30, %v2196_v31  ;;  %v11475_v37 = vcombine.high %v2193_v26, %v2197_v27  ;;  %v2244_v30 = vld [vmem:[#allocation8 + $0x12b0] sm:$0xff]  ;;  %v2241_v31 = vld [vmem:[#allocation8 + $0x1298] sm:$0xff] }
 0x475   :  { %10431 = vmatprep.subr.bf16.mxu1 %v11427_v38  ;;  %v2200_v38 = vld [vmem:[#allocation8 + $0x1150] sm:$0xff] }
 0x476   :  { %v11480_v51 = vcombine.low %v2200_v38, %v2204_v41 }
 0x477   :  { %10002 = vmatpush1.bf16.msra.mxu0 %v11424_v43  ;;  %v11474_v43 = vcombine.low %v2193_v26, %v2197_v27  ;;  %v2245_v26 = vld [vmem:[#allocation8 + $0x12b8] sm:$0xff] }
 0x478   :  { %10432 = vmatpush1.bf16.msra.mxu1 %v11426_v45  ;;  %10003 = vmatprep.subr.bf16.mxu0 %v11433_v47  ;;  %v11481_v45 = vcombine.high %v2200_v38, %v2204_v41  ;;  %v11483_v47 = vcombine.high %v2201_v55, %v2205_v54  ;;  %v2252_v38 = vld [vmem:[#allocation8 + $0x12f0] sm:$0xff]  ;;  %v2249_v41 = vld [vmem:[#allocation8 + $0x12d8] sm:$0xff] }
 0x479   :  { %10433 = vmatprep.subr.bf16.mxu1 %v11435_v50  ;;  %v2208_v50 = vld [vmem:[#allocation8 + $0x1190] sm:$0xff] }
 0x47a   :  { %v11488_v62 = vcombine.low %v2208_v50, %v2212_v48 }
 0x47b   :  { %10004 = vmatpush1.bf16.msra.mxu0 %v11432_v12  ;;  %v11482_v12 = vcombine.low %v2201_v55, %v2205_v54  ;;  %v2253_v55 = vld [vmem:[#allocation8 + $0x12f8] sm:$0xff] }
 0x47c   :  { %10434 = vmatpush1.bf16.msra.mxu1 %v11434_v58  ;;  %10016 = vmatprep.subr.bf16.mxu0 %v11441_v6  ;;  %v11489_v58 = vcombine.high %v2208_v50, %v2212_v48  ;;  %v11491_v6 = vcombine.high %v2209_v49, %v2213_v57  ;;  %v2260_v50 = vld [vmem:[#allocation8 + $0x1330] sm:$0xff]  ;;  %v2257_v48 = vld [vmem:[#allocation8 + $0x1318] sm:$0xff] }
 0x47d   :  { %10446 = vmatprep.subr.bf16.mxu1 %v11443_v11  ;;  %v2216_v11 = vld [vmem:[#allocation8 + $0x11d0] sm:$0xff]  ;;  %v2261_v49 = vld [vmem:[#allocation8 + $0x1338] sm:$0xff] }
 0x47e   :  { %10006 = vmatmul.mubr.bf16.vlgmr.msra.gmra.mrb[24].mxu0 %v12919_v53 }
 0x47f   :  { %10436 = vmatmul.mubr.bf16.vlgmr.msra.gmra.mrb[24].mxu1 %v12919_v53  ;;  %10017 = vmatpush1.bf16.msra.mxu0 %v11440_v61  ;;  %v11458_v53 = vcombine.low %v2177_v14, %v2181_v15  ;;  %v2221_v61 = vld [vmem:[#allocation8 + $0x11f8] sm:$0xff]  ;;  %v11496_v15 = vcombine.low %v2216_v11, %v2220_v59 }
 0x480   :  { %10048 = vmatprep.mubr.bf16.mxu0 %v12935_v19  ;;  %10447 = vmatpush1.bf16.msra.mxu1 %v11442_v63  ;;  %v11497_v63 = vcombine.high %v2216_v11, %v2220_v59  ;;  %v2229_v14 = vld [vmem:[#allocation8 + $0x1238] sm:$0xff]  ;;  %v2268_v11 = vld [vmem:[#allocation8 + $0x1370] sm:$0xff] }
 0x481   :  { %10478 = vmatprep.mubr.bf16.mxu1 %v12935_v19  ;;  %10018 = vmatprep.subr.bf16.mxu0 %v11449_v1  ;;  %v11464_v19 = vcombine.low %v2184_v21, %v2188_v56  ;;  %v11499_v1 = vcombine.high %v2217_v52, %v2221_v61  ;;  %v2236_v21 = vld [vmem:[#allocation8 + $0x1270] sm:$0xff]  ;;  %v2233_v56 = vld [vmem:[#allocation8 + $0x1258] sm:$0xff] }
 0x482   :  { %10448 = vmatprep.subr.bf16.mxu1 %v11451_v9  ;;  %v2225_v9 = vld [vmem:[#allocation8 + $0x1218] sm:$0xff] }
 0x483   :  { %10019 = vmatpush1.bf16.msra.mxu0 %v11448_v16  ;;  %v11498_v16 = vcombine.low %v2217_v52, %v2221_v61  ;;  %v2265_v59 = vld [vmem:[#allocation8 + $0x1358] sm:$0xff] }
 0x484   :  { %10449 = vmatpush1.bf16.msra.mxu1 %v11450_v18  ;;  %10020 = vmatprep.subr.bf16.mxu0 %v11457_v7  ;;  %v11505_v18 = vcombine.high %v2224_v4, %v2228_v8  ;;  %v11507_v7 = vcombine.high %v2225_v9, %v2229_v14  ;;  %v2269_v52 = vld [vmem:[#allocation8 + $0x1378] sm:$0xff]  ;;  %v2276_v4 = vld [vmem:[#allocation8 + $0x13b0] sm:$0xff] }
 0x485   :  { %10450 = vmatprep.subr.bf16.mxu1 %v11459_v20  ;;  %v2232_v20 = vld [vmem:[#allocation8 + $0x1250] sm:$0xff]  ;;  %v2273_v8 = vld [vmem:[#allocation8 + $0x1398] sm:$0xff] }
 0x486   :  { %v11512_v27 = vcombine.low %v2232_v20, %v2236_v21 }
 0x487   :  { %10021 = vmatpush1.bf16.msra.mxu0 %v11456_v24  ;;  %v11506_v24 = vcombine.low %v2225_v9, %v2229_v14  ;;  %v2277_v9 = vld [vmem:[#allocation8 + $0x13b8] sm:$0xff] }
 0x488   :  { %10451 = vmatpush1.bf16.msra.mxu1 %v11458_v53  ;;  %10022 = vmatprep.subr.bf16.mxu0 %v11465_v25  ;;  %v11513_v53 = vcombine.high %v2232_v20, %v2236_v21  ;;  %v11515_v25 = vcombine.high %v2233_v56, %v2237_v22  ;;  %v2284_v20 = vld [vmem:[#allocation8 + $0x13f0] sm:$0xff]  ;;  %v2281_v21 = vld [vmem:[#allocation8 + $0x13d8] sm:$0xff] }
 0x489   :  { %10452 = vmatprep.subr.bf16.mxu1 %v11467_v28  ;;  %v2240_v28 = vld [vmem:[#allocation8 + $0x1290] sm:$0xff] }
 0x48a   :  { %v11520_v54 = vcombine.low %v2240_v28, %v2244_v30 }
 0x48b   :  { %10023 = vmatpush1.bf16.msra.mxu0 %v11464_v19  ;;  %v11514_v19 = vcombine.low %v2233_v56, %v2237_v22  ;;  %v2285_v56 = vld [vmem:[#allocation8 + $0x13f8] sm:$0xff] }
 0x48c   :  { %10453 = vmatpush1.bf16.msra.mxu1 %v11466_v34  ;;  %10024 = vmatprep.subr.bf16.mxu0 %v11473_v32  ;;  %v11521_v34 = vcombine.high %v2240_v28, %v2244_v30  ;;  %v11523_v32 = vcombine.high %v2241_v31, %v2245_v26  ;;  %v2292_v28 = vld [vmem:[#allocation8 + $0x1430] sm:$0xff]  ;;  %v2289_v30 = vld [vmem:[#allocation8 + $0x1418] sm:$0xff] }
 0x48d   :  { %10454 = vmatprep.subr.bf16.mxu1 %v11475_v37  ;;  %v2248_v37 = vld [vmem:[#allocation8 + $0x12d0] sm:$0xff] }
 0x48e   :  { %v11528_v57 = vcombine.low %v2248_v37, %v2252_v38 }
 0x48f   :  { %10025 = vmatpush1.bf16.msra.mxu0 %v11472_v44  ;;  %v11522_v44 = vcombine.low %v2241_v31, %v2245_v26  ;;  %v2293_v31 = vld [vmem:[#allocation8 + $0x1438] sm:$0xff] }
 0x490   :  { %10455 = vmatpush1.bf16.msra.mxu1 %v11474_v43  ;;  %10026 = vmatprep.subr.bf16.mxu0 %v11481_v45  ;;  %v11529_v43 = vcombine.high %v2248_v37, %v2252_v38  ;;  %v11531_v45 = vcombine.high %v2249_v41, %v2253_v55  ;;  %v2300_v37 = vld [vmem:[#allocation8 + $0x1470] sm:$0xff] }
 0x491   :  { %10456 = vmatprep.subr.bf16.mxu1 %v11483_v47  ;;  %v2256_v47 = vld [vmem:[#allocation8 + $0x1310] sm:$0xff] }
 0x492   :  { %v11536_v61 = vcombine.low %v2256_v47, %v2260_v50 }
 0x493   :  { %10027 = vmatpush1.bf16.msra.mxu0 %v11480_v51  ;;  %v11530_v51 = vcombine.low %v2249_v41, %v2253_v55  ;;  %v2297_v41 = vld [vmem:[#allocation8 + $0x1458] sm:$0xff] }
 0x494   :  { %10457 = vmatpush1.bf16.msra.mxu1 %v11482_v12  ;;  %10028 = vmatprep.subr.bf16.mxu0 %v11489_v58  ;;  %v11537_v12 = vcombine.high %v2256_v47, %v2260_v50  ;;  %v11539_v58 = vcombine.high %v2257_v48, %v2261_v49  ;;  %v2301_v55 = vld [vmem:[#allocation8 + $0x1478] sm:$0xff] }
 0x495   :  { %10458 = vmatprep.subr.bf16.mxu1 %v11491_v6  ;;  %v2264_v6 = vld [vmem:[#allocation8 + $0x1350] sm:$0xff]  ;;  %v11579_v47 = vcombine.high %v2297_v41, %v2301_v55  ;;  %v2305_v50 = vld [vmem:[#allocation8 + $0x1498] sm:$0xff] }
 0x496   :  { %v11544_v14 = vcombine.low %v2264_v6, %v2268_v11 }
 0x497   :  { %10029 = vmatpush1.bf16.msra.mxu0 %v11488_v62  ;;  %v11538_v62 = vcombine.low %v2257_v48, %v2261_v49  ;;  %v2309_v48 = vld [vmem:[#allocation8 + $0x14b8] sm:$0xff] }
 0x498   :  { %10459 = vmatpush1.bf16.msra.mxu1 %v11490_v60  ;;  %10030 = vmatprep.subr.bf16.mxu0 %v11497_v63  ;;  %v11545_v60 = vcombine.high %v2264_v6, %v2268_v11  ;;  %v11547_v63 = vcombine.high %v2265_v59, %v2269_v52  ;;  %v2316_v6 = vld [vmem:[#allocation8 + $0x14f0] sm:$0xff]  ;;  %v2313_v11 = vld [vmem:[#allocation8 + $0x14d8] sm:$0xff] }
 0x499   :  { %10460 = vmatprep.subr.bf16.mxu1 %v11499_v1  ;;  %v2272_v1 = vld [vmem:[#allocation8 + $0x1390] sm:$0xff] }
 0x49a   :  { %v11552_v22 = vcombine.low %v2272_v1, %v2276_v4 }
 0x49b   :  { %10031 = vmatpush1.bf16.msra.mxu0 %v11496_v15  ;;  %v11546_v15 = vcombine.low %v2265_v59, %v2269_v52  ;;  %v2317_v59 = vld [vmem:[#allocation8 + $0x14f8] sm:$0xff] }
 0x49c   :  { %10461 = vmatpush1.bf16.msra.mxu1 %v11498_v16  ;;  %10032 = vmatprep.subr.bf16.mxu0 %v11505_v18  ;;  %v11553_v16 = vcombine.high %v2272_v1, %v2276_v4  ;;  %v11555_v18 = vcombine.high %v2273_v8, %v2277_v9  ;;  %v2321_v1 = vld [vmem:[#allocation8 + $0x1518] sm:$0xff] }
 0x49d   :  { %10462 = vmatprep.subr.bf16.mxu1 %v11507_v7  ;;  %v2280_v7 = vld [vmem:[#allocation8 + $0x13d0] sm:$0xff]  ;;  %v2325_v4 = vld [vmem:[#allocation8 + $0x1538] sm:$0xff] }
 0x49e   :  { %v11560_v26 = vcombine.low %v2280_v7, %v2284_v20 }
 0x49f   :  { %10033 = vmatpush1.bf16.msra.mxu0 %v11504_v23  ;;  %v11554_v23 = vcombine.low %v2273_v8, %v2277_v9  ;;  %v11594_v8 = vcombine.low %v2313_v11, %v2317_v59 }
 0x4a0   :  { %10463 = vmatpush1.bf16.msra.mxu1 %v11506_v24  ;;  %10034 = vmatprep.subr.bf16.mxu0 %v11513_v53  ;;  %v11561_v24 = vcombine.high %v2280_v7, %v2284_v20  ;;  %v11563_v53 = vcombine.high %v2281_v21, %v2285_v56  ;;  %v2333_v7 = vld [vmem:[#allocation8 + $0x1578] sm:$0xff] }
 0x4a1   :  { %10464 = vmatprep.subr.bf16.mxu1 %v11515_v25  ;;  %v2288_v25 = vld [vmem:[#allocation8 + $0x1410] sm:$0xff] }
 0x4a2   :  { %v11568_v38 = vcombine.low %v2288_v25, %v2292_v28 }
 0x4a3   :  { %10035 = vmatpush1.bf16.msra.mxu0 %v11512_v27  ;;  %v11562_v27 = vcombine.low %v2281_v21, %v2285_v56  ;;  %v11602_v21 = vcombine.low %v2321_v1, %v2325_v4 }
 0x4a4   :  { %10465 = vmatpush1.bf16.msra.mxu1 %v11514_v19  ;;  %10036 = vmatprep.subr.bf16.mxu0 %v11521_v34  ;;  %v11569_v19 = vcombine.high %v2288_v25, %v2292_v28  ;;  %v11571_v34 = vcombine.high %v2289_v30, %v2293_v31  ;;  %v2341_v25 = vld [vmem:[#allocation8 + $0x15b8] sm:$0xff] }
 0x4a5   :  { %10466 = vmatprep.subr.bf16.mxu1 %v11523_v32  ;;  %v2296_v32 = vld [vmem:[#allocation8 + $0x1450] sm:$0xff] }
 0x4a6   :  { %v11576_v49 = vcombine.low %v2296_v32, %v2300_v37 }
 0x4a7   :  { %10037 = vmatpush1.bf16.msra.mxu0 %v11520_v54  ;;  %v11570_v54 = vcombine.low %v2289_v30, %v2293_v31 }
 0x4a8   :  { %10467 = vmatpush1.bf16.msra.mxu1 %v11522_v44  ;;  %10038 = vmatprep.subr.bf16.mxu0 %v11529_v43  ;;  %v11577_v44 = vcombine.high %v2296_v32, %v2300_v37  ;;  %v2304_v43 = vld [vmem:[#allocation8 + $0x1490] sm:$0xff]  ;;  %v2349_v32 = vld [vmem:[#allocation8 + $0x15f8] sm:$0xff] }
 0x4a9   :  { %10468 = vmatprep.subr.bf16.mxu1 %v11531_v45  ;;  %v2308_v45 = vld [vmem:[#allocation8 + $0x14b0] sm:$0xff] }
 0x4aa   :  { %v11584_v52 = vcombine.low %v2304_v43, %v2308_v45 }
 0x4ab   :  { %10039 = vmatpush1.bf16.msra.mxu0 %v11528_v57  ;;  %v11578_v57 = vcombine.low %v2297_v41, %v2301_v55 }
 0x4ac   :  { %10469 = vmatpush1.bf16.msra.mxu1 %v11530_v51  ;;  %10040 = vmatprep.subr.bf16.mxu0 %v11537_v12  ;;  %v11585_v51 = vcombine.high %v2304_v43, %v2308_v45  ;;  %v11587_v12 = vcombine.high %v2305_v50, %v2309_v48  ;;  %v2353_v43 = vld [vmem:[#allocation8 + $0x1618] sm:$0xff] }
 0x4ad   :  { %10470 = vmatprep.subr.bf16.mxu1 %v11539_v58  ;;  %v2312_v58 = vld [vmem:[#allocation8 + $0x14d0] sm:$0xff]  ;;  %v2357_v45 = vld [vmem:[#allocation8 + $0x1638] sm:$0xff] }
 0x4af   :  { %10041 = vmatpush1.bf16.msra.mxu0 %v11536_v61  ;;  %v11593_v61 = vcombine.high %v2312_v58, %v2316_v6 }
 0x4b0   :  { %10471 = vmatpush1.bf16.msra.mxu1 %v11538_v62  ;;  %10042 = vmatprep.subr.bf16.mxu0 %v11545_v60  ;;  %v11595_v62 = vcombine.high %v2313_v11, %v2317_v59  ;;  %v2320_v60 = vld [vmem:[#allocation8 + $0x1510] sm:$0xff]  ;;  %v11634_v11 = vcombine.low %v2353_v43, %v2357_v45 }
 0x4b1   :  { %10472 = vmatprep.subr.bf16.mxu1 %v11547_v63  ;;  %v2324_v63 = vld [vmem:[#allocation8 + $0x1530] sm:$0xff] }
 0x4b2   :  { %v11601_v9 = vcombine.high %v2320_v60, %v2324_v63  ;;  %v11600_v20 = vcombine.low %v2320_v60, %v2324_v63  ;;  %v2373_v60 = vld [vmem:[#allocation8 + $0x16b8] sm:$0xff] }
 0x4b3   :  { %10043 = vmatpush1.bf16.msra.mxu0 %v11544_v14  ;;  %v11603_v14 = vcombine.high %v2321_v1, %v2325_v4 }
 0x4b4   :  { %10473 = vmatpush1.bf16.msra.mxu1 %v11546_v15  ;;  %10044 = vmatprep.subr.bf16.mxu0 %v11553_v16  ;;  %v2328_v15 = vld [vmem:[#allocation8 + $0x1550] sm:$0xff] }
 0x4b5   :  { %10474 = vmatprep.subr.bf16.mxu1 %v11555_v18  ;;  %v2332_v16 = vld [vmem:[#allocation8 + $0x1570] sm:$0xff]  ;;  %v2329_v18 = vld [vmem:[#allocation8 + $0x1558] sm:$0xff] }
 0x4b6   :  { %v11609_v56 = vcombine.high %v2328_v15, %v2332_v16  ;;  %v11608_v28 = vcombine.low %v2328_v15, %v2332_v16  ;;  %v11610_v30 = vcombine.low %v2329_v18, %v2333_v7  ;;  %v2381_v15 = vld [vmem:[#allocation8 + $0x16f8] sm:$0xff] }
 0x4b7   :  { %10045 = vmatpush1.bf16.msra.mxu0 %v11552_v22  ;;  %v11611_v22 = vcombine.high %v2329_v18, %v2333_v7 }
 0x4b8   :  { %10475 = vmatpush1.bf16.msra.mxu1 %v11554_v23  ;;  %10046 = vmatprep.subr.bf16.mxu0 %v11561_v24  ;;  %v2336_v23 = vld [vmem:[#allocation8 + $0x1590] sm:$0xff] }
 0x4b9   :  { %10476 = vmatprep.subr.bf16.mxu1 %v11563_v53  ;;  %v2340_v24 = vld [vmem:[#allocation8 + $0x15b0] sm:$0xff]  ;;  %v2337_v53 = vld [vmem:[#allocation8 + $0x1598] sm:$0xff] }
 0x4ba   :  { %v11617_v31 = vcombine.high %v2336_v23, %v2340_v24  ;;  %v11616_v37 = vcombine.low %v2336_v23, %v2340_v24  ;;  %v2389_v23 = vld [vmem:[#allocation8 + $0x1738] sm:$0xff] }
 0x4bb   :  { %10047 = vmatpush1.bf16.msra.mxu0 %v11560_v26  ;;  %v11619_v26 = vcombine.high %v2337_v53, %v2341_v25 }
 0x4bc   :  { %10477 = vmatpush1.bf16.msra.mxu1 %v11562_v27  ;;  %10059 = vmatprep.subr.bf16.mxu0 %v11569_v19  ;;  %v2344_v27 = vld [vmem:[#allocation8 + $0x15d0] sm:$0xff] }
 0x4bd   :  { %10489 = vmatprep.subr.bf16.mxu1 %v11571_v34  ;;  %v2348_v19 = vld [vmem:[#allocation8 + $0x15f0] sm:$0xff]  ;;  %v2345_v34 = vld [vmem:[#allocation8 + $0x15d8] sm:$0xff] }
 0x4be   :  { %10049 = vmatmul.mubr.bf16.vlgmr.msra.gmra.mrb[24].mxu0 %v12933_v17  ;;  %v11625_v41 = vcombine.high %v2344_v27, %v2348_v19  ;;  %v11627_v55 = vcombine.high %v2345_v34, %v2349_v32 }
 0x4bf   :  { %10479 = vmatmul.mubr.bf16.vlgmr.msra.gmra.mrb[24].mxu1 %v12933_v17  ;;  %10060 = vmatpush1.bf16.msra.mxu0 %v11568_v38  ;;  %v11586_v17 = vcombine.low %v2305_v50, %v2309_v48  ;;  %v11618_v38 = vcombine.low %v2337_v53, %v2341_v25  ;;  %v11626_v50 = vcombine.low %v2345_v34, %v2349_v32 }
 0x4c0   :  { %10091 = vmatprep.mubr.bf16.mxu0 %v12943_v10  ;;  %10490 = vmatpush1.bf16.msra.mxu1 %v11570_v54  ;;  %v2352_v54 = vld [vmem:[#allocation8 + $0x1610] sm:$0xff] }
 0x4c1   :  { %10521 = vmatprep.mubr.bf16.mxu1 %v12943_v10  ;;  %10061 = vmatprep.subr.bf16.mxu0 %v11577_v44  ;;  %v11592_v10 = vcombine.low %v2312_v58, %v2316_v6  ;;  %v2356_v44 = vld [vmem:[#allocation8 + $0x1630] sm:$0xff]  ;;  %v2365_v58 = vld [vmem:[#allocation8 + $0x1678] sm:$0xff] }
 0x4c2   :  { %10491 = vmatprep.subr.bf16.mxu1 %v11579_v47  ;;  %v11624_v47 = vcombine.low %v2344_v27, %v2348_v19  ;;  %v11633_v48 = vcombine.high %v2352_v54, %v2356_v44  ;;  %v11632_v6 = vcombine.low %v2352_v54, %v2356_v44  ;;  %v2397_v27 = vld [vmem:[#allocation8 + $0x1778] sm:$0xff] }
 0x4c3   :  { %10062 = vmatpush1.bf16.msra.mxu0 %v11576_v49  ;;  %v11635_v49 = vcombine.high %v2353_v43, %v2357_v45  ;;  %v2405_v54 = vld [vmem:[#allocation8 + $0x17b8] sm:$0xff] }
 0x4c4   :  { %10492 = vmatpush1.bf16.msra.mxu1 %v11578_v57  ;;  %10063 = vmatprep.subr.bf16.mxu0 %v11585_v51  ;;  %v2360_v57 = vld [vmem:[#allocation8 + $0x1650] sm:$0xff] }
 0x4c5   :  { %10493 = vmatprep.subr.bf16.mxu1 %v11587_v12  ;;  %v2364_v51 = vld [vmem:[#allocation8 + $0x1670] sm:$0xff]  ;;  %v2361_v12 = vld [vmem:[#allocation8 + $0x1658] sm:$0xff] }
 0x4c6   :  { %v11641_v59 = vcombine.high %v2360_v57, %v2364_v51  ;;  %v11640_v63 = vcombine.low %v2360_v57, %v2364_v51  ;;  %v11642_v1 = vcombine.low %v2361_v12, %v2365_v58  ;;  %v2413_v57 = vld [vmem:[#allocation8 + $0x17f8] sm:$0xff] }
 0x4c7   :  { %10064 = vmatpush1.bf16.msra.mxu0 %v11584_v52  ;;  %v11643_v52 = vcombine.high %v2361_v12, %v2365_v58 }
 0x4c8   :  { %10494 = vmatpush1.bf16.msra.mxu1 %v11586_v17  ;;  %10065 = vmatprep.subr.bf16.mxu0 %v11593_v61  ;;  %v2368_v17 = vld [vmem:[#allocation8 + $0x1690] sm:$0xff] }
 0x4c9   :  { %10495 = vmatprep.subr.bf16.mxu1 %v11595_v62  ;;  %v2372_v61 = vld [vmem:[#allocation8 + $0x16b0] sm:$0xff]  ;;  %v2369_v62 = vld [vmem:[#allocation8 + $0x1698] sm:$0xff] }
 0x4ca   :  { %v11649_v4 = vcombine.high %v2368_v17, %v2372_v61  ;;  %v11648_v16 = vcombine.low %v2368_v17, %v2372_v61  ;;  %v11650_v18 = vcombine.low %v2369_v62, %v2373_v60  ;;  %v2421_v17 = vld [vmem:[#allocation8 + $0x1838] sm:$0xff] }
 0x4cb   :  { %10066 = vmatpush1.bf16.msra.mxu0 %v11592_v10  ;;  %v11651_v10 = vcombine.high %v2369_v62, %v2373_v60 }
 0x4cc   :  { %10496 = vmatpush1.bf16.msra.mxu1 %v11594_v8  ;;  %10067 = vmatprep.subr.bf16.mxu0 %v11601_v9  ;;  %v2376_v8 = vld [vmem:[#allocation8 + $0x16d0] sm:$0xff] }
 0x4cd   :  { %10497 = vmatprep.subr.bf16.mxu1 %v11603_v14  ;;  %v2380_v9 = vld [vmem:[#allocation8 + $0x16f0] sm:$0xff]  ;;  %v2377_v14 = vld [vmem:[#allocation8 + $0x16d8] sm:$0xff] }
 0x4ce   :  { %v11657_v7 = vcombine.high %v2376_v8, %v2380_v9  ;;  %v11656_v24 = vcombine.low %v2376_v8, %v2380_v9  ;;  %v11658_v53 = vcombine.low %v2377_v14, %v2381_v15  ;;  %v2425_v8 = vld [vmem:[#allocation8 + $0x1858] sm:$0xff] }
 0x4cf   :  { %10068 = vmatpush1.bf16.msra.mxu0 %v11600_v20  ;;  %v11659_v20 = vcombine.high %v2377_v14, %v2381_v15  ;;  %v2429_v9 = vld [vmem:[#allocation8 + $0x1878] sm:$0xff] }
 0x4d0   :  { %10498 = vmatpush1.bf16.msra.mxu1 %v11602_v21  ;;  %10069 = vmatprep.subr.bf16.mxu0 %v11609_v56  ;;  %v2384_v21 = vld [vmem:[#allocation8 + $0x1710] sm:$0xff] }
 0x4d1   :  { %10499 = vmatprep.subr.bf16.mxu1 %v11611_v22  ;;  %v2388_v56 = vld [vmem:[#allocation8 + $0x1730] sm:$0xff]  ;;  %v2385_v22 = vld [vmem:[#allocation8 + $0x1718] sm:$0xff] }
 0x4d2   :  { %v11665_v25 = vcombine.high %v2384_v21, %v2388_v56  ;;  %v11664_v19 = vcombine.low %v2384_v21, %v2388_v56  ;;  %v11666_v34 = vcombine.low %v2385_v22, %v2389_v23  ;;  %v2437_v21 = vld [vmem:[#allocation8 + $0x18b8] sm:$0xff] }
 0x4d3   :  { %10070 = vmatpush1.bf16.msra.mxu0 %v11608_v28  ;;  %v11667_v28 = vcombine.high %v2385_v22, %v2389_v23  ;;  %v11706_v22 = vcombine.low %v2425_v8, %v2429_v9 }
 0x4d4   :  { %10500 = vmatpush1.bf16.msra.mxu1 %v11610_v30  ;;  %10071 = vmatprep.subr.bf16.mxu0 %v11617_v31  ;;  %v2392_v30 = vld [vmem:[#allocation8 + $0x1750] sm:$0xff] }
 0x4d5   :  { %10501 = vmatprep.subr.bf16.mxu1 %v11619_v26  ;;  %v2396_v31 = vld [vmem:[#allocation8 + $0x1770] sm:$0xff]  ;;  %v2393_v26 = vld [vmem:[#allocation8 + $0x1758] sm:$0xff] }
 0x4d6   :  { %v11673_v32 = vcombine.high %v2392_v30, %v2396_v31  ;;  %v11672_v44 = vcombine.low %v2392_v30, %v2396_v31  ;;  %v11674_v43 = vcombine.low %v2393_v26, %v2397_v27  ;;  %v2445_v30 = vld [vmem:[#allocation8 + $0x18f8] sm:$0xff] }
 0x4d7   :  { %10072 = vmatpush1.bf16.msra.mxu0 %v11616_v37  ;;  %v11675_v37 = vcombine.high %v2393_v26, %v2397_v27 }
 0x4d8   :  { %10502 = vmatpush1.bf16.msra.mxu1 %v11618_v38  ;;  %10073 = vmatprep.subr.bf16.mxu0 %v11625_v41  ;;  %v2400_v38 = vld [vmem:[#allocation8 + $0x1790] sm:$0xff] }
 0x4d9   :  { %10503 = vmatprep.subr.bf16.mxu1 %v11627_v55  ;;  %v2404_v41 = vld [vmem:[#allocation8 + $0x17b0] sm:$0xff]  ;;  %v2401_v55 = vld [vmem:[#allocation8 + $0x1798] sm:$0xff] }
 0x4da   :  { %v11681_v45 = vcombine.high %v2400_v38, %v2404_v41  ;;  %v11680_v51 = vcombine.low %v2400_v38, %v2404_v41  ;;  %v11682_v12 = vcombine.low %v2401_v55, %v2405_v54 }
 0x4db   :  { %10074 = vmatpush1.bf16.msra.mxu0 %v11624_v47  ;;  %v11683_v47 = vcombine.high %v2401_v55, %v2405_v54  ;;  %v2456_v54 = vld [vmem:[#allocation8 + $0x1950] sm:$0xff] }
 0x4dc   :  { %10504 = vmatpush1.bf16.msra.mxu1 %v11626_v50  ;;  %10075 = vmatprep.subr.bf16.mxu0 %v11633_v48  ;;  %v2408_v50 = vld [vmem:[#allocation8 + $0x17d0] sm:$0xff] }
 0x4dd   :  { %10505 = vmatprep.subr.bf16.mxu1 %v11635_v49  ;;  %v2412_v48 = vld [vmem:[#allocation8 + $0x17f0] sm:$0xff]  ;;  %v2409_v49 = vld [vmem:[#allocation8 + $0x17d8] sm:$0xff] }
 0x4de   :  { %v11689_v58 = vcombine.high %v2408_v50, %v2412_v48  ;;  %v11688_v61 = vcombine.low %v2408_v50, %v2412_v48  ;;  %v11690_v62 = vcombine.low %v2409_v49, %v2413_v57 }
 0x4df   :  { %10076 = vmatpush1.bf16.msra.mxu0 %v11632_v6  ;;  %v11691_v6 = vcombine.high %v2409_v49, %v2413_v57  ;;  %v2464_v57 = vld [vmem:[#allocation8 + $0x1990] sm:$0xff] }
 0x4e0   :  { %10506 = vmatpush1.bf16.msra.mxu1 %v11634_v11  ;;  %10077 = vmatprep.subr.bf16.mxu0 %v11641_v59  ;;  %v2416_v11 = vld [vmem:[#allocation8 + $0x1810] sm:$0xff] }
 0x4e1   :  { %10507 = vmatprep.subr.bf16.mxu1 %v11643_v52  ;;  %v2420_v59 = vld [vmem:[#allocation8 + $0x1830] sm:$0xff]  ;;  %v2417_v52 = vld [vmem:[#allocation8 + $0x1818] sm:$0xff] }
 0x4e2   :  { %v11697_v60 = vcombine.high %v2416_v11, %v2420_v59  ;;  %v11698_v14 = vcombine.low %v2417_v52, %v2421_v17 }
 0x4e3   :  { %10078 = vmatpush1.bf16.msra.mxu0 %v11640_v63  ;;  %v11699_v63 = vcombine.high %v2417_v52, %v2421_v17  ;;  %v2472_v17 = vld [vmem:[#allocation8 + $0x19d0] sm:$0xff] }
 0x4e4   :  { %10508 = vmatpush1.bf16.msra.mxu1 %v11642_v1  ;;  %10079 = vmatprep.subr.bf16.mxu0 %v11649_v4  ;;  %v2424_v1 = vld [vmem:[#allocation8 + $0x1850] sm:$0xff] }
 0x4e5   :  { %10509 = vmatprep.subr.bf16.mxu1 %v11651_v10  ;;  %v2428_v4 = vld [vmem:[#allocation8 + $0x1870] sm:$0xff]  ;;  %v11696_v10 = vcombine.low %v2416_v11, %v2420_v59 }
 0x4e6   :  { %v11705_v15 = vcombine.high %v2424_v1, %v2428_v4  ;;  %v11704_v56 = vcombine.low %v2424_v1, %v2428_v4 }
 0x4e7   :  { %10080 = vmatpush1.bf16.msra.mxu0 %v11648_v16  ;;  %v2432_v16 = vld [vmem:[#allocation8 + $0x1890] sm:$0xff] }
 0x4e8   :  { %10510 = vmatpush1.bf16.msra.mxu1 %v11650_v18  ;;  %10081 = vmatprep.subr.bf16.mxu0 %v11657_v7  ;;  %v2436_v18 = vld [vmem:[#allocation8 + $0x18b0] sm:$0xff]  ;;  %v11707_v7 = vcombine.high %v2425_v8, %v2429_v9 }
 0x4e9   :  { %10511 = vmatprep.subr.bf16.mxu1 %v11659_v20  ;;  %v2433_v20 = vld [vmem:[#allocation8 + $0x1898] sm:$0xff]  ;;  %v11713_v23 = vcombine.high %v2432_v16, %v2436_v18  ;;  %v11712_v31 = vcombine.low %v2432_v16, %v2436_v18  ;;  %v2480_v8 = vld [vmem:[#allocation8 + $0x1a10] sm:$0xff] }
 0x4ea   :  { %v2484_v9 = vld [vmem:[#allocation8 + $0x1a30] sm:$0xff] }
 0x4eb   :  { %10082 = vmatpush1.bf16.msra.mxu0 %v11656_v24  ;;  %v11715_v24 = vcombine.high %v2433_v20, %v2437_v21 }
 0x4ec   :  { %10512 = vmatpush1.bf16.msra.mxu1 %v11658_v53  ;;  %10083 = vmatprep.subr.bf16.mxu0 %v11665_v25  ;;  %v2440_v53 = vld [vmem:[#allocation8 + $0x18d0] sm:$0xff] }
 0x4ed   :  { %10513 = vmatprep.subr.bf16.mxu1 %v11667_v28  ;;  %v2444_v25 = vld [vmem:[#allocation8 + $0x18f0] sm:$0xff]  ;;  %v2441_v28 = vld [vmem:[#allocation8 + $0x18d8] sm:$0xff] }
 0x4ee   :  { %v11721_v26 = vcombine.high %v2440_v53, %v2444_v25  ;;  %v11723_v27 = vcombine.high %v2441_v28, %v2445_v30  ;;  %v11722_v38 = vcombine.low %v2441_v28, %v2445_v30  ;;  %v2496_v30 = vld [vmem:[#allocation8 + $0x1a90] sm:$0xff] }
 0x4ef   :  { %10084 = vmatpush1.bf16.msra.mxu0 %v11664_v19  ;;  %v2448_v19 = vld [vmem:[#allocation8 + $0x1910] sm:$0xff] }
 0x4f0   :  { %10514 = vmatpush1.bf16.msra.mxu1 %v11666_v34  ;;  %10085 = vmatprep.subr.bf16.mxu0 %v11673_v32  ;;  %v2452_v34 = vld [vmem:[#allocation8 + $0x1930] sm:$0xff]  ;;  %v2449_v32 = vld [vmem:[#allocation8 + $0x1918] sm:$0xff] }
 0x4f1   :  { %10515 = vmatprep.subr.bf16.mxu1 %v11675_v37  ;;  %v2453_v37 = vld [vmem:[#allocation8 + $0x1938] sm:$0xff]  ;;  %v11729_v41 = vcombine.high %v2448_v19, %v2452_v34 }
 0x4f2   :  { %v11731_v55 = vcombine.high %v2449_v32, %v2453_v37  ;;  %v11730_v50 = vcombine.low %v2449_v32, %v2453_v37  ;;  %v2504_v37 = vld [vmem:[#allocation8 + $0x1ad0] sm:$0xff] }
 0x4f3   :  { %10086 = vmatpush1.bf16.msra.mxu0 %v11672_v44  ;;  %v2460_v44 = vld [vmem:[#allocation8 + $0x1970] sm:$0xff] }
 0x4f4   :  { %10516 = vmatpush1.bf16.msra.mxu1 %v11674_v43  ;;  %10087 = vmatprep.subr.bf16.mxu0 %v11681_v45  ;;  %v2457_v43 = vld [vmem:[#allocation8 + $0x1958] sm:$0xff]  ;;  %v11737_v48 = vcombine.high %v2456_v54, %v2460_v44 }
 0x4f5   :  { %10517 = vmatprep.subr.bf16.mxu1 %v11683_v47  ;;  %v2461_v45 = vld [vmem:[#allocation8 + $0x1978] sm:$0xff]  ;;  %v11728_v47 = vcombine.low %v2448_v19, %v2452_v34 }
 0x4f6   :  { %v11739_v49 = vcombine.high %v2457_v43, %v2461_v45  ;;  %v11738_v11 = vcombine.low %v2457_v43, %v2461_v45  ;;  %v2512_v45 = vld [vmem:[#allocation8 + $0x1b10] sm:$0xff] }
 0x4f7   :  { %10088 = vmatpush1.bf16.msra.mxu0 %v11680_v51  ;;  %v2468_v51 = vld [vmem:[#allocation8 + $0x19b0] sm:$0xff] }
 0x4f8   :  { %10518 = vmatpush1.bf16.msra.mxu1 %v11682_v12  ;;  %10089 = vmatprep.subr.bf16.mxu0 %v11689_v58  ;;  %v2465_v12 = vld [vmem:[#allocation8 + $0x1998] sm:$0xff]  ;;  %v11745_v59 = vcombine.high %v2464_v57, %v2468_v51 }
 0x4f9   :  { %10519 = vmatprep.subr.bf16.mxu1 %v11691_v6  ;;  %v2469_v58 = vld [vmem:[#allocation8 + $0x19b8] sm:$0xff]  ;;  %v11736_v6 = vcombine.low %v2456_v54, %v2460_v44 }
 0x4fa   :  { %v11747_v52 = vcombine.high %v2465_v12, %v2469_v58  ;;  %v11746_v1 = vcombine.low %v2465_v12, %v2469_v58  ;;  %v2520_v58 = vld [vmem:[#allocation8 + $0x1b50] sm:$0xff] }
 0x4fb   :  { %10090 = vmatpush1.bf16.msra.mxu0 %v11688_v61  ;;  %v2476_v61 = vld [vmem:[#allocation8 + $0x19f0] sm:$0xff] }
 0x4fc   :  { %10520 = vmatpush1.bf16.msra.mxu1 %v11690_v62  ;;  %10102 = vmatprep.subr.bf16.mxu0 %v11697_v60  ;;  %v2473_v62 = vld [vmem:[#allocation8 + $0x19d8] sm:$0xff]  ;;  %v11753_v4 = vcombine.high %v2472_v17, %v2476_v61  ;;  %v11752_v16 = vcombine.low %v2472_v17, %v2476_v61 }
 0x4fd   :  { %10532 = vmatprep.subr.bf16.mxu1 %v11699_v63  ;;  %v2477_v60 = vld [vmem:[#allocation8 + $0x19f8] sm:$0xff]  ;;  %v11744_v63 = vcombine.low %v2464_v57, %v2468_v51 }
 0x4fe   :  { %10092 = vmatmul.mubr.bf16.vlgmr.msra.gmra.mrb[24].mxu0 %v12941_v3  ;;  %v11754_v18 = vcombine.low %v2473_v62, %v2477_v60 }
 0x4ff   :  { %10522 = vmatmul.mubr.bf16.vlgmr.msra.gmra.mrb[24].mxu1 %v12941_v3  ;;  %10103 = vmatpush1.bf16.msra.mxu0 %v11696_v10  ;;  %v11714_v3 = vcombine.low %v2433_v20, %v2437_v21  ;;  %v11755_v10 = vcombine.high %v2473_v62, %v2477_v60  ;;  %v2488_v21 = vld [vmem:[#allocation8 + $0x1a50] sm:$0xff] }
 0x500   :  { %10134 = vmatprep.mubr.bf16.mxu0 %v12955_v39  ;;  %10533 = vmatpush1.bf16.msra.mxu1 %v11698_v14  ;;  %v2481_v14 = vld [vmem:[#allocation8 + $0x1a18] sm:$0xff]  ;;  %v2528_v60 = vld [vmem:[#allocation8 + $0x1b90] sm:$0xff] }
 0x501   :  { %10564 = vmatprep.mubr.bf16.mxu1 %v12955_v39  ;;  %10104 = vmatprep.subr.bf16.mxu0 %v11705_v15  ;;  %v11720_v39 = vcombine.low %v2440_v53, %v2444_v25  ;;  %v2485_v15 = vld [vmem:[#allocation8 + $0x1a38] sm:$0xff] }
 0x502   :  { %10534 = vmatprep.subr.bf16.mxu1 %v11707_v7  ;;  %v11761_v7 = vcombine.high %v2480_v8, %v2484_v9  ;;  %v11763_v20 = vcombine.high %v2481_v14, %v2485_v15  ;;  %v11762_v53 = vcombine.low %v2481_v14, %v2485_v15  ;;  %v2536_v15 = vld [vmem:[#allocation8 + $0x1bd0] sm:$0xff] }
 0x503   :  { %10105 = vmatpush1.bf16.msra.mxu0 %v11704_v56  ;;  %v2492_v56 = vld [vmem:[#allocation8 + $0x1a70] sm:$0xff] }
 0x504   :  { %10535 = vmatpush1.bf16.msra.mxu1 %v11706_v22  ;;  %10106 = vmatprep.subr.bf16.mxu0 %v11713_v23  ;;  %v2489_v22 = vld [vmem:[#allocation8 + $0x1a58] sm:$0xff]  ;;  %v11769_v25 = vcombine.high %v2488_v21, %v2492_v56 }
 0x505   :  { %10536 = vmatprep.subr.bf16.mxu1 %v11715_v24  ;;  %v2493_v23 = vld [vmem:[#allocation8 + $0x1a78] sm:$0xff]  ;;  %v11760_v24 = vcombine.low %v2480_v8, %v2484_v9 }
 0x506   :  { %v11771_v28 = vcombine.high %v2489_v22, %v2493_v23  ;;  %v11770_v19 = vcombine.low %v2489_v22, %v2493_v23  ;;  %v2544_v23 = vld [vmem:[#allocation8 + $0x1c10] sm:$0xff] }
 0x507   :  { %10107 = vmatpush1.bf16.msra.mxu0 %v11712_v31  ;;  %v2500_v31 = vld [vmem:[#allocation8 + $0x1ab0] sm:$0xff] }
 0x508   :  { %10537 = vmatpush1.bf16.msra.mxu1 %v11714_v3  ;;  %10108 = vmatprep.subr.bf16.mxu0 %v11721_v26  ;;  %v2497_v3 = vld [vmem:[#allocation8 + $0x1a98] sm:$0xff]  ;;  %v11777_v34 = vcombine.high %v2496_v30, %v2500_v31 }
 0x509   :  { %10538 = vmatprep.subr.bf16.mxu1 %v11723_v27  ;;  %v2501_v26 = vld [vmem:[#allocation8 + $0x1ab8] sm:$0xff]  ;;  %v11768_v27 = vcombine.low %v2488_v21, %v2492_v56 }
 0x50a   :  { %v11779_v32 = vcombine.high %v2497_v3, %v2501_v26  ;;  %v11778_v54 = vcombine.low %v2497_v3, %v2501_v26  ;;  %v2552_v26 = vld [vmem:[#allocation8 + $0x1c50] sm:$0xff] }
 0x50b   :  { %10109 = vmatpush1.bf16.msra.mxu0 %v11720_v39  ;;  %v2508_v39 = vld [vmem:[#allocation8 + $0x1af0] sm:$0xff] }
 0x50c   :  { %10539 = vmatpush1.bf16.msra.mxu1 %v11722_v38  ;;  %10110 = vmatprep.subr.bf16.mxu0 %v11729_v41  ;;  %v2505_v38 = vld [vmem:[#allocation8 + $0x1ad8] sm:$0xff]  ;;  %v11785_v44 = vcombine.high %v2504_v37, %v2508_v39 }
 0x50d   :  { %10540 = vmatprep.subr.bf16.mxu1 %v11731_v55  ;;  %v2509_v41 = vld [vmem:[#allocation8 + $0x1af8] sm:$0xff]  ;;  %v11776_v55 = vcombine.low %v2496_v30, %v2500_v31 }
 0x50e   :  { %v11787_v43 = vcombine.high %v2505_v38, %v2509_v41  ;;  %v11786_v57 = vcombine.low %v2505_v38, %v2509_v41  ;;  %v2560_v38 = vld [vmem:[#allocation8 + $0x1c90] sm:$0xff] }
 0x50f   :  { %10111 = vmatpush1.bf16.msra.mxu0 %v11728_v47  ;;  %v2516_v47 = vld [vmem:[#allocation8 + $0x1b30] sm:$0xff] }
 0x510   :  { %10541 = vmatpush1.bf16.msra.mxu1 %v11730_v50  ;;  %10112 = vmatprep.subr.bf16.mxu0 %v11737_v48  ;;  %v2513_v50 = vld [vmem:[#allocation8 + $0x1b18] sm:$0xff]  ;;  %v11793_v51 = vcombine.high %v2512_v45, %v2516_v47  ;;  %v2564_v41 = vld [vmem:[#allocation8 + $0x1cb0] sm:$0xff] }
 0x511   :  { %10542 = vmatprep.subr.bf16.mxu1 %v11739_v49  ;;  %v2517_v48 = vld [vmem:[#allocation8 + $0x1b38] sm:$0xff]  ;;  %v11784_v49 = vcombine.low %v2504_v37, %v2508_v39 }
 0x512   :  { %v11795_v12 = vcombine.high %v2513_v50, %v2517_v48  ;;  %v11794_v17 = vcombine.low %v2513_v50, %v2517_v48  ;;  %v2568_v48 = vld [vmem:[#allocation8 + $0x1cd0] sm:$0xff] }
 0x513   :  { %10113 = vmatpush1.bf16.msra.mxu0 %v11736_v6  ;;  %v2524_v6 = vld [vmem:[#allocation8 + $0x1b70] sm:$0xff] }
 0x514   :  { %10543 = vmatpush1.bf16.msra.mxu1 %v11738_v11  ;;  %10114 = vmatprep.subr.bf16.mxu0 %v11745_v59  ;;  %v2521_v11 = vld [vmem:[#allocation8 + $0x1b58] sm:$0xff]  ;;  %v11801_v61 = vcombine.high %v2520_v58, %v2524_v6 }
 0x515   :  { %10544 = vmatprep.subr.bf16.mxu1 %v11747_v52  ;;  %v2525_v59 = vld [vmem:[#allocation8 + $0x1b78] sm:$0xff]  ;;  %v11792_v52 = vcombine.low %v2512_v45, %v2516_v47  ;;  %v11841_v47 = vcombine.high %v2560_v38, %v2564_v41 }
 0x516   :  { %v11803_v62 = vcombine.high %v2521_v11, %v2525_v59  ;;  %v11802_v8 = vcombine.low %v2521_v11, %v2525_v59  ;;  %v2576_v11 = vld [vmem:[#allocation8 + $0x1d10] sm:$0xff] }
 0x517   :  { %10115 = vmatpush1.bf16.msra.mxu0 %v11744_v63  ;;  %v2532_v63 = vld [vmem:[#allocation8 + $0x1bb0] sm:$0xff] }
 0x518   :  { %10545 = vmatpush1.bf16.msra.mxu1 %v11746_v1  ;;  %10116 = vmatprep.subr.bf16.mxu0 %v11753_v4  ;;  %v2529_v1 = vld [vmem:[#allocation8 + $0x1b98] sm:$0xff]  ;;  %v11809_v9 = vcombine.high %v2528_v60, %v2532_v63  ;;  %v2580_v59 = vld [vmem:[#allocation8 + $0x1d30] sm:$0xff] }
 0x519   :  { %10546 = vmatprep.subr.bf16.mxu1 %v11755_v10  ;;  %v2533_v4 = vld [vmem:[#allocation8 + $0x1bb8] sm:$0xff]  ;;  %v11800_v10 = vcombine.low %v2520_v58, %v2524_v6 }
 0x51a   :  { %v11811_v14 = vcombine.high %v2529_v1, %v2533_v4  ;;  %v11810_v21 = vcombine.low %v2529_v1, %v2533_v4  ;;  %v2588_v1 = vld [vmem:[#allocation8 + $0x1d70] sm:$0xff]  ;;  %v2585_v4 = vld [vmem:[#allocation8 + $0x1d58] sm:$0xff] }
 0x51b   :  { %10117 = vmatpush1.bf16.msra.mxu0 %v11752_v16  ;;  %v2540_v16 = vld [vmem:[#allocation8 + $0x1bf0] sm:$0xff] }
 0x51c   :  { %10547 = vmatpush1.bf16.msra.mxu1 %v11754_v18  ;;  %10118 = vmatprep.subr.bf16.mxu0 %v11761_v7  ;;  %v2537_v18 = vld [vmem:[#allocation8 + $0x1bd8] sm:$0xff]  ;;  %v11817_v56 = vcombine.high %v2536_v15, %v2540_v16 }
 0x51d   :  { %10548 = vmatprep.subr.bf16.mxu1 %v11763_v20  ;;  %v2541_v7 = vld [vmem:[#allocation8 + $0x1bf8] sm:$0xff]  ;;  %v11808_v20 = vcombine.low %v2528_v60, %v2532_v63  ;;  %v2584_v63 = vld [vmem:[#allocation8 + $0x1d50] sm:$0xff] }
 0x51e   :  { %v11819_v22 = vcombine.high %v2537_v18, %v2541_v7  ;;  %v11818_v30 = vcombine.low %v2537_v18, %v2541_v7  ;;  %v2596_v18 = vld [vmem:[#allocation8 + $0x1db0] sm:$0xff]  ;;  %v2593_v7 = vld [vmem:[#allocation8 + $0x1d98] sm:$0xff] }
 0x51f   :  { %10119 = vmatpush1.bf16.msra.mxu0 %v11760_v24  ;;  %v2548_v24 = vld [vmem:[#allocation8 + $0x1c30] sm:$0xff] }
 0x520   :  { %10549 = vmatpush1.bf16.msra.mxu1 %v11762_v53  ;;  %10120 = vmatprep.subr.bf16.mxu0 %v11769_v25  ;;  %v2545_v53 = vld [vmem:[#allocation8 + $0x1c18] sm:$0xff]  ;;  %v11825_v31 = vcombine.high %v2544_v23, %v2548_v24 }
 0x521   :  { %10550 = vmatprep.subr.bf16.mxu1 %v11771_v28  ;;  %v2549_v25 = vld [vmem:[#allocation8 + $0x1c38] sm:$0xff]  ;;  %v11816_v28 = vcombine.low %v2536_v15, %v2540_v16  ;;  %v2592_v16 = vld [vmem:[#allocation8 + $0x1d90] sm:$0xff] }
 0x522   :  { %v11827_v3 = vcombine.high %v2545_v53, %v2549_v25  ;;  %v11826_v37 = vcombine.low %v2545_v53, %v2549_v25  ;;  %v2604_v53 = vld [vmem:[#allocation8 + $0x1df0] sm:$0xff]  ;;  %v2601_v25 = vld [vmem:[#allocation8 + $0x1dd8] sm:$0xff] }
 0x523   :  { %10121 = vmatpush1.bf16.msra.mxu0 %v11768_v27  ;;  %v2556_v27 = vld [vmem:[#allocation8 + $0x1c70] sm:$0xff] }
 0x524   :  { %10551 = vmatpush1.bf16.msra.mxu1 %v11770_v19  ;;  %10122 = vmatprep.subr.bf16.mxu0 %v11777_v34  ;;  %v11824_v19 = vcombine.low %v2544_v23, %v2548_v24  ;;  %v2553_v34 = vld [vmem:[#allocation8 + $0x1c58] sm:$0xff]  ;;  %v11833_v39 = vcombine.high %v2552_v26, %v2556_v27  ;;  %v2600_v24 = vld [vmem:[#allocation8 + $0x1dd0] sm:$0xff] }
 0x525   :  { %10552 = vmatprep.subr.bf16.mxu1 %v11779_v32  ;;  %v2557_v32 = vld [vmem:[#allocation8 + $0x1c78] sm:$0xff] }
 0x526   :  { %v11834_v45 = vcombine.low %v2553_v34, %v2557_v32 }
 0x527   :  { %10123 = vmatpush1.bf16.msra.mxu0 %v11776_v55  ;;  %v11835_v55 = vcombine.high %v2553_v34, %v2557_v32  ;;  %v2609_v34 = vld [vmem:[#allocation8 + $0x1e18] sm:$0xff] }
 0x528   :  { %10553 = vmatpush1.bf16.msra.mxu1 %v11778_v54  ;;  %10124 = vmatprep.subr.bf16.mxu0 %v11785_v44  ;;  %v2561_v54 = vld [vmem:[#allocation8 + $0x1c98] sm:$0xff] }
 0x529   :  { %10554 = vmatprep.subr.bf16.mxu1 %v11787_v43  ;;  %v2565_v44 = vld [vmem:[#allocation8 + $0x1cb8] sm:$0xff]  ;;  %v11832_v43 = vcombine.low %v2552_v26, %v2556_v27  ;;  %v2608_v27 = vld [vmem:[#allocation8 + $0x1e10] sm:$0xff] }
 0x52a   :  { %v11843_v50 = vcombine.high %v2561_v54, %v2565_v44  ;;  %v2613_v32 = vld [vmem:[#allocation8 + $0x1e38] sm:$0xff] }
 0x52b   :  { %10125 = vmatpush1.bf16.msra.mxu0 %v11784_v49  ;;  %v2572_v49 = vld [vmem:[#allocation8 + $0x1cf0] sm:$0xff] }
 0x52c   :  { %10555 = vmatpush1.bf16.msra.mxu1 %v11786_v57  ;;  %10126 = vmatprep.subr.bf16.mxu0 %v11793_v51  ;;  %v2569_v57 = vld [vmem:[#allocation8 + $0x1cd8] sm:$0xff]  ;;  %v11849_v58 = vcombine.high %v2568_v48, %v2572_v49 }
 0x52d   :  { %10556 = vmatprep.subr.bf16.mxu1 %v11795_v12  ;;  %v2573_v51 = vld [vmem:[#allocation8 + $0x1cf8] sm:$0xff]  ;;  %v11840_v12 = vcombine.low %v2560_v38, %v2564_v41  ;;  %v11891_v41 = vcombine.high %v2609_v34, %v2613_v32 }
 0x52e   :  { %v11851_v6 = vcombine.high %v2569_v57, %v2573_v51 }
 0x52f   :  { %10127 = vmatpush1.bf16.msra.mxu0 %v11792_v52  ;;  %v2577_v52 = vld [vmem:[#allocation8 + $0x1d18] sm:$0xff] }
 0x530   :  { %10557 = vmatpush1.bf16.msra.mxu1 %v11794_v17  ;;  %10128 = vmatprep.subr.bf16.mxu0 %v11801_v61  ;;  %v2581_v17 = vld [vmem:[#allocation8 + $0x1d38] sm:$0xff]  ;;  %v11850_v61 = vcombine.low %v2569_v57, %v2573_v51  ;;  %v2628_v57 = vld [vmem:[#allocation8 + $0x1eb0] sm:$0xff] }
 0x531   :  { %10558 = vmatprep.subr.bf16.mxu1 %v11803_v62  ;;  %v11857_v62 = vcombine.high %v2576_v11, %v2580_v59  ;;  %v11859_v60 = vcombine.high %v2577_v52, %v2581_v17  ;;  %v2625_v51 = vld [vmem:[#allocation8 + $0x1e98] sm:$0xff] }
 0x533   :  { %10129 = vmatpush1.bf16.msra.mxu0 %v11800_v10  ;;  %v2589_v10 = vld [vmem:[#allocation8 + $0x1d78] sm:$0xff] }
 0x534   :  { %10559 = vmatpush1.bf16.msra.mxu1 %v11802_v8  ;;  %10130 = vmatprep.subr.bf16.mxu0 %v11809_v9  ;;  %v11856_v8 = vcombine.low %v2576_v11, %v2580_v59  ;;  %v11858_v9 = vcombine.low %v2577_v52, %v2581_v17  ;;  %v11867_v15 = vcombine.high %v2585_v4, %v2589_v10  ;;  %v2632_v59 = vld [vmem:[#allocation8 + $0x1ed0] sm:$0xff]  ;;  %v2633_v17 = vld [vmem:[#allocation8 + $0x1ed8] sm:$0xff] }
 0x535   :  { %10560 = vmatprep.subr.bf16.mxu1 %v11811_v14  ;;  %v11865_v14 = vcombine.high %v2584_v63, %v2588_v1  ;;  %v2636_v52 = vld [vmem:[#allocation8 + $0x1ef0] sm:$0xff] }
 0x537   :  { %10131 = vmatpush1.bf16.msra.mxu0 %v11808_v20  ;;  %v2597_v20 = vld [vmem:[#allocation8 + $0x1db8] sm:$0xff] }
 0x538   :  { %10561 = vmatpush1.bf16.msra.mxu1 %v11810_v21  ;;  %10132 = vmatprep.subr.bf16.mxu0 %v11817_v56  ;;  %v11864_v21 = vcombine.low %v2584_v63, %v2588_v1  ;;  %v11866_v56 = vcombine.low %v2585_v4, %v2589_v10  ;;  %v11875_v23 = vcombine.high %v2593_v7, %v2597_v20  ;;  %v2640_v1 = vld [vmem:[#allocation8 + $0x1f10] sm:$0xff]  ;;  %v2641_v10 = vld [vmem:[#allocation8 + $0x1f18] sm:$0xff] }
 0x539   :  { %10562 = vmatprep.subr.bf16.mxu1 %v11819_v22  ;;  %v11873_v22 = vcombine.high %v2592_v16, %v2596_v18  ;;  %v2644_v4 = vld [vmem:[#allocation8 + $0x1f30] sm:$0xff] }
 0x53b   :  { %10133 = vmatpush1.bf16.msra.mxu0 %v11816_v28  ;;  %v2605_v28 = vld [vmem:[#allocation8 + $0x1df8] sm:$0xff] }
 0x53c   :  { %10563 = vmatpush1.bf16.msra.mxu1 %v11818_v30  ;;  %10145 = vmatprep.subr.bf16.mxu0 %v11825_v31  ;;  %v11872_v30 = vcombine.low %v2592_v16, %v2596_v18  ;;  %v11874_v31 = vcombine.low %v2593_v7, %v2597_v20  ;;  %v11883_v26 = vcombine.high %v2601_v25, %v2605_v28  ;;  %v2648_v18 = vld [vmem:[#allocation8 + $0x1f50] sm:$0xff]  ;;  %v2649_v20 = vld [vmem:[#allocation8 + $0x1f58] sm:$0xff] }
 0x53d   :  { %10575 = vmatprep.subr.bf16.mxu1 %v11827_v3  ;;  %v11881_v3 = vcombine.high %v2600_v24, %v2604_v53  ;;  %v2652_v7 = vld [vmem:[#allocation8 + $0x1f70] sm:$0xff] }
 0x53e   :  { %10135 = vmatmul.mubr.bf16.vlgmr.msra.gmra.mrb[24].mxu0 %v12953_v35 }
 0x53f   :  { %10565 = vmatmul.mubr.bf16.vlgmr.msra.gmra.mrb[24].mxu1 %v12953_v35  ;;  %10146 = vmatpush1.bf16.msra.mxu0 %v11824_v19  ;;  %v11842_v35 = vcombine.low %v2561_v54, %v2565_v44  ;;  %v2612_v19 = vld [vmem:[#allocation8 + $0x1e30] sm:$0xff]  ;;  %v2617_v44 = vld [vmem:[#allocation8 + $0x1e58] sm:$0xff] }
 0x540   :  { %10177 = vmatprep.mubr.bf16.mxu0 %v12959_v33  ;;  %10576 = vmatpush1.bf16.msra.mxu1 %v11826_v37  ;;  %v11880_v37 = vcombine.low %v2600_v24, %v2604_v53  ;;  %v11889_v38 = vcombine.high %v2608_v27, %v2612_v19  ;;  %v2620_v54 = vld [vmem:[#allocation8 + $0x1e70] sm:$0xff] }
 0x541   :  { %10607 = vmatprep.mubr.bf16.mxu1 %v12959_v33  ;;  %10147 = vmatprep.subr.bf16.mxu0 %v11833_v39  ;;  %v11848_v33 = vcombine.low %v2568_v48, %v2572_v49  ;;  %v11882_v39 = vcombine.low %v2601_v25, %v2605_v28  ;;  %v2624_v49 = vld [vmem:[#allocation8 + $0x1e90] sm:$0xff]  ;;  %v2657_v28 = vld [vmem:[#allocation8 + $0x1f98] sm:$0xff] }
 0x542   :  { %10577 = vmatprep.subr.bf16.mxu1 %v11835_v55  ;;  %v2616_v55 = vld [vmem:[#allocation8 + $0x1e50] sm:$0xff] }
 0x543   :  { %10148 = vmatpush1.bf16.msra.mxu0 %v11832_v43  ;;  %v2621_v43 = vld [vmem:[#allocation8 + $0x1e78] sm:$0xff]  ;;  %v2656_v53 = vld [vmem:[#allocation8 + $0x1f90] sm:$0xff] }
 0x544   :  { %10578 = vmatpush1.bf16.msra.mxu1 %v11834_v45  ;;  %10149 = vmatprep.subr.bf16.mxu0 %v11841_v47  ;;  %v11888_v45 = vcombine.low %v2608_v27, %v2612_v19  ;;  %v11890_v47 = vcombine.low %v2609_v34, %v2613_v32  ;;  %v11899_v48 = vcombine.high %v2617_v44, %v2621_v43  ;;  %v2660_v25 = vld [vmem:[#allocation8 + $0x1fb0] sm:$0xff]  ;;  %v2665_v32 = vld [vmem:[#allocation8 + $0x1fd8] sm:$0xff] }
 0x545   :  { %10579 = vmatprep.subr.bf16.mxu1 %v11843_v50  ;;  %v11897_v50 = vcombine.high %v2616_v55, %v2620_v54  ;;  %v2664_v19 = vld [vmem:[#allocation8 + $0x1fd0] sm:$0xff] }
 0x546   :  { %v2668_v34 = vld [vmem:[#allocation8 + $0x1ff0] sm:$0xff] }
 0x547   :  { %10150 = vmatpush1.bf16.msra.mxu0 %v11840_v12  ;;  %v2629_v12 = vld [vmem:[#allocation8 + $0x1eb8] sm:$0xff] }
 0x548   :  { %10580 = vmatpush1.bf16.msra.mxu1 %v11842_v35  ;;  %10151 = vmatprep.subr.bf16.mxu0 %v11849_v58  ;;  %v11896_v35 = vcombine.low %v2616_v55, %v2620_v54  ;;  %v11898_v58 = vcombine.low %v2617_v44, %v2621_v43  ;;  %v11907_v11 = vcombine.high %v2625_v51, %v2629_v12  ;;  %v2672_v54 = vld [vmem:[#allocation8 + $0x2010] sm:$0xff]  ;;  %v2673_v43 = vld [vmem:[#allocation8 + $0x2018] sm:$0xff] }
 0x549   :  { %10581 = vmatprep.subr.bf16.mxu1 %v11851_v6  ;;  %v11905_v6 = vcombine.high %v2624_v49, %v2628_v57  ;;  %v2676_v44 = vld [vmem:[#allocation8 + $0x2030] sm:$0xff] }
 0x54b   :  { %10152 = vmatpush1.bf16.msra.mxu0 %v11848_v33  ;;  %v2637_v33 = vld [vmem:[#allocation8 + $0x1ef8] sm:$0xff] }
 0x54c   :  { %10582 = vmatpush1.bf16.msra.mxu1 %v11850_v61  ;;  %10153 = vmatprep.subr.bf16.mxu0 %v11857_v62  ;;  %v11904_v61 = vcombine.low %v2624_v49, %v2628_v57  ;;  %v11906_v62 = vcombine.low %v2625_v51, %v2629_v12  ;;  %v11915_v63 = vcombine.high %v2633_v17, %v2637_v33  ;;  %v2680_v57 = vld [vmem:[#allocation8 + $0x2050] sm:$0xff] }
 0x54d   :  { %10583 = vmatprep.subr.bf16.mxu1 %v11859_v60  ;;  %v11913_v60 = vcombine.high %v2632_v59, %v2636_v52  ;;  %v2684_v51 = vld [vmem:[#allocation8 + $0x2070] sm:$0xff]  ;;  %v11952_v12 = vcombine.low %v2672_v54, %v2676_v44 }
 0x54f   :  { %10154 = vmatpush1.bf16.msra.mxu0 %v11856_v8  ;;  %v2645_v8 = vld [vmem:[#allocation8 + $0x1f38] sm:$0xff] }
 0x550   :  { %10584 = vmatpush1.bf16.msra.mxu1 %v11858_v9  ;;  %10155 = vmatprep.subr.bf16.mxu0 %v11865_v14  ;;  %v11912_v9 = vcombine.low %v2632_v59, %v2636_v52  ;;  %v11914_v14 = vcombine.low %v2633_v17, %v2637_v33  ;;  %v11923_v16 = vcombine.high %v2641_v10, %v2645_v8  ;;  %v2688_v59 = vld [vmem:[#allocation8 + $0x2090] sm:$0xff]  ;;  %v2689_v33 = vld [vmem:[#allocation8 + $0x2098] sm:$0xff] }
 0x551   :  { %10585 = vmatprep.subr.bf16.mxu1 %v11867_v15  ;;  %v11921_v15 = vcombine.high %v2640_v1, %v2644_v4  ;;  %v2692_v52 = vld [vmem:[#allocation8 + $0x20b0] sm:$0xff] }
 0x553   :  { %10156 = vmatpush1.bf16.msra.mxu0 %v11864_v21  ;;  %v2653_v21 = vld [vmem:[#allocation8 + $0x1f78] sm:$0xff] }
 0x554   :  { %10586 = vmatpush1.bf16.msra.mxu1 %v11866_v56  ;;  %10157 = vmatprep.subr.bf16.mxu0 %v11873_v22  ;;  %v11920_v56 = vcombine.low %v2640_v1, %v2644_v4  ;;  %v11922_v22 = vcombine.low %v2641_v10, %v2645_v8  ;;  %v11931_v24 = vcombine.high %v2649_v20, %v2653_v21  ;;  %v2696_v4 = vld [vmem:[#allocation8 + $0x20d0] sm:$0xff]  ;;  %v2697_v8 = vld [vmem:[#allocation8 + $0x20d8] sm:$0xff] }
 0x555   :  { %10587 = vmatprep.subr.bf16.mxu1 %v11875_v23  ;;  %v11929_v23 = vcombine.high %v2648_v18, %v2652_v7  ;;  %v2700_v10 = vld [vmem:[#allocation8 + $0x20f0] sm:$0xff] }
 0x557   :  { %10158 = vmatpush1.bf16.msra.mxu0 %v11872_v30  ;;  %v2661_v30 = vld [vmem:[#allocation8 + $0x1fb8] sm:$0xff] }
 0x558   :  { %10588 = vmatpush1.bf16.msra.mxu1 %v11874_v31  ;;  %10159 = vmatprep.subr.bf16.mxu0 %v11881_v3  ;;  %v11928_v31 = vcombine.low %v2648_v18, %v2652_v7  ;;  %v11930_v3 = vcombine.low %v2649_v20, %v2653_v21  ;;  %v11939_v27 = vcombine.high %v2657_v28, %v2661_v30  ;;  %v2704_v18 = vld [vmem:[#allocation8 + $0x2110] sm:$0xff]  ;;  %v2705_v20 = vld [vmem:[#allocation8 + $0x2118] sm:$0xff] }
 0x559   :  { %10589 = vmatprep.subr.bf16.mxu1 %v11883_v26  ;;  %v11937_v26 = vcombine.high %v2656_v53, %v2660_v25  ;;  %v2708_v7 = vld [vmem:[#allocation8 + $0x2130] sm:$0xff]  ;;  %v2709_v21 = vld [vmem:[#allocation8 + $0x2138] sm:$0xff] }
 0x55b   :  { %10160 = vmatpush1.bf16.msra.mxu0 %v11880_v37  ;;  %v2669_v37 = vld [vmem:[#allocation8 + $0x1ff8] sm:$0xff] }
 0x55c   :  { %10590 = vmatpush1.bf16.msra.mxu1 %v11882_v39  ;;  %10161 = vmatprep.subr.bf16.mxu0 %v11889_v38  ;;  %v11936_v39 = vcombine.low %v2656_v53, %v2660_v25  ;;  %v11938_v38 = vcombine.low %v2657_v28, %v2661_v30  ;;  %v11947_v55 = vcombine.high %v2665_v32, %v2669_v37  ;;  %v2716_v53 = vld [vmem:[#allocation8 + $0x2170] sm:$0xff]  ;;  %v2713_v25 = vld [vmem:[#allocation8 + $0x2158] sm:$0xff] }
 0x55d   :  { %10591 = vmatprep.subr.bf16.mxu1 %v11891_v41  ;;  %v11945_v41 = vcombine.high %v2664_v19, %v2668_v34  ;;  %v2717_v28 = vld [vmem:[#allocation8 + $0x2178] sm:$0xff]  ;;  %v11984_v30 = vcombine.low %v2704_v18, %v2708_v7 }
 0x55f   :  { %10162 = vmatpush1.bf16.msra.mxu0 %v11888_v45  ;;  %v2677_v45 = vld [vmem:[#allocation8 + $0x2038] sm:$0xff] }
 0x560   :  { %10592 = vmatpush1.bf16.msra.mxu1 %v11890_v47  ;;  %10163 = vmatprep.subr.bf16.mxu0 %v11897_v50  ;;  %v11944_v47 = vcombine.low %v2664_v19, %v2668_v34  ;;  %v11946_v50 = vcombine.low %v2665_v32, %v2669_v37  ;;  %v11955_v49 = vcombine.high %v2673_v43, %v2677_v45  ;;  %v2724_v19 = vld [vmem:[#allocation8 + $0x21b0] sm:$0xff]  ;;  %v2721_v34 = vld [vmem:[#allocation8 + $0x2198] sm:$0xff] }
 0x561   :  { %10593 = vmatprep.subr.bf16.mxu1 %v11899_v48  ;;  %v11953_v48 = vcombine.high %v2672_v54, %v2676_v44  ;;  %v2725_v32 = vld [vmem:[#allocation8 + $0x21b8] sm:$0xff]  ;;  %v2732_v54 = vld [vmem:[#allocation8 + $0x21f0] sm:$0xff] }
 0x562   :  { %v2729_v44 = vld [vmem:[#allocation8 + $0x21d8] sm:$0xff] }
 0x563   :  { %10164 = vmatpush1.bf16.msra.mxu0 %v11896_v35  ;;  %v2681_v35 = vld [vmem:[#allocation8 + $0x2058] sm:$0xff] }
 0x564   :  { %10594 = vmatpush1.bf16.msra.mxu1 %v11898_v58  ;;  %10165 = vmatprep.subr.bf16.mxu0 %v11905_v6  ;;  %v2685_v58 = vld [vmem:[#allocation8 + $0x2078] sm:$0xff]  ;;  %v11954_v6 = vcombine.low %v2673_v43, %v2677_v45 }
 0x565   :  { %10595 = vmatprep.subr.bf16.mxu1 %v11907_v11  ;;  %v11961_v11 = vcombine.high %v2680_v57, %v2684_v51  ;;  %v11963_v17 = vcombine.high %v2681_v35, %v2685_v58  ;;  %v2733_v43 = vld [vmem:[#allocation8 + $0x21f8] sm:$0xff] }
 0x567   :  { %10166 = vmatpush1.bf16.msra.mxu0 %v11904_v61  ;;  %v2693_v61 = vld [vmem:[#allocation8 + $0x20b8] sm:$0xff] }
 0x568   :  { %10596 = vmatpush1.bf16.msra.mxu1 %v11906_v62  ;;  %10167 = vmatprep.subr.bf16.mxu0 %v11913_v60  ;;  %v11960_v62 = vcombine.low %v2680_v57, %v2684_v51  ;;  %v11962_v60 = vcombine.low %v2681_v35, %v2685_v58  ;;  %v11971_v1 = vcombine.high %v2689_v33, %v2693_v61  ;;  %v2740_v57 = vld [vmem:[#allocation8 + $0x2230] sm:$0xff]  ;;  %v2737_v51 = vld [vmem:[#allocation8 + $0x2218] sm:$0xff] }
 0x569   :  { %10597 = vmatprep.subr.bf16.mxu1 %v11915_v63  ;;  %v11969_v63 = vcombine.high %v2688_v59, %v2692_v52  ;;  %v12010_v58 = vcombine.low %v2729_v44, %v2733_v43 }
 0x56b   :  { %10168 = vmatpush1.bf16.msra.mxu0 %v11912_v9  ;;  %v2701_v9 = vld [vmem:[#allocation8 + $0x20f8] sm:$0xff] }
 0x56c   :  { %10598 = vmatpush1.bf16.msra.mxu1 %v11914_v14  ;;  %10169 = vmatprep.subr.bf16.mxu0 %v11921_v15  ;;  %v11968_v14 = vcombine.low %v2688_v59, %v2692_v52  ;;  %v11977_v15 = vcombine.high %v2696_v4, %v2700_v10  ;;  %v2744_v59 = vld [vmem:[#allocation8 + $0x2250] sm:$0xff] }
 0x56d   :  { %10599 = vmatprep.subr.bf16.mxu1 %v11923_v16  ;;  %v11979_v16 = vcombine.high %v2697_v8, %v2701_v9  ;;  %v2748_v52 = vld [vmem:[#allocation8 + $0x2270] sm:$0xff] }
 0x56f   :  { %10170 = vmatpush1.bf16.msra.mxu0 %v11920_v56  ;;  %v11978_v56 = vcombine.low %v2697_v8, %v2701_v9  ;;  %v2757_v8 = vld [vmem:[#allocation8 + $0x22b8] sm:$0xff]  ;;  %v12024_v9 = vcombine.low %v2744_v59, %v2748_v52 }
 0x570   :  { %10600 = vmatpush1.bf16.msra.mxu1 %v11922_v22  ;;  %10171 = vmatprep.subr.bf16.mxu0 %v11929_v23  ;;  %v11985_v22 = vcombine.high %v2704_v18, %v2708_v7  ;;  %v11987_v23 = vcombine.high %v2705_v20, %v2709_v21  ;;  %v2764_v18 = vld [vmem:[#allocation8 + $0x22f0] sm:$0xff]  ;;  %v2761_v7 = vld [vmem:[#allocation8 + $0x22d8] sm:$0xff] }
 0x571   :  { %10601 = vmatprep.subr.bf16.mxu1 %v11931_v24  ;;  %v2712_v24 = vld [vmem:[#allocation8 + $0x2150] sm:$0xff] }
 0x572   :  { %v11992_v37 = vcombine.low %v2712_v24, %v2716_v53 }
 0x573   :  { %10172 = vmatpush1.bf16.msra.mxu0 %v11928_v31  ;;  %v11986_v31 = vcombine.low %v2705_v20, %v2709_v21  ;;  %v2765_v20 = vld [vmem:[#allocation8 + $0x22f8] sm:$0xff] }
 0x574   :  { %10602 = vmatpush1.bf16.msra.mxu1 %v11930_v3  ;;  %10173 = vmatprep.subr.bf16.mxu0 %v11937_v26  ;;  %v11993_v3 = vcombine.high %v2712_v24, %v2716_v53  ;;  %v11995_v26 = vcombine.high %v2713_v25, %v2717_v28  ;;  %v2772_v24 = vld [vmem:[#allocation8 + $0x2330] sm:$0xff]  ;;  %v2769_v53 = vld [vmem:[#allocation8 + $0x2318] sm:$0xff] }
 0x575   :  { %10603 = vmatprep.subr.bf16.mxu1 %v11939_v27  ;;  %v2720_v27 = vld [vmem:[#allocation8 + $0x2190] sm:$0xff] }
 0x576   :  { %v12000_v45 = vcombine.low %v2720_v27, %v2724_v19 }
 0x577   :  { %10174 = vmatpush1.bf16.msra.mxu0 %v11936_v39  ;;  %v11994_v39 = vcombine.low %v2713_v25, %v2717_v28  ;;  %v2773_v25 = vld [vmem:[#allocation8 + $0x2338] sm:$0xff] }
 0x578   :  { %10604 = vmatpush1.bf16.msra.mxu1 %v11938_v38  ;;  %10175 = vmatprep.subr.bf16.mxu0 %v11945_v41  ;;  %v12001_v38 = vcombine.high %v2720_v27, %v2724_v19  ;;  %v12003_v41 = vcombine.high %v2721_v34, %v2725_v32  ;;  %v2780_v27 = vld [vmem:[#allocation8 + $0x2370] sm:$0xff]  ;;  %v2777_v19 = vld [vmem:[#allocation8 + $0x2358] sm:$0xff] }
 0x579   :  { %10605 = vmatprep.subr.bf16.mxu1 %v11947_v55  ;;  %v2728_v55 = vld [vmem:[#allocation8 + $0x21d0] sm:$0xff] }
 0x57a   :  { %v12008_v35 = vcombine.low %v2728_v55, %v2732_v54 }
 0x57b   :  { %10176 = vmatpush1.bf16.msra.mxu0 %v11944_v47  ;;  %v12002_v47 = vcombine.low %v2721_v34, %v2725_v32  ;;  %v2781_v34 = vld [vmem:[#allocation8 + $0x2378] sm:$0xff] }
 0x57c   :  { %10606 = vmatpush1.bf16.msra.mxu1 %v11946_v50  ;;  %10188 = vmatprep.subr.bf16.mxu0 %v11953_v48  ;;  %v12009_v50 = vcombine.high %v2728_v55, %v2732_v54  ;;  %v12011_v48 = vcombine.high %v2729_v44, %v2733_v43  ;;  %v2788_v55 = vld [vmem:[#allocation8 + $0x23b0] sm:$0xff]  ;;  %v2785_v54 = vld [vmem:[#allocation8 + $0x2398] sm:$0xff] }
 0x57d   :  { %10618 = vmatprep.subr.bf16.mxu1 %v11955_v49  ;;  %v2736_v49 = vld [vmem:[#allocation8 + $0x2210] sm:$0xff]  ;;  %v2789_v44 = vld [vmem:[#allocation8 + $0x23b8] sm:$0xff] }
 0x57e   :  { %10178 = vmatmul.mubr.bf16.vlgmr.msra.gmra.mrb[24].mxu0 %v12957_v29 }
 0x57f   :  { %10608 = vmatmul.mubr.bf16.vlgmr.msra.gmra.mrb[24].mxu1 %v12957_v29  ;;  %10189 = vmatpush1.bf16.msra.mxu0 %v11952_v12  ;;  %v11970_v29 = vcombine.low %v2689_v33, %v2693_v61  ;;  %v2741_v12 = vld [vmem:[#allocation8 + $0x2238] sm:$0xff]  ;;  %v12016_v61 = vcombine.low %v2736_v49, %v2740_v57 }
 0x580   :  { %10220 = vmatprep.mubr.bf16.mxu0 %v12966_v42  ;;  %10619 = vmatpush1.bf16.msra.mxu1 %v11954_v6  ;;  %v12017_v6 = vcombine.high %v2736_v49, %v2740_v57  ;;  %v2749_v33 = vld [vmem:[#allocation8 + $0x2278] sm:$0xff]  ;;  %v2796_v49 = vld [vmem:[#allocation8 + $0x23f0] sm:$0xff] }
 0x581   :  { %10650 = vmatprep.mubr.bf16.mxu1 %v12966_v42  ;;  %10190 = vmatprep.subr.bf16.mxu0 %v11961_v11  ;;  %v11976_v42 = vcombine.low %v2696_v4, %v2700_v10  ;;  %v12019_v11 = vcombine.high %v2737_v51, %v2741_v12  ;;  %v2756_v4 = vld [vmem:[#allocation8 + $0x22b0] sm:$0xff]  ;;  %v2753_v10 = vld [vmem:[#allocation8 + $0x2298] sm:$0xff] }
 0x582   :  { %10620 = vmatprep.subr.bf16.mxu1 %v11963_v17  ;;  %v2745_v17 = vld [vmem:[#allocation8 + $0x2258] sm:$0xff] }
 0x583   :  { %10191 = vmatpush1.bf16.msra.mxu0 %v11960_v62  ;;  %v12018_v62 = vcombine.low %v2737_v51, %v2741_v12  ;;  %v2793_v57 = vld [vmem:[#allocation8 + $0x23d8] sm:$0xff] }
 0x584   :  { %10621 = vmatpush1.bf16.msra.mxu1 %v11962_v60  ;;  %10192 = vmatprep.subr.bf16.mxu0 %v11969_v63  ;;  %v12025_v60 = vcombine.high %v2744_v59, %v2748_v52  ;;  %v12027_v63 = vcombine.high %v2745_v17, %v2749_v33  ;;  %v2797_v51 = vld [vmem:[#allocation8 + $0x23f8] sm:$0xff]  ;;  %v2804_v59 = vld [vmem:[#allocation8 + $0x2430] sm:$0xff] }
 0x585   :  { %10622 = vmatprep.subr.bf16.mxu1 %v11971_v1  ;;  %v2752_v1 = vld [vmem:[#allocation8 + $0x2290] sm:$0xff]  ;;  %v2801_v52 = vld [vmem:[#allocation8 + $0x2418] sm:$0xff] }
 0x586   :  { %v12032_v21 = vcombine.low %v2752_v1, %v2756_v4 }
 0x587   :  { %10193 = vmatpush1.bf16.msra.mxu0 %v11968_v14  ;;  %v12026_v14 = vcombine.low %v2745_v17, %v2749_v33  ;;  %v2805_v17 = vld [vmem:[#allocation8 + $0x2438] sm:$0xff] }
 0x588   :  { %10623 = vmatpush1.bf16.msra.mxu1 %v11970_v29  ;;  %10194 = vmatprep.subr.bf16.mxu0 %v11977_v15  ;;  %v12033_v29 = vcombine.high %v2752_v1, %v2756_v4  ;;  %v12035_v15 = vcombine.high %v2753_v10, %v2757_v8  ;;  %v2812_v1 = vld [vmem:[#allocation8 + $0x2470] sm:$0xff]  ;;  %v2809_v4 = vld [vmem:[#allocation8 + $0x2458] sm:$0xff] }
 0x589   :  { %10624 = vmatprep.subr.bf16.mxu1 %v11979_v16  ;;  %v2760_v16 = vld [vmem:[#allocation8 + $0x22d0] sm:$0xff] }
 0x58a   :  { %v12040_v28 = vcombine.low %v2760_v16, %v2764_v18 }
 0x58b   :  { %10195 = vmatpush1.bf16.msra.mxu0 %v11976_v42  ;;  %v12034_v42 = vcombine.low %v2753_v10, %v2757_v8  ;;  %v2813_v10 = vld [vmem:[#allocation8 + $0x2478] sm:$0xff] }
 0x58c   :  { %10625 = vmatpush1.bf16.msra.mxu1 %v11978_v56  ;;  %10196 = vmatprep.subr.bf16.mxu0 %v11985_v22  ;;  %v12041_v56 = vcombine.high %v2760_v16, %v2764_v18  ;;  %v12043_v22 = vcombine.high %v2761_v7, %v2765_v20  ;;  %v2820_v16 = vld [vmem:[#allocation8 + $0x24b0] sm:$0xff]  ;;  %v2817_v18 = vld [vmem:[#allocation8 + $0x2498] sm:$0xff] }
 0x58d   :  { %10626 = vmatprep.subr.bf16.mxu1 %v11987_v23  ;;  %v2768_v23 = vld [vmem:[#allocation8 + $0x2310] sm:$0xff] }
 0x58e   :  { %v12048_v32 = vcombine.low %v2768_v23, %v2772_v24 }
 0x58f   :  { %10197 = vmatpush1.bf16.msra.mxu0 %v11984_v30  ;;  %v12042_v30 = vcombine.low %v2761_v7, %v2765_v20  ;;  %v2821_v7 = vld [vmem:[#allocation8 + $0x24b8] sm:$0xff] }
 0x590   :  { %10627 = vmatpush1.bf16.msra.mxu1 %v11986_v31  ;;  %10198 = vmatprep.subr.bf16.mxu0 %v11993_v3  ;;  %v12049_v31 = vcombine.high %v2768_v23, %v2772_v24  ;;  %v12051_v3 = vcombine.high %v2769_v53, %v2773_v25  ;;  %v2828_v23 = vld [vmem:[#allocation8 + $0x24f0] sm:$0xff]  ;;  %v2825_v24 = vld [vmem:[#allocation8 + $0x24d8] sm:$0xff] }
 0x591   :  { %10628 = vmatprep.subr.bf16.mxu1 %v11995_v26  ;;  %v2776_v26 = vld [vmem:[#allocation8 + $0x2350] sm:$0xff] }
 0x592   :  { %v12056_v43 = vcombine.low %v2776_v26, %v2780_v27 }
 0x593   :  { %10199 = vmatpush1.bf16.msra.mxu0 %v11992_v37  ;;  %v12050_v37 = vcombine.low %v2769_v53, %v2773_v25  ;;  %v2829_v53 = vld [vmem:[#allocation8 + $0x24f8] sm:$0xff] }
 0x594   :  { %10629 = vmatpush1.bf16.msra.mxu1 %v11994_v39  ;;  %10200 = vmatprep.subr.bf16.mxu0 %v12001_v38  ;;  %v12057_v39 = vcombine.high %v2776_v26, %v2780_v27  ;;  %v12059_v38 = vcombine.high %v2777_v19, %v2781_v34  ;;  %v2833_v26 = vld [vmem:[#allocation8 + $0x2518] sm:$0xff] }
 0x595   :  { %10630 = vmatprep.subr.bf16.mxu1 %v12003_v41  ;;  %v2784_v41 = vld [vmem:[#allocation8 + $0x2390] sm:$0xff]  ;;  %v2837_v27 = vld [vmem:[#allocation8 + $0x2538] sm:$0xff] }
 0x596   :  { %v12064_v12 = vcombine.low %v2784_v41, %v2788_v55 }
 0x597   :  { %10201 = vmatpush1.bf16.msra.mxu0 %v12000_v45  ;;  %v12058_v45 = vcombine.low %v2777_v19, %v2781_v34  ;;  %v12106_v34 = vcombine.low %v2825_v24, %v2829_v53 }
 0x598   :  { %10631 = vmatpush1.bf16.msra.mxu1 %v12002_v47  ;;  %10202 = vmatprep.subr.bf16.mxu0 %v12009_v50  ;;  %v12065_v47 = vcombine.high %v2784_v41, %v2788_v55  ;;  %v12067_v50 = vcombine.high %v2785_v54, %v2789_v44  ;;  %v2845_v41 = vld [vmem:[#allocation8 + $0x2578] sm:$0xff] }
 0x599   :  { %10632 = vmatprep.subr.bf16.mxu1 %v12011_v48  ;;  %v2792_v48 = vld [vmem:[#allocation8 + $0x23d0] sm:$0xff] }
 0x59a   :  { %v12072_v33 = vcombine.low %v2792_v48, %v2796_v49 }
 0x59b   :  { %10203 = vmatpush1.bf16.msra.mxu0 %v12008_v35  ;;  %v12066_v35 = vcombine.low %v2785_v54, %v2789_v44  ;;  %v12114_v54 = vcombine.low %v2833_v26, %v2837_v27 }
 0x59c   :  { %10633 = vmatpush1.bf16.msra.mxu1 %v12010_v58  ;;  %10204 = vmatprep.subr.bf16.mxu0 %v12017_v6  ;;  %v12073_v58 = vcombine.high %v2792_v48, %v2796_v49  ;;  %v12075_v6 = vcombine.high %v2793_v57, %v2797_v51  ;;  %v2853_v48 = vld [vmem:[#allocation8 + $0x25b8] sm:$0xff] }
 0x59d   :  { %10634 = vmatprep.subr.bf16.mxu1 %v12019_v11  ;;  %v2800_v11 = vld [vmem:[#allocation8 + $0x2410] sm:$0xff] }
 0x59e   :  { %v12080_v8 = vcombine.low %v2800_v11, %v2804_v59 }
 0x59f   :  { %10205 = vmatpush1.bf16.msra.mxu0 %v12016_v61  ;;  %v12074_v61 = vcombine.low %v2793_v57, %v2797_v51 }
 0x5a0   :  { %10635 = vmatpush1.bf16.msra.mxu1 %v12018_v62  ;;  %10206 = vmatprep.subr.bf16.mxu0 %v12025_v60  ;;  %v12081_v62 = vcombine.high %v2800_v11, %v2804_v59  ;;  %v12083_v60 = vcombine.high %v2801_v52, %v2805_v17  ;;  %v2861_v11 = vld [vmem:[#allocation8 + $0x25f8] sm:$0xff] }
 0x5a1   :  { %10636 = vmatprep.subr.bf16.mxu1 %v12027_v63  ;;  %v2808_v63 = vld [vmem:[#allocation8 + $0x2450] sm:$0xff] }
 0x5a2   :  { %v12088_v20 = vcombine.low %v2808_v63, %v2812_v1 }
 0x5a3   :  { %10207 = vmatpush1.bf16.msra.mxu0 %v12024_v9  ;;  %v12082_v9 = vcombine.low %v2801_v52, %v2805_v17 }
 0x5a4   :  { %10637 = vmatpush1.bf16.msra.mxu1 %v12026_v14  ;;  %10208 = vmatprep.subr.bf16.mxu0 %v12033_v29  ;;  %v12089_v14 = vcombine.high %v2808_v63, %v2812_v1  ;;  %v12091_v29 = vcombine.high %v2809_v4, %v2813_v10 }
 0x5a5   :  { %10638 = vmatprep.subr.bf16.mxu1 %v12035_v15  ;;  %v2816_v15 = vld [vmem:[#allocation8 + $0x2490] sm:$0xff] }
 0x5a6   :  { %v12096_v25 = vcombine.low %v2816_v15, %v2820_v16 }
 0x5a7   :  { %10209 = vmatpush1.bf16.msra.mxu0 %v12032_v21  ;;  %v12090_v21 = vcombine.low %v2809_v4, %v2813_v10 }
 0x5a8   :  { %10639 = vmatpush1.bf16.msra.mxu1 %v12034_v42  ;;  %10210 = vmatprep.subr.bf16.mxu0 %v12041_v56  ;;  %v12097_v42 = vcombine.high %v2816_v15, %v2820_v16  ;;  %v12099_v56 = vcombine.high %v2817_v18, %v2821_v7 }
 0x5a9   :  { %10640 = vmatprep.subr.bf16.mxu1 %v12043_v22  ;;  %v2824_v22 = vld [vmem:[#allocation8 + $0x24d0] sm:$0xff] }
 0x5aa   :  { %v12104_v19 = vcombine.low %v2824_v22, %v2828_v23 }
 0x5ab   :  { %10211 = vmatpush1.bf16.msra.mxu0 %v12040_v28  ;;  %v12105_v28 = vcombine.high %v2824_v22, %v2828_v23 }
 0x5ac   :  { %10641 = vmatpush1.bf16.msra.mxu1 %v12042_v30  ;;  %10212 = vmatprep.subr.bf16.mxu0 %v12049_v31  ;;  %v12107_v30 = vcombine.high %v2825_v24, %v2829_v53  ;;  %v2832_v31 = vld [vmem:[#allocation8 + $0x2510] sm:$0xff] }
 0x5ad   :  { %10642 = vmatprep.subr.bf16.mxu1 %v12051_v3  ;;  %v2836_v3 = vld [vmem:[#allocation8 + $0x2530] sm:$0xff] }
 0x5ae   :  { %v12112_v55 = vcombine.low %v2832_v31, %v2836_v3 }
 0x5af   :  { %10213 = vmatpush1.bf16.msra.mxu0 %v12048_v32  ;;  %v12113_v32 = vcombine.high %v2832_v31, %v2836_v3 }
 0x5b0   :  { %10643 = vmatpush1.bf16.msra.mxu1 %v12050_v37  ;;  %10214 = vmatprep.subr.bf16.mxu0 %v12057_v39  ;;  %v2840_v37 = vld [vmem:[#allocation8 + $0x2550] sm:$0xff] }
 0x5b1   :  { %10644 = vmatprep.subr.bf16.mxu1 %v12059_v38  ;;  %v2844_v39 = vld [vmem:[#allocation8 + $0x2570] sm:$0xff]  ;;  %v2841_v38 = vld [vmem:[#allocation8 + $0x2558] sm:$0xff] }
 0x5b2   :  { %v12121_v44 = vcombine.high %v2840_v37, %v2844_v39  ;;  %v12120_v49 = vcombine.low %v2840_v37, %v2844_v39  ;;  %v12122_v57 = vcombine.low %v2841_v38, %v2845_v41 }
 0x5b3   :  { %10215 = vmatpush1.bf16.msra.mxu0 %v12056_v43  ;;  %v12123_v43 = vcombine.high %v2841_v38, %v2845_v41 }
 0x5b4   :  { %10645 = vmatpush1.bf16.msra.mxu1 %v12058_v45  ;;  %10216 = vmatprep.subr.bf16.mxu0 %v12065_v47  ;;  %v2848_v45 = vld [vmem:[#allocation8 + $0x2590] sm:$0xff] }
 0x5b5   :  { %10646 = vmatprep.subr.bf16.mxu1 %v12067_v50  ;;  %v2852_v47 = vld [vmem:[#allocation8 + $0x25b0] sm:$0xff]  ;;  %v2849_v50 = vld [vmem:[#allocation8 + $0x2598] sm:$0xff] }
 0x5b6   :  { %v12129_v51 = vcombine.high %v2848_v45, %v2852_v47  ;;  %v12128_v59 = vcombine.low %v2848_v45, %v2852_v47  ;;  %v12130_v52 = vcombine.low %v2849_v50, %v2853_v48 }
 0x5b7   :  { %10217 = vmatpush1.bf16.msra.mxu0 %v12064_v12  ;;  %v12131_v12 = vcombine.high %v2849_v50, %v2853_v48 }
 0x5b8   :  { %10647 = vmatpush1.bf16.msra.mxu1 %v12066_v35  ;;  %10218 = vmatprep.subr.bf16.mxu0 %v12073_v58  ;;  %v2856_v35 = vld [vmem:[#allocation8 + $0x25d0] sm:$0xff] }
 0x5b9   :  { %10648 = vmatprep.subr.bf16.mxu1 %v12075_v6  ;;  %v2860_v58 = vld [vmem:[#allocation8 + $0x25f0] sm:$0xff]  ;;  %v2857_v6 = vld [vmem:[#allocation8 + $0x25d8] sm:$0xff] }
 0x5ba   :  { %v12137_v17 = vcombine.high %v2856_v35, %v2860_v58 }
 0x5bb   :  { %10219 = vmatpush1.bf16.msra.mxu0 %v12072_v33  ;;  %v12139_v33 = vcombine.high %v2857_v6, %v2861_v11 }
 0x5bc   :  { %10649 = vmatpush1.bf16.msra.mxu1 %v12074_v61  ;;  %10231 = vmatprep.subr.bf16.mxu0 %v12081_v62  ;;  %v12136_v61 = vcombine.low %v2856_v35, %v2860_v58  ;;  %v12138_v62 = vcombine.low %v2857_v6, %v2861_v11 }
 0x5bd   :  { %10661 = vmatprep.subr.bf16.mxu1 %v12083_v60  ;;  %v12570_v60 = vld [vmem:[#allocation10] sm:$0xff] }
 0x5be   :  { %10221 = vmatmul.mubr.bf16.vlgmr.msra.gmra.mrb[24].mxu0 %v12964_v13  ;;  %v2883_v63 = vrot.slane %v12570_v60, %v12896_v2  ;;  %v2891_v1 = vrot.slane %v12570_v60, %v12906_v36  ;;  %v2887_v4 = vrot.slane %v12570_v60, %v12899_v5  ;;  %v2895_v10 = vrot.slane %v12570_v60, %v12909_v46 }
 0x5bf   :  { %10651 = vmatmul.mubr.bf16.vlgmr.msra.gmra.mrb[24].mxu1 %v12964_v13  ;;  %10232 = vmatpush1.bf16.msra.mxu0 %v12080_v8  ;;  %v12098_v13 = vcombine.low %v2817_v18, %v2821_v7 }
 0x5c0   :  { %10662 = vmatpush1.bf16.msra.mxu1 %v12082_v9  ;;  %10233 = vmatprep.subr.bf16.mxu0 %v12089_v14 }
 0x5c1   :  { %10663 = vmatprep.subr.bf16.mxu1 %v12091_v29  ;;  %10263 = vmatprep.mubr.bf16.mxu0 %v12722_v0 }
 0x5c2   :  { %10693 = vmatprep.mubr.bf16.mxu1 %v12722_v0  ;;  %v12115_v0 = vcombine.high %v2833_v26, %v2837_v27 }
 0x5c3   :  { %10234 = vmatpush1.bf16.msra.mxu0 %v12088_v20 }
 0x5c4   :  { %10664 = vmatpush1.bf16.msra.mxu1 %v12090_v21  ;;  %10235 = vmatprep.subr.bf16.mxu0 %v12097_v42 }
 0x5c5   :  { %10665 = vmatprep.subr.bf16.mxu1 %v12099_v56 }
 0x5c7   :  { %10236 = vmatpush1.bf16.msra.mxu0 %v12096_v25 }
 0x5c8   :  { %10666 = vmatpush1.bf16.msra.mxu1 %v12098_v13  ;;  %10237 = vmatprep.subr.bf16.mxu0 %v12105_v28 }
 0x5c9   :  { %10667 = vmatprep.subr.bf16.mxu1 %v12107_v30 }
 0x5cb   :  { %10238 = vmatpush1.bf16.msra.mxu0 %v12104_v19 }
 0x5cc   :  { %10668 = vmatpush1.bf16.msra.mxu1 %v12106_v34  ;;  %10239 = vmatprep.subr.bf16.mxu0 %v12113_v32 }
 0x5cd   :  { %10669 = vmatprep.subr.bf16.mxu1 %v12115_v0 }
 0x5cf   :  { %10240 = vmatpush1.bf16.msra.mxu0 %v12112_v55 }
 0x5d0   :  { %10670 = vmatpush1.bf16.msra.mxu1 %v12114_v54  ;;  %10241 = vmatprep.subr.bf16.mxu0 %v12121_v44 }
 0x5d1   :  { %10671 = vmatprep.subr.bf16.mxu1 %v12123_v43 }
 0x5d3   :  { %10242 = vmatpush1.bf16.msra.mxu0 %v12120_v49 }
 0x5d4   :  { %10672 = vmatpush1.bf16.msra.mxu1 %v12122_v57  ;;  %10243 = vmatprep.subr.bf16.mxu0 %v12129_v51 }
 0x5d5   :  { %10673 = vmatprep.subr.bf16.mxu1 %v12131_v12 }
 0x5d7   :  { %10244 = vmatpush1.bf16.msra.mxu0 %v12128_v59 }
 0x5d8   :  { %10674 = vmatpush1.bf16.msra.mxu1 %v12130_v52  ;;  %10245 = vmatprep.subr.bf16.mxu0 %v12137_v17 }
 0x5d9   :  { %10675 = vmatprep.subr.bf16.mxu1 %v12139_v33 }
 0x5db   :  { %10246 = vmatpush1.bf16.msra.mxu0 %v12136_v61 }
 0x5dc   :  { %10676 = vmatpush1.bf16.msra.mxu1 %v12138_v62 }
 0x5de   :  { %10264 = vmatmul.mubr.bf16.vlgmr.msra.gmra.mrb[24].mxu0 %v12972_v40 }
 0x5df   :  { %10694 = vmatmul.mubr.bf16.vlgmr.msra.gmra.mrb[24].mxu1 %v12972_v40 }
 0x6b1   :  { %v10265_v8 = vpop.f32.mrb[24].mxu0 }
 0x6b2   :  { %v12177_v9 = vadd.f32 %v10265_v8, %v2883_v63  ;;  %v10695_v14 = vpop.f32.mrb[24].mxu1  ;;  %v10267_v29 = vpop.f32.mrb[25].mxu0 }
 0x6b3   :  { %v12181_v15 = vadd.f32 %v10695_v14, %v2891_v1  ;;  %v12178_v16 = vadd.f32 %v10267_v29, %v2887_v4  ;;  %v10697_v18 = vpop.f32.mrb[25].mxu1  ;;  %v10269_v7 = vpop.f32.mrb[26].mxu0 }
 0x6b4   :  { %v10708_v20 = vmul.f32 0.01, %v12177_v9  ;;  %v12182_v21 = vadd.f32 %v10697_v18, %v2895_v10  ;;  %v12179_v40 = vadd.f32 %v10269_v7, %v2883_v63  ;;  %v10699_v42 = vpop.f32.mrb[26].mxu1  ;;  %v10271_v56 = vpop.f32.mrb[27].mxu0 }
 0x6b5   :  { %v10710_v2 = vmul.f32 0.01, %v12181_v15  ;;  %v10709_v22 = vmul.f32 0.01, %v12178_v16  ;;  %v12183_v36 = vadd.f32 %v10699_v42, %v2891_v1  ;;  %v12180_v23 = vadd.f32 %v10271_v56, %v2887_v4  ;;  %v10701_v5 = vpop.f32.mrb[27].mxu1 }
 0x6b6   :  { %v10724_v24 = vmax.f32 %v12177_v9, %v10708_v20  ;;  %v10711_v46 = vmul.f32 0.01, %v12182_v21  ;;  %v10716_v53 = vmul.f32 0.01, %v12179_v40  ;;  %v12184_v25 = vadd.f32 %v10701_v5, %v2895_v10 }
 0x6b7   :  { %v10726_v13 = vmax.f32 %v12181_v15, %v10710_v2  ;;  %v10725_v28 = vmax.f32 %v12178_v16, %v10709_v22  ;;  %v10718_v30 = vmul.f32 0.01, %v12183_v36  ;;  %v10717_v31 = vmul.f32 0.01, %v12180_v23 }
 0x6b8   :  { %10740 = vst [vmem:[#allocation11 + $0x20] sm:$0xff] %v10724_v24  ;;  %v10727_v3 = vmax.f32 %v12182_v21, %v10711_v46  ;;  %v10732_v26 = vmax.f32 %v12179_v40, %v10716_v53  ;;  %v10719_v27 = vmul.f32 0.01, %v12184_v25 }
 0x6b9   :  { %10742 = vst [vmem:[#allocation11 + $0x30] sm:$0xff] %v10726_v13  ;;  %10741 = vst [vmem:[#allocation11 + $0x28] sm:$0xff] %v10725_v28  ;;  %v10734_v19 = vmax.f32 %v12183_v36, %v10718_v30  ;;  %v10733_v34 = vmax.f32 %v12180_v23, %v10717_v31 }
 0x6ba   :  { %10743 = vst [vmem:[#allocation11 + $0x38] sm:$0xff] %v10727_v3  ;;  %10748 = vst [vmem:[#allocation11 + $0x60] sm:$0xff] %v10732_v26  ;;  %v10735_v32 = vmax.f32 %v12184_v25, %v10719_v27 }
 0x6bb   :  { %10750 = vst [vmem:[#allocation11 + $0x70] sm:$0xff] %v10734_v19  ;;  %10749 = vst [vmem:[#allocation11 + $0x68] sm:$0xff] %v10733_v34 }
 0x6bc   :  { %10751 = vst [vmem:[#allocation11 + $0x78] sm:$0xff] %v10735_v32 }
 0x6bd   :  { %12692 = shalt.err (!%p12689_p2)
}
 0x6be   :  { %s12693_s9 = scalar_lea.hbm %s13082_s5, 2048 }
 0x6bf   :  { %p12694_p3 = scmp.ne.s32.totalorder %s13082_s5, %s12693_s9  ;;  %p12697_p4 = scmp.lt.u32.totalorder %s12693_s9, %s13082_s5 }
 0x6c1   :  { %p12699_p5 = pnand %p12697_p4, %p12694_p3 }
 0x6c3   :  { %12702 = shalt.err (!%p12699_p5)
}
 0x6c4   :  { %s12726_s14 = smov 1024  }
 0x6c5   :  { %10763 = dma.vmem_to_hbm [thread:$0]  %s10758_s30, 2048, %s13082_s5, [#allocation4], %s12726_s14, %s12726_s14, %s12718_s3  }
 0x6c6   :  { %12709 = dma.done.wait [#allocation4], 2048  }
 0x6c7   :  { %12710 = vsyncadd [#allocation4], 4294965248 }
 0x6c8   :  { %10767 = vsyncpa [#allocation3], 1 }
 0x6c9   :  { %10768 = vsyncpa [#allocation6], 1 }
 0x6ca   :  { %10769 = vsyncpa [#allocation9], 1 }
 0x6cb   :  { %10770 = vsyncpa [#allocation4], 1 }

</bundles_post_ra>
